<compile_context>
chip_gen: v7x
topology: tpu7x:2x2x1
jax: 0.10.0
libtpu: 0.0.40
codegen_flags: <defaults>
</compile_context>

<pallas_src>
import functools

import jax
import jax.numpy as jnp
from jax.experimental import pallas as pl
from jax.experimental.pallas import tpu as pltpu

NC = 3          # config.nc
NFEATURE = 8    # config.nfeature
IMG = 64        # spatial size hard-wired by the module
LRELU_SLOPE = 0.2
BN_EPS = 1e-5

_VMEM_SPEC = pl.BlockSpec(memory_space=pltpu.MemorySpace.VMEM)


@functools.lru_cache(maxsize=None)
def _vmem_limit():
    # ~75% of physical VMEM (96 MiB on v5e/v6e's 128 MiB, 48 MiB on v7x's 64 MiB),
    # conservative 48 MiB fallback if the query is unavailable. Raising the limit only
    # relaxes the compile-time check; actual per-call usage here is < 30 MiB.
    try:
        cap = int(pltpu.get_tpu_info().vmem_capacity_bytes)
    except Exception:
        return 48 * 1024 * 1024
    return max(32 * 1024 * 1024, min(cap * 3 // 4, 96 * 1024 * 1024))


def _pick_tile_m(m, target):
    """Largest divisor of m that is a multiple of 16 and <= min(target, m//2).

    Multiples of 16 keep bf16 sublane packing clean; the m//2 cap guarantees >= 2
    grid programs so the 'parallel' axis can be sharded across both TCs on v7x.
    All M values in this network are B*16 * 4^k, so a valid tile always exists and
    the `return m` fallback (single block) is unreachable for supported shapes.
    """
    if m <= 16 or m % 16 != 0:
        return m
    cap = min(target, (m // 2) // 16 * 16)
    cap = max(cap, 16)
    for t in range(cap, 15, -16):
        if m % t == 0:
            return t
    return m


# ---------------------------------------------------------------------------
# Pallas kernels
# ---------------------------------------------------------------------------
def _linear_kernel(x_ref, w_ref, b_ref, o_ref):
    # tiny [B, K] @ [K, N] + [1, N]; per review this layer is launch/DMA dominated,
    # so it is left untouched.
    y = jnp.dot(x_ref[...], w_ref[...], preferred_element_type=jnp.float32)
    o_ref[...] = y + b_ref[...]


def _matmul_kernel(x_ref, w_ref, o_ref, *, use_lrelu):
    # M-tiled im2col matmul (+ optional LeakyReLU). bf16 in, f32 MXU accumulation.
    y = jnp.dot(x_ref[...], w_ref[...], preferred_element_type=jnp.float32)
    if use_lrelu:
        y = jnp.maximum(y, LRELU_SLOPE * y)
    o_ref[...] = y.astype(o_ref.dtype)


def _matmul_stats_kernel(x_ref, w_ref, y_ref, stats_ref):
    # M-tiled matmul emitting per-tile BatchNorm statistics:
    #   stats row 0 = per-channel tile mean, row 1 = per-channel centered sum of
    #   squares (M2). Computed from the f32 accumulator, hidden under MXU work.
    # The conv output itself is stored in bf16 to halve intermediate HBM traffic.
    y = jnp.dot(x_ref[...], w_ref[...], preferred_element_type=jnp.float32)
    y_ref[...] = y.astype(y_ref.dtype)
    mean_t = jnp.mean(y, axis=0, keepdims=True)
    m2_t = jnp.sum((y - mean_t) ** 2, axis=0, keepdims=True)
    # Only rows 0..1 of the (8, N) stats block are meaningful; rows 2..7 are left
    # unwritten on purpose (glue never reads them) — no zero-pad concat/store.
    stats_ref[0:2, :] = jnp.concatenate([mean_t, m2_t], axis=0)


def _bn_lrelu_kernel(y_ref, scale_ref, shift_ref, o_ref):
    # Pre-folded BatchNorm (per-channel scale/shift) + LeakyReLU, M-tiled.
    # bf16 loads/stores, f32 math inside (v5e has no native bf16 VPU path).
    z = y_ref[...].astype(jnp.float32) * scale_ref[...] + shift_ref[...]
    o_ref[...] = jnp.maximum(z, LRELU_SLOPE * z).astype(o_ref.dtype)


def _conv4_kernel(x_ref, scale_ref, shift_ref, w_ref, o_ref):
    # conv4 = Conv(512, 1, 4, 1, 0) on a 4x4 map: one dot product per image.
    # Prologue applies conv3's BatchNorm + LeakyReLU (expanded to K along the
    # (h, w, c) patch ordering) — exact because conv4 has no padding and each
    # input element appears in exactly one patch.  The 1-channel output is a VPU
    # multiply + lane reduction against the real [1, 8192] weight (no zero padding).
    a = x_ref[...].astype(jnp.float32) * scale_ref[...] + shift_ref[...]
    a = jnp.maximum(a, LRELU_SLOPE * a)
    o_ref[...] = jnp.sum(a * w_ref[...], axis=1, keepdims=True)


# ---------------------------------------------------------------------------
# pallas_call wrappers
# ---------------------------------------------------------------------------
def pallas_linear(x, w, b):
    m, _ = x.shape
    n = w.shape[1]
    return pl.pallas_call(
        _linear_kernel,
        out_shape=jax.ShapeDtypeStruct((m, n), jnp.float32),
        in_specs=[_VMEM_SPEC] * 3,
        out_specs=_VMEM_SPEC,
        compiler_params=pltpu.CompilerParams(vmem_limit_bytes=_vmem_limit()),
    )(x, w, b.reshape(1, n))


def pallas_matmul(x, w, *, use_lrelu, out_dtype, target_tm):
    m, k = x.shape
    n = w.shape[1]
    tm = _pick_tile_m(m, target_tm)
    return pl.pallas_call(
        functools.partial(_matmul_kernel, use_lrelu=use_lrelu),
        out_shape=jax.ShapeDtypeStruct((m, n), out_dtype),
        grid=(m // tm,),
        in_specs=[
            pl.BlockSpec((tm, k), lambda i: (i, 0)),   # streamed activation tiles
            pl.BlockSpec((k, n), lambda i: (0, 0)),    # weight resident across M
        ],
        out_specs=pl.BlockSpec((tm, n), lambda i: (i, 0)),
        compiler_params=pltpu.CompilerParams(
            dimension_semantics=("parallel",),
            vmem_limit_bytes=_vmem_limit(),
        ),
    )(x, w)


def pallas_matmul_stats(x, w, *, target_tm):
    """Tiled matmul; returns (y_bf16, channel_mean, channel_var) using batch stats."""
    m, k = x.shape
    n = w.shape[1]
    tm = _pick_tile_m(m, target_tm)
    gm = m // tm
    y, stats = pl.pallas_call(
        _matmul_stats_kernel,
        out_shape=(
            jax.ShapeDtypeStruct((m, n), jnp.bfloat16),      # bf16 intermediate
            jax.ShapeDtypeStruct((gm * 8, n), jnp.float32),  # per-tile (mean, M2)
        ),
        grid=(gm,),
        in_specs=[
            pl.BlockSpec((tm, k), lambda i: (i, 0)),
            pl.BlockSpec((k, n), lambda i: (0, 0)),          # weight resident across M
        ],
        out_specs=(
            pl.BlockSpec((tm, n), lambda i: (i, 0)),
            pl.BlockSpec((8, n), lambda i: (i, 0)),          # per-tile partial stats
        ),
        compiler_params=pltpu.CompilerParams(
            dimension_semantics=("parallel",),
            vmem_limit_bytes=_vmem_limit(),
        ),
    )(x, w)
    # Chan-style combination of equal-sized tiles (numerically robust vs E[x^2]-E[x]^2).
    stats = stats.reshape(gm, 8, n)
    tile_mean = stats[:, 0, :]
    tile_m2 = stats[:, 1, :]
    mean = jnp.mean(tile_mean, axis=0)
    m2 = jnp.sum(tile_m2, axis=0) + tm * jnp.sum((tile_mean - mean) ** 2, axis=0)
    var = m2 / m   # biased variance, as used by BatchNorm's forward normalization
    return y, mean, var


def pallas_bn_lrelu(y, scale, shift, *, out_dtype, target_tm):
    m, n = y.shape
    tm = _pick_tile_m(m, target_tm)
    return pl.pallas_call(
        _bn_lrelu_kernel,
        out_shape=jax.ShapeDtypeStruct((m, n), out_dtype),
        grid=(m // tm,),
        in_specs=[
            pl.BlockSpec((tm, n), lambda i: (i, 0)),
            pl.BlockSpec((1, n), lambda i: (0, 0)),
            pl.BlockSpec((1, n), lambda i: (0, 0)),
        ],
        out_specs=pl.BlockSpec((tm, n), lambda i: (i, 0)),
        compiler_params=pltpu.CompilerParams(
            dimension_semantics=("parallel",),
            vmem_limit_bytes=_vmem_limit(),
        ),
    )(y, scale.reshape(1, n), shift.reshape(1, n))


def pallas_conv4(x, scale_k, shift_k, w_row):
    bsz, k = x.shape
    return pl.pallas_call(
        _conv4_kernel,
        out_shape=jax.ShapeDtypeStruct((bsz, 1), jnp.float32),
        in_specs=[_VMEM_SPEC] * 4,
        out_specs=_VMEM_SPEC,
        compiler_params=pltpu.CompilerParams(vmem_limit_bytes=_vmem_limit()),
    )(x, scale_k, shift_k, w_row)


# ---------------------------------------------------------------------------
# Glue: fused patch extraction + weight layout (no python-loop im2col)
# ---------------------------------------------------------------------------
# TODO(synk): fully fuse patch extraction into the Pallas kernels (pl.ANY + manual
# DMA of NHWC row bands) to avoid materializing the im2col matrices in HBM at all.
def extract_patches(x_nhwc, k, stride, pad):
    b, _, _, c = x_nhwc.shape
    patches = jax.lax.conv_general_dilated_patches(
        x_nhwc,
        filter_shape=(k, k),
        window_strides=(stride, stride),
        padding=((pad, pad), (pad, pad)),
        dimension_numbers=("NHWC", "HWIO", "NHWC"),
    )
    # [B, Ho, Wo, C*k*k] with channel index = c*k*k + i*k + j   (C_in major)
    ho, wo = patches.shape[1], patches.shape[2]
    return patches.reshape(b * ho * wo, c * k * k), (b, ho, wo)


def conv_weight_to_mat(w_oihw):
    # [C_out, C_in, kh, kw] -> [C_in*kh*kw, C_out]  (matches patch channel ordering)
    c_out, c_in, kh, kw = w_oihw.shape
    return jnp.transpose(w_oihw, (1, 2, 3, 0)).reshape(c_in * kh * kw, c_out)


def _check_patch_ordering():
    """One-off f32 check that the im2col ordering matches lax.conv_general_dilated."""
    k1, k2 = jax.random.split(jax.random.PRNGKey(42))
    x = jax.random.normal(k1, (1, 6, 6, 3), jnp.float32)
    w = jax.random.normal(k2, (5, 3, 4, 4), jnp.float32)            # OIHW
    p, (b, ho, wo) = extract_patches(x, 4, 2, 1)
    got = jnp.dot(p, conv_weight_to_mat(w),
                  precision=jax.lax.Precision.HIGHEST).reshape(b, ho, wo, 5)
    ref = jax.lax.conv_general_dilated(
        x, jnp.transpose(w, (2, 3, 1, 0)),                          # HWIO
        window_strides=(2, 2), padding=((1, 1), (1, 1)),
        dimension_numbers=("NHWC", "HWIO", "NHWC"),
        precision=jax.lax.Precision.HIGHEST)
    err = float(jnp.max(jnp.abs(got - ref)))
    assert err < 1e-2, f"im2col ordering mismatch, max err={err}"


# ---------------------------------------------------------------------------
# Parameter construction (deterministic synthetic init)
# ---------------------------------------------------------------------------
def init_params(key):
    keys = jax.random.split(key, 8)
    p = {}
    p["lin_w"] = 0.02 * jax.random.normal(keys[0], (NFEATURE, IMG * IMG), jnp.float32)
    p["lin_b"] = 0.02 * jax.random.normal(keys[1], (IMG * IMG,), jnp.float32)

    # conv0: pack the (64, 64) weight block-diagonally into (128, 128) so two im2col
    # rows are produced as one 128-lane output row (lane-dense loads + stores).
    w0 = 0.02 * jax.random.normal(keys[2], (64, NC + 1, 4, 4), jnp.float32)
    wm0 = conv_weight_to_mat(w0).astype(jnp.bfloat16)               # (64, 64)
    z = jnp.zeros_like(wm0)
    p["conv0_wm"] = jnp.block([[wm0, z], [z, wm0]])                 # (128, 128)

    conv_shapes = [(128, 64, 4, 4), (256, 128, 4, 4), (512, 256, 4, 4)]
    for i, shp in enumerate(conv_shapes, start=1):
        w = 0.02 * jax.random.normal(keys[2 + i], shp, jnp.float32)
        p[f"conv{i}_wm"] = conv_weight_to_mat(w).astype(jnp.bfloat16)

    # conv4: real [1, 8192] weight row in (h, w, c) ordering (no 128-lane zero pad).
    w4 = 0.02 * jax.random.normal(keys[6], (1, 512, 4, 4), jnp.float32)
    p["conv4_w"] = jnp.transpose(w4[0], (1, 2, 0)).reshape(1, 4 * 4 * 512)

    # BatchNorm affine params: PyTorch default init (gamma=1, beta=0), kept in f32.
    for i, ch in zip((1, 2, 3), (128, 256, 512)):
        p[f"bn{i}_gamma"] = jnp.ones((ch,), jnp.float32)
        p[f"bn{i}_beta"] = jnp.zeros((ch,), jnp.float32)
    return p


# ---------------------------------------------------------------------------
# Forward pass
# ---------------------------------------------------------------------------
@jax.jit
def discriminator_forward(params, x_nchw, attr):
    b = x_nchw.shape[0]

    # attr = self.feature_input(attr).view(-1, 1, 64, 64)
    attr_img = pallas_linear(attr, params["lin_w"], params["lin_b"])
    attr_img = attr_img.reshape(b, 1, IMG, IMG)

    # x = torch.cat([x, attr], 1)   (NCHW), then go NHWC / bf16 internally
    x = jnp.concatenate([x_nchw, attr_img], axis=1)
    x = jnp.transpose(x, (0, 2, 3, 1)).astype(jnp.bfloat16)         # NHWC [B,64,64,4]

    # conv0: Conv(4,64,4,2,1) + LeakyReLU (no BN).  The (M,64) patch matrix is viewed
    # as (M/2,128) (row-major free) and multiplied by the block-diagonal weight so the
    # output is 128-lane dense; reshaping back to (B,32,32,64) is also free.
    patches, (bb, ho, wo) = extract_patches(x, 4, 2, 1)
    m0 = patches.shape[0]
    y = pallas_matmul(patches.reshape(m0 // 2, 128), params["conv0_wm"],
                      use_lrelu=True, out_dtype=jnp.bfloat16, target_tm=2048)
    x = y.reshape(bb, ho, wo, 64)

    # conv1 / conv2: Conv + BatchNorm(batch stats) + LeakyReLU.
    # BN+LReLU stays a separate tiled Pallas pass here (bf16 in/out, f32 math): folding
    # it into the next conv's patch prologue would apply BN after zero padding (wrong
    # borders) and repeat the elementwise work 4-16x on the expanded im2col matrix.
    for idx, cout, tgt in ((1, 128, 2048), (2, 256, 1024)):
        patches, (bb, ho, wo) = extract_patches(x, 4, 2, 1)
        y, mean, var = pallas_matmul_stats(patches, params[f"conv{idx}_wm"],
                                           target_tm=tgt)
        scale = params[f"bn{idx}_gamma"] * jax.lax.rsqrt(var + BN_EPS)
        shift = params[f"bn{idx}_beta"] - mean * scale
        yb = pallas_bn_lrelu(y, scale, shift, out_dtype=jnp.bfloat16, target_tm=tgt)
        x = yb.reshape(bb, ho, wo, cout)

    # conv3: Conv(256,512,4,2,1).  Its BatchNorm + LeakyReLU are NOT applied here —
    # they are folded into the conv4 kernel prologue (exact: conv4 has no padding).
    patches, _ = extract_patches(x, 4, 2, 1)
    y3, mean3, var3 = pallas_matmul_stats(patches, params["conv3_wm"], target_tm=512)
    scale3 = params["bn3_gamma"] * jax.lax.rsqrt(var3 + BN_EPS)
    shift3 = params["bn3_beta"] - mean3 * scale3

    # conv4: Conv(512,1,4,1,0).  The 4x4x512 window is one dot per image; "patches"
    # are a free row-major reshape to (h, w, c) ordering, so BN scale/shift are tiled
    # 16x along K to match.  Fused BN + LReLU + VPU reduction inside the kernel.
    x4 = y3.reshape(b, 4 * 4 * 512)
    scale_k = jnp.tile(scale3, 16).reshape(1, -1)
    shift_k = jnp.tile(shift3, 16).reshape(1, -1)
    out = pallas_conv4(x4, scale_k, shift_k, params["conv4_w"])

    # final x is [B, 1, 1, 1] -> view(-1, 1)
    return out.reshape(-1, 1)


if __name__ == "__main__":
    # One-off f32 sanity check of the im2col channel-ordering assumption.
    _check_patch_ordering()

    key = jax.random.PRNGKey(0)
    pkey, xkey, akey = jax.random.split(key, 3)

    params = init_params(pkey)

    B = 2
    x = jax.random.normal(xkey, (B, NC, IMG, IMG), jnp.float32)
    attr = jax.random.normal(akey, (B, NFEATURE), jnp.float32)

    out = discriminator_forward(params, x, attr)
    out = jax.block_until_ready(out)

    assert out.shape == (B, 1), out.shape
    assert bool(jnp.all(jnp.isfinite(out)))
    print("KERNEL_OK")
</pallas_src>

<mosaic_0001>
module attributes {stable_mosaic.version = 11 : i64} {
  func.func @_linear_kernel(%arg0: memref<2x8xf32, #tpu.memory_space<vmem>>, %arg1: memref<8x4096xf32, #tpu.memory_space<vmem>>, %arg2: memref<1x4096xf32, #tpu.memory_space<vmem>>, %arg3: memref<2x4096xf32, #tpu.memory_space<vmem>>) attributes {dimension_semantics = [], scalar_prefetch = 0 : i64, scratch_operands = 0 : i64, tpu.core_type = #tpu.core_type<tc>} {
    %c0 = arith.constant 0 : index
    %c0_0 = arith.constant 0 : index
    %0 = vector.load %arg0[%c0, %c0_0] : memref<2x8xf32, #tpu.memory_space<vmem>>, vector<2x8xf32>
    %c0_1 = arith.constant 0 : index
    %c0_2 = arith.constant 0 : index
    %1 = vector.load %arg1[%c0_1, %c0_2] : memref<8x4096xf32, #tpu.memory_space<vmem>>, vector<8x4096xf32>
    %cst = arith.constant dense<0.000000e+00> : vector<2x4096xf32>
    %2 = tpu.matmul %0, %1, %cst {dimension_numbers = #tpu.dot_dimension_numbers<[1], [0], [0], [1], [0, 0, 1, 1], [], []>} : vector<2x8xf32>, vector<8x4096xf32>, vector<2x4096xf32> -> vector<2x4096xf32>
    %c0_3 = arith.constant 0 : index
    %c0_4 = arith.constant 0 : index
    %3 = vector.load %arg2[%c0_3, %c0_4] : memref<1x4096xf32, #tpu.memory_space<vmem>>, vector<1x4096xf32>
    %4 = vector.broadcast %3 : vector<1x4096xf32> to vector<2x4096xf32>
    %5 = arith.addf %2, %4 : vector<2x4096xf32>
    %c0_5 = arith.constant 0 : index
    %c0_6 = arith.constant 0 : index
    %6 = vector.load %arg3[%c0_5, %c0_6] : memref<2x4096xf32, #tpu.memory_space<vmem>>, vector<2x4096xf32>
    tpu.vector_store %arg3[%c0_5, %c0_6], %5 {strides = array<i32>} : memref<2x4096xf32, #tpu.memory_space<vmem>>, vector<2x4096xf32>,
    return
  }
}

module attributes {stable_mosaic.version = 11 : i64} {
  func.func @_matmul_kernel(%arg0: i32, %arg1: memref<512x128xbf16, #tpu.memory_space<vmem>>, %arg2: memref<128x128xbf16, #tpu.memory_space<vmem>>, %arg3: memref<512x128xbf16, #tpu.memory_space<vmem>>) attributes {dimension_semantics = [#tpu.dimension_semantics<parallel>], iteration_bounds = array<i64: 2>, scalar_prefetch = 0 : i64, scratch_operands = 0 : i64, tpu.core_type = #tpu.core_type<tc>, window_params = [{transform_indices = @transform_0, window_bounds = array<i64: 512, 128>}, {pipeline_mode = #tpu.pipeline_mode<synchronous>, transform_indices = @transform_1, window_bounds = array<i64: 128, 128>}, {transform_indices = @transform_2, window_bounds = array<i64: 512, 128>}]} {
    %c0 = arith.constant 0 : index
    %c0_0 = arith.constant 0 : index
    %0 = vector.load %arg1[%c0, %c0_0] : memref<512x128xbf16, #tpu.memory_space<vmem>>, vector<512x128xbf16>
    %c0_1 = arith.constant 0 : index
    %c0_2 = arith.constant 0 : index
    %1 = vector.load %arg2[%c0_1, %c0_2] : memref<128x128xbf16, #tpu.memory_space<vmem>>, vector<128x128xbf16>
    %cst = arith.constant dense<0.000000e+00> : vector<512x128xf32>
    %2 = tpu.matmul %0, %1, %cst {dimension_numbers = #tpu.dot_dimension_numbers<[1], [0], [0], [1], [0, 0, 1, 1], [], []>} : vector<512x128xbf16>, vector<128x128xbf16>, vector<512x128xf32> -> vector<512x128xf32>
    %cst_3 = arith.constant 2.000000e-01 : f32
    %3 = vector.broadcast %cst_3 : f32 to vector<512x128xf32>
    %4 = arith.mulf %3, %2 : vector<512x128xf32>
    %5 = arith.maximumf %2, %4 : vector<512x128xf32>
    %6 = arith.truncf %5 : vector<512x128xf32> to vector<512x128xbf16>
    %c0_4 = arith.constant 0 : index
    %c0_5 = arith.constant 0 : index
    %7 = vector.load %arg3[%c0_4, %c0_5] : memref<512x128xbf16, #tpu.memory_space<vmem>>, vector<512x128xbf16>
    tpu.vector_store %arg3[%c0_4, %c0_5], %6 {strides = array<i32>} : memref<512x128xbf16, #tpu.memory_space<vmem>>, vector<512x128xbf16>,
    return
  }
  func.func @transform_0(%arg0: i32) -> (i32, i32) {
    %c0_i32 = arith.constant 0 : i32
    %c0_i32_0 = arith.constant 0 : i32
    return %arg0, %c0_i32 : i32, i32
  }
  func.func @transform_1(%arg0: i32) -> (i32, i32) {
    %c0_i32 = arith.constant 0 : i32
    %c0_i32_0 = arith.constant 0 : i32
    %c0_i32_1 = arith.constant 0 : i32
    return %c0_i32, %c0_i32_0 : i32, i32
  }
  func.func @transform_2(%arg0: i32) -> (i32, i32) {
    %c0_i32 = arith.constant 0 : i32
    %c0_i32_0 = arith.constant 0 : i32
    return %arg0, %c0_i32 : i32, i32
  }
}

module attributes {stable_mosaic.version = 11 : i64} {
  func.func @_matmul_stats_kernel(%arg0: i32, %arg1: memref<256x1024xbf16, #tpu.memory_space<vmem>>, %arg2: memref<1024x128xbf16, #tpu.memory_space<vmem>>, %arg3: memref<256x128xbf16, #tpu.memory_space<vmem>>, %arg4: memref<8x128xf32, #tpu.memory_space<vmem>>) attributes {dimension_semantics = [#tpu.dimension_semantics<parallel>], iteration_bounds = array<i64: 2>, scalar_prefetch = 0 : i64, scratch_operands = 0 : i64, tpu.core_type = #tpu.core_type<tc>, window_params = [{transform_indices = @transform_0, window_bounds = array<i64: 256, 1024>}, {pipeline_mode = #tpu.pipeline_mode<synchronous>, transform_indices = @transform_1, window_bounds = array<i64: 1024, 128>}, {transform_indices = @transform_2, window_bounds = array<i64: 256, 128>}, {transform_indices = @transform_3, window_bounds = array<i64: 8, 128>}]} {
    %c0 = arith.constant 0 : index
    %c0_0 = arith.constant 0 : index
    %0 = vector.load %arg1[%c0, %c0_0] : memref<256x1024xbf16, #tpu.memory_space<vmem>>, vector<256x1024xbf16>
    %c0_1 = arith.constant 0 : index
    %c0_2 = arith.constant 0 : index
    %1 = vector.load %arg2[%c0_1, %c0_2] : memref<1024x128xbf16, #tpu.memory_space<vmem>>, vector<1024x128xbf16>
    %cst = arith.constant dense<0.000000e+00> : vector<256x128xf32>
    %2 = tpu.matmul %0, %1, %cst {dimension_numbers = #tpu.dot_dimension_numbers<[1], [0], [0], [1], [0, 0, 1, 1], [], []>} : vector<256x1024xbf16>, vector<1024x128xbf16>, vector<256x128xf32> -> vector<256x128xf32>
    %3 = arith.truncf %2 : vector<256x128xf32> to vector<256x128xbf16>
    %c0_3 = arith.constant 0 : index
    %c0_4 = arith.constant 0 : index
    %4 = vector.load %arg3[%c0_3, %c0_4] : memref<256x128xbf16, #tpu.memory_space<vmem>>, vector<256x128xbf16>
    tpu.vector_store %arg3[%c0_3, %c0_4], %3 {strides = array<i32>} : memref<256x128xbf16, #tpu.memory_space<vmem>>, vector<256x128xbf16>,
    %cst_5 = arith.constant dense<0.000000e+00> : vector<128xf32>
    %5 = vector.multi_reduction <add>, %2, %cst_5 [0] : vector<256x128xf32> to vector<128xf32>
    %6 = vector.shape_cast %5 : vector<128xf32> to vector<1x128xf32>
    %cst_6 = arith.constant 2.560000e+02 : f32
    %7 = vector.broadcast %cst_6 : f32 to vector<1x128xf32>
    %8 = arith.divf %6, %7 : vector<1x128xf32>
    %9 = vector.broadcast %8 : vector<1x128xf32> to vector<256x128xf32>
    %10 = arith.subf %2, %9 : vector<256x128xf32>
    %11 = arith.mulf %10, %10 : vector<256x128xf32>
    %cst_7 = arith.constant dense<0.000000e+00> : vector<128xf32>
    %12 = vector.multi_reduction <add>, %11, %cst_7 [0] : vector<256x128xf32> to vector<128xf32>
    %13 = vector.shape_cast %12 : vector<128xf32> to vector<1x128xf32>
    %14 = tpu.concatenate %8, %13 in 0 : vector<1x128xf32>, vector<1x128xf32> -> vector<2x128xf32>
    %c0_8 = arith.constant 0 : index
    %c0_9 = arith.constant 0 : index
    %15 = vector.load %arg4[%c0_8, %c0_9] : memref<8x128xf32, #tpu.memory_space<vmem>>, vector<2x128xf32>
    tpu.vector_store %arg4[%c0_8, %c0_9], %14 {strides = array<i32>} : memref<8x128xf32, #tpu.memory_space<vmem>>, vector<2x128xf32>,
    return
  }
  func.func @transform_0(%arg0: i32) -> (i32, i32) {
    %c0_i32 = arith.constant 0 : i32
    %c0_i32_0 = arith.constant 0 : i32
    return %arg0, %c0_i32 : i32, i32
  }
  func.func @transform_1(%arg0: i32) -> (i32, i32) {
    %c0_i32 = arith.constant 0 : i32
    %c0_i32_0 = arith.constant 0 : i32
    %c0_i32_1 = arith.constant 0 : i32
    return %c0_i32, %c0_i32_0 : i32, i32
  }
  func.func @transform_2(%arg0: i32) -> (i32, i32) {
    %c0_i32 = arith.constant 0 : i32
    %c0_i32_0 = arith.constant 0 : i32
    return %arg0, %c0_i32 : i32, i32
  }
  func.func @transform_3(%arg0: i32) -> (i32, i32) {
    %c0_i32 = arith.constant 0 : i32
    %c0_i32_0 = arith.constant 0 : i32
    return %arg0, %c0_i32 : i32, i32
  }
}

module attributes {stable_mosaic.version = 11 : i64} {
  func.func @_bn_lrelu_kernel(%arg0: i32, %arg1: memref<256x128xbf16, #tpu.memory_space<vmem>>, %arg2: memref<1x128xf32, #tpu.memory_space<vmem>>, %arg3: memref<1x128xf32, #tpu.memory_space<vmem>>, %arg4: memref<256x128xbf16, #tpu.memory_space<vmem>>) attributes {dimension_semantics = [#tpu.dimension_semantics<parallel>], iteration_bounds = array<i64: 2>, scalar_prefetch = 0 : i64, scratch_operands = 0 : i64, tpu.core_type = #tpu.core_type<tc>, window_params = [{transform_indices = @transform_0, window_bounds = array<i64: 256, 128>}, {pipeline_mode = #tpu.pipeline_mode<synchronous>, transform_indices = @transform_1, window_bounds = array<i64: 1, 128>}, {pipeline_mode = #tpu.pipeline_mode<synchronous>, transform_indices = @transform_2, window_bounds = array<i64: 1, 128>}, {transform_indices = @transform_3, window_bounds = array<i64: 256, 128>}]} {
    %c0 = arith.constant 0 : index
    %c0_0 = arith.constant 0 : index
    %0 = vector.load %arg1[%c0, %c0_0] : memref<256x128xbf16, #tpu.memory_space<vmem>>, vector<256x128xbf16>
    %1 = arith.extf %0 : vector<256x128xbf16> to vector<256x128xf32>
    %c0_1 = arith.constant 0 : index
    %c0_2 = arith.constant 0 : index
    %2 = vector.load %arg2[%c0_1, %c0_2] : memref<1x128xf32, #tpu.memory_space<vmem>>, vector<1x128xf32>
    %3 = vector.broadcast %2 : vector<1x128xf32> to vector<256x128xf32>
    %4 = arith.mulf %1, %3 : vector<256x128xf32>
    %c0_3 = arith.constant 0 : index
    %c0_4 = arith.constant 0 : index
    %5 = vector.load %arg3[%c0_3, %c0_4] : memref<1x128xf32, #tpu.memory_space<vmem>>, vector<1x128xf32>
    %6 = vector.broadcast %5 : vector<1x128xf32> to vector<256x128xf32>
    %7 = arith.addf %4, %6 : vector<256x128xf32>
    %cst = arith.constant 2.000000e-01 : f32
    %8 = vector.broadcast %cst : f32 to vector<256x128xf32>
    %9 = arith.mulf %8, %7 : vector<256x128xf32>
    %10 = arith.maximumf %7, %9 : vector<256x128xf32>
    %11 = arith.truncf %10 : vector<256x128xf32> to vector<256x128xbf16>
    %c0_5 = arith.constant 0 : index
    %c0_6 = arith.constant 0 : index
    %12 = vector.load %arg4[%c0_5, %c0_6] : memref<256x128xbf16, #tpu.memory_space<vmem>>, vector<256x128xbf16>
    tpu.vector_store %arg4[%c0_5, %c0_6], %11 {strides = array<i32>} : memref<256x128xbf16, #tpu.memory_space<vmem>>, vector<256x128xbf16>,
    return
  }
  func.func @transform_0(%arg0: i32) -> (i32, i32) {
    %c0_i32 = arith.constant 0 : i32
    %c0_i32_0 = arith.constant 0 : i32
    return %arg0, %c0_i32 : i32, i32
  }
  func.func @transform_1(%arg0: i32) -> (i32, i32) {
    %c0_i32 = arith.constant 0 : i32
    %c0_i32_0 = arith.constant 0 : i32
    %c0_i32_1 = arith.constant 0 : i32
    return %c0_i32, %c0_i32_0 : i32, i32
  }
  func.func @transform_2(%arg0: i32) -> (i32, i32) {
    %c0_i32 = arith.constant 0 : i32
    %c0_i32_0 = arith.constant 0 : i32
    %c0_i32_1 = arith.constant 0 : i32
    return %c0_i32, %c0_i32_0 : i32, i32
  }
  func.func @transform_3(%arg0: i32) -> (i32, i32) {
    %c0_i32 = arith.constant 0 : i32
    %c0_i32_0 = arith.constant 0 : i32
    return %arg0, %c0_i32 : i32, i32
  }
}

module attributes {stable_mosaic.version = 11 : i64} {
  func.func @_matmul_stats_kernel(%arg0: i32, %arg1: memref<64x2048xbf16, #tpu.memory_space<vmem>>, %arg2: memref<2048x256xbf16, #tpu.memory_space<vmem>>, %arg3: memref<64x256xbf16, #tpu.memory_space<vmem>>, %arg4: memref<8x256xf32, #tpu.memory_space<vmem>>) attributes {dimension_semantics = [#tpu.dimension_semantics<parallel>], iteration_bounds = array<i64: 2>, scalar_prefetch = 0 : i64, scratch_operands = 0 : i64, tpu.core_type = #tpu.core_type<tc>, window_params = [{transform_indices = @transform_0, window_bounds = array<i64: 64, 2048>}, {pipeline_mode = #tpu.pipeline_mode<synchronous>, transform_indices = @transform_1, window_bounds = array<i64: 2048, 256>}, {transform_indices = @transform_2, window_bounds = array<i64: 64, 256>}, {transform_indices = @transform_3, window_bounds = array<i64: 8, 256>}]} {
    %c0 = arith.constant 0 : index
    %c0_0 = arith.constant 0 : index
    %0 = vector.load %arg1[%c0, %c0_0] : memref<64x2048xbf16, #tpu.memory_space<vmem>>, vector<64x2048xbf16>
    %c0_1 = arith.constant 0 : index
    %c0_2 = arith.constant 0 : index
    %1 = vector.load %arg2[%c0_1, %c0_2] : memref<2048x256xbf16, #tpu.memory_space<vmem>>, vector<2048x256xbf16>
    %cst = arith.constant dense<0.000000e+00> : vector<64x256xf32>
    %2 = tpu.matmul %0, %1, %cst {dimension_numbers = #tpu.dot_dimension_numbers<[1], [0], [0], [1], [0, 0, 1, 1], [], []>} : vector<64x2048xbf16>, vector<2048x256xbf16>, vector<64x256xf32> -> vector<64x256xf32>
    %3 = arith.truncf %2 : vector<64x256xf32> to vector<64x256xbf16>
    %c0_3 = arith.constant 0 : index
    %c0_4 = arith.constant 0 : index
    %4 = vector.load %arg3[%c0_3, %c0_4] : memref<64x256xbf16, #tpu.memory_space<vmem>>, vector<64x256xbf16>
    tpu.vector_store %arg3[%c0_3, %c0_4], %3 {strides = array<i32>} : memref<64x256xbf16, #tpu.memory_space<vmem>>, vector<64x256xbf16>,
    %cst_5 = arith.constant dense<0.000000e+00> : vector<256xf32>
    %5 = vector.multi_reduction <add>, %2, %cst_5 [0] : vector<64x256xf32> to vector<256xf32>
    %6 = vector.shape_cast %5 : vector<256xf32> to vector<1x256xf32>
    %cst_6 = arith.constant 6.400000e+01 : f32
    %7 = vector.broadcast %cst_6 : f32 to vector<1x256xf32>
    %8 = arith.divf %6, %7 : vector<1x256xf32>
    %9 = vector.broadcast %8 : vector<1x256xf32> to vector<64x256xf32>
    %10 = arith.subf %2, %9 : vector<64x256xf32>
    %11 = arith.mulf %10, %10 : vector<64x256xf32>
    %cst_7 = arith.constant dense<0.000000e+00> : vector<256xf32>
    %12 = vector.multi_reduction <add>, %11, %cst_7 [0] : vector<64x256xf32> to vector<256xf32>
    %13 = vector.shape_cast %12 : vector<256xf32> to vector<1x256xf32>
    %14 = tpu.concatenate %8, %13 in 0 : vector<1x256xf32>, vector<1x256xf32> -> vector<2x256xf32>
    %c0_8 = arith.constant 0 : index
    %c0_9 = arith.constant 0 : index
    %15 = vector.load %arg4[%c0_8, %c0_9] : memref<8x256xf32, #tpu.memory_space<vmem>>, vector<2x256xf32>
    tpu.vector_store %arg4[%c0_8, %c0_9], %14 {strides = array<i32>} : memref<8x256xf32, #tpu.memory_space<vmem>>, vector<2x256xf32>,
    return
  }
  func.func @transform_0(%arg0: i32) -> (i32, i32) {
    %c0_i32 = arith.constant 0 : i32
    %c0_i32_0 = arith.constant 0 : i32
    return %arg0, %c0_i32 : i32, i32
  }
  func.func @transform_1(%arg0: i32) -> (i32, i32) {
    %c0_i32 = arith.constant 0 : i32
    %c0_i32_0 = arith.constant 0 : i32
    %c0_i32_1 = arith.constant 0 : i32
    return %c0_i32, %c0_i32_0 : i32, i32
  }
  func.func @transform_2(%arg0: i32) -> (i32, i32) {
    %c0_i32 = arith.constant 0 : i32
    %c0_i32_0 = arith.constant 0 : i32
    return %arg0, %c0_i32 : i32, i32
  }
  func.func @transform_3(%arg0: i32) -> (i32, i32) {
    %c0_i32 = arith.constant 0 : i32
    %c0_i32_0 = arith.constant 0 : i32
    return %arg0, %c0_i32 : i32, i32
  }
}

module attributes {stable_mosaic.version = 11 : i64} {
  func.func @_bn_lrelu_kernel(%arg0: i32, %arg1: memref<64x256xbf16, #tpu.memory_space<vmem>>, %arg2: memref<1x256xf32, #tpu.memory_space<vmem>>, %arg3: memref<1x256xf32, #tpu.memory_space<vmem>>, %arg4: memref<64x256xbf16, #tpu.memory_space<vmem>>) attributes {dimension_semantics = [#tpu.dimension_semantics<parallel>], iteration_bounds = array<i64: 2>, scalar_prefetch = 0 : i64, scratch_operands = 0 : i64, tpu.core_type = #tpu.core_type<tc>, window_params = [{transform_indices = @transform_0, window_bounds = array<i64: 64, 256>}, {pipeline_mode = #tpu.pipeline_mode<synchronous>, transform_indices = @transform_1, window_bounds = array<i64: 1, 256>}, {pipeline_mode = #tpu.pipeline_mode<synchronous>, transform_indices = @transform_2, window_bounds = array<i64: 1, 256>}, {transform_indices = @transform_3, window_bounds = array<i64: 64, 256>}]} {
    %c0 = arith.constant 0 : index
    %c0_0 = arith.constant 0 : index
    %0 = vector.load %arg1[%c0, %c0_0] : memref<64x256xbf16, #tpu.memory_space<vmem>>, vector<64x256xbf16>
    %1 = arith.extf %0 : vector<64x256xbf16> to vector<64x256xf32>
    %c0_1 = arith.constant 0 : index
    %c0_2 = arith.constant 0 : index
    %2 = vector.load %arg2[%c0_1, %c0_2] : memref<1x256xf32, #tpu.memory_space<vmem>>, vector<1x256xf32>
    %3 = vector.broadcast %2 : vector<1x256xf32> to vector<64x256xf32>
    %4 = arith.mulf %1, %3 : vector<64x256xf32>
    %c0_3 = arith.constant 0 : index
    %c0_4 = arith.constant 0 : index
    %5 = vector.load %arg3[%c0_3, %c0_4] : memref<1x256xf32, #tpu.memory_space<vmem>>, vector<1x256xf32>
    %6 = vector.broadcast %5 : vector<1x256xf32> to vector<64x256xf32>
    %7 = arith.addf %4, %6 : vector<64x256xf32>
    %cst = arith.constant 2.000000e-01 : f32
    %8 = vector.broadcast %cst : f32 to vector<64x256xf32>
    %9 = arith.mulf %8, %7 : vector<64x256xf32>
    %10 = arith.maximumf %7, %9 : vector<64x256xf32>
    %11 = arith.truncf %10 : vector<64x256xf32> to vector<64x256xbf16>
    %c0_5 = arith.constant 0 : index
    %c0_6 = arith.constant 0 : index
    %12 = vector.load %arg4[%c0_5, %c0_6] : memref<64x256xbf16, #tpu.memory_space<vmem>>, vector<64x256xbf16>
    tpu.vector_store %arg4[%c0_5, %c0_6], %11 {strides = array<i32>} : memref<64x256xbf16, #tpu.memory_space<vmem>>, vector<64x256xbf16>,
    return
  }
  func.func @transform_0(%arg0: i32) -> (i32, i32) {
    %c0_i32 = arith.constant 0 : i32
    %c0_i32_0 = arith.constant 0 : i32
    return %arg0, %c0_i32 : i32, i32
  }
  func.func @transform_1(%arg0: i32) -> (i32, i32) {
    %c0_i32 = arith.constant 0 : i32
    %c0_i32_0 = arith.constant 0 : i32
    %c0_i32_1 = arith.constant 0 : i32
    return %c0_i32, %c0_i32_0 : i32, i32
  }
  func.func @transform_2(%arg0: i32) -> (i32, i32) {
    %c0_i32 = arith.constant 0 : i32
    %c0_i32_0 = arith.constant 0 : i32
    %c0_i32_1 = arith.constant 0 : i32
    return %c0_i32, %c0_i32_0 : i32, i32
  }
  func.func @transform_3(%arg0: i32) -> (i32, i32) {
    %c0_i32 = arith.constant 0 : i32
    %c0_i32_0 = arith.constant 0 : i32
    return %arg0, %c0_i32 : i32, i32
  }
}

module attributes {stable_mosaic.version = 11 : i64} {
  func.func @_matmul_stats_kernel(%arg0: i32, %arg1: memref<16x4096xbf16, #tpu.memory_space<vmem>>, %arg2: memref<4096x512xbf16, #tpu.memory_space<vmem>>, %arg3: memref<16x512xbf16, #tpu.memory_space<vmem>>, %arg4: memref<8x512xf32, #tpu.memory_space<vmem>>) attributes {dimension_semantics = [#tpu.dimension_semantics<parallel>], iteration_bounds = array<i64: 2>, scalar_prefetch = 0 : i64, scratch_operands = 0 : i64, tpu.core_type = #tpu.core_type<tc>, window_params = [{transform_indices = @transform_0, window_bounds = array<i64: 16, 4096>}, {pipeline_mode = #tpu.pipeline_mode<synchronous>, transform_indices = @transform_1, window_bounds = array<i64: 4096, 512>}, {transform_indices = @transform_2, window_bounds = array<i64: 16, 512>}, {transform_indices = @transform_3, window_bounds = array<i64: 8, 512>}]} {
    %c0 = arith.constant 0 : index
    %c0_0 = arith.constant 0 : index
    %0 = vector.load %arg1[%c0, %c0_0] : memref<16x4096xbf16, #tpu.memory_space<vmem>>, vector<16x4096xbf16>
    %c0_1 = arith.constant 0 : index
    %c0_2 = arith.constant 0 : index
    %1 = vector.load %arg2[%c0_1, %c0_2] : memref<4096x512xbf16, #tpu.memory_space<vmem>>, vector<4096x512xbf16>
    %cst = arith.constant dense<0.000000e+00> : vector<16x512xf32>
    %2 = tpu.matmul %0, %1, %cst {dimension_numbers = #tpu.dot_dimension_numbers<[1], [0], [0], [1], [0, 0, 1, 1], [], []>} : vector<16x4096xbf16>, vector<4096x512xbf16>, vector<16x512xf32> -> vector<16x512xf32>
    %3 = arith.truncf %2 : vector<16x512xf32> to vector<16x512xbf16>
    %c0_3 = arith.constant 0 : index
    %c0_4 = arith.constant 0 : index
    %4 = vector.load %arg3[%c0_3, %c0_4] : memref<16x512xbf16, #tpu.memory_space<vmem>>, vector<16x512xbf16>
    tpu.vector_store %arg3[%c0_3, %c0_4], %3 {strides = array<i32>} : memref<16x512xbf16, #tpu.memory_space<vmem>>, vector<16x512xbf16>,
    %cst_5 = arith.constant dense<0.000000e+00> : vector<512xf32>
    %5 = vector.multi_reduction <add>, %2, %cst_5 [0] : vector<16x512xf32> to vector<512xf32>
    %6 = vector.shape_cast %5 : vector<512xf32> to vector<1x512xf32>
    %cst_6 = arith.constant 1.600000e+01 : f32
    %7 = vector.broadcast %cst_6 : f32 to vector<1x512xf32>
    %8 = arith.divf %6, %7 : vector<1x512xf32>
    %9 = vector.broadcast %8 : vector<1x512xf32> to vector<16x512xf32>
    %10 = arith.subf %2, %9 : vector<16x512xf32>
    %11 = arith.mulf %10, %10 : vector<16x512xf32>
    %cst_7 = arith.constant dense<0.000000e+00> : vector<512xf32>
    %12 = vector.multi_reduction <add>, %11, %cst_7 [0] : vector<16x512xf32> to vector<512xf32>
    %13 = vector.shape_cast %12 : vector<512xf32> to vector<1x512xf32>
    %14 = tpu.concatenate %8, %13 in 0 : vector<1x512xf32>, vector<1x512xf32> -> vector<2x512xf32>
    %c0_8 = arith.constant 0 : index
    %c0_9 = arith.constant 0 : index
    %15 = vector.load %arg4[%c0_8, %c0_9] : memref<8x512xf32, #tpu.memory_space<vmem>>, vector<2x512xf32>
    tpu.vector_store %arg4[%c0_8, %c0_9], %14 {strides = array<i32>} : memref<8x512xf32, #tpu.memory_space<vmem>>, vector<2x512xf32>,
    return
  }
  func.func @transform_0(%arg0: i32) -> (i32, i32) {
    %c0_i32 = arith.constant 0 : i32
    %c0_i32_0 = arith.constant 0 : i32
    return %arg0, %c0_i32 : i32, i32
  }
  func.func @transform_1(%arg0: i32) -> (i32, i32) {
    %c0_i32 = arith.constant 0 : i32
    %c0_i32_0 = arith.constant 0 : i32
    %c0_i32_1 = arith.constant 0 : i32
    return %c0_i32, %c0_i32_0 : i32, i32
  }
  func.func @transform_2(%arg0: i32) -> (i32, i32) {
    %c0_i32 = arith.constant 0 : i32
    %c0_i32_0 = arith.constant 0 : i32
    return %arg0, %c0_i32 : i32, i32
  }
  func.func @transform_3(%arg0: i32) -> (i32, i32) {
    %c0_i32 = arith.constant 0 : i32
    %c0_i32_0 = arith.constant 0 : i32
    return %arg0, %c0_i32 : i32, i32
  }
}

module attributes {stable_mosaic.version = 11 : i64} {
  func.func @_conv4_kernel(%arg0: memref<2x8192xbf16, #tpu.memory_space<vmem>>, %arg1: memref<1x8192xf32, #tpu.memory_space<vmem>>, %arg2: memref<1x8192xf32, #tpu.memory_space<vmem>>, %arg3: memref<1x8192xf32, #tpu.memory_space<vmem>>, %arg4: memref<2x1xf32, #tpu.memory_space<vmem>>) attributes {dimension_semantics = [], scalar_prefetch = 0 : i64, scratch_operands = 0 : i64, tpu.core_type = #tpu.core_type<tc>} {
    %c0 = arith.constant 0 : index
    %c0_0 = arith.constant 0 : index
    %0 = vector.load %arg0[%c0, %c0_0] : memref<2x8192xbf16, #tpu.memory_space<vmem>>, vector<2x8192xbf16>
    %1 = arith.extf %0 : vector<2x8192xbf16> to vector<2x8192xf32>
    %c0_1 = arith.constant 0 : index
    %c0_2 = arith.constant 0 : index
    %2 = vector.load %arg1[%c0_1, %c0_2] : memref<1x8192xf32, #tpu.memory_space<vmem>>, vector<1x8192xf32>
    %3 = vector.broadcast %2 : vector<1x8192xf32> to vector<2x8192xf32>
    %4 = arith.mulf %1, %3 : vector<2x8192xf32>
    %c0_3 = arith.constant 0 : index
    %c0_4 = arith.constant 0 : index
    %5 = vector.load %arg2[%c0_3, %c0_4] : memref<1x8192xf32, #tpu.memory_space<vmem>>, vector<1x8192xf32>
    %6 = vector.broadcast %5 : vector<1x8192xf32> to vector<2x8192xf32>
    %7 = arith.addf %4, %6 : vector<2x8192xf32>
    %cst = arith.constant 2.000000e-01 : f32
    %8 = vector.broadcast %cst : f32 to vector<2x8192xf32>
    %9 = arith.mulf %8, %7 : vector<2x8192xf32>
    %10 = arith.maximumf %7, %9 : vector<2x8192xf32>
    %c0_5 = arith.constant 0 : index
    %c0_6 = arith.constant 0 : index
    %11 = vector.load %arg3[%c0_5, %c0_6] : memref<1x8192xf32, #tpu.memory_space<vmem>>, vector<1x8192xf32>
    %12 = vector.broadcast %11 : vector<1x8192xf32> to vector<2x8192xf32>
    %13 = arith.mulf %10, %12 : vector<2x8192xf32>
    %cst_7 = arith.constant dense<0.000000e+00> : vector<2xf32>
    %14 = vector.multi_reduction <add>, %13, %cst_7 [1] : vector<2x8192xf32> to vector<2xf32>
    %15 = vector.shape_cast %14 : vector<2xf32> to vector<2x1xf32>
    %c0_8 = arith.constant 0 : index
    %c0_9 = arith.constant 0 : index
    %16 = vector.load %arg4[%c0_8, %c0_9] : memref<2x1xf32, #tpu.memory_space<vmem>>, vector<2x1xf32>
    tpu.vector_store %arg4[%c0_8, %c0_9], %15 {strides = array<i32>} : memref<2x1xf32, #tpu.memory_space<vmem>>, vector<2x1xf32>,
    return
  }
}

</mosaic_0001>

<bundles_post_ra>
// kernel: discriminator_forward.8
= control target key start
LH: loop header
LB: loop body
LE: loop exit
PB: predicated region body
PF: predicated region fallthrough
CT: control target
= control target key end

     0   :  { %v1561_v3 = vmov 0.0   ;;  %vm215_vm0 = vcmask 64512   ;;  %v55_v34 = vlaneseq  ;;  %v1562_v38 = vmov 1983009808   ;;  %s1844_s1 = inlined_call_operand.vmem [shape: f32[8,4096], index: 1, kind: input, shape index: {}]   ;;  %s1845_s0 = inlined_call_operand.vmem [shape: f32[2,8], index: 0, kind: input, shape index: {}]   ;;  %s1846_s2 = inlined_call_operand.vmem [shape: f32[1,4096], index: 2, kind: input, shape index: {}]   ;;  %s1847_s3 = inlined_call_operand.vmem [shape: f32[2,4096], index: 3, kind: output, shape index: {}]  }
   0x1   :  { %v16_v0 = vld [vmem:[%s1844_s1 + $0x8] sm:$0xff]  ;;  %v18_v1 = vld [vmem:[%s1844_s1 + $0x18] sm:$0xff]  ;;  %v15_v2 = vld [vmem:[%s1844_s1] sm:$0xff]  ;;  %283 = vmatprep.mubr.f32.mxu0 %v1561_v3  ;;  %354 = vmatprep.mubr.f32.mxu1 %v1561_v3  ;;  %v1390_v39 = vunpack.c.l.s4 %v1562_v38 }
   0x2   :  { %219 = vmatprep.subr.mxu0 %v16_v0  ;;  %290 = vmatprep.subr.mxu1 %v18_v1  ;;  %v17_v4 = vld [vmem:[%s1844_s1 + $0x10] sm:$0xff]  ;;  %v1600_v5 = vld [vmem:[%s1845_s0] sm:$0x3]  ;;  %v20_v6 = vld [vmem:[%s1844_s1 + $0x28] sm:$0xff]  ;;  %v56_v35 = vshrl.u32 %v55_v34, 7 }
   0x3   :  { %220 = vmatpush1.msra.mxu0 %v15_v2  ;;  %291 = vmatpush1.msra.mxu1 %v17_v4  ;;  %v22_v7 = vld [vmem:[%s1844_s1 + $0x38] sm:$0xff]  ;;  %v19_v8 = vld [vmem:[%s1844_s1 + $0x20] sm:$0xff]  ;;  %v21_v9 = vld [vmem:[%s1844_s1 + $0x30] sm:$0xff]  ;;  %v1391_v46 = vunpack.c.0.s8 %v1390_v39 }
   0x4   :  { %1543 = vmatmul.mubr.msk.f32.vlgmr.msra.gmra.mrb[0].mxu0 %vm215_vm0, %v1600_v5  ;;  %1544 = vmatmul.mubr.msk.f32.vlgmr.msra.gmra.mrb[0].mxu1 %vm215_vm0, %v1600_v5  ;;  %v24_v10 = vld [vmem:[%s1844_s1 + $0x48] sm:$0xff]  ;;  %v26_v11 = vld [vmem:[%s1844_s1 + $0x58] sm:$0xff]  ;;  %v23_v12 = vld [vmem:[%s1844_s1 + $0x40] sm:$0xff]  ;;  %v1732_v36 = vsub.s32 0, %v56_v35  ;;  %v1734_v37 = vsub.s32 2, %v56_v35  ;;  %v1739_v41 = vsub.s32 1, %v56_v35 }
   0x5   :  { %361 = vmatprep.subr.mxu0 %v20_v6  ;;  %432 = vmatprep.subr.mxu1 %v22_v7  ;;  %v25_v13 = vld [vmem:[%s1844_s1 + $0x50] sm:$0xff]  ;;  %v28_v14 = vld [vmem:[%s1844_s1 + $0x68] sm:$0xff]  ;;  %v30_v15 = vld [vmem:[%s1844_s1 + $0x78] sm:$0xff]  ;;  %v1741_v42 = vsub.s32 3, %v56_v35  ;;  %v1743_v43 = vsub.s32 4, %v56_v35  ;;  %v1747_v47 = vsub.s32 6, %v56_v35  ;;  %v1756_v58 = vsub.s32 %v1391_v46, %v56_v35 }
   0x6   :  { %362 = vmatpush1.msra.mxu0 %v19_v8  ;;  %433 = vmatpush1.msra.mxu1 %v21_v9  ;;  %v27_v16 = vld [vmem:[%s1844_s1 + $0x60] sm:$0xff]  ;;  %v29_v17 = vld [vmem:[%s1844_s1 + $0x70] sm:$0xff]  ;;  %v32_v18 = vld [vmem:[%s1844_s1 + $0x88] sm:$0xff]  ;;  %v1751_v50 = vsub.s32 5, %v56_v35  ;;  %v1753_v51 = vsub.s32 7, %v56_v35 }
   0x7   :  { %425 = vmatprep.mubr.f32.mxu0 %v1561_v3  ;;  %496 = vmatprep.mubr.f32.mxu1 %v1561_v3  ;;  %v34_v19 = vld [vmem:[%s1844_s1 + $0x98] sm:$0xff]  ;;  %v31_v20 = vld [vmem:[%s1844_s1 + $0x80] sm:$0xff]  ;;  %v33_v21 = vld [vmem:[%s1844_s1 + $0x90] sm:$0xff] }
   0x8   :  { %1545 = vmatmul.mubr.msk.f32.vlgmr.msra.gmra.mrb[2].mxu0 %vm215_vm0, %v1600_v5  ;;  %1546 = vmatmul.mubr.msk.f32.vlgmr.msra.gmra.mrb[2].mxu1 %vm215_vm0, %v1600_v5  ;;  %v36_v22 = vld [vmem:[%s1844_s1 + $0xa8] sm:$0xff]  ;;  %v38_v23 = vld [vmem:[%s1844_s1 + $0xb8] sm:$0xff]  ;;  %v35_v24 = vld [vmem:[%s1844_s1 + $0xa0] sm:$0xff] }
   0x9   :  { %503 = vmatprep.subr.mxu0 %v24_v10  ;;  %574 = vmatprep.subr.mxu1 %v26_v11  ;;  %v37_v25 = vld [vmem:[%s1844_s1 + $0xb0] sm:$0xff]  ;;  %v40_v26 = vld [vmem:[%s1844_s1 + $0xc8] sm:$0xff]  ;;  %v42_v27 = vld [vmem:[%s1844_s1 + $0xd8] sm:$0xff] }
   0xa   :  { %504 = vmatpush1.msra.mxu0 %v23_v12  ;;  %575 = vmatpush1.msra.mxu1 %v25_v13  ;;  %v39_v28 = vld [vmem:[%s1844_s1 + $0xc0] sm:$0xff]  ;;  %v41_v29 = vld [vmem:[%s1844_s1 + $0xd0] sm:$0xff]  ;;  %v44_v30 = vld [vmem:[%s1844_s1 + $0xe8] sm:$0xff] }
   0xb   :  { %567 = vmatprep.mubr.f32.mxu0 %v1561_v3  ;;  %638 = vmatprep.mubr.f32.mxu1 %v1561_v3  ;;  %v46_v31 = vld [vmem:[%s1844_s1 + $0xf8] sm:$0xff]  ;;  %v43_v32 = vld [vmem:[%s1844_s1 + $0xe0] sm:$0xff]  ;;  %v45_v33 = vld [vmem:[%s1844_s1 + $0xf0] sm:$0xff] }
   0xc   :  { %1547 = vmatmul.mubr.msk.f32.vlgmr.msra.gmra.mrb[4].mxu0 %vm215_vm0, %v1600_v5  ;;  %1548 = vmatmul.mubr.msk.f32.vlgmr.msra.gmra.mrb[4].mxu1 %vm215_vm0, %v1600_v5  ;;  %v47_v40 = vld [vmem:[%s1846_s2] sm:$0xff]  ;;  %v48_v61 = vld [vmem:[%s1846_s2 + $0x8] sm:$0xff] }
   0xd   :  { %645 = vmatprep.subr.mxu0 %v28_v14  ;;  %716 = vmatprep.subr.mxu1 %v30_v15  ;;  %v58_v44 = vrot.slane %v47_v40, %v1732_v36  ;;  %v66_v45 = vrot.slane %v47_v40, %v1734_v37  ;;  %v62_v48 = vrot.slane %v47_v40, %v1739_v41 }
   0xe   :  { %646 = vmatpush1.msra.mxu0 %v27_v16  ;;  %717 = vmatpush1.msra.mxu1 %v29_v17  ;;  %v70_v49 = vrot.slane %v47_v40, %v1741_v42  ;;  %v74_v54 = vrot.slane %v47_v40, %v1743_v43  ;;  %v82_v60 = vrot.slane %v47_v40, %v1747_v47 }
   0xf   :  { %709 = vmatprep.mubr.f32.mxu0 %v1561_v3  ;;  %780 = vmatprep.mubr.f32.mxu1 %v1561_v3  ;;  %v78_v0 = vrot.slane %v47_v40, %v1751_v50  ;;  %v86_v1 = vrot.slane %v47_v40, %v1753_v51  ;;  %v90_v6 = vrot.slane %v48_v61, %v1732_v36 }
  0x10   :  { %1549 = vmatmul.mubr.msk.f32.vlgmr.msra.gmra.mrb[6].mxu0 %vm215_vm0, %v1600_v5  ;;  %1550 = vmatmul.mubr.msk.f32.vlgmr.msra.gmra.mrb[6].mxu1 %vm215_vm0, %v1600_v5  ;;  %v98_v7 = vrot.slane %v48_v61, %v1734_v37  ;;  %v94_v12 = vrot.slane %v48_v61, %v1739_v41  ;;  %v102_v13 = vrot.slane %v48_v61, %v1741_v42 }
  0x11   :  { %787 = vmatprep.subr.mxu0 %v32_v18  ;;  %858 = vmatprep.subr.mxu1 %v34_v19  ;;  %v106_v18 = vrot.slane %v48_v61, %v1743_v43 }
  0x12   :  { %788 = vmatpush1.msra.mxu0 %v31_v20  ;;  %859 = vmatpush1.msra.mxu1 %v33_v21 }
  0x13   :  { %851 = vmatprep.mubr.f32.mxu0 %v1561_v3  ;;  %922 = vmatprep.mubr.f32.mxu1 %v1561_v3 }
  0x14   :  { %1551 = vmatmul.mubr.msk.f32.vlgmr.msra.gmra.mrb[8].mxu0 %vm215_vm0, %v1600_v5  ;;  %1552 = vmatmul.mubr.msk.f32.vlgmr.msra.gmra.mrb[8].mxu1 %vm215_vm0, %v1600_v5 }
  0x15   :  { %929 = vmatprep.subr.mxu0 %v36_v22  ;;  %1000 = vmatprep.subr.mxu1 %v38_v23 }
  0x16   :  { %930 = vmatpush1.msra.mxu0 %v35_v24  ;;  %1001 = vmatpush1.msra.mxu1 %v37_v25  ;;  %v114_v24 = vrot.slane %v48_v61, %v1747_v47  ;;  %v1775_v25 = vld [vmem:[%s1846_s2 + $0x10] sm:$0xff] }
  0x17   :  { %993 = vmatprep.mubr.f32.mxu0 %v1561_v3  ;;  %1064 = vmatprep.mubr.f32.mxu1 %v1561_v3  ;;  %v122_v38 = vrot.slane %v1775_v25, %v1732_v36 }
  0x18   :  { %1553 = vmatmul.mubr.msk.f32.vlgmr.msra.gmra.mrb[10].mxu0 %vm215_vm0, %v1600_v5  ;;  %1554 = vmatmul.mubr.msk.f32.vlgmr.msra.gmra.mrb[10].mxu1 %vm215_vm0, %v1600_v5 }
  0x19   :  { %1071 = vmatprep.subr.mxu0 %v40_v26  ;;  %1142 = vmatprep.subr.mxu1 %v42_v27 }
  0x1a   :  { %1072 = vmatpush1.msra.mxu0 %v39_v28  ;;  %1143 = vmatpush1.msra.mxu1 %v41_v29 }
  0x1b   :  { %1135 = vmatprep.mubr.f32.mxu0 %v1561_v3  ;;  %1206 = vmatprep.mubr.f32.mxu1 %v1561_v3 }
  0x1c   :  { %1555 = vmatmul.mubr.msk.f32.vlgmr.msra.gmra.mrb[12].mxu0 %vm215_vm0, %v1600_v5  ;;  %1556 = vmatmul.mubr.msk.f32.vlgmr.msra.gmra.mrb[12].mxu1 %vm215_vm0, %v1600_v5 }
  0x1d   :  { %1213 = vmatprep.subr.mxu0 %v44_v30  ;;  %1284 = vmatprep.subr.mxu1 %v46_v31  ;;  %v110_v30 = vrot.slane %v48_v61, %v1751_v50  ;;  %v118_v31 = vrot.slane %v48_v61, %v1753_v51 }
  0x1e   :  { %1214 = vmatpush1.msra.mxu0 %v43_v32  ;;  %1285 = vmatpush1.msra.mxu1 %v45_v33 }
  0x1f   :  { %1277 = vmatprep.mubr.f32.mxu0 %v1561_v3  ;;  %1348 = vmatprep.mubr.f32.mxu1 %v1561_v3 }
  0x20   :  { %1557 = vmatmul.mubr.msk.f32.vlgmr.msra.gmra.mrb[14].mxu0 %vm215_vm0, %v1600_v5  ;;  %1558 = vmatmul.mubr.msk.f32.vlgmr.msra.gmra.mrb[14].mxu1 %vm215_vm0, %v1600_v5 }
  0xd7   :  { %v285_v52 = vpop.f32.mrb[0].mxu0  ;;  %v356_v53 = vpop.f32.mrb[0].mxu1 }
  0xd8   :  { %v286_v55 = vadd.f32 %v285_v52, %v58_v44  ;;  %v357_v56 = vadd.f32 %v356_v53, %v66_v45  ;;  %v287_v57 = vpop.f32.mrb[1].mxu0  ;;  %v358_v59 = vpop.f32.mrb[1].mxu1 }
  0xd9   :  { %v288_v62 = vadd.f32 %v287_v57, %v62_v48  ;;  %v359_v63 = vadd.f32 %v358_v59, %v70_v49  ;;  %v130_v48 = vrot.slane %v1775_v25, %v1734_v37 }
  0xdb   :  { %v1387_v2 = vcombine.low %v286_v55, %v288_v62  ;;  %v1388_v3 = vcombine.low %v357_v56, %v359_v63  ;;  %v427_v4 = vpop.f32.mrb[2].mxu0  ;;  %v498_v5 = vpop.f32.mrb[2].mxu1  ;;  %v126_v55 = vrot.slane %v1775_v25, %v1739_v41  ;;  %v134_v56 = vrot.slane %v1775_v25, %v1741_v42 }
  0xdc   :  { %v428_v8 = vadd.f32 %v427_v4, %v74_v54  ;;  %v499_v9 = vadd.f32 %v498_v5, %v82_v60  ;;  %v429_v10 = vpop.f32.mrb[3].mxu0  ;;  %v500_v11 = vpop.f32.mrb[3].mxu1  ;;  %v138_v62 = vrot.slane %v1775_v25, %v1743_v43  ;;  %v146_v4 = vrot.slane %v1775_v25, %v1747_v47  ;;  %v50_v5 = vld [vmem:[%s1846_s2 + $0x18] sm:$0xff] }
  0xdd   :  { %v1395_v14 = vrot.slane %v1387_v2, %v1756_v58  ;;  %v1402_v15 = vrot.slane %v1388_v3, %v1756_v58  ;;  %v430_v16 = vadd.f32 %v429_v10, %v78_v0  ;;  %v501_v17 = vadd.f32 %v500_v11, %v86_v1 }
  0xde   :  { %v142_v10 = vrot.slane %v1775_v25, %v1751_v50  ;;  %v150_v11 = vrot.slane %v1775_v25, %v1753_v51 }
  0xdf   :  { %v1403_v19 = vcombine.low %v1395_v14, %v1402_v15  ;;  %v1404_v20 = vcombine.low %v428_v8, %v430_v16  ;;  %v1405_v21 = vcombine.low %v499_v9, %v501_v17  ;;  %v569_v22 = vpop.f32.mrb[4].mxu0  ;;  %v640_v23 = vpop.f32.mrb[4].mxu1  ;;  %v154_v16 = vrot.slane %v50_v5, %v1732_v36 }
  0xe0   :  { %v570_v26 = vadd.f32 %v569_v22, %v90_v6  ;;  %v641_v27 = vadd.f32 %v640_v23, %v98_v7  ;;  %v571_v28 = vpop.f32.mrb[5].mxu0  ;;  %v642_v29 = vpop.f32.mrb[5].mxu1  ;;  %v162_v22 = vrot.slane %v50_v5, %v1734_v37  ;;  %v170_v37 = vrot.slane %v50_v5, %v1743_v43 }
  0xe1   :  { %1531 = vst [vmem:[%s1847_s3] sm:$0xff] %v1403_v19  ;;  %v1412_v32 = vrot.slane %v1404_v20, %v1756_v58  ;;  %v1419_v33 = vrot.slane %v1405_v21, %v1756_v58  ;;  %v572_v34 = vadd.f32 %v571_v28, %v94_v12  ;;  %v643_v35 = vadd.f32 %v642_v29, %v102_v13 }
  0xe2   :  { %v166_v28 = vrot.slane %v50_v5, %v1741_v42 }
  0xe3   :  { %v1420_v39 = vcombine.low %v1412_v32, %v1419_v33  ;;  %v1421_v40 = vcombine.low %v570_v26, %v572_v34  ;;  %v1422_v44 = vcombine.low %v641_v27, %v643_v35  ;;  %v711_v45 = vpop.f32.mrb[6].mxu0  ;;  %v782_v46 = vpop.f32.mrb[6].mxu1  ;;  %v158_v27 = vrot.slane %v50_v5, %v1739_v41 }
  0xe4   :  { %v712_v49 = vadd.f32 %v711_v45, %v106_v18  ;;  %v783_v52 = vadd.f32 %v782_v46, %v114_v24  ;;  %v713_v53 = vpop.f32.mrb[7].mxu0  ;;  %v784_v54 = vpop.f32.mrb[7].mxu1  ;;  %v178_v41 = vrot.slane %v50_v5, %v1747_v47  ;;  %v174_v45 = vrot.slane %v50_v5, %v1751_v50 }
  0xe5   :  { %1532 = vst [vmem:[%s1847_s3 + $0x8] sm:$0xff] %v1420_v39  ;;  %v1429_v57 = vrot.slane %v1421_v40, %v1756_v58  ;;  %v1436_v59 = vrot.slane %v1422_v44, %v1756_v58  ;;  %v714_v60 = vadd.f32 %v713_v53, %v110_v30  ;;  %v785_v61 = vadd.f32 %v784_v54, %v118_v31 }
  0xe6   :  { %v182_v46 = vrot.slane %v50_v5, %v1753_v51 }
  0xe7   :  { %v1437_v63 = vcombine.low %v1429_v57, %v1436_v59  ;;  %v1438_v0 = vcombine.low %v712_v49, %v714_v60  ;;  %v1439_v1 = vcombine.low %v783_v52, %v785_v61  ;;  %v853_v2 = vpop.f32.mrb[8].mxu0  ;;  %v924_v3 = vpop.f32.mrb[8].mxu1 }
  0xe8   :  { %v854_v6 = vadd.f32 %v853_v2, %v122_v38  ;;  %v925_v7 = vadd.f32 %v924_v3, %v130_v48  ;;  %v855_v8 = vpop.f32.mrb[9].mxu0  ;;  %v926_v9 = vpop.f32.mrb[9].mxu1 }
  0xe9   :  { %1533 = vst [vmem:[%s1847_s3 + $0x10] sm:$0xff] %v1437_v63  ;;  %v1446_v12 = vrot.slane %v1438_v0, %v1756_v58  ;;  %v1453_v13 = vrot.slane %v1439_v1, %v1756_v58  ;;  %v856_v14 = vadd.f32 %v855_v8, %v126_v55  ;;  %v927_v15 = vadd.f32 %v926_v9, %v134_v56 }
  0xeb   :  { %v1454_v17 = vcombine.low %v1446_v12, %v1453_v13  ;;  %v1455_v18 = vcombine.low %v854_v6, %v856_v14  ;;  %v1456_v19 = vcombine.low %v925_v7, %v927_v15  ;;  %v995_v20 = vpop.f32.mrb[10].mxu0  ;;  %v1066_v21 = vpop.f32.mrb[10].mxu1 }
  0xec   :  { %v996_v23 = vadd.f32 %v995_v20, %v138_v62  ;;  %v1067_v24 = vadd.f32 %v1066_v21, %v146_v4  ;;  %v997_v25 = vpop.f32.mrb[11].mxu0  ;;  %v1068_v26 = vpop.f32.mrb[11].mxu1 }
  0xed   :  { %1534 = vst [vmem:[%s1847_s3 + $0x18] sm:$0xff] %v1454_v17  ;;  %v1463_v36 = vrot.slane %v1455_v18, %v1756_v58  ;;  %v1470_v29 = vrot.slane %v1456_v19, %v1756_v58  ;;  %v998_v30 = vadd.f32 %v997_v25, %v142_v10  ;;  %v1069_v31 = vadd.f32 %v1068_v26, %v150_v11 }
  0xef   :  { %v1471_v32 = vcombine.low %v1463_v36, %v1470_v29  ;;  %v1472_v33 = vcombine.low %v996_v23, %v998_v30  ;;  %v1473_v34 = vcombine.low %v1067_v24, %v1069_v31  ;;  %v1137_v35 = vpop.f32.mrb[12].mxu0  ;;  %v1208_v38 = vpop.f32.mrb[12].mxu1 }
  0xf0   :  { %v1138_v42 = vadd.f32 %v1137_v35, %v154_v16  ;;  %v1209_v39 = vadd.f32 %v1208_v38, %v162_v22  ;;  %v1139_v40 = vpop.f32.mrb[13].mxu0  ;;  %v1210_v44 = vpop.f32.mrb[13].mxu1 }
  0xf1   :  { %1535 = vst [vmem:[%s1847_s3 + $0x20] sm:$0xff] %v1471_v32  ;;  %v1480_v43 = vrot.slane %v1472_v33, %v1756_v58  ;;  %v1487_v48 = vrot.slane %v1473_v34, %v1756_v58  ;;  %v1140_v49 = vadd.f32 %v1139_v40, %v158_v27  ;;  %v1211_v52 = vadd.f32 %v1210_v44, %v166_v28 }
  0xf3   :  { %v1488_v53 = vcombine.low %v1480_v43, %v1487_v48  ;;  %v1489_v47 = vcombine.low %v1138_v42, %v1140_v49  ;;  %v1490_v54 = vcombine.low %v1209_v39, %v1211_v52  ;;  %v1279_v55 = vpop.f32.mrb[14].mxu0  ;;  %v1350_v56 = vpop.f32.mrb[14].mxu1 }
  0xf4   :  { %v1280_v57 = vadd.f32 %v1279_v55, %v170_v37  ;;  %v1351_v59 = vadd.f32 %v1350_v56, %v178_v41  ;;  %v1281_v50 = vpop.f32.mrb[15].mxu0  ;;  %v1352_v60 = vpop.f32.mrb[15].mxu1 }
  0xf5   :  { %1536 = vst [vmem:[%s1847_s3 + $0x28] sm:$0xff] %v1488_v53  ;;  %v1497_v51 = vrot.slane %v1489_v47, %v1756_v58  ;;  %v1504_v61 = vrot.slane %v1490_v54, %v1756_v58  ;;  %v1282_v62 = vadd.f32 %v1281_v50, %v174_v45  ;;  %v1353_v63 = vadd.f32 %v1352_v60, %v182_v46 }
  0xf7   :  { %v1505_v0 = vcombine.low %v1497_v51, %v1504_v61  ;;  %v1506_v1 = vcombine.low %v1280_v57, %v1282_v62  ;;  %v1507_v2 = vcombine.low %v1351_v59, %v1353_v63 }
  0xf9   :  { %1537 = vst [vmem:[%s1847_s3 + $0x30] sm:$0xff] %v1505_v0  ;;  %v1514_v3 = vrot.slane %v1506_v1, %v1756_v58  ;;  %v1521_v4 = vrot.slane %v1507_v2, %v1756_v58 }
  0xfb   :  { %v1522_v5 = vcombine.low %v1514_v3, %v1521_v4 }
  0xfd   :  { %1538 = vst [vmem:[%s1847_s3 + $0x38] sm:$0xff] %v1522_v5 }

// kernel: discriminator_forward.9
= control target key start
LH: loop header
LB: loop body
LE: loop exit
PB: predicated region body
PF: predicated region fallthrough
CT: control target
= control target key end

     0   :  { %s1838_s9 = smov 0   ;;  %s1954_s0 = inlined_call_operand.vmem [shape: bf16[1024,128], index: 0, kind: input, shape index: {}]   ;;  %s1955_s1 = inlined_call_operand.vmem [shape: bf16[128,128], index: 1, kind: input, shape index: {}]   ;;  %s1956_s2 = inlined_call_operand.vmem [shape: bf16[1024,128], index: 2, kind: output, shape index: {}]  }
   0x1 LB: > { %s1261_s10 = sadd.s32 4294967295, %s1821_s9   ;;  %p1265_p0 = scmp.ge.s32.totalorder %s1821_s9, 1  ;;  %s1821_s9 = sphi %s1838_s9, %s12_s9  }
   0x2   : > { %p113_p1 = scmp.lt.s32.totalorder %s1821_s9, 3 }
   0x4   : > { %p114_p2 = pnand %p1265_p0, %p113_p1 }
   0x5   : > { %v1775_v0 = vld [vmem:[%s1955_s1] sm:$0xff] (!%p114_p2)   ;;  %s1266_s13 = sshll.u32 (!%p114_p2), %s1261_s10, 6  ;;  %v1776_v1 = vld [vmem:[%s1955_s1 + $0x8] sm:$0xff] (!%p114_p2)   ;;  %v1777_v2 = vld [vmem:[%s1955_s1 + $0x10] sm:$0xff] (!%p114_p2)  }
   0x6   : > { %117 = sbr.rel (%p114_p2) target bundleno = 317 (0x13d), region = 28  ;;  %p136_p3 = scmp.lt.s32.totalorder (!%p114_p2), %s1266_s13, 127  ;;  %1671 = vmatprep.subr.bf16.mxu0 (!%p114_p2), %v1775_v0  ;;  %1751 = vmatprep.subr.bf16.mxu1 (!%p114_p2), %v1775_v0  ;;  %v1778_v3 = vld [vmem:[%s1955_s1 + $0x18] sm:$0xff] (!%p114_p2)   ;;  %v1779_v6 = vld [vmem:[%s1955_s1 + $0x20] sm:$0xff] (!%p114_p2)   ;;  %v1780_v7 = vld [vmem:[%s1955_s1 + $0x28] sm:$0xff] (!%p114_p2)  }
   0x7   : > { %1672 = vmatpush3.bf16.msra.mxu0 (!%p114_p2), %v1775_v0  ;;  %1759 = vmatpush3.bf16.msra.mxu1 (!%p114_p2), %v1775_v0  ;;  %v1781_v8 = vld [vmem:[%s1955_s1 + $0x30] sm:$0xff] (!%p114_p2)   ;;  %v1782_v9 = vld [vmem:[%s1955_s1 + $0x38] sm:$0xff] (!%p114_p2)  }
   0x8   : > { %1673 = vmatprep.subr.bf16.mxu0 (!%p114_p2), %v1776_v1  ;;  %1752 = vmatprep.subr.bf16.mxu1 (!%p114_p2), %v1776_v1 }
   0xb   : > { %1674 = vmatpush3.bf16.msra.mxu0 (!%p114_p2), %v1776_v1  ;;  %1760 = vmatpush3.bf16.msra.mxu1 (!%p114_p2), %v1776_v1 }
   0xc   : > { %1675 = vmatprep.subr.bf16.mxu0 (!%p114_p2), %v1777_v2  ;;  %1753 = vmatprep.subr.bf16.mxu1 (!%p114_p2), %v1777_v2 }
   0xd   : > { %s1958_s13 = smov (!%p136_p3, %s1266_s13), 127 }
   0xe   : > { %s1267_s18 = sshll.u32 %s1958_s13, 2 }
   0xf   : > { %s1863_s21 = scalar_lea.vmem %s1954_s0, %s1267_s18  ;;  %1676 = vmatpush3.bf16.msra.mxu0 %v1777_v2  ;;  %1761 = vmatpush3.bf16.msra.mxu1 %v1777_v2  ;;  %s1917_s6 = scalar_lea.vmem %s1956_s2, %s1267_s18 }
  0x10   : > { %v1783_v4 = vld [vmem:[%s1863_s21] sm:$0xff]   ;;  %1677 = vmatprep.subr.bf16.mxu0 %v1778_v3  ;;  %1754 = vmatprep.subr.bf16.mxu1 %v1778_v3  ;;  %v1785_v10 = vld [vmem:[%s1863_s21 + $0x8] sm:$0xff]   ;;  %v1787_v12 = vld [vmem:[%s1863_s21 + $0x10] sm:$0xff]  }
  0x11   : > { %v1784_v5 = vld [vmem:[%s1863_s21 + $0x80] sm:$0xff]   ;;  %1687 = vmatprep.mubr.bf16.mxu0 %v1783_v4  ;;  %v1786_v11 = vld [vmem:[%s1863_s21 + $0x88] sm:$0xff]   ;;  %v1788_v13 = vld [vmem:[%s1863_s21 + $0x90] sm:$0xff]  }
  0x12   : > { %1719 = vmatprep.mubr.bf16.mxu1 %v1784_v5  ;;  %v1789_v14 = vld [vmem:[%s1863_s21 + $0x18] sm:$0xff]   ;;  %v1791_v16 = vld [vmem:[%s1863_s21 + $0x20] sm:$0xff]   ;;  %v1793_v18 = vld [vmem:[%s1863_s21 + $0x28] sm:$0xff]  }
  0x13   : > { %1678 = vmatpush3.bf16.msra.mxu0 %v1778_v3  ;;  %1762 = vmatpush3.bf16.msra.mxu1 %v1778_v3  ;;  %v1790_v15 = vld [vmem:[%s1863_s21 + $0x98] sm:$0xff]   ;;  %v1792_v17 = vld [vmem:[%s1863_s21 + $0xa0] sm:$0xff]   ;;  %v1794_v19 = vld [vmem:[%s1863_s21 + $0xa8] sm:$0xff]  }
  0x14   : > { %1679 = vmatprep.subr.bf16.mxu0 %v1779_v6  ;;  %1755 = vmatprep.subr.bf16.mxu1 %v1779_v6  ;;  %v1795_v20 = vld [vmem:[%s1863_s21 + $0x30] sm:$0xff]   ;;  %v1797_v22 = vld [vmem:[%s1863_s21 + $0x38] sm:$0xff]   ;;  %v1799_v24 = vld [vmem:[%s1863_s21 + $0x40] sm:$0xff]  }
  0x15   : > { %v1796_v21 = vld [vmem:[%s1863_s21 + $0xb0] sm:$0xff]   ;;  %v1798_v23 = vld [vmem:[%s1863_s21 + $0xb8] sm:$0xff]   ;;  %v1800_v25 = vld [vmem:[%s1863_s21 + $0xc0] sm:$0xff]  }
  0x16   : > { %v1801_v26 = vld [vmem:[%s1863_s21 + $0x48] sm:$0xff]   ;;  %v1803_v28 = vld [vmem:[%s1863_s21 + $0x50] sm:$0xff]   ;;  %v1805_v30 = vld [vmem:[%s1863_s21 + $0x58] sm:$0xff]  }
  0x17   : > { %1680 = vmatpush3.bf16.msra.mxu0 %v1779_v6  ;;  %1763 = vmatpush3.bf16.msra.mxu1 %v1779_v6  ;;  %v1802_v27 = vld [vmem:[%s1863_s21 + $0xc8] sm:$0xff]   ;;  %v1804_v29 = vld [vmem:[%s1863_s21 + $0xd0] sm:$0xff]   ;;  %v1806_v31 = vld [vmem:[%s1863_s21 + $0xd8] sm:$0xff]  }
  0x18   : > { %1681 = vmatprep.subr.bf16.mxu0 %v1780_v7  ;;  %1756 = vmatprep.subr.bf16.mxu1 %v1780_v7  ;;  %v1807_v32 = vld [vmem:[%s1863_s21 + $0x60] sm:$0xff]   ;;  %v1809_v34 = vld [vmem:[%s1863_s21 + $0x68] sm:$0xff]   ;;  %v1811_v36 = vld [vmem:[%s1863_s21 + $0x70] sm:$0xff]  }
  0x19   : > { %v1808_v33 = vld [vmem:[%s1863_s21 + $0xe0] sm:$0xff]   ;;  %v1810_v35 = vld [vmem:[%s1863_s21 + $0xe8] sm:$0xff]   ;;  %v1812_v37 = vld [vmem:[%s1863_s21 + $0xf0] sm:$0xff]  }
  0x1a   : > { %v1813_v38 = vld [vmem:[%s1863_s21 + $0x78] sm:$0xff]  }
  0x1b   : > { %1682 = vmatpush3.bf16.msra.mxu0 %v1780_v7  ;;  %1764 = vmatpush3.bf16.msra.mxu1 %v1780_v7  ;;  %v1814_v39 = vld [vmem:[%s1863_s21 + $0xf8] sm:$0xff]  }
  0x1c   : > { %1683 = vmatprep.subr.bf16.mxu0 %v1781_v8  ;;  %1757 = vmatprep.subr.bf16.mxu1 %v1781_v8 }
  0x1f   : > { %1684 = vmatpush3.bf16.msra.mxu0 %v1781_v8  ;;  %1765 = vmatpush3.bf16.msra.mxu1 %v1781_v8 }
  0x20   : > { %1685 = vmatprep.subr.bf16.mxu0 %v1782_v9  ;;  %1758 = vmatprep.subr.bf16.mxu1 %v1782_v9 }
  0x23   : > { %1686 = vmatpush3.bf16.msra.mxu0 %v1782_v9  ;;  %1766 = vmatpush3.bf16.msra.mxu1 %v1782_v9 }
  0x26   : > { %1688 = vmatmul.mubr.bf16.vlgmr.msra.gmra.mrb[0].mxu0 %v1785_v10  ;;  %1720 = vmatmul.mubr.bf16.vlgmr.msra.gmra.mrb[0].mxu1 %v1786_v11 }
  0x27   : > { %1691 = vmatprep.mubr.bf16.mxu0 %v1787_v12  ;;  %1723 = vmatprep.mubr.bf16.mxu1 %v1788_v13 }
  0x2e   : > { %1692 = vmatmul.mubr.bf16.gmra.mrb[4].mxu0 %v1789_v14  ;;  %1724 = vmatmul.mubr.bf16.gmra.mrb[4].mxu1 %v1790_v15 }
  0x2f   : > { %1695 = vmatprep.mubr.bf16.mxu0 %v1791_v16  ;;  %1727 = vmatprep.mubr.bf16.mxu1 %v1792_v17 }
  0x36   : > { %1696 = vmatmul.mubr.bf16.gmra.mrb[8].mxu0 %v1793_v18  ;;  %1728 = vmatmul.mubr.bf16.gmra.mrb[8].mxu1 %v1794_v19 }
  0x37   : > { %1699 = vmatprep.mubr.bf16.mxu0 %v1795_v20  ;;  %1731 = vmatprep.mubr.bf16.mxu1 %v1796_v21 }
  0x3e   : > { %1700 = vmatmul.mubr.bf16.gmra.mrb[12].mxu0 %v1797_v22  ;;  %1732 = vmatmul.mubr.bf16.gmra.mrb[12].mxu1 %v1798_v23 }
  0x3f   : > { %1703 = vmatprep.mubr.bf16.mxu0 %v1799_v24  ;;  %1735 = vmatprep.mubr.bf16.mxu1 %v1800_v25 }
  0x46   : > { %1704 = vmatmul.mubr.bf16.gmra.mrb[16].mxu0 %v1801_v26  ;;  %1736 = vmatmul.mubr.bf16.gmra.mrb[16].mxu1 %v1802_v27 }
  0x47   : > { %1707 = vmatprep.mubr.bf16.mxu0 %v1803_v28  ;;  %1739 = vmatprep.mubr.bf16.mxu1 %v1804_v29 }
  0x4e   : > { %1708 = vmatmul.mubr.bf16.gmra.mrb[20].mxu0 %v1805_v30  ;;  %1740 = vmatmul.mubr.bf16.gmra.mrb[20].mxu1 %v1806_v31 }
  0x4f   : > { %1711 = vmatprep.mubr.bf16.mxu0 %v1807_v32  ;;  %1743 = vmatprep.mubr.bf16.mxu1 %v1808_v33 }
  0x56   : > { %1712 = vmatmul.mubr.bf16.gmra.mrb[24].mxu0 %v1809_v34  ;;  %1744 = vmatmul.mubr.bf16.gmra.mrb[24].mxu1 %v1810_v35 }
  0x57   : > { %1715 = vmatprep.mubr.bf16.mxu0 %v1811_v36  ;;  %1747 = vmatprep.mubr.bf16.mxu1 %v1812_v37 }
  0x5e   : > { %1716 = vmatmul.mubr.bf16.gmra.mrb[28].mxu0 %v1813_v38  ;;  %1748 = vmatmul.mubr.bf16.gmra.mrb[28].mxu1 %v1814_v39 }
  0xf9   : > { %v1689_v40 = vpop.f32.mrb[0].mxu0  ;;  %v1721_v41 = vpop.f32.mrb[0].mxu1 }
  0xfa   : > { %v759_v42 = vmul.f32 0.2, %v1689_v40  ;;  %v791_v43 = vmul.f32 0.2, %v1721_v41  ;;  %v502_v44 = vpop.f32.mrb[1].mxu0  ;;  %v630_v45 = vpop.f32.mrb[1].mxu1 }
  0xfb   : > { %v757_v46 = vmul.f32 0.2, %v502_v44  ;;  %v789_v47 = vmul.f32 0.2, %v630_v45  ;;  %v1690_v48 = vpop.f32.mrb[2].mxu0  ;;  %v1722_v49 = vpop.f32.mrb[2].mxu1 }
  0xfc   : > { %v760_v50 = vmul.f32 0.2, %v1690_v48  ;;  %v792_v51 = vmul.f32 0.2, %v1722_v49  ;;  %v505_v52 = vpop.f32.mrb[3].mxu0  ;;  %v633_v53 = vpop.f32.mrb[3].mxu1  ;;  %v823_v56 = vmax.f32 %v1689_v40, %v759_v42  ;;  %v855_v57 = vmax.f32 %v1721_v41, %v791_v43 }
  0xfd   : > { %v758_v54 = vmul.f32 0.2, %v505_v52  ;;  %v790_v55 = vmul.f32 0.2, %v633_v53  ;;  %v821_v60 = vmax.f32 %v502_v44, %v757_v46  ;;  %v853_v61 = vmax.f32 %v630_v45, %v789_v47 }
  0xfe   : > { %v824_v58 = vmax.f32 %v1690_v48, %v760_v50  ;;  %v856_v59 = vmax.f32 %v1722_v49, %v792_v51 }
  0xff   : > { %v822_v62 = vmax.f32 %v505_v52, %v758_v54  ;;  %v854_v63 = vmax.f32 %v633_v53, %v790_v55 }
 0x100   : > { %v1448_v0 = vpack.c.bf16 %v824_v58, %v823_v56  ;;  %v1528_v1 = vpack.c.bf16 %v856_v59, %v855_v57 }
 0x101   : > { %v1443_v2 = vpack.c.bf16 %v822_v62, %v821_v60  ;;  %v1523_v3 = vpack.c.bf16 %v854_v63, %v853_v61  ;;  %v1693_v4 = vpop.f32.mrb[4].mxu0  ;;  %v1725_v5 = vpop.f32.mrb[4].mxu1 }
 0x102   : > { %1600 = vst [vmem:[%s1917_s6 + $0x8] sm:$0xff] %v1448_v0   ;;  %1616 = vst [vmem:[%s1917_s6 + $0x88] sm:$0xff] %v1528_v1   ;;  %v763_v6 = vmul.f32 0.2, %v1693_v4  ;;  %v795_v7 = vmul.f32 0.2, %v1725_v5 }
 0x103   : > { %v518_v8 = vpop.f32.mrb[5].mxu0  ;;  %v646_v9 = vpop.f32.mrb[5].mxu1  ;;  %1444 = vst [vmem:[%s1917_s6] sm:$0xff] %v1443_v2   ;;  %1615 = vst [vmem:[%s1917_s6 + $0x80] sm:$0xff] %v1523_v3  }
 0x104   : > { %v761_v10 = vmul.f32 0.2, %v518_v8  ;;  %v793_v11 = vmul.f32 0.2, %v646_v9  ;;  %v1694_v12 = vpop.f32.mrb[6].mxu0  ;;  %v1726_v13 = vpop.f32.mrb[6].mxu1  ;;  %v827_v20 = vmax.f32 %v1693_v4, %v763_v6  ;;  %v859_v21 = vmax.f32 %v1725_v5, %v795_v7 }
 0x105   : > { %v764_v14 = vmul.f32 0.2, %v1694_v12  ;;  %v796_v15 = vmul.f32 0.2, %v1726_v13  ;;  %v521_v16 = vpop.f32.mrb[7].mxu0  ;;  %v649_v17 = vpop.f32.mrb[7].mxu1 }
 0x106   : > { %v762_v18 = vmul.f32 0.2, %v521_v16  ;;  %v794_v19 = vmul.f32 0.2, %v649_v17  ;;  %v825_v24 = vmax.f32 %v518_v8, %v761_v10  ;;  %v857_v25 = vmax.f32 %v646_v9, %v793_v11 }
 0x107   : > { %v828_v22 = vmax.f32 %v1694_v12, %v764_v14  ;;  %v860_v23 = vmax.f32 %v1726_v13, %v796_v15 }
 0x108   : > { %v826_v26 = vmax.f32 %v521_v16, %v762_v18  ;;  %v858_v27 = vmax.f32 %v649_v17, %v794_v19 }
 0x109   : > { %v1458_v28 = vpack.c.bf16 %v828_v22, %v827_v20  ;;  %v1538_v29 = vpack.c.bf16 %v860_v23, %v859_v21  ;;  %v1697_v32 = vpop.f32.mrb[8].mxu0  ;;  %v1729_v33 = vpop.f32.mrb[8].mxu1 }
 0x10a   : > { %v1453_v30 = vpack.c.bf16 %v826_v26, %v825_v24  ;;  %v1533_v31 = vpack.c.bf16 %v858_v27, %v857_v25  ;;  %v767_v34 = vmul.f32 0.2, %v1697_v32  ;;  %v799_v35 = vmul.f32 0.2, %v1729_v33  ;;  %v534_v36 = vpop.f32.mrb[9].mxu0  ;;  %v662_v37 = vpop.f32.mrb[9].mxu1 }
 0x10b   : > { %1602 = vst [vmem:[%s1917_s6 + $0x18] sm:$0xff] %v1458_v28   ;;  %1618 = vst [vmem:[%s1917_s6 + $0x98] sm:$0xff] %v1538_v29   ;;  %v765_v38 = vmul.f32 0.2, %v534_v36  ;;  %v797_v39 = vmul.f32 0.2, %v662_v37 }
 0x10c   : > { %1601 = vst [vmem:[%s1917_s6 + $0x10] sm:$0xff] %v1453_v30   ;;  %1617 = vst [vmem:[%s1917_s6 + $0x90] sm:$0xff] %v1533_v31   ;;  %v1698_v40 = vpop.f32.mrb[10].mxu0  ;;  %v1730_v41 = vpop.f32.mrb[10].mxu1  ;;  %v831_v48 = vmax.f32 %v1697_v32, %v767_v34  ;;  %v863_v49 = vmax.f32 %v1729_v33, %v799_v35 }
 0x10d   : > { %v768_v42 = vmul.f32 0.2, %v1698_v40  ;;  %v800_v43 = vmul.f32 0.2, %v1730_v41  ;;  %v537_v44 = vpop.f32.mrb[11].mxu0  ;;  %v665_v45 = vpop.f32.mrb[11].mxu1  ;;  %v829_v52 = vmax.f32 %v534_v36, %v765_v38  ;;  %v861_v53 = vmax.f32 %v662_v37, %v797_v39 }
 0x10e   : > { %v766_v46 = vmul.f32 0.2, %v537_v44  ;;  %v798_v47 = vmul.f32 0.2, %v665_v45 }
 0x10f   : > { %v832_v50 = vmax.f32 %v1698_v40, %v768_v42  ;;  %v864_v51 = vmax.f32 %v1730_v41, %v800_v43 }
 0x110   : > { %v830_v54 = vmax.f32 %v537_v44, %v766_v46  ;;  %v862_v55 = vmax.f32 %v665_v45, %v798_v47 }
 0x111   : > { %v1468_v56 = vpack.c.bf16 %v832_v50, %v831_v48  ;;  %v1548_v57 = vpack.c.bf16 %v864_v51, %v863_v49  ;;  %v1701_v60 = vpop.f32.mrb[12].mxu0  ;;  %v1733_v61 = vpop.f32.mrb[12].mxu1 }
 0x112   : > { %v1463_v58 = vpack.c.bf16 %v830_v54, %v829_v52  ;;  %v1543_v59 = vpack.c.bf16 %v862_v55, %v861_v53  ;;  %v771_v62 = vmul.f32 0.2, %v1701_v60  ;;  %v803_v63 = vmul.f32 0.2, %v1733_v61  ;;  %v550_v0 = vpop.f32.mrb[13].mxu0  ;;  %v678_v1 = vpop.f32.mrb[13].mxu1 }
 0x113   : > { %1604 = vst [vmem:[%s1917_s6 + $0x28] sm:$0xff] %v1468_v56   ;;  %1620 = vst [vmem:[%s1917_s6 + $0xa8] sm:$0xff] %v1548_v57   ;;  %v769_v2 = vmul.f32 0.2, %v550_v0  ;;  %v801_v3 = vmul.f32 0.2, %v678_v1 }
 0x114   : > { %1603 = vst [vmem:[%s1917_s6 + $0x20] sm:$0xff] %v1463_v58   ;;  %1619 = vst [vmem:[%s1917_s6 + $0xa0] sm:$0xff] %v1543_v59   ;;  %v1702_v4 = vpop.f32.mrb[14].mxu0  ;;  %v1734_v5 = vpop.f32.mrb[14].mxu1  ;;  %v835_v12 = vmax.f32 %v1701_v60, %v771_v62  ;;  %v867_v13 = vmax.f32 %v1733_v61, %v803_v63 }
 0x115   : > { %v772_v6 = vmul.f32 0.2, %v1702_v4  ;;  %v804_v7 = vmul.f32 0.2, %v1734_v5  ;;  %v553_v8 = vpop.f32.mrb[15].mxu0  ;;  %v681_v9 = vpop.f32.mrb[15].mxu1  ;;  %v833_v16 = vmax.f32 %v550_v0, %v769_v2  ;;  %v865_v17 = vmax.f32 %v678_v1, %v801_v3 }
 0x116   : > { %v770_v10 = vmul.f32 0.2, %v553_v8  ;;  %v802_v11 = vmul.f32 0.2, %v681_v9 }
 0x117   : > { %v836_v14 = vmax.f32 %v1702_v4, %v772_v6  ;;  %v868_v15 = vmax.f32 %v1734_v5, %v804_v7 }
 0x118   : > { %v834_v18 = vmax.f32 %v553_v8, %v770_v10  ;;  %v866_v19 = vmax.f32 %v681_v9, %v802_v11 }
 0x119   : > { %v1478_v20 = vpack.c.bf16 %v836_v14, %v835_v12  ;;  %v1558_v21 = vpack.c.bf16 %v868_v15, %v867_v13  ;;  %v1705_v24 = vpop.f32.mrb[16].mxu0  ;;  %v1737_v25 = vpop.f32.mrb[16].mxu1 }
 0x11a   : > { %v1473_v22 = vpack.c.bf16 %v834_v18, %v833_v16  ;;  %v1553_v23 = vpack.c.bf16 %v866_v19, %v865_v17  ;;  %v775_v26 = vmul.f32 0.2, %v1705_v24  ;;  %v807_v27 = vmul.f32 0.2, %v1737_v25  ;;  %v566_v28 = vpop.f32.mrb[17].mxu0  ;;  %v694_v29 = vpop.f32.mrb[17].mxu1 }
 0x11b   : > { %1606 = vst [vmem:[%s1917_s6 + $0x38] sm:$0xff] %v1478_v20   ;;  %1622 = vst [vmem:[%s1917_s6 + $0xb8] sm:$0xff] %v1558_v21   ;;  %v773_v30 = vmul.f32 0.2, %v566_v28  ;;  %v805_v31 = vmul.f32 0.2, %v694_v29 }
 0x11c   : > { %1605 = vst [vmem:[%s1917_s6 + $0x30] sm:$0xff] %v1473_v22   ;;  %1621 = vst [vmem:[%s1917_s6 + $0xb0] sm:$0xff] %v1553_v23   ;;  %v1706_v32 = vpop.f32.mrb[18].mxu0  ;;  %v1738_v33 = vpop.f32.mrb[18].mxu1  ;;  %v839_v40 = vmax.f32 %v1705_v24, %v775_v26  ;;  %v871_v41 = vmax.f32 %v1737_v25, %v807_v27 }
 0x11d   : > { %v776_v34 = vmul.f32 0.2, %v1706_v32  ;;  %v808_v35 = vmul.f32 0.2, %v1738_v33  ;;  %v569_v36 = vpop.f32.mrb[19].mxu0  ;;  %v697_v37 = vpop.f32.mrb[19].mxu1  ;;  %v837_v44 = vmax.f32 %v566_v28, %v773_v30  ;;  %v869_v45 = vmax.f32 %v694_v29, %v805_v31 }
 0x11e   : > { %v774_v38 = vmul.f32 0.2, %v569_v36  ;;  %v806_v39 = vmul.f32 0.2, %v697_v37 }
 0x11f   : > { %v840_v42 = vmax.f32 %v1706_v32, %v776_v34  ;;  %v872_v43 = vmax.f32 %v1738_v33, %v808_v35 }
 0x120   : > { %v838_v46 = vmax.f32 %v569_v36, %v774_v38  ;;  %v870_v47 = vmax.f32 %v697_v37, %v806_v39 }
 0x121   : > { %v1488_v48 = vpack.c.bf16 %v840_v42, %v839_v40  ;;  %v1568_v49 = vpack.c.bf16 %v872_v43, %v871_v41  ;;  %v1709_v52 = vpop.f32.mrb[20].mxu0  ;;  %v1741_v53 = vpop.f32.mrb[20].mxu1 }
 0x122   : > { %v1483_v50 = vpack.c.bf16 %v838_v46, %v837_v44  ;;  %v1563_v51 = vpack.c.bf16 %v870_v47, %v869_v45  ;;  %v779_v54 = vmul.f32 0.2, %v1709_v52  ;;  %v811_v55 = vmul.f32 0.2, %v1741_v53  ;;  %v582_v56 = vpop.f32.mrb[21].mxu0  ;;  %v710_v57 = vpop.f32.mrb[21].mxu1 }
 0x123   : > { %1608 = vst [vmem:[%s1917_s6 + $0x48] sm:$0xff] %v1488_v48   ;;  %1624 = vst [vmem:[%s1917_s6 + $0xc8] sm:$0xff] %v1568_v49   ;;  %v777_v58 = vmul.f32 0.2, %v582_v56  ;;  %v809_v59 = vmul.f32 0.2, %v710_v57 }
 0x124   : > { %1607 = vst [vmem:[%s1917_s6 + $0x40] sm:$0xff] %v1483_v50   ;;  %1623 = vst [vmem:[%s1917_s6 + $0xc0] sm:$0xff] %v1563_v51   ;;  %v1710_v60 = vpop.f32.mrb[22].mxu0  ;;  %v1742_v61 = vpop.f32.mrb[22].mxu1  ;;  %v843_v4 = vmax.f32 %v1709_v52, %v779_v54  ;;  %v875_v5 = vmax.f32 %v1741_v53, %v811_v55 }
 0x125   : > { %v780_v62 = vmul.f32 0.2, %v1710_v60  ;;  %v812_v63 = vmul.f32 0.2, %v1742_v61  ;;  %v585_v0 = vpop.f32.mrb[23].mxu0  ;;  %v713_v1 = vpop.f32.mrb[23].mxu1  ;;  %v841_v8 = vmax.f32 %v582_v56, %v777_v58  ;;  %v873_v9 = vmax.f32 %v710_v57, %v809_v59 }
 0x126   : > { %v778_v2 = vmul.f32 0.2, %v585_v0  ;;  %v810_v3 = vmul.f32 0.2, %v713_v1 }
 0x127   : > { %v844_v6 = vmax.f32 %v1710_v60, %v780_v62  ;;  %v876_v7 = vmax.f32 %v1742_v61, %v812_v63 }
 0x128   : > { %v842_v10 = vmax.f32 %v585_v0, %v778_v2  ;;  %v874_v11 = vmax.f32 %v713_v1, %v810_v3 }
 0x129   : > { %v1498_v12 = vpack.c.bf16 %v844_v6, %v843_v4  ;;  %v1578_v13 = vpack.c.bf16 %v876_v7, %v875_v5  ;;  %v1713_v16 = vpop.f32.mrb[24].mxu0  ;;  %v1745_v17 = vpop.f32.mrb[24].mxu1 }
 0x12a   : > { %v1493_v14 = vpack.c.bf16 %v842_v10, %v841_v8  ;;  %v1573_v15 = vpack.c.bf16 %v874_v11, %v873_v9  ;;  %v783_v18 = vmul.f32 0.2, %v1713_v16  ;;  %v815_v19 = vmul.f32 0.2, %v1745_v17  ;;  %v598_v20 = vpop.f32.mrb[25].mxu0  ;;  %v726_v21 = vpop.f32.mrb[25].mxu1 }
 0x12b   : > { %1610 = vst [vmem:[%s1917_s6 + $0x58] sm:$0xff] %v1498_v12   ;;  %1626 = vst [vmem:[%s1917_s6 + $0xd8] sm:$0xff] %v1578_v13   ;;  %v781_v22 = vmul.f32 0.2, %v598_v20  ;;  %v813_v23 = vmul.f32 0.2, %v726_v21 }
 0x12c   : > { %1609 = vst [vmem:[%s1917_s6 + $0x50] sm:$0xff] %v1493_v14   ;;  %1625 = vst [vmem:[%s1917_s6 + $0xd0] sm:$0xff] %v1573_v15   ;;  %v1714_v24 = vpop.f32.mrb[26].mxu0  ;;  %v1746_v25 = vpop.f32.mrb[26].mxu1  ;;  %v847_v32 = vmax.f32 %v1713_v16, %v783_v18  ;;  %v879_v33 = vmax.f32 %v1745_v17, %v815_v19 }
 0x12d   : > { %v784_v26 = vmul.f32 0.2, %v1714_v24  ;;  %v816_v27 = vmul.f32 0.2, %v1746_v25  ;;  %v601_v28 = vpop.f32.mrb[27].mxu0  ;;  %v729_v29 = vpop.f32.mrb[27].mxu1  ;;  %v845_v36 = vmax.f32 %v598_v20, %v781_v22  ;;  %v877_v37 = vmax.f32 %v726_v21, %v813_v23 }
 0x12e   : > { %v782_v30 = vmul.f32 0.2, %v601_v28  ;;  %v814_v31 = vmul.f32 0.2, %v729_v29 }
 0x12f   : > { %v848_v34 = vmax.f32 %v1714_v24, %v784_v26  ;;  %v880_v35 = vmax.f32 %v1746_v25, %v816_v27 }
 0x130   : > { %v846_v38 = vmax.f32 %v601_v28, %v782_v30  ;;  %v878_v39 = vmax.f32 %v729_v29, %v814_v31 }
 0x131   : > { %v1508_v40 = vpack.c.bf16 %v848_v34, %v847_v32  ;;  %v1588_v41 = vpack.c.bf16 %v880_v35, %v879_v33  ;;  %v1717_v44 = vpop.f32.mrb[28].mxu0  ;;  %v1749_v45 = vpop.f32.mrb[28].mxu1 }
 0x132   : > { %v1503_v42 = vpack.c.bf16 %v846_v38, %v845_v36  ;;  %v1583_v43 = vpack.c.bf16 %v878_v39, %v877_v37  ;;  %v787_v46 = vmul.f32 0.2, %v1717_v44  ;;  %v819_v47 = vmul.f32 0.2, %v1749_v45  ;;  %v614_v48 = vpop.f32.mrb[29].mxu0  ;;  %v742_v49 = vpop.f32.mrb[29].mxu1 }
 0x133   : > { %1612 = vst [vmem:[%s1917_s6 + $0x68] sm:$0xff] %v1508_v40   ;;  %1628 = vst [vmem:[%s1917_s6 + $0xe8] sm:$0xff] %v1588_v41   ;;  %v785_v50 = vmul.f32 0.2, %v614_v48  ;;  %v817_v51 = vmul.f32 0.2, %v742_v49 }
 0x134   : > { %1611 = vst [vmem:[%s1917_s6 + $0x60] sm:$0xff] %v1503_v42   ;;  %1627 = vst [vmem:[%s1917_s6 + $0xe0] sm:$0xff] %v1583_v43   ;;  %v1718_v52 = vpop.f32.mrb[30].mxu0  ;;  %v1750_v53 = vpop.f32.mrb[30].mxu1  ;;  %v851_v60 = vmax.f32 %v1717_v44, %v787_v46  ;;  %v883_v61 = vmax.f32 %v1749_v45, %v819_v47 }
 0x135   : > { %v788_v54 = vmul.f32 0.2, %v1718_v52  ;;  %v820_v55 = vmul.f32 0.2, %v1750_v53  ;;  %v617_v56 = vpop.f32.mrb[31].mxu0  ;;  %v745_v57 = vpop.f32.mrb[31].mxu1  ;;  %v849_v0 = vmax.f32 %v614_v48, %v785_v50  ;;  %v881_v1 = vmax.f32 %v742_v49, %v817_v51 }
 0x136   : > { %v786_v58 = vmul.f32 0.2, %v617_v56  ;;  %v818_v59 = vmul.f32 0.2, %v745_v57 }
 0x137   : > { %v852_v62 = vmax.f32 %v1718_v52, %v788_v54  ;;  %v884_v63 = vmax.f32 %v1750_v53, %v820_v55 }
 0x138   : > { %v850_v2 = vmax.f32 %v617_v56, %v786_v58  ;;  %v882_v3 = vmax.f32 %v745_v57, %v818_v59 }
 0x139   : > { %v1518_v4 = vpack.c.bf16 %v852_v62, %v851_v60  ;;  %v1598_v5 = vpack.c.bf16 %v884_v63, %v883_v61 }
 0x13a   : > { %v1513_v6 = vpack.c.bf16 %v850_v2, %v849_v0  ;;  %v1593_v7 = vpack.c.bf16 %v882_v3, %v881_v1 }
 0x13b   : > { %1614 = vst [vmem:[%s1917_s6 + $0x78] sm:$0xff] %v1518_v4   ;;  %1630 = vst [vmem:[%s1917_s6 + $0xf8] sm:$0xff] %v1598_v5  }
 0x13c   : > { %1613 = vst [vmem:[%s1917_s6 + $0x70] sm:$0xff] %v1513_v6   ;;  %1629 = vst [vmem:[%s1917_s6 + $0xf0] sm:$0xff] %v1593_v7  }
 0x13d PF: > { %s12_s9 = sadd.s32 1, %s1821_s9  }
 0x13e   : > { %p9_p4 = scmp.ge.s32.totalorder %s12_s9, 4  }
 0x140   :  { %11 = sbr.rel (!%p9_p4) target bundleno = 1 (0x1), region = 58 }

// kernel: discriminator_forward.11
= control target key start
LH: loop header
LB: loop body
LE: loop exit
PB: predicated region body
PF: predicated region fallthrough
CT: control target
= control target key end

     0   :  { %s883_s12 = smov 0   ;;  %s1017_s0 = inlined_call_operand.vmem [shape: bf16[512,128], index: 0, kind: input, shape index: {}]   ;;  %s1018_s1 = inlined_call_operand.vmem [shape: f32[1,128], index: 1, kind: input, shape index: {}]   ;;  %s1019_s2 = inlined_call_operand.vmem [shape: f32[1,128], index: 2, kind: input, shape index: {}]   ;;  %s1020_s3 = inlined_call_operand.vmem [shape: bf16[512,128], index: 3, kind: output, shape index: {}]  }
   0x1 LB: > { %s596_s13 = sadd.s32 4294967295, %s861_s12   ;;  %p600_p0 = scmp.ge.s32.totalorder %s861_s12, 1  ;;  %s861_s12 = sphi %s883_s12, %s13_s12  }
   0x2   : > { %p138_p1 = scmp.lt.s32.totalorder %s861_s12, 3 }
   0x4   : > { %p139_p2 = pnand %p600_p0, %p138_p1 }
   0x5   : > { %s601_s14 = sshll.u32 (!%p139_p2), %s596_s13, 5  ;;  %v904_v0 = vld [vmem:[%s1018_s1] ss:$0 sm:$0xff] (!%p139_p2) }
   0x6   : > { %142 = sbr.rel (%p139_p2) target bundleno = 68 (0x44), region = 32  ;;  %p163_p3 = scmp.lt.s32.totalorder (!%p139_p2), %s601_s14, 63  ;;  %v913_v9 = vld [vmem:[%s1019_s2] ss:$0 sm:$0xff] (!%p139_p2) }
   0xd   : > { %s1022_s14 = smov (!%p163_p3, %s601_s14), 63 }
   0xe   : > { %s602_s15 = sshll.u32 %s1022_s14, 2 }
   0xf   : > { %s899_s18 = scalar_lea.vmem %s1017_s0, %s602_s15  ;;  %s938_s25 = scalar_lea.vmem %s1020_s3, %s602_s15 }
  0x10   : > { %v674_v1 = vld [vmem:[%s899_s18] sm:$0xff]   ;;  %v817_v2 = vld [vmem:[%s899_s18 + $0x8] sm:$0xff]   ;;  %v818_v3 = vld [vmem:[%s899_s18 + $0x10] sm:$0xff]  }
  0x11   : > { %v675_v4 = vunpack.c.l.bf16 %v674_v1  ;;  %v676_v5 = vunpack.c.h.bf16 %v674_v1  ;;  %v679_v6 = vunpack.c.l.bf16 %v817_v2  ;;  %v680_v7 = vunpack.c.h.bf16 %v817_v2  ;;  %v819_v8 = vld [vmem:[%s899_s18 + $0x18] sm:$0xff]   ;;  %v820_v22 = vld [vmem:[%s899_s18 + $0x20] sm:$0xff]   ;;  %v821_v43 = vld [vmem:[%s899_s18 + $0x28] sm:$0xff]  }
  0x12   : > { %v683_v10 = vunpack.c.l.bf16 %v818_v3  ;;  %v684_v11 = vunpack.c.h.bf16 %v818_v3  ;;  %v687_v12 = vunpack.c.l.bf16 %v819_v8  ;;  %v688_v13 = vunpack.c.h.bf16 %v819_v8  ;;  %v822_v48 = vld [vmem:[%s899_s18 + $0x30] sm:$0xff]   ;;  %v823_v53 = vld [vmem:[%s899_s18 + $0x38] sm:$0xff]  }
  0x13   : > { %v245_v14 = vmul.f32 %v675_v4, %v904_v0  ;;  %v246_v15 = vmul.f32 %v676_v5, %v904_v0  ;;  %v247_v16 = vmul.f32 %v679_v6, %v904_v0  ;;  %v248_v17 = vmul.f32 %v680_v7, %v904_v0 }
  0x14   : > { %v249_v18 = vmul.f32 %v683_v10, %v904_v0  ;;  %v250_v19 = vmul.f32 %v684_v11, %v904_v0  ;;  %v251_v20 = vmul.f32 %v687_v12, %v904_v0  ;;  %v252_v21 = vmul.f32 %v688_v13, %v904_v0  ;;  %v824_v12 = vld [vmem:[%s899_s18 + $0x40] sm:$0xff]  }
  0x15   : > { %v284_v23 = vadd.f32 %v913_v9, %v245_v14  ;;  %v285_v24 = vadd.f32 %v913_v9, %v246_v15  ;;  %v286_v25 = vadd.f32 %v913_v9, %v247_v16  ;;  %v287_v26 = vadd.f32 %v913_v9, %v248_v17 }
  0x16   : > { %v288_v27 = vadd.f32 %v913_v9, %v249_v18  ;;  %v289_v28 = vadd.f32 %v913_v9, %v250_v19  ;;  %v290_v29 = vadd.f32 %v913_v9, %v251_v20  ;;  %v291_v30 = vadd.f32 %v913_v9, %v252_v21 }
  0x17   : > { %v316_v31 = vmul.f32 0.2, %v284_v23  ;;  %v317_v32 = vmul.f32 0.2, %v285_v24  ;;  %v318_v33 = vmul.f32 0.2, %v286_v25  ;;  %v691_v34 = vunpack.c.l.bf16 %v820_v22 }
  0x18   : > { %v319_v35 = vmul.f32 0.2, %v287_v26  ;;  %v320_v36 = vmul.f32 0.2, %v288_v27  ;;  %v321_v37 = vmul.f32 0.2, %v289_v28  ;;  %v692_v38 = vunpack.c.h.bf16 %v820_v22 }
  0x19   : > { %v348_v39 = vmax.f32 %v284_v23, %v316_v31  ;;  %v349_v40 = vmax.f32 %v285_v24, %v317_v32  ;;  %v350_v41 = vmax.f32 %v286_v25, %v318_v33  ;;  %v322_v42 = vmul.f32 0.2, %v290_v29  ;;  %v825_v25 = vld [vmem:[%s899_s18 + $0x48] sm:$0xff]  }
  0x1a   : > { %v351_v44 = vmax.f32 %v287_v26, %v319_v35  ;;  %v352_v45 = vmax.f32 %v288_v27, %v320_v36  ;;  %v353_v46 = vmax.f32 %v289_v28, %v321_v37  ;;  %v323_v47 = vmul.f32 0.2, %v291_v30 }
  0x1b   : > { %v740_v49 = vpack.c.bf16 %v349_v40, %v348_v39  ;;  %v354_v50 = vmax.f32 %v290_v29, %v322_v42  ;;  %v253_v51 = vmul.f32 %v691_v34, %v904_v0  ;;  %v254_v52 = vmul.f32 %v692_v38, %v904_v0  ;;  %v826_v34 = vld [vmem:[%s899_s18 + $0x50] sm:$0xff]  }
  0x1c   : > { %v745_v54 = vpack.c.bf16 %v351_v44, %v350_v41  ;;  %v750_v55 = vpack.c.bf16 %v353_v46, %v352_v45  ;;  %v355_v56 = vmax.f32 %v291_v30, %v323_v47  ;;  %v695_v57 = vunpack.c.l.bf16 %v821_v43 }
  0x1d   : > { %741 = vst [vmem:[%s938_s25] sm:$0xff] %v740_v49   ;;  %v292_v58 = vadd.f32 %v913_v9, %v253_v51  ;;  %v293_v59 = vadd.f32 %v913_v9, %v254_v52  ;;  %v696_v60 = vunpack.c.h.bf16 %v821_v43  ;;  %v699_v61 = vunpack.c.l.bf16 %v822_v48  ;;  %v827_v43 = vld [vmem:[%s899_s18 + $0x58] sm:$0xff]  }
  0x1e   : > { %832 = vst [vmem:[%s938_s25 + $0x8] sm:$0xff] %v745_v54   ;;  %833 = vst [vmem:[%s938_s25 + $0x10] sm:$0xff] %v750_v55   ;;  %v755_v62 = vpack.c.bf16 %v355_v56, %v354_v50  ;;  %v255_v63 = vmul.f32 %v695_v57, %v904_v0  ;;  %v700_v1 = vunpack.c.h.bf16 %v822_v48  ;;  %v703_v2 = vunpack.c.l.bf16 %v823_v53  ;;  %v828_v56 = vld [vmem:[%s899_s18 + $0x60] sm:$0xff]  }
  0x1f   : > { %v324_v3 = vmul.f32 0.2, %v292_v58  ;;  %v325_v4 = vmul.f32 0.2, %v293_v59  ;;  %v256_v5 = vmul.f32 %v696_v60, %v904_v0  ;;  %v257_v6 = vmul.f32 %v699_v61, %v904_v0 }
  0x20   : > { %834 = vst [vmem:[%s938_s25 + $0x18] sm:$0xff] %v755_v62   ;;  %v294_v7 = vadd.f32 %v913_v9, %v255_v63  ;;  %v258_v8 = vmul.f32 %v700_v1, %v904_v0  ;;  %v704_v10 = vunpack.c.h.bf16 %v823_v53  ;;  %v259_v11 = vmul.f32 %v703_v2, %v904_v0 }
  0x21   : > { %v356_v13 = vmax.f32 %v292_v58, %v324_v3  ;;  %v357_v14 = vmax.f32 %v293_v59, %v325_v4  ;;  %v295_v15 = vadd.f32 %v913_v9, %v256_v5  ;;  %v296_v16 = vadd.f32 %v913_v9, %v257_v6 }
  0x22   : > { %v326_v17 = vmul.f32 0.2, %v294_v7  ;;  %v297_v18 = vadd.f32 %v913_v9, %v258_v8  ;;  %v260_v19 = vmul.f32 %v704_v10, %v904_v0  ;;  %v298_v20 = vadd.f32 %v913_v9, %v259_v11  ;;  %v829_v11 = vld [vmem:[%s899_s18 + $0x68] sm:$0xff]  }
  0x23   : > { %v760_v21 = vpack.c.bf16 %v357_v14, %v356_v13  ;;  %v327_v22 = vmul.f32 0.2, %v295_v15  ;;  %v328_v23 = vmul.f32 0.2, %v296_v16  ;;  %v707_v24 = vunpack.c.l.bf16 %v824_v12 }
  0x24   : > { %v358_v26 = vmax.f32 %v294_v7, %v326_v17  ;;  %v329_v27 = vmul.f32 0.2, %v297_v18  ;;  %v299_v28 = vadd.f32 %v913_v9, %v260_v19  ;;  %v330_v29 = vmul.f32 0.2, %v298_v20 }
  0x25   : > { %835 = vst [vmem:[%s938_s25 + $0x20] sm:$0xff] %v760_v21   ;;  %v359_v30 = vmax.f32 %v295_v15, %v327_v22  ;;  %v360_v31 = vmax.f32 %v296_v16, %v328_v23  ;;  %v708_v32 = vunpack.c.h.bf16 %v824_v12  ;;  %v261_v33 = vmul.f32 %v707_v24, %v904_v0 }
  0x26   : > { %v361_v35 = vmax.f32 %v297_v18, %v329_v27  ;;  %v331_v36 = vmul.f32 0.2, %v299_v28  ;;  %v362_v37 = vmax.f32 %v298_v20, %v330_v29  ;;  %v711_v38 = vunpack.c.l.bf16 %v825_v25  ;;  %v830_v20 = vld [vmem:[%s899_s18 + $0x70] sm:$0xff]   ;;  %v831_v29 = vld [vmem:[%s899_s18 + $0x78] sm:$0xff]  }
  0x27   : > { %v765_v39 = vpack.c.bf16 %v359_v30, %v358_v26  ;;  %v262_v40 = vmul.f32 %v708_v32, %v904_v0  ;;  %v300_v41 = vadd.f32 %v913_v9, %v261_v33  ;;  %v712_v42 = vunpack.c.h.bf16 %v825_v25 }
  0x28   : > { %v770_v44 = vpack.c.bf16 %v361_v35, %v360_v31  ;;  %v363_v45 = vmax.f32 %v299_v28, %v331_v36  ;;  %v263_v46 = vmul.f32 %v711_v38, %v904_v0  ;;  %v715_v47 = vunpack.c.l.bf16 %v826_v34 }
  0x29   : > { %836 = vst [vmem:[%s938_s25 + $0x28] sm:$0xff] %v765_v39   ;;  %v301_v48 = vadd.f32 %v913_v9, %v262_v40  ;;  %v332_v49 = vmul.f32 0.2, %v300_v41  ;;  %v264_v50 = vmul.f32 %v712_v42, %v904_v0  ;;  %v716_v51 = vunpack.c.h.bf16 %v826_v34 }
  0x2a   : > { %837 = vst [vmem:[%s938_s25 + $0x30] sm:$0xff] %v770_v44   ;;  %v775_v52 = vpack.c.bf16 %v363_v45, %v362_v37  ;;  %v302_v53 = vadd.f32 %v913_v9, %v263_v46  ;;  %v265_v54 = vmul.f32 %v715_v47, %v904_v0  ;;  %v719_v55 = vunpack.c.l.bf16 %v827_v43 }
  0x2b   : > { %v333_v57 = vmul.f32 0.2, %v301_v48  ;;  %v364_v58 = vmax.f32 %v300_v41, %v332_v49  ;;  %v303_v59 = vadd.f32 %v913_v9, %v264_v50  ;;  %v266_v60 = vmul.f32 %v716_v51, %v904_v0 }
  0x2c   : > { %838 = vst [vmem:[%s938_s25 + $0x38] sm:$0xff] %v775_v52   ;;  %v334_v61 = vmul.f32 0.2, %v302_v53  ;;  %v304_v62 = vadd.f32 %v913_v9, %v265_v54  ;;  %v720_v63 = vunpack.c.h.bf16 %v827_v43  ;;  %v267_v1 = vmul.f32 %v719_v55, %v904_v0 }
  0x2d   : > { %v365_v2 = vmax.f32 %v301_v48, %v333_v57  ;;  %v335_v3 = vmul.f32 0.2, %v303_v59  ;;  %v305_v4 = vadd.f32 %v913_v9, %v266_v60  ;;  %v723_v5 = vunpack.c.l.bf16 %v828_v56 }
  0x2e   : > { %v366_v6 = vmax.f32 %v302_v53, %v334_v61  ;;  %v336_v7 = vmul.f32 0.2, %v304_v62  ;;  %v268_v8 = vmul.f32 %v720_v63, %v904_v0  ;;  %v306_v10 = vadd.f32 %v913_v9, %v267_v1 }
  0x2f   : > { %v780_v12 = vpack.c.bf16 %v365_v2, %v364_v58  ;;  %v367_v13 = vmax.f32 %v303_v59, %v335_v3  ;;  %v337_v14 = vmul.f32 0.2, %v305_v4  ;;  %v724_v15 = vunpack.c.h.bf16 %v828_v56 }
  0x30   : > { %v368_v16 = vmax.f32 %v304_v62, %v336_v7  ;;  %v307_v17 = vadd.f32 %v913_v9, %v268_v8  ;;  %v338_v18 = vmul.f32 0.2, %v306_v10  ;;  %v269_v19 = vmul.f32 %v723_v5, %v904_v0 }
  0x31   : > { %839 = vst [vmem:[%s938_s25 + $0x40] sm:$0xff] %v780_v12   ;;  %v785_v21 = vpack.c.bf16 %v367_v13, %v366_v6  ;;  %v369_v22 = vmax.f32 %v305_v4, %v337_v14  ;;  %v270_v23 = vmul.f32 %v724_v15, %v904_v0  ;;  %v727_v24 = vunpack.c.l.bf16 %v829_v11 }
  0x32   : > { %v339_v25 = vmul.f32 0.2, %v307_v17  ;;  %v370_v26 = vmax.f32 %v306_v10, %v338_v18  ;;  %v308_v27 = vadd.f32 %v913_v9, %v269_v19  ;;  %v728_v28 = vunpack.c.h.bf16 %v829_v11 }
  0x33   : > { %840 = vst [vmem:[%s938_s25 + $0x48] sm:$0xff] %v785_v21   ;;  %v790_v30 = vpack.c.bf16 %v369_v22, %v368_v16  ;;  %v309_v31 = vadd.f32 %v913_v9, %v270_v23  ;;  %v271_v32 = vmul.f32 %v727_v24, %v904_v0  ;;  %v731_v33 = vunpack.c.l.bf16 %v830_v20 }
  0x34   : > { %v371_v34 = vmax.f32 %v307_v17, %v339_v25  ;;  %v340_v35 = vmul.f32 0.2, %v308_v27  ;;  %v272_v36 = vmul.f32 %v728_v28, %v904_v0  ;;  %v732_v37 = vunpack.c.h.bf16 %v830_v20 }
  0x35   : > { %841 = vst [vmem:[%s938_s25 + $0x50] sm:$0xff] %v790_v30   ;;  %v341_v38 = vmul.f32 0.2, %v309_v31  ;;  %v310_v39 = vadd.f32 %v913_v9, %v271_v32  ;;  %v273_v40 = vmul.f32 %v731_v33, %v904_v0  ;;  %v735_v41 = vunpack.c.l.bf16 %v831_v29 }
  0x36   : > { %v795_v42 = vpack.c.bf16 %v371_v34, %v370_v26  ;;  %v372_v43 = vmax.f32 %v308_v27, %v340_v35  ;;  %v311_v44 = vadd.f32 %v913_v9, %v272_v36  ;;  %v274_v45 = vmul.f32 %v732_v37, %v904_v0 }
  0x37   : > { %v373_v46 = vmax.f32 %v309_v31, %v341_v38  ;;  %v342_v47 = vmul.f32 0.2, %v310_v39  ;;  %v312_v48 = vadd.f32 %v913_v9, %v273_v40  ;;  %v736_v49 = vunpack.c.h.bf16 %v831_v29 }
  0x38   : > { %842 = vst [vmem:[%s938_s25 + $0x58] sm:$0xff] %v795_v42   ;;  %v343_v50 = vmul.f32 0.2, %v311_v44  ;;  %v313_v51 = vadd.f32 %v913_v9, %v274_v45  ;;  %v275_v52 = vmul.f32 %v735_v41, %v904_v0 }
  0x39   : > { %v800_v53 = vpack.c.bf16 %v373_v46, %v372_v43  ;;  %v374_v54 = vmax.f32 %v310_v39, %v342_v47  ;;  %v344_v55 = vmul.f32 0.2, %v312_v48  ;;  %v276_v56 = vmul.f32 %v736_v49, %v904_v0 }
  0x3a   : > { %v375_v57 = vmax.f32 %v311_v44, %v343_v50  ;;  %v345_v58 = vmul.f32 0.2, %v313_v51  ;;  %v314_v59 = vadd.f32 %v913_v9, %v275_v52 }
  0x3b   : > { %843 = vst [vmem:[%s938_s25 + $0x60] sm:$0xff] %v800_v53   ;;  %v376_v60 = vmax.f32 %v312_v48, %v344_v55  ;;  %v315_v61 = vadd.f32 %v913_v9, %v276_v56 }
  0x3c   : > { %v805_v62 = vpack.c.bf16 %v375_v57, %v374_v54  ;;  %v377_v63 = vmax.f32 %v313_v51, %v345_v58  ;;  %v346_v1 = vmul.f32 0.2, %v314_v59 }
  0x3d   : > { %v347_v2 = vmul.f32 0.2, %v315_v61 }
  0x3e   : > { %844 = vst [vmem:[%s938_s25 + $0x68] sm:$0xff] %v805_v62   ;;  %v810_v3 = vpack.c.bf16 %v377_v63, %v376_v60  ;;  %v378_v4 = vmax.f32 %v314_v59, %v346_v1 }
  0x3f   : > { %v379_v5 = vmax.f32 %v315_v61, %v347_v2 }
  0x40   : > { %845 = vst [vmem:[%s938_s25 + $0x70] sm:$0xff] %v810_v3  }
  0x41   : > { %v815_v6 = vpack.c.bf16 %v379_v5, %v378_v4 }
  0x43   : > { %846 = vst [vmem:[%s938_s25 + $0x78] sm:$0xff] %v815_v6  }
  0x44 PF: > { %s13_s12 = sadd.s32 1, %s861_s12  }
  0x45   : > { %p10_p4 = scmp.ge.s32.totalorder %s13_s12, 4  }
  0x47   :  { %12 = sbr.rel (!%p10_p4) target bundleno = 1 (0x1), region = 62 }

// kernel: discriminator_forward.10
= control target key start
LH: loop header
LB: loop body
LE: loop exit
PB: predicated region body
PF: predicated region fallthrough
CT: control target
= control target key end

     0   :  { %s3416_s12 = smov 0   ;;  %s4076_s0 = inlined_call_operand.vmem [shape: bf16[512,1024], index: 0, kind: input, shape index: {}]   ;;  %s4077_s1 = inlined_call_operand.vmem [shape: bf16[1024,128], index: 1, kind: input, shape index: {}]   ;;  %s4078_s2 = inlined_call_operand.vmem [shape: bf16[512,128], index: 2, kind: output, shape index: {0}]   ;;  %s4079_s3 = inlined_call_operand.vmem [shape: f32[16,128], index: 3, kind: output, shape index: {1}]  }
   0x1 LB: > { %s3422_s13 = sadd.s32 4294967295, %s3394_s12   ;;  %p2507_p0 = scmp.ge.s32.totalorder %s3394_s12, 1  ;;  %s3394_s12 = sphi %s3416_s12, %s14_s12  }
   0x2   : > { %p142_p1 = scmp.lt.s32.totalorder %s3394_s12, 3 }
   0x4   : > { %p143_p2 = pnand %p2507_p0, %p142_p1 }
   0x5   : > { %v3324_v0 = vld [vmem:[%s4077_s1 + $0x40] sm:$0xff] (!%p143_p2)   ;;  %v3328_v4 = vld [vmem:[%s4077_s1 + $0x48] sm:$0xff] (!%p143_p2)   ;;  %v3332_v8 = vld [vmem:[%s4077_s1 + $0x50] sm:$0xff] (!%p143_p2)   ;;  %s2508_s21 = sshll.u32 (!%p143_p2), %s3422_s13, 5  ;;  %p184_p4 = scmp.lt.s32.totalorder (!%p143_p2), %s3422_s13, 1  ;;  %vm2413_vm0 = vcmask (!%p143_p2), 1040384  }
   0x6   : > { %146 = sbr.rel (%p143_p2) target bundleno = 604 (0x25c), region = 28  ;;  %v3325_v1 = vld [vmem:[%s4077_s1 + $0xc0] sm:$0xff] (!%p143_p2)   ;;  %2868 = vmatprep.subr.bf16.mxu0 (!%p143_p2), %v3324_v0  ;;  %v3329_v5 = vld [vmem:[%s4077_s1 + $0xc8] sm:$0xff] (!%p143_p2)   ;;  %v3333_v9 = vld [vmem:[%s4077_s1 + $0xd0] sm:$0xff] (!%p143_p2)   ;;  %p172_p3 = scmp.lt.s32.totalorder (!%p143_p2), %s2508_s21, 63 }
   0x7   : > { %v3326_v2 = vld [vmem:[%s4077_s1] sm:$0xff] (!%p143_p2)   ;;  %2980 = vmatprep.subr.bf16.mxu1 (!%p143_p2), %v3325_v1  ;;  %v3330_v6 = vld [vmem:[%s4077_s1 + $0x8] sm:$0xff] (!%p143_p2)   ;;  %v3334_v10 = vld [vmem:[%s4077_s1 + $0x10] sm:$0xff] (!%p143_p2)  }
   0x8   : > { %v3327_v3 = vld [vmem:[%s4077_s1 + $0x80] sm:$0xff] (!%p143_p2)   ;;  %2869 = vmatpush3.bf16.msra.mxu0 (!%p143_p2), %v3326_v2  ;;  %v3331_v7 = vld [vmem:[%s4077_s1 + $0x88] sm:$0xff] (!%p143_p2)   ;;  %v3335_v11 = vld [vmem:[%s4077_s1 + $0x90] sm:$0xff] (!%p143_p2)  }
   0x9   : > { %2981 = vmatpush3.bf16.msra.mxu1 (!%p143_p2), %v3327_v3  ;;  %2870 = vmatprep.subr.bf16.mxu0 (!%p143_p2), %v3328_v4  ;;  %v3336_v12 = vld [vmem:[%s4077_s1 + $0x58] sm:$0xff] (!%p143_p2)   ;;  %v3340_v16 = vld [vmem:[%s4077_s1 + $0x60] sm:$0xff] (!%p143_p2)   ;;  %v3344_v20 = vld [vmem:[%s4077_s1 + $0x68] sm:$0xff] (!%p143_p2)  }
   0xa   : > { %2982 = vmatprep.subr.bf16.mxu1 (!%p143_p2), %v3329_v5  ;;  %v3337_v13 = vld [vmem:[%s4077_s1 + $0xd8] sm:$0xff] (!%p143_p2)   ;;  %v3341_v17 = vld [vmem:[%s4077_s1 + $0xe0] sm:$0xff] (!%p143_p2)   ;;  %v3345_v21 = vld [vmem:[%s4077_s1 + $0xe8] sm:$0xff] (!%p143_p2)  }
   0xb   : > { %v3338_v14 = vld [vmem:[%s4077_s1 + $0x18] sm:$0xff] (!%p143_p2)   ;;  %v3342_v18 = vld [vmem:[%s4077_s1 + $0x20] sm:$0xff] (!%p143_p2)   ;;  %v3346_v22 = vld [vmem:[%s4077_s1 + $0x28] sm:$0xff] (!%p143_p2)  }
   0xc   : > { %2871 = vmatpush3.bf16.msra.mxu0 (!%p143_p2), %v3330_v6  ;;  %v3339_v15 = vld [vmem:[%s4077_s1 + $0x98] sm:$0xff] (!%p143_p2)   ;;  %v3343_v19 = vld [vmem:[%s4077_s1 + $0xa0] sm:$0xff] (!%p143_p2)   ;;  %v3347_v23 = vld [vmem:[%s4077_s1 + $0xa8] sm:$0xff] (!%p143_p2)  }
   0xd   : > { %2983 = vmatpush3.bf16.msra.mxu1 %v3331_v7  ;;  %2872 = vmatprep.subr.bf16.mxu0 %v3332_v8  ;;  %s4081_s21 = smov (!%p172_p3, %s2508_s21), 63  ;;  %v3348_v24 = vld [vmem:[%s4077_s1 + $0x70] sm:$0xff]   ;;  %v3352_v28 = vld [vmem:[%s4077_s1 + $0x78] sm:$0xff]   ;;  %v3356_v40 = vld [vmem:[%s4077_s1 + $0x140] sm:$0xff]   ;;  %s4083_s13 = smov (!%p184_p4, %s3422_s13), 1 }
   0xe   : > { %2984 = vmatprep.subr.bf16.mxu1 %v3333_v9  ;;  %v3349_v25 = vld [vmem:[%s4077_s1 + $0xf0] sm:$0xff]   ;;  %s2740_s19 = sshll.u32 %s4081_s21, 5  ;;  %v3353_v29 = vld [vmem:[%s4077_s1 + $0xf8] sm:$0xff]   ;;  %v3357_v41 = vld [vmem:[%s4077_s1 + $0x100] sm:$0xff]  }
   0xf   : > { %v3350_v26 = vld [vmem:[%s4077_s1 + $0x30] sm:$0xff]   ;;  %s3523_s29 = scalar_lea.vmem %s4076_s0, %s2740_s19  ;;  %v3354_v30 = vld [vmem:[%s4077_s1 + $0x38] sm:$0xff]   ;;  %v3358_v42 = vld [vmem:[%s4077_s1 + $0x1c0] sm:$0xff]  }
  0x10   : > { %2873 = vmatpush3.bf16.msra.mxu0 %v3334_v10  ;;  %v3351_v27 = vld [vmem:[%s4077_s1 + $0xb0] sm:$0xff]   ;;  %v3355_v31 = vld [vmem:[%s4077_s1 + $0xb8] sm:$0xff]   ;;  %v189_v32 = vld [vmem:[%s3523_s29] sm:$0xff] }
  0x11   : > { %2985 = vmatpush3.bf16.msra.mxu1 %v3335_v11  ;;  %2874 = vmatprep.subr.bf16.mxu0 %v3336_v12  ;;  %v193_v33 = vld [vmem:[%s3523_s29 + $0x20] sm:$0xff]  ;;  %v190_v34 = vld [vmem:[%s3523_s29 + $0x8] sm:$0xff]  ;;  %v3364_v2 = vld [vmem:[%s4077_s1 + $0x150] sm:$0xff]  }
  0x12   : > { %2986 = vmatprep.subr.bf16.mxu1 %v3337_v13  ;;  %v2514_v35 = vcombine.low %v189_v32, %v193_v33  ;;  %v2515_v36 = vcombine.high %v189_v32, %v193_v33  ;;  %v194_v37 = vld [vmem:[%s3523_s29 + $0x28] sm:$0xff]  ;;  %v3359_v43 = vld [vmem:[%s4077_s1 + $0x180] sm:$0xff]   ;;  %v3365_v4 = vld [vmem:[%s4077_s1 + $0x110] sm:$0xff]  }
  0x13   : > { %v2516_v38 = vcombine.low %v190_v34, %v194_v37  ;;  %v2517_v39 = vcombine.high %v190_v34, %v194_v37  ;;  %v197_v44 = vld [vmem:[%s3523_s29 + $0x40] sm:$0xff]  ;;  %v198_v47 = vld [vmem:[%s3523_s29 + $0x48] sm:$0xff]  ;;  %v3366_v7 = vld [vmem:[%s4077_s1 + $0x1d0] sm:$0xff]  }
  0x14   : > { %2875 = vmatpush3.bf16.msra.mxu0 %v3338_v14  ;;  %1501 = vmatprep.mubr.bf16.mxu0 %v2515_v36  ;;  %v201_v45 = vld [vmem:[%s3523_s29 + $0x60] sm:$0xff]  ;;  %v202_v48 = vld [vmem:[%s3523_s29 + $0x68] sm:$0xff]  ;;  %v3367_v9 = vld [vmem:[%s4077_s1 + $0x190] sm:$0xff]  }
  0x15   : > { %2987 = vmatpush3.bf16.msra.mxu1 %v3339_v15  ;;  %2876 = vmatprep.subr.bf16.mxu0 %v3340_v16  ;;  %v2523_v46 = vcombine.high %v197_v44, %v201_v45  ;;  %v205_v49 = vld [vmem:[%s3523_s29 + $0x80] sm:$0xff]  ;;  %v2525_v50 = vcombine.high %v198_v47, %v202_v48  ;;  %v206_v52 = vld [vmem:[%s3523_s29 + $0x88] sm:$0xff]  ;;  %v2522_v54 = vcombine.low %v197_v44, %v201_v45  ;;  %v3368_v14 = vld [vmem:[%s4077_s1 + $0x158] sm:$0xff]  }
  0x16   : > { %2988 = vmatprep.subr.bf16.mxu1 %v3341_v17  ;;  %1662 = vmatprep.mubr.bf16.mxu1 %v2517_v39  ;;  %v209_v51 = vld [vmem:[%s3523_s29 + $0xa0] sm:$0xff]  ;;  %v210_v53 = vld [vmem:[%s3523_s29 + $0xa8] sm:$0xff]  ;;  %v2524_v56 = vcombine.low %v198_v47, %v202_v48  ;;  %v3369_v15 = vld [vmem:[%s4077_s1 + $0x118] sm:$0xff]  }
  0x17   : > { %v3360_v55 = vld [vmem:[%s4077_s1 + $0x148] sm:$0xff]   ;;  %v2531_v57 = vcombine.high %v205_v49, %v209_v51  ;;  %v2533_v59 = vcombine.high %v206_v52, %v210_v53  ;;  %v213_v62 = vld [vmem:[%s3523_s29 + $0xc0] sm:$0xff]  ;;  %v2530_v3 = vcombine.low %v205_v49, %v209_v51  ;;  %v2532_v5 = vcombine.low %v206_v52, %v210_v53  ;;  %v3370_v17 = vld [vmem:[%s4077_s1 + $0x1d8] sm:$0xff]  }
  0x18   : > { %2877 = vmatpush3.bf16.msra.mxu0 %v3342_v18  ;;  %v3361_v58 = vld [vmem:[%s4077_s1 + $0x108] sm:$0xff]   ;;  %v217_v63 = vld [vmem:[%s3523_s29 + $0xe0] sm:$0xff]  ;;  %v3381_v47 = vld [vmem:[%s4077_s1 + $0x130] sm:$0xff]  }
  0x19   : > { %2989 = vmatpush3.bf16.msra.mxu1 %v3343_v19  ;;  %2878 = vmatprep.subr.bf16.mxu0 %v3344_v20  ;;  %v3362_v60 = vld [vmem:[%s4077_s1 + $0x1c8] sm:$0xff]   ;;  %v2539_v6 = vcombine.high %v213_v62, %v217_v63  ;;  %v221_v10 = vld [vmem:[%s3523_s29 + $0x100] sm:$0xff]  ;;  %v2538_v16 = vcombine.low %v213_v62, %v217_v63  ;;  %v3371_v20 = vld [vmem:[%s4077_s1 + $0x198] sm:$0xff]  }
  0x1a   : > { %2990 = vmatprep.subr.bf16.mxu1 %v3345_v21  ;;  %v3363_v61 = vld [vmem:[%s4077_s1 + $0x188] sm:$0xff]   ;;  %v225_v11 = vld [vmem:[%s3523_s29 + $0x120] sm:$0xff]  ;;  %v3382_v48 = vld [vmem:[%s4077_s1 + $0x1f0] sm:$0xff]  }
  0x1b   : > { %v214_v0 = vld [vmem:[%s3523_s29 + $0xc8] sm:$0xff]  ;;  %v2547_v19 = vcombine.high %v221_v10, %v225_v11  ;;  %v3383_v49 = vld [vmem:[%s4077_s1 + $0x1b0] sm:$0xff]   ;;  %v249_v51 = vld [vmem:[%s3523_s29 + $0x1e0] sm:$0xff] }
  0x1c   : > { %2879 = vmatpush3.bf16.msra.mxu0 %v3346_v22  ;;  %v218_v1 = vld [vmem:[%s3523_s29 + $0xe8] sm:$0xff]  ;;  %v229_v22 = vld [vmem:[%s3523_s29 + $0x140] sm:$0xff] }
  0x1d   : > { %2991 = vmatpush3.bf16.msra.mxu1 %v3347_v23  ;;  %2880 = vmatprep.subr.bf16.mxu0 %v3348_v24  ;;  %v2541_v8 = vcombine.high %v214_v0, %v218_v1  ;;  %v222_v12 = vld [vmem:[%s3523_s29 + $0x108] sm:$0xff]  ;;  %v2540_v18 = vcombine.low %v214_v0, %v218_v1  ;;  %v233_v23 = vld [vmem:[%s3523_s29 + $0x160] sm:$0xff] }
  0x1e   : > { %2992 = vmatprep.subr.bf16.mxu1 %v3349_v25  ;;  %v226_v13 = vld [vmem:[%s3523_s29 + $0x128] sm:$0xff]  ;;  %v3372_v24 = vld [vmem:[%s4077_s1 + $0x160] sm:$0xff]   ;;  %v2555_v32 = vcombine.high %v229_v22, %v233_v23 }
  0x1f   : > { %v2549_v21 = vcombine.high %v222_v12, %v226_v13  ;;  %v230_v25 = vld [vmem:[%s3523_s29 + $0x148] sm:$0xff]  ;;  %v253_v62 = vld [vmem:[%s3523_s29 + $0x200] sm:$0xff] }
  0x20   : > { %2881 = vmatpush3.bf16.msra.mxu0 %v3350_v26  ;;  %v234_v26 = vld [vmem:[%s3523_s29 + $0x168] sm:$0xff]  ;;  %v257_v63 = vld [vmem:[%s3523_s29 + $0x220] sm:$0xff] }
  0x21   : > { %2993 = vmatpush3.bf16.msra.mxu1 %v3351_v27  ;;  %2882 = vmatprep.subr.bf16.mxu0 %v3352_v28  ;;  %v3373_v27 = vld [vmem:[%s4077_s1 + $0x120] sm:$0xff]   ;;  %v2557_v33 = vcombine.high %v230_v25, %v234_v26  ;;  %v3376_v34 = vld [vmem:[%s4077_s1 + $0x168] sm:$0xff]  }
  0x22   : > { %2994 = vmatprep.subr.bf16.mxu1 %v3353_v29  ;;  %v3374_v28 = vld [vmem:[%s4077_s1 + $0x1e0] sm:$0xff]   ;;  %v3377_v36 = vld [vmem:[%s4077_s1 + $0x128] sm:$0xff]  }
  0x23   : > { %v3375_v29 = vld [vmem:[%s4077_s1 + $0x1a0] sm:$0xff]   ;;  %v3378_v37 = vld [vmem:[%s4077_s1 + $0x1e8] sm:$0xff]  }
  0x24   : > { %2883 = vmatpush3.bf16.msra.mxu0 %v3354_v30  ;;  %v2546_v30 = vcombine.low %v221_v10, %v225_v11  ;;  %v3379_v39 = vld [vmem:[%s4077_s1 + $0x1a8] sm:$0xff]   ;;  %v2578_v10 = vcombine.low %v253_v62, %v257_v63 }
  0x25   : > { %2995 = vmatpush3.bf16.msra.mxu1 %v3355_v31  ;;  %3092 = vmatprep.subr.bf16.mxu0 %v3356_v40  ;;  %v2548_v31 = vcombine.low %v222_v12, %v226_v13  ;;  %v238_v40 = vld [vmem:[%s3523_s29 + $0x188] sm:$0xff] }
  0x26   : > { %3204 = vmatprep.subr.bf16.mxu1 %v3358_v42  ;;  %v2554_v42 = vcombine.low %v229_v22, %v233_v23  ;;  %v246_v52 = vld [vmem:[%s3523_s29 + $0x1c8] sm:$0xff]  ;;  %v277_v22 = vld [vmem:[%s3523_s29 + $0x2c0] sm:$0xff] }
  0x27   : > { %1502 = vmatmul.mubr.bf16.vlgmr.msra.gmra.mrb[0].mxu0 %v2514_v35  ;;  %v237_v35 = vld [vmem:[%s3523_s29 + $0x180] sm:$0xff]  ;;  %v250_v53 = vld [vmem:[%s3523_s29 + $0x1e8] sm:$0xff] }
  0x28   : > { %1663 = vmatmul.mubr.bf16.vlgmr.msra.gmra.mrb[0].mxu1 %v2516_v38  ;;  %3093 = vmatpush3.bf16.msra.mxu0 %v3357_v41  ;;  %v241_v38 = vld [vmem:[%s3523_s29 + $0x1a0] sm:$0xff]  ;;  %v242_v41 = vld [vmem:[%s3523_s29 + $0x1a8] sm:$0xff] }
  0x29   : > { %3205 = vmatpush3.bf16.msra.mxu1 %v3359_v43  ;;  %1509 = vmatprep.mubr.bf16.mxu0 %v2523_v46  ;;  %v2556_v43 = vcombine.low %v230_v25, %v234_v26  ;;  %v2563_v44 = vcombine.high %v237_v35, %v241_v38  ;;  %v2565_v45 = vcombine.high %v238_v40, %v242_v41  ;;  %v3380_v46 = vld [vmem:[%s4077_s1 + $0x170] sm:$0xff]   ;;  %v254_v0 = vld [vmem:[%s3523_s29 + $0x208] sm:$0xff]  ;;  %v281_v23 = vld [vmem:[%s3523_s29 + $0x2e0] sm:$0xff] }
  0x2a   : > { %1670 = vmatprep.mubr.bf16.mxu1 %v2525_v50  ;;  %3094 = vmatprep.subr.bf16.mxu0 %v3360_v55  ;;  %v245_v50 = vld [vmem:[%s3523_s29 + $0x1c0] sm:$0xff]  ;;  %v3384_v55 = vld [vmem:[%s4077_s1 + $0x178] sm:$0xff]   ;;  %v258_v1 = vld [vmem:[%s3523_s29 + $0x228] sm:$0xff] }
  0x2b   : > { %3206 = vmatprep.subr.bf16.mxu1 %v3362_v60  ;;  %v3386_v60 = vld [vmem:[%s4077_s1 + $0x1f8] sm:$0xff]   ;;  %v2580_v11 = vcombine.low %v254_v0, %v258_v1  ;;  %v282_v25 = vld [vmem:[%s3523_s29 + $0x2e8] sm:$0xff] }
  0x2c   : > { %3095 = vmatpush3.bf16.msra.mxu0 %v3361_v58  ;;  %v3385_v58 = vld [vmem:[%s4077_s1 + $0x138] sm:$0xff]  }
  0x2d   : > { %3207 = vmatpush3.bf16.msra.mxu1 %v3363_v61  ;;  %3096 = vmatprep.subr.bf16.mxu0 %v3364_v2  ;;  %v3387_v61 = vld [vmem:[%s4077_s1 + $0x1b8] sm:$0xff]   ;;  %v2570_v2 = vcombine.low %v245_v50, %v249_v51 }
  0x2e   : > { %3208 = vmatprep.subr.bf16.mxu1 %v3366_v7  ;;  %v265_v7 = vld [vmem:[%s3523_s29 + $0x260] sm:$0xff] }
  0x2f   : > { %1510 = vmatmul.mubr.bf16.gmra.mrb[4].mxu0 %v2522_v54  ;;  %v2562_v54 = vcombine.low %v237_v35, %v241_v38  ;;  %v293_v38 = vld [vmem:[%s3523_s29 + $0x340] sm:$0xff] }
  0x30   : > { %1671 = vmatmul.mubr.bf16.gmra.mrb[4].mxu1 %v2524_v56  ;;  %1517 = vmatprep.mubr.bf16.mxu0 %v2531_v57  ;;  %v2564_v56 = vcombine.low %v238_v40, %v242_v41  ;;  %v2571_v57 = vcombine.high %v245_v50, %v249_v51  ;;  %v294_v40 = vld [vmem:[%s3523_s29 + $0x348] sm:$0xff] }
  0x31   : > { %1678 = vmatprep.mubr.bf16.mxu1 %v2533_v59  ;;  %3097 = vmatpush3.bf16.msra.mxu0 %v3365_v4  ;;  %v2573_v59 = vcombine.high %v246_v52, %v250_v53  ;;  %v2579_v4 = vcombine.high %v253_v62, %v257_v63  ;;  %v298_v41 = vld [vmem:[%s3523_s29 + $0x368] sm:$0xff]  ;;  %v191_v62 = vld [vmem:[%s3523_s29 + $0x10] sm:$0xff] }
  0x32   : > { %3209 = vmatpush3.bf16.msra.mxu1 %v3367_v9  ;;  %3098 = vmatprep.subr.bf16.mxu0 %v3368_v14  ;;  %v266_v9 = vld [vmem:[%s3523_s29 + $0x268] sm:$0xff]  ;;  %v269_v14 = vld [vmem:[%s3523_s29 + $0x280] sm:$0xff]  ;;  %v2620_v51 = vcombine.low %v294_v40, %v298_v41  ;;  %v195_v63 = vld [vmem:[%s3523_s29 + $0x30] sm:$0xff] }
  0x33   : > { %3210 = vmatprep.subr.bf16.mxu1 %v3370_v17  ;;  %v274_v17 = vld [vmem:[%s3523_s29 + $0x2a8] sm:$0xff] }
  0x35   : > { %3099 = vmatpush3.bf16.msra.mxu0 %v3369_v15  ;;  %v273_v15 = vld [vmem:[%s3523_s29 + $0x2a0] sm:$0xff] }
  0x36   : > { %3211 = vmatpush3.bf16.msra.mxu1 %v3371_v20  ;;  %3100 = vmatprep.subr.bf16.mxu0 %v3372_v24  ;;  %v2595_v20 = vcombine.high %v269_v14, %v273_v15  ;;  %v278_v24 = vld [vmem:[%s3523_s29 + $0x2c8] sm:$0xff]  ;;  %v2594_v26 = vcombine.low %v269_v14, %v273_v15  ;;  %v207_v14 = vld [vmem:[%s3523_s29 + $0x90] sm:$0xff] }
  0x37   : > { %1518 = vmatmul.mubr.bf16.gmra.mrb[8].mxu0 %v2530_v3  ;;  %3212 = vmatprep.subr.bf16.mxu1 %v3374_v28  ;;  %v2572_v3 = vcombine.low %v246_v52, %v250_v53  ;;  %v2603_v28 = vcombine.high %v277_v22, %v281_v23  ;;  %v2604_v35 = vcombine.low %v278_v24, %v282_v25  ;;  %v211_v15 = vld [vmem:[%s3523_s29 + $0xb0] sm:$0xff] }
  0x38   : > { %1679 = vmatmul.mubr.bf16.gmra.mrb[8].mxu1 %v2532_v5  ;;  %1525 = vmatprep.mubr.bf16.mxu0 %v2539_v6  ;;  %v2581_v5 = vcombine.high %v254_v0, %v258_v1  ;;  %v261_v6 = vld [vmem:[%s3523_s29 + $0x240] sm:$0xff]  ;;  %v192_v0 = vld [vmem:[%s3523_s29 + $0x18] sm:$0xff] }
  0x39   : > { %1686 = vmatprep.mubr.bf16.mxu1 %v2541_v8  ;;  %3101 = vmatpush3.bf16.msra.mxu0 %v3373_v27  ;;  %v262_v8 = vld [vmem:[%s3523_s29 + $0x248] sm:$0xff]  ;;  %v2587_v12 = vcombine.high %v261_v6, %v265_v7  ;;  %v196_v1 = vld [vmem:[%s3523_s29 + $0x38] sm:$0xff] }
  0x3a   : > { %3213 = vmatpush3.bf16.msra.mxu1 %v3375_v29  ;;  %3102 = vmatprep.subr.bf16.mxu0 %v3376_v34  ;;  %v2589_v13 = vcombine.high %v262_v8, %v266_v9  ;;  %v2605_v29 = vcombine.high %v278_v24, %v282_v25  ;;  %v2602_v34 = vcombine.low %v277_v22, %v281_v23  ;;  %v215_v22 = vld [vmem:[%s3523_s29 + $0xd0] sm:$0xff]  ;;  %v216_v24 = vld [vmem:[%s3523_s29 + $0xd8] sm:$0xff] }
  0x3b   : > { %3214 = vmatprep.subr.bf16.mxu1 %v3378_v37  ;;  %v219_v23 = vld [vmem:[%s3523_s29 + $0xf0] sm:$0xff]  ;;  %v220_v25 = vld [vmem:[%s3523_s29 + $0xf8] sm:$0xff] }
  0x3d   : > { %3103 = vmatpush3.bf16.msra.mxu0 %v3377_v36 }
  0x3e   : > { %3215 = vmatpush3.bf16.msra.mxu1 %v3379_v39  ;;  %3104 = vmatprep.subr.bf16.mxu0 %v3380_v46  ;;  %v297_v39 = vld [vmem:[%s3523_s29 + $0x360] sm:$0xff] }
  0x3f   : > { %1526 = vmatmul.mubr.bf16.gmra.mrb[12].mxu0 %v2538_v16  ;;  %3216 = vmatprep.subr.bf16.mxu1 %v3382_v48  ;;  %v270_v16 = vld [vmem:[%s3523_s29 + $0x288] sm:$0xff]  ;;  %v301_v46 = vld [vmem:[%s3523_s29 + $0x380] sm:$0xff]  ;;  %v2618_v50 = vcombine.low %v293_v38, %v297_v39 }
  0x40   : > { %1687 = vmatmul.mubr.bf16.gmra.mrb[12].mxu1 %v2540_v18  ;;  %1533 = vmatprep.mubr.bf16.mxu0 %v2547_v19  ;;  %v2586_v18 = vcombine.low %v261_v6, %v265_v7  ;;  %v2588_v19 = vcombine.low %v262_v8, %v266_v9  ;;  %v2596_v27 = vcombine.low %v270_v16, %v274_v17  ;;  %v302_v48 = vld [vmem:[%s3523_s29 + $0x388] sm:$0xff]  ;;  %v199_v6 = vld [vmem:[%s3523_s29 + $0x50] sm:$0xff]  ;;  %v200_v8 = vld [vmem:[%s3523_s29 + $0x58] sm:$0xff] }
  0x41   : > { %1694 = vmatprep.mubr.bf16.mxu1 %v2549_v21  ;;  %3105 = vmatpush3.bf16.msra.mxu0 %v3381_v47  ;;  %v2597_v21 = vcombine.high %v270_v16, %v274_v17  ;;  %v305_v47 = vld [vmem:[%s3523_s29 + $0x3a0] sm:$0xff]  ;;  %v203_v7 = vld [vmem:[%s3523_s29 + $0x70] sm:$0xff]  ;;  %v204_v9 = vld [vmem:[%s3523_s29 + $0x78] sm:$0xff] }
  0x42   : > { %3217 = vmatpush3.bf16.msra.mxu1 %v3383_v49  ;;  %3106 = vmatprep.subr.bf16.mxu0 %v3384_v55  ;;  %v306_v49 = vld [vmem:[%s3523_s29 + $0x3a8] sm:$0xff]  ;;  %v2627_v52 = vcombine.high %v301_v46, %v305_v47  ;;  %v313_v55 = vld [vmem:[%s3523_s29 + $0x3e0] sm:$0xff]  ;;  %v208_v16 = vld [vmem:[%s3523_s29 + $0x98] sm:$0xff] }
  0x43   : > { %3218 = vmatprep.subr.bf16.mxu1 %v3386_v60  ;;  %v2629_v53 = vcombine.high %v302_v48, %v306_v49  ;;  %v212_v17 = vld [vmem:[%s3523_s29 + $0xb8] sm:$0xff] }
  0x45   : > { %3107 = vmatpush3.bf16.msra.mxu0 %v3385_v58  ;;  %v2626_v58 = vcombine.low %v301_v46, %v305_v47  ;;  %v239_v46 = vld [vmem:[%s3523_s29 + $0x190] sm:$0xff] }
  0x46   : > { %3219 = vmatpush3.bf16.msra.mxu1 %v3387_v61  ;;  %v243_v47 = vld [vmem:[%s3523_s29 + $0x1b0] sm:$0xff] }
  0x47   : > { %1534 = vmatmul.mubr.bf16.gmra.mrb[16].mxu0 %v2546_v30  ;;  %v285_v30 = vld [vmem:[%s3523_s29 + $0x300] sm:$0xff] }
  0x48   : > { %1695 = vmatmul.mubr.bf16.gmra.mrb[16].mxu1 %v2548_v31  ;;  %1541 = vmatprep.mubr.bf16.mxu0 %v2555_v32  ;;  %v289_v31 = vld [vmem:[%s3523_s29 + $0x320] sm:$0xff]  ;;  %v286_v32 = vld [vmem:[%s3523_s29 + $0x308] sm:$0xff] }
  0x49   : > { %1702 = vmatprep.mubr.bf16.mxu1 %v2557_v33  ;;  %v290_v33 = vld [vmem:[%s3523_s29 + $0x328] sm:$0xff]  ;;  %v2611_v36 = vcombine.high %v285_v30, %v289_v31 }
  0x4a   : > { %v2613_v37 = vcombine.high %v286_v32, %v290_v33 }
  0x4f   : > { %1542 = vmatmul.mubr.bf16.gmra.mrb[20].mxu0 %v2554_v42  ;;  %v2610_v42 = vcombine.low %v285_v30, %v289_v31  ;;  %v223_v30 = vld [vmem:[%s3523_s29 + $0x110] sm:$0xff] }
  0x50   : > { %1703 = vmatmul.mubr.bf16.gmra.mrb[20].mxu1 %v2556_v43  ;;  %1549 = vmatprep.mubr.bf16.mxu0 %v2563_v44  ;;  %v2612_v43 = vcombine.low %v286_v32, %v290_v33  ;;  %v2619_v44 = vcombine.high %v293_v38, %v297_v39  ;;  %v227_v31 = vld [vmem:[%s3523_s29 + $0x130] sm:$0xff]  ;;  %v224_v32 = vld [vmem:[%s3523_s29 + $0x118] sm:$0xff] }
  0x51   : > { %1710 = vmatprep.mubr.bf16.mxu1 %v2565_v45  ;;  %v2621_v45 = vcombine.high %v294_v40, %v298_v41  ;;  %v228_v33 = vld [vmem:[%s3523_s29 + $0x138] sm:$0xff]  ;;  %v231_v38 = vld [vmem:[%s3523_s29 + $0x150] sm:$0xff] }
  0x52   : > { %v235_v39 = vld [vmem:[%s3523_s29 + $0x170] sm:$0xff]  ;;  %v232_v40 = vld [vmem:[%s3523_s29 + $0x158] sm:$0xff] }
  0x53   : > { %v236_v41 = vld [vmem:[%s3523_s29 + $0x178] sm:$0xff] }
  0x57   : > { %1550 = vmatmul.mubr.bf16.gmra.mrb[24].mxu0 %v2562_v54  ;;  %v309_v54 = vld [vmem:[%s3523_s29 + $0x3c0] sm:$0xff] }
  0x58   : > { %1711 = vmatmul.mubr.bf16.gmra.mrb[24].mxu1 %v2564_v56  ;;  %1557 = vmatprep.mubr.bf16.mxu0 %v2571_v57  ;;  %v310_v56 = vld [vmem:[%s3523_s29 + $0x3c8] sm:$0xff]  ;;  %v2635_v60 = vcombine.high %v309_v54, %v313_v55 }
  0x59   : > { %1718 = vmatprep.mubr.bf16.mxu1 %v2573_v59  ;;  %v314_v57 = vld [vmem:[%s3523_s29 + $0x3e8] sm:$0xff]  ;;  %v2628_v59 = vcombine.low %v302_v48, %v306_v49  ;;  %v240_v48 = vld [vmem:[%s3523_s29 + $0x198] sm:$0xff] }
  0x5a   : > { %v2637_v61 = vcombine.high %v310_v56, %v314_v57  ;;  %v244_v49 = vld [vmem:[%s3523_s29 + $0x1b8] sm:$0xff] }
  0x5f   : > { %1558 = vmatmul.mubr.bf16.gmra.mrb[28].mxu0 %v2570_v2  ;;  %v2634_v2 = vcombine.low %v309_v54, %v313_v55  ;;  %v247_v54 = vld [vmem:[%s3523_s29 + $0x1d0] sm:$0xff] }
  0x60   : > { %1719 = vmatmul.mubr.bf16.gmra.mrb[28].mxu1 %v2572_v3  ;;  %1565 = vmatprep.mubr.bf16.mxu0 %v2579_v4  ;;  %v2636_v3 = vcombine.low %v310_v56, %v314_v57  ;;  %v2519_v4 = vcombine.high %v191_v62, %v195_v63  ;;  %v251_v55 = vld [vmem:[%s3523_s29 + $0x1f0] sm:$0xff]  ;;  %v248_v56 = vld [vmem:[%s3523_s29 + $0x1d8] sm:$0xff] }
  0x61   : > { %1726 = vmatprep.mubr.bf16.mxu1 %v2581_v5  ;;  %v2521_v5 = vcombine.high %v192_v0, %v196_v1  ;;  %v252_v57 = vld [vmem:[%s3523_s29 + $0x1f8] sm:$0xff] }
  0x67   : > { %1566 = vmatmul.mubr.bf16.gmra.mrb[32].mxu0 %v2578_v10  ;;  %v2518_v10 = vcombine.low %v191_v62, %v195_v63  ;;  %v255_v62 = vld [vmem:[%s3523_s29 + $0x210] sm:$0xff] }
  0x68   : > { %1727 = vmatmul.mubr.bf16.gmra.mrb[32].mxu1 %v2580_v11  ;;  %1573 = vmatprep.mubr.bf16.mxu0 %v2587_v12  ;;  %v2520_v11 = vcombine.low %v192_v0, %v196_v1  ;;  %v2527_v12 = vcombine.high %v199_v6, %v203_v7  ;;  %v259_v63 = vld [vmem:[%s3523_s29 + $0x230] sm:$0xff]  ;;  %v256_v0 = vld [vmem:[%s3523_s29 + $0x218] sm:$0xff] }
  0x69   : > { %1734 = vmatprep.mubr.bf16.mxu1 %v2589_v13  ;;  %v2529_v13 = vcombine.high %v200_v8, %v204_v9  ;;  %v260_v1 = vld [vmem:[%s3523_s29 + $0x238] sm:$0xff] }
  0x6f   : > { %1574 = vmatmul.mubr.bf16.gmra.mrb[36].mxu0 %v2586_v18  ;;  %v2526_v18 = vcombine.low %v199_v6, %v203_v7  ;;  %v263_v6 = vld [vmem:[%s3523_s29 + $0x250] sm:$0xff] }
  0x70   : > { %1735 = vmatmul.mubr.bf16.gmra.mrb[36].mxu1 %v2588_v19  ;;  %1581 = vmatprep.mubr.bf16.mxu0 %v2595_v20  ;;  %v2528_v19 = vcombine.low %v200_v8, %v204_v9  ;;  %v2535_v20 = vcombine.high %v207_v14, %v211_v15  ;;  %v267_v7 = vld [vmem:[%s3523_s29 + $0x270] sm:$0xff]  ;;  %v264_v8 = vld [vmem:[%s3523_s29 + $0x258] sm:$0xff] }
  0x71   : > { %1742 = vmatprep.mubr.bf16.mxu1 %v2597_v21  ;;  %v2537_v21 = vcombine.high %v208_v16, %v212_v17  ;;  %v268_v9 = vld [vmem:[%s3523_s29 + $0x278] sm:$0xff] }
  0x77   : > { %1582 = vmatmul.mubr.bf16.gmra.mrb[40].mxu0 %v2594_v26  ;;  %v2534_v26 = vcombine.low %v207_v14, %v211_v15  ;;  %v271_v14 = vld [vmem:[%s3523_s29 + $0x290] sm:$0xff] }
  0x78   : > { %1743 = vmatmul.mubr.bf16.gmra.mrb[40].mxu1 %v2596_v27  ;;  %1589 = vmatprep.mubr.bf16.mxu0 %v2603_v28  ;;  %v2536_v27 = vcombine.low %v208_v16, %v212_v17  ;;  %v2543_v28 = vcombine.high %v215_v22, %v219_v23  ;;  %v275_v15 = vld [vmem:[%s3523_s29 + $0x2b0] sm:$0xff]  ;;  %v272_v16 = vld [vmem:[%s3523_s29 + $0x298] sm:$0xff] }
  0x79   : > { %1750 = vmatprep.mubr.bf16.mxu1 %v2605_v29  ;;  %v2545_v29 = vcombine.high %v216_v24, %v220_v25  ;;  %v276_v17 = vld [vmem:[%s3523_s29 + $0x2b8] sm:$0xff] }
  0x7f   : > { %1590 = vmatmul.mubr.bf16.gmra.mrb[44].mxu0 %v2602_v34  ;;  %v2542_v34 = vcombine.low %v215_v22, %v219_v23  ;;  %v279_v22 = vld [vmem:[%s3523_s29 + $0x2d0] sm:$0xff] }
  0x80   : > { %1751 = vmatmul.mubr.bf16.gmra.mrb[44].mxu1 %v2604_v35  ;;  %1597 = vmatprep.mubr.bf16.mxu0 %v2611_v36  ;;  %v2544_v35 = vcombine.low %v216_v24, %v220_v25  ;;  %v2551_v36 = vcombine.high %v223_v30, %v227_v31  ;;  %v283_v23 = vld [vmem:[%s3523_s29 + $0x2f0] sm:$0xff]  ;;  %v280_v24 = vld [vmem:[%s3523_s29 + $0x2d8] sm:$0xff] }
  0x81   : > { %1758 = vmatprep.mubr.bf16.mxu1 %v2613_v37  ;;  %v2553_v37 = vcombine.high %v224_v32, %v228_v33  ;;  %v284_v25 = vld [vmem:[%s3523_s29 + $0x2f8] sm:$0xff] }
  0x87   : > { %1598 = vmatmul.mubr.bf16.gmra.mrb[48].mxu0 %v2610_v42  ;;  %v2550_v42 = vcombine.low %v223_v30, %v227_v31  ;;  %v287_v30 = vld [vmem:[%s3523_s29 + $0x310] sm:$0xff] }
  0x88   : > { %1759 = vmatmul.mubr.bf16.gmra.mrb[48].mxu1 %v2612_v43  ;;  %1605 = vmatprep.mubr.bf16.mxu0 %v2619_v44  ;;  %v2552_v43 = vcombine.low %v224_v32, %v228_v33  ;;  %v2559_v44 = vcombine.high %v231_v38, %v235_v39  ;;  %v291_v31 = vld [vmem:[%s3523_s29 + $0x330] sm:$0xff]  ;;  %v288_v33 = vld [vmem:[%s3523_s29 + $0x318] sm:$0xff] }
  0x89   : > { %1766 = vmatprep.mubr.bf16.mxu1 %v2621_v45  ;;  %v2561_v45 = vcombine.high %v232_v40, %v236_v41 }
  0x8f   : > { %1606 = vmatmul.mubr.bf16.gmra.mrb[52].mxu0 %v2618_v50  ;;  %v2558_v50 = vcombine.low %v231_v38, %v235_v39 }
  0x90   : > { %1767 = vmatmul.mubr.bf16.gmra.mrb[52].mxu1 %v2620_v51  ;;  %1613 = vmatprep.mubr.bf16.mxu0 %v2627_v52  ;;  %v2560_v51 = vcombine.low %v232_v40, %v236_v41  ;;  %v2567_v52 = vcombine.high %v239_v46, %v243_v47  ;;  %v2608_v41 = vcombine.low %v280_v24, %v284_v25 }
  0x91   : > { %1774 = vmatprep.mubr.bf16.mxu1 %v2629_v53  ;;  %v2569_v53 = vcombine.high %v240_v48, %v244_v49 }
  0x97   : > { %1614 = vmatmul.mubr.bf16.gmra.mrb[56].mxu0 %v2626_v58  ;;  %v2566_v58 = vcombine.low %v239_v46, %v243_v47 }
  0x98   : > { %1775 = vmatmul.mubr.bf16.gmra.mrb[56].mxu1 %v2628_v59  ;;  %1621 = vmatprep.mubr.bf16.mxu0 %v2635_v60  ;;  %v2568_v59 = vcombine.low %v240_v48, %v244_v49  ;;  %v2575_v60 = vcombine.high %v247_v54, %v251_v55 }
  0x99   : > { %1782 = vmatprep.mubr.bf16.mxu1 %v2637_v61  ;;  %v2577_v61 = vcombine.high %v248_v56, %v252_v57 }
  0x9f   : > { %1622 = vmatmul.mubr.bf16.gmra.mrb[60].mxu0 %v2634_v2  ;;  %v2574_v2 = vcombine.low %v247_v54, %v251_v55  ;;  %v296_v55 = vld [vmem:[%s3523_s29 + $0x358] sm:$0xff] }
  0xa0   : > { %1783 = vmatmul.mubr.bf16.gmra.mrb[60].mxu1 %v2636_v3  ;;  %1823 = vmatprep.mubr.bf16.mxu0 %v2519_v4  ;;  %v2576_v3 = vcombine.low %v248_v56, %v252_v57  ;;  %v2583_v4 = vcombine.high %v255_v62, %v259_v63  ;;  %v300_v56 = vld [vmem:[%s3523_s29 + $0x378] sm:$0xff] }
  0xa1   : > { %1984 = vmatprep.mubr.bf16.mxu1 %v2521_v5  ;;  %v2585_v5 = vcombine.high %v256_v0, %v260_v1 }
  0xa7   : > { %1824 = vmatmul.mubr.bf16.vlgmr.msra.gmra.mrb[64].mxu0 %v2518_v10  ;;  %v2582_v10 = vcombine.low %v255_v62, %v259_v63 }
  0xa8   : > { %1985 = vmatmul.mubr.bf16.vlgmr.msra.gmra.mrb[64].mxu1 %v2520_v11  ;;  %1831 = vmatprep.mubr.bf16.mxu0 %v2527_v12  ;;  %v2584_v11 = vcombine.low %v256_v0, %v260_v1  ;;  %v2591_v12 = vcombine.high %v263_v6, %v267_v7 }
  0xa9   : > { %1992 = vmatprep.mubr.bf16.mxu1 %v2529_v13  ;;  %v2593_v13 = vcombine.high %v264_v8, %v268_v9 }
  0xaf   : > { %1832 = vmatmul.mubr.bf16.gmra.mrb[68].mxu0 %v2526_v18  ;;  %v2590_v18 = vcombine.low %v263_v6, %v267_v7 }
  0xb0   : > { %1993 = vmatmul.mubr.bf16.gmra.mrb[68].mxu1 %v2528_v19  ;;  %1839 = vmatprep.mubr.bf16.mxu0 %v2535_v20  ;;  %v2592_v19 = vcombine.low %v264_v8, %v268_v9  ;;  %v2599_v20 = vcombine.high %v271_v14, %v275_v15 }
  0xb1   : > { %2000 = vmatprep.mubr.bf16.mxu1 %v2537_v21  ;;  %v2601_v21 = vcombine.high %v272_v16, %v276_v17 }
  0xb7   : > { %1840 = vmatmul.mubr.bf16.gmra.mrb[72].mxu0 %v2534_v26  ;;  %v2598_v26 = vcombine.low %v271_v14, %v275_v15  ;;  %v308_v14 = vld [vmem:[%s3523_s29 + $0x3b8] sm:$0xff] }
  0xb8   : > { %2001 = vmatmul.mubr.bf16.gmra.mrb[72].mxu1 %v2536_v27  ;;  %1847 = vmatprep.mubr.bf16.mxu0 %v2543_v28  ;;  %v2600_v27 = vcombine.low %v272_v16, %v276_v17  ;;  %v2607_v28 = vcombine.high %v279_v22, %v283_v23 }
  0xb9   : > { %2008 = vmatprep.mubr.bf16.mxu1 %v2545_v29  ;;  %v2609_v29 = vcombine.high %v280_v24, %v284_v25 }
  0xbf   : > { %1848 = vmatmul.mubr.bf16.gmra.mrb[76].mxu0 %v2542_v34  ;;  %v292_v34 = vld [vmem:[%s3523_s29 + $0x338] sm:$0xff] }
  0xc0   : > { %2009 = vmatmul.mubr.bf16.gmra.mrb[76].mxu1 %v2544_v35  ;;  %1855 = vmatprep.mubr.bf16.mxu0 %v2551_v36  ;;  %v2617_v46 = vcombine.high %v288_v33, %v292_v34  ;;  %v2616_v63 = vcombine.low %v288_v33, %v292_v34  ;;  %v315_v33 = vld [vmem:[%s3523_s29 + $0x3f0] sm:$0xff] }
  0xc1   : > { %2016 = vmatprep.mubr.bf16.mxu1 %v2553_v37  ;;  %v2606_v37 = vcombine.low %v279_v22, %v283_v23 }
  0xc7   : > { %1856 = vmatmul.mubr.bf16.gmra.mrb[80].mxu0 %v2550_v42  ;;  %v2615_v42 = vcombine.high %v287_v30, %v291_v31 }
  0xc8   : > { %2017 = vmatmul.mubr.bf16.gmra.mrb[80].mxu1 %v2552_v43  ;;  %1863 = vmatprep.mubr.bf16.mxu0 %v2559_v44 }
  0xc9   : > { %2024 = vmatprep.mubr.bf16.mxu1 %v2561_v45 }
  0xcf   : > { %1864 = vmatmul.mubr.bf16.gmra.mrb[84].mxu0 %v2558_v50 }
  0xd0   : > { %2025 = vmatmul.mubr.bf16.gmra.mrb[84].mxu1 %v2560_v51  ;;  %1871 = vmatprep.mubr.bf16.mxu0 %v2567_v52  ;;  %v295_v52 = vld [vmem:[%s3523_s29 + $0x350] sm:$0xff] }
  0xd1   : > { %2032 = vmatprep.mubr.bf16.mxu1 %v2569_v53  ;;  %v299_v53 = vld [vmem:[%s3523_s29 + $0x370] sm:$0xff] }
  0xd2   : > { %v2623_v0 = vcombine.high %v295_v52, %v299_v53  ;;  %v2622_v17 = vcombine.low %v295_v52, %v299_v53 }
  0xd7   : > { %1872 = vmatmul.mubr.bf16.gmra.mrb[88].mxu0 %v2566_v58 }
  0xd8   : > { %2033 = vmatmul.mubr.bf16.gmra.mrb[88].mxu1 %v2568_v59  ;;  %1879 = vmatprep.mubr.bf16.mxu0 %v2575_v60  ;;  %v2614_v59 = vcombine.low %v287_v30, %v291_v31 }
  0xd9   : > { %2040 = vmatprep.mubr.bf16.mxu1 %v2577_v61 }
  0xdf   : > { %1880 = vmatmul.mubr.bf16.gmra.mrb[92].mxu0 %v2574_v2 }
  0xe0   : > { %2041 = vmatmul.mubr.bf16.gmra.mrb[92].mxu1 %v2576_v3  ;;  %1887 = vmatprep.mubr.bf16.mxu0 %v2583_v4  ;;  %v2625_v4 = vcombine.high %v296_v55, %v300_v56 }
  0xe1   : > { %2048 = vmatprep.mubr.bf16.mxu1 %v2585_v5 }
  0xe7   : > { %1888 = vmatmul.mubr.bf16.gmra.mrb[96].mxu0 %v2582_v10  ;;  %v303_v10 = vld [vmem:[%s3523_s29 + $0x390] sm:$0xff] }
  0xe8   : > { %2049 = vmatmul.mubr.bf16.gmra.mrb[96].mxu1 %v2584_v11  ;;  %1895 = vmatprep.mubr.bf16.mxu0 %v2591_v12  ;;  %v307_v11 = vld [vmem:[%s3523_s29 + $0x3b0] sm:$0xff] }
  0xe9   : > { %2056 = vmatprep.mubr.bf16.mxu1 %v2593_v13  ;;  %v304_v13 = vld [vmem:[%s3523_s29 + $0x398] sm:$0xff]  ;;  %v2631_v22 = vcombine.high %v303_v10, %v307_v11 }
  0xef   : > { %1896 = vmatmul.mubr.bf16.gmra.mrb[100].mxu0 %v2590_v18 }
  0xf0   : > { %2057 = vmatmul.mubr.bf16.gmra.mrb[100].mxu1 %v2592_v19  ;;  %1903 = vmatprep.mubr.bf16.mxu0 %v2599_v20 }
  0xf1   : > { %2064 = vmatprep.mubr.bf16.mxu1 %v2601_v21  ;;  %v2624_v21 = vcombine.low %v296_v55, %v300_v56 }
  0xf7   : > { %1904 = vmatmul.mubr.bf16.gmra.mrb[104].mxu0 %v2598_v26  ;;  %v2633_v26 = vcombine.high %v304_v13, %v308_v14 }
  0xf8   : > { %2065 = vmatmul.mubr.bf16.gmra.mrb[104].mxu1 %v2600_v27  ;;  %1911 = vmatprep.mubr.bf16.mxu0 %v2607_v28 }
  0xf9   : > { %2072 = vmatprep.mubr.bf16.mxu1 %v2609_v29 }
  0xfa   : > { %v2884_v32 = vpop.f32.mrb[0].mxu0 }
  0xfb   : > { %v2996_v35 = vpop.f32.mrb[0].mxu1  ;;  %v2885_v36 = vpop.f32.mrb[1].mxu0 }
  0xfc   : > { %v2886_v38 = vadd.f32 %v2885_v36, %v2884_v32  ;;  %v2997_v39 = vpop.f32.mrb[1].mxu1  ;;  %v2887_v40 = vpop.f32.mrb[2].mxu0  ;;  %v311_v32 = vld [vmem:[%s3523_s29 + $0x3d0] sm:$0xff]  ;;  %v316_v36 = vld [vmem:[%s3523_s29 + $0x3f8] sm:$0xff] }
  0xfd   : > { %v2998_v43 = vadd.f32 %v2997_v39, %v2996_v35  ;;  %v2999_v44 = vpop.f32.mrb[2].mxu1  ;;  %v2888_v45 = vpop.f32.mrb[3].mxu0  ;;  %v312_v35 = vld [vmem:[%s3523_s29 + $0x3d8] sm:$0xff]  ;;  %v2630_v39 = vcombine.low %v303_v10, %v307_v11  ;;  %s2512_s29 = sshll.u32 %s4081_s21, 2  ;;  %s2513_s21 = sshll.u32 %s4083_s13, 3 }
  0xfe   : > { %v2889_v47 = vadd.f32 %v2888_v45, %v2887_v40  ;;  %v3000_v48 = vpop.f32.mrb[3].mxu1  ;;  %s3829_s4 = scalar_lea.vmem %s4078_s2, %s2512_s29  ;;  %s187_s7 = scalar_lea.vmem %s4079_s3, %s2513_s21 }
  0xff   : > { %v3743_v49 = vadd.f32 %v2998_v43, %v2886_v38  ;;  %v3001_v50 = vadd.f32 %v3000_v48, %v2999_v44  ;;  %1912 = vmatmul.mubr.bf16.gmra.mrb[108].mxu0 %v2606_v37  ;;  %v2632_v43 = vcombine.low %v304_v13, %v308_v14  ;;  %v2639_v44 = vcombine.high %v311_v32, %v315_v33 }
 0x100   : > { %2073 = vmatmul.mubr.bf16.gmra.mrb[108].mxu1 %v2608_v41  ;;  %1919 = vmatprep.mubr.bf16.mxu0 %v2615_v42  ;;  %v2641_v48 = vcombine.high %v312_v35, %v316_v36 }
 0x101   : > { %v3745_v51 = vadd.f32 %v3001_v50, %v2889_v47  ;;  %2080 = vmatprep.mubr.bf16.mxu1 %v2617_v46 }
 0x102   : > { %v2890_v54 = vpop.f32.mrb[4].mxu0 }
 0x103   : > { %v3002_v57 = vpop.f32.mrb[4].mxu1  ;;  %v2891_v58 = vpop.f32.mrb[5].mxu0 }
 0x104   : > { %v2892_v60 = vadd.f32 %v2891_v58, %v2890_v54  ;;  %v3003_v61 = vpop.f32.mrb[5].mxu1  ;;  %v2893_v62 = vpop.f32.mrb[6].mxu0 }
 0x105   : > { %v3004_v1 = vadd.f32 %v3003_v61, %v3002_v57  ;;  %v3005_v2 = vpop.f32.mrb[6].mxu1  ;;  %v2894_v3 = vpop.f32.mrb[7].mxu0 }
 0x106   : > { %v2895_v5 = vadd.f32 %v2894_v3, %v2893_v62  ;;  %v3006_v6 = vpop.f32.mrb[7].mxu1 }
 0x107   : > { %v3751_v7 = vadd.f32 %v3004_v1, %v2892_v60  ;;  %v3007_v8 = vadd.f32 %v3006_v6, %v3005_v2  ;;  %1920 = vmatmul.mubr.bf16.gmra.mrb[112].mxu0 %v2614_v59  ;;  %v2638_v59 = vcombine.low %v311_v32, %v315_v33 }
 0x108   : > { %2081 = vmatmul.mubr.bf16.gmra.mrb[112].mxu1 %v2616_v63  ;;  %1927 = vmatprep.mubr.bf16.mxu0 %v2623_v0  ;;  %v2640_v63 = vcombine.low %v312_v35, %v316_v36 }
 0x109   : > { %v3753_v9 = vadd.f32 %v3007_v8, %v2895_v5  ;;  %2088 = vmatprep.mubr.bf16.mxu1 %v2625_v4 }
 0x10a   : > { %v2896_v12 = vpop.f32.mrb[8].mxu0 }
 0x10b   : > { %v3008_v15 = vpop.f32.mrb[8].mxu1  ;;  %v2897_v16 = vpop.f32.mrb[9].mxu0 }
 0x10c   : > { %v2898_v18 = vadd.f32 %v2897_v16, %v2896_v12  ;;  %v3009_v19 = vpop.f32.mrb[9].mxu1  ;;  %v2899_v20 = vpop.f32.mrb[10].mxu0 }
 0x10d   : > { %v3010_v23 = vadd.f32 %v3009_v19, %v3008_v15  ;;  %v3011_v24 = vpop.f32.mrb[10].mxu1  ;;  %v2900_v25 = vpop.f32.mrb[11].mxu0 }
 0x10e   : > { %v2901_v27 = vadd.f32 %v2900_v25, %v2899_v20  ;;  %v3012_v28 = vpop.f32.mrb[11].mxu1 }
 0x10f   : > { %v3759_v29 = vadd.f32 %v3010_v23, %v2898_v18  ;;  %v3013_v30 = vadd.f32 %v3012_v28, %v3011_v24  ;;  %1928 = vmatmul.mubr.bf16.gmra.mrb[116].mxu0 %v2622_v17 }
 0x110   : > { %2089 = vmatmul.mubr.bf16.gmra.mrb[116].mxu1 %v2624_v21  ;;  %1935 = vmatprep.mubr.bf16.mxu0 %v2631_v22 }
 0x111   : > { %v3761_v31 = vadd.f32 %v3013_v30, %v2901_v27  ;;  %2096 = vmatprep.mubr.bf16.mxu1 %v2633_v26 }
 0x112   : > { %v2902_v34 = vpop.f32.mrb[12].mxu0 }
 0x113   : > { %v3014_v37 = vpop.f32.mrb[12].mxu1  ;;  %v2903_v38 = vpop.f32.mrb[13].mxu0 }
 0x114   : > { %v2904_v40 = vadd.f32 %v2903_v38, %v2902_v34  ;;  %v3015_v41 = vpop.f32.mrb[13].mxu1  ;;  %v2905_v42 = vpop.f32.mrb[14].mxu0 }
 0x115   : > { %v3016_v45 = vadd.f32 %v3015_v41, %v3014_v37  ;;  %v3017_v46 = vpop.f32.mrb[14].mxu1  ;;  %v2906_v47 = vpop.f32.mrb[15].mxu0 }
 0x116   : > { %v2907_v50 = vadd.f32 %v2906_v47, %v2905_v42  ;;  %v3018_v52 = vpop.f32.mrb[15].mxu1 }
 0x117   : > { %v3767_v53 = vadd.f32 %v3016_v45, %v2904_v40  ;;  %v3019_v54 = vadd.f32 %v3018_v52, %v3017_v46  ;;  %1936 = vmatmul.mubr.bf16.gmra.mrb[120].mxu0 %v2630_v39 }
 0x118   : > { %2097 = vmatmul.mubr.bf16.gmra.mrb[120].mxu1 %v2632_v43  ;;  %1943 = vmatprep.mubr.bf16.mxu0 %v2639_v44 }
 0x119   : > { %v3769_v55 = vadd.f32 %v3019_v54, %v2907_v50  ;;  %2104 = vmatprep.mubr.bf16.mxu1 %v2641_v48 }
 0x11a   : > { %v2908_v56 = vpop.f32.mrb[16].mxu0 }
 0x11b   : > { %v3020_v57 = vpop.f32.mrb[16].mxu1  ;;  %v2909_v58 = vpop.f32.mrb[17].mxu0 }
 0x11c   : > { %v2910_v60 = vadd.f32 %v2909_v58, %v2908_v56  ;;  %v3021_v61 = vpop.f32.mrb[17].mxu1  ;;  %v2911_v62 = vpop.f32.mrb[18].mxu0 }
 0x11d   : > { %v3022_v0 = vadd.f32 %v3021_v61, %v3020_v57  ;;  %v3023_v1 = vpop.f32.mrb[18].mxu1  ;;  %v2912_v2 = vpop.f32.mrb[19].mxu0 }
 0x11e   : > { %v2913_v3 = vadd.f32 %v2912_v2, %v2911_v62  ;;  %v3024_v4 = vpop.f32.mrb[19].mxu1 }
 0x11f   : > { %v3771_v5 = vadd.f32 %v3022_v0, %v2910_v60  ;;  %v3025_v6 = vadd.f32 %v3024_v4, %v3023_v1  ;;  %1944 = vmatmul.mubr.bf16.gmra.mrb[124].mxu0 %v2638_v59 }
 0x120   : > { %2105 = vmatmul.mubr.bf16.gmra.mrb[124].mxu1 %v2640_v63 }
 0x121   : > { %v3773_v8 = vadd.f32 %v3025_v6, %v2913_v3 }
 0x122   : > { %v2914_v10 = vpop.f32.mrb[20].mxu0 }
 0x123   : > { %v3026_v11 = vpop.f32.mrb[20].mxu1  ;;  %v2915_v12 = vpop.f32.mrb[21].mxu0 }
 0x124   : > { %v2916_v13 = vadd.f32 %v2915_v12, %v2914_v10  ;;  %v3027_v14 = vpop.f32.mrb[21].mxu1  ;;  %v2917_v15 = vpop.f32.mrb[22].mxu0 }
 0x125   : > { %v3028_v16 = vadd.f32 %v3027_v14, %v3026_v11  ;;  %v3029_v17 = vpop.f32.mrb[22].mxu1  ;;  %v2918_v18 = vpop.f32.mrb[23].mxu0 }
 0x126   : > { %v2919_v19 = vadd.f32 %v2918_v18, %v2917_v15  ;;  %v3030_v20 = vpop.f32.mrb[23].mxu1 }
 0x127   : > { %v3775_v21 = vadd.f32 %v3028_v16, %v2916_v13  ;;  %v3031_v22 = vadd.f32 %v3030_v20, %v3029_v17 }
 0x129   : > { %v3777_v23 = vadd.f32 %v3031_v22, %v2919_v19 }
 0x12a   : > { %v2920_v24 = vpop.f32.mrb[24].mxu0 }
 0x12b   : > { %v3032_v25 = vpop.f32.mrb[24].mxu1  ;;  %v2921_v26 = vpop.f32.mrb[25].mxu0 }
 0x12c   : > { %v2922_v27 = vadd.f32 %v2921_v26, %v2920_v24  ;;  %v3033_v28 = vpop.f32.mrb[25].mxu1  ;;  %v2923_v30 = vpop.f32.mrb[26].mxu0 }
 0x12d   : > { %v3034_v32 = vadd.f32 %v3033_v28, %v3032_v25  ;;  %v3035_v33 = vpop.f32.mrb[26].mxu1  ;;  %v2924_v34 = vpop.f32.mrb[27].mxu0 }
 0x12e   : > { %v2925_v35 = vadd.f32 %v2924_v34, %v2923_v30  ;;  %v3036_v36 = vpop.f32.mrb[27].mxu1 }
 0x12f   : > { %v3779_v37 = vadd.f32 %v3034_v32, %v2922_v27  ;;  %v3037_v38 = vadd.f32 %v3036_v36, %v3035_v33 }
 0x131   : > { %v3781_v39 = vadd.f32 %v3037_v38, %v2925_v35 }
 0x132   : > { %v2926_v40 = vpop.f32.mrb[28].mxu0 }
 0x133   : > { %v3038_v41 = vpop.f32.mrb[28].mxu1  ;;  %v2927_v42 = vpop.f32.mrb[29].mxu0 }
 0x134   : > { %v2928_v43 = vadd.f32 %v2927_v42, %v2926_v40  ;;  %v3039_v44 = vpop.f32.mrb[29].mxu1  ;;  %v2929_v45 = vpop.f32.mrb[30].mxu0 }
 0x135   : > { %v3040_v46 = vadd.f32 %v3039_v44, %v3038_v41  ;;  %v3041_v47 = vpop.f32.mrb[30].mxu1  ;;  %v2930_v48 = vpop.f32.mrb[31].mxu0 }
 0x136   : > { %v2931_v50 = vadd.f32 %v2930_v48, %v2929_v45  ;;  %v3042_v52 = vpop.f32.mrb[31].mxu1 }
 0x137   : > { %v3783_v54 = vadd.f32 %v3040_v46, %v2928_v43  ;;  %v3043_v56 = vadd.f32 %v3042_v52, %v3041_v47 }
 0x139   : > { %v3785_v57 = vadd.f32 %v3043_v56, %v2931_v50 }
 0x13a   : > { %v2932_v58 = vpop.f32.mrb[32].mxu0 }
 0x13b   : > { %v3044_v59 = vpop.f32.mrb[32].mxu1  ;;  %v2933_v60 = vpop.f32.mrb[33].mxu0 }
 0x13c   : > { %v2934_v61 = vadd.f32 %v2933_v60, %v2932_v58  ;;  %v3045_v62 = vpop.f32.mrb[33].mxu1  ;;  %v2935_v63 = vpop.f32.mrb[34].mxu0 }
 0x13d   : > { %v3046_v0 = vadd.f32 %v3045_v62, %v3044_v59  ;;  %v3047_v1 = vpop.f32.mrb[34].mxu1  ;;  %v2936_v2 = vpop.f32.mrb[35].mxu0 }
 0x13e   : > { %v2937_v3 = vadd.f32 %v2936_v2, %v2935_v63  ;;  %v3048_v4 = vpop.f32.mrb[35].mxu1 }
 0x13f   : > { %v3787_v6 = vadd.f32 %v3046_v0, %v2934_v61  ;;  %v3049_v10 = vadd.f32 %v3048_v4, %v3047_v1 }
 0x141   : > { %v3789_v11 = vadd.f32 %v3049_v10, %v2937_v3 }
 0x142   : > { %v2938_v12 = vpop.f32.mrb[36].mxu0 }
 0x143   : > { %v3050_v13 = vpop.f32.mrb[36].mxu1  ;;  %v2939_v14 = vpop.f32.mrb[37].mxu0 }
 0x144   : > { %v2940_v15 = vadd.f32 %v2939_v14, %v2938_v12  ;;  %v3051_v16 = vpop.f32.mrb[37].mxu1  ;;  %v2941_v17 = vpop.f32.mrb[38].mxu0 }
 0x145   : > { %v3052_v18 = vadd.f32 %v3051_v16, %v3050_v13  ;;  %v3053_v19 = vpop.f32.mrb[38].mxu1  ;;  %v2942_v20 = vpop.f32.mrb[39].mxu0 }
 0x146   : > { %v2943_v22 = vadd.f32 %v2942_v20, %v2941_v17  ;;  %v3054_v24 = vpop.f32.mrb[39].mxu1 }
 0x147   : > { %v3791_v25 = vadd.f32 %v3052_v18, %v2940_v15  ;;  %v3055_v26 = vadd.f32 %v3054_v24, %v3053_v19 }
 0x149   : > { %v3793_v27 = vadd.f32 %v3055_v26, %v2943_v22 }
 0x14a   : > { %v2944_v28 = vpop.f32.mrb[40].mxu0 }
 0x14b   : > { %v3056_v30 = vpop.f32.mrb[40].mxu1  ;;  %v2945_v32 = vpop.f32.mrb[41].mxu0 }
 0x14c   : > { %v2946_v33 = vadd.f32 %v2945_v32, %v2944_v28  ;;  %v3057_v34 = vpop.f32.mrb[41].mxu1  ;;  %v2947_v35 = vpop.f32.mrb[42].mxu0 }
 0x14d   : > { %v3058_v36 = vadd.f32 %v3057_v34, %v3056_v30  ;;  %v3059_v38 = vpop.f32.mrb[42].mxu1  ;;  %v2948_v40 = vpop.f32.mrb[43].mxu0 }
 0x14e   : > { %v2949_v41 = vadd.f32 %v2948_v40, %v2947_v35  ;;  %v3060_v42 = vpop.f32.mrb[43].mxu1 }
 0x14f   : > { %v3795_v43 = vadd.f32 %v3058_v36, %v2946_v33  ;;  %v3061_v44 = vadd.f32 %v3060_v42, %v3059_v38 }
 0x151   : > { %v3797_v45 = vadd.f32 %v3061_v44, %v2949_v41 }
 0x152   : > { %v2950_v46 = vpop.f32.mrb[44].mxu0 }
 0x153   : > { %v3062_v47 = vpop.f32.mrb[44].mxu1  ;;  %v2951_v48 = vpop.f32.mrb[45].mxu0 }
 0x154   : > { %v2952_v50 = vadd.f32 %v2951_v48, %v2950_v46  ;;  %v3063_v52 = vpop.f32.mrb[45].mxu1  ;;  %v2953_v56 = vpop.f32.mrb[46].mxu0 }
 0x155   : > { %v3064_v58 = vadd.f32 %v3063_v52, %v3062_v47  ;;  %v3065_v59 = vpop.f32.mrb[46].mxu1  ;;  %v2954_v60 = vpop.f32.mrb[47].mxu0 }
 0x156   : > { %v2955_v61 = vadd.f32 %v2954_v60, %v2953_v56  ;;  %v3066_v62 = vpop.f32.mrb[47].mxu1 }
 0x157   : > { %v3799_v63 = vadd.f32 %v3064_v58, %v2952_v50  ;;  %v3067_v0 = vadd.f32 %v3066_v62, %v3065_v59 }
 0x159   : > { %v3801_v1 = vadd.f32 %v3067_v0, %v2955_v61 }
 0x15a   : > { %v2956_v2 = vpop.f32.mrb[48].mxu0 }
 0x15b   : > { %v3068_v3 = vpop.f32.mrb[48].mxu1  ;;  %v2957_v4 = vpop.f32.mrb[49].mxu0 }
 0x15c   : > { %v2958_v10 = vadd.f32 %v2957_v4, %v2956_v2  ;;  %v3069_v12 = vpop.f32.mrb[49].mxu1  ;;  %v2959_v13 = vpop.f32.mrb[50].mxu0 }
 0x15d   : > { %v3070_v14 = vadd.f32 %v3069_v12, %v3068_v3  ;;  %v3071_v15 = vpop.f32.mrb[50].mxu1  ;;  %v2960_v16 = vpop.f32.mrb[51].mxu0 }
 0x15e   : > { %v2961_v17 = vadd.f32 %v2960_v16, %v2959_v13  ;;  %v3072_v18 = vpop.f32.mrb[51].mxu1 }
 0x15f   : > { %v3803_v19 = vadd.f32 %v3070_v14, %v2958_v10  ;;  %v3073_v20 = vadd.f32 %v3072_v18, %v3071_v15 }
 0x161   : > { %v3805_v22 = vadd.f32 %v3073_v20, %v2961_v17 }
 0x162   : > { %v2962_v24 = vpop.f32.mrb[52].mxu0 }
 0x163   : > { %v3074_v26 = vpop.f32.mrb[52].mxu1  ;;  %v2963_v28 = vpop.f32.mrb[53].mxu0 }
 0x164   : > { %v2964_v30 = vadd.f32 %v2963_v28, %v2962_v24  ;;  %v3075_v32 = vpop.f32.mrb[53].mxu1  ;;  %v2965_v33 = vpop.f32.mrb[54].mxu0 }
 0x165   : > { %v3076_v34 = vadd.f32 %v3075_v32, %v3074_v26  ;;  %v3077_v35 = vpop.f32.mrb[54].mxu1  ;;  %v2966_v36 = vpop.f32.mrb[55].mxu0 }
 0x166   : > { %v2967_v38 = vadd.f32 %v2966_v36, %v2965_v33  ;;  %v3078_v40 = vpop.f32.mrb[55].mxu1 }
 0x167   : > { %v3807_v41 = vadd.f32 %v3076_v34, %v2964_v30  ;;  %v3079_v42 = vadd.f32 %v3078_v40, %v3077_v35 }
 0x169   : > { %v3809_v44 = vadd.f32 %v3079_v42, %v2967_v38 }
 0x16a   : > { %v2968_v46 = vpop.f32.mrb[56].mxu0 }
 0x16b   : > { %v3080_v47 = vpop.f32.mrb[56].mxu1  ;;  %v2969_v48 = vpop.f32.mrb[57].mxu0 }
 0x16c   : > { %v2970_v50 = vadd.f32 %v2969_v48, %v2968_v46  ;;  %v3081_v52 = vpop.f32.mrb[57].mxu1  ;;  %v2971_v56 = vpop.f32.mrb[58].mxu0 }
 0x16d   : > { %v3082_v58 = vadd.f32 %v3081_v52, %v3080_v47  ;;  %v3083_v59 = vpop.f32.mrb[58].mxu1  ;;  %v2972_v60 = vpop.f32.mrb[59].mxu0 }
 0x16e   : > { %v2973_v61 = vadd.f32 %v2972_v60, %v2971_v56  ;;  %v3084_v62 = vpop.f32.mrb[59].mxu1 }
 0x16f   : > { %v3811_v0 = vadd.f32 %v3082_v58, %v2970_v50  ;;  %v3085_v2 = vadd.f32 %v3084_v62, %v3083_v59 }
 0x171   : > { %v3813_v3 = vadd.f32 %v3085_v2, %v2973_v61 }
 0x172   : > { %v2974_v4 = vpop.f32.mrb[60].mxu0 }
 0x173   : > { %v3086_v10 = vpop.f32.mrb[60].mxu1  ;;  %v2975_v12 = vpop.f32.mrb[61].mxu0 }
 0x174   : > { %v2976_v13 = vadd.f32 %v2975_v12, %v2974_v4  ;;  %v3087_v14 = vpop.f32.mrb[61].mxu1  ;;  %v2977_v15 = vpop.f32.mrb[62].mxu0 }
 0x175   : > { %v3088_v16 = vadd.f32 %v3087_v14, %v3086_v10  ;;  %v3089_v17 = vpop.f32.mrb[62].mxu1  ;;  %v2978_v18 = vpop.f32.mrb[63].mxu0 }
 0x176   : > { %v2979_v20 = vadd.f32 %v2978_v18, %v2977_v15  ;;  %v3090_v24 = vpop.f32.mrb[63].mxu1 }
 0x177   : > { %v3815_v26 = vadd.f32 %v3088_v16, %v2976_v13  ;;  %v3091_v28 = vadd.f32 %v3090_v24, %v3089_v17 }
 0x179   : > { %v3817_v30 = vadd.f32 %v3091_v28, %v2979_v20 }
 0x17a   : > { %v3108_v32 = vpop.f32.mrb[64].mxu0 }
 0x17b   : > { %v3220_v33 = vpop.f32.mrb[64].mxu1  ;;  %v3109_v34 = vpop.f32.mrb[65].mxu0 }
 0x17c   : > { %v3110_v35 = vadd.f32 %v3109_v34, %v3108_v32  ;;  %v3221_v36 = vpop.f32.mrb[65].mxu1  ;;  %v3111_v38 = vpop.f32.mrb[66].mxu0 }
 0x17d   : > { %v3222_v40 = vadd.f32 %v3221_v36, %v3220_v33  ;;  %v3223_v42 = vpop.f32.mrb[66].mxu1  ;;  %v3112_v46 = vpop.f32.mrb[67].mxu0 }
 0x17e   : > { %v1826_v47 = vadd.f32 %v3110_v35, %v3743_v49  ;;  %v3113_v48 = vadd.f32 %v3112_v46, %v3111_v38  ;;  %v3224_v50 = vpop.f32.mrb[67].mxu1 }
 0x17f   : > { %v3225_v52 = vadd.f32 %v3224_v50, %v3223_v42 }
 0x180   : > { %v3820_v56 = vadd.f32 %v3222_v40, %v1826_v47  ;;  %v1829_v58 = vadd.f32 %v3113_v48, %v3745_v51 }
 0x182   : > { %v3824_v59 = vadd.f32 %v3225_v52, %v1829_v58  ;;  %v3114_v60 = vpop.f32.mrb[68].mxu0 }
 0x183   : > { %v3226_v61 = vpop.f32.mrb[68].mxu1  ;;  %v3115_v62 = vpop.f32.mrb[69].mxu0 }
 0x184   : > { %v2776_v49 = vpack.c.bf16 %v3824_v59, %v3820_v56  ;;  %v3116_v2 = vadd.f32 %v3115_v62, %v3114_v60  ;;  %v3227_v4 = vpop.f32.mrb[69].mxu1  ;;  %v3117_v10 = vpop.f32.mrb[70].mxu0 }
 0x185   : > { %v3228_v12 = vadd.f32 %v3227_v4, %v3226_v61  ;;  %v3229_v51 = vpop.f32.mrb[70].mxu1  ;;  %v3118_v13 = vpop.f32.mrb[71].mxu0 }
 0x186   : > { %2777 = vst [vmem:[%s3829_s4] sm:$0xff] %v2776_v49   ;;  %v1834_v14 = vadd.f32 %v3116_v2, %v3751_v7  ;;  %v3119_v15 = vadd.f32 %v3118_v13, %v3117_v10  ;;  %v3230_v16 = vpop.f32.mrb[71].mxu1 }
 0x187   : > { %v3231_v17 = vadd.f32 %v3230_v16, %v3229_v51 }
 0x188   : > { %v3835_v18 = vadd.f32 %v3228_v12, %v1834_v14  ;;  %v1837_v20 = vadd.f32 %v3119_v15, %v3753_v9 }
 0x18a   : > { %v3838_v24 = vadd.f32 %v3231_v17, %v1837_v20  ;;  %v3120_v28 = vpop.f32.mrb[72].mxu0  ;;  %v2273_v20 = vadd.f32 %v3824_v59, %v3820_v56 }
 0x18b   : > { %v3232_v32 = vpop.f32.mrb[72].mxu1  ;;  %v3121_v33 = vpop.f32.mrb[73].mxu0 }
 0x18c   : > { %v2781_v34 = vpack.c.bf16 %v3838_v24, %v3835_v18  ;;  %v3122_v35 = vadd.f32 %v3121_v33, %v3120_v28  ;;  %v3233_v36 = vpop.f32.mrb[73].mxu1  ;;  %v3123_v38 = vpop.f32.mrb[74].mxu0 }
 0x18d   : > { %v3234_v7 = vadd.f32 %v3233_v36, %v3232_v32  ;;  %v3235_v40 = vpop.f32.mrb[74].mxu1  ;;  %v3124_v42 = vpop.f32.mrb[75].mxu0 }
 0x18e   : > { %2853 = vst [vmem:[%s3829_s4 + $0x8] sm:$0xff] %v2781_v34   ;;  %v1842_v46 = vadd.f32 %v3122_v35, %v3759_v29  ;;  %v3125_v47 = vadd.f32 %v3124_v42, %v3123_v38  ;;  %v3236_v9 = vpop.f32.mrb[75].mxu1  ;;  %v2274_v35 = vadd.f32 %v2273_v20, %v3835_v18 }
 0x18f   : > { %v3237_v48 = vadd.f32 %v3236_v9, %v3235_v40 }
 0x190   : > { %v3844_v50 = vadd.f32 %v3234_v7, %v1842_v46  ;;  %v1845_v52 = vadd.f32 %v3125_v47, %v3761_v31 }
 0x192   : > { %v3847_v58 = vadd.f32 %v3237_v48, %v1845_v52  ;;  %v3126_v60 = vpop.f32.mrb[76].mxu0  ;;  %v2275_v52 = vadd.f32 %v2274_v35, %v3838_v24 }
 0x193   : > { %v3238_v61 = vpop.f32.mrb[76].mxu1  ;;  %v3127_v62 = vpop.f32.mrb[77].mxu0 }
 0x194   : > { %v2786_v49 = vpack.c.bf16 %v3847_v58, %v3844_v50  ;;  %v3128_v2 = vadd.f32 %v3127_v62, %v3126_v60  ;;  %v3239_v4 = vpop.f32.mrb[77].mxu1  ;;  %v3129_v10 = vpop.f32.mrb[78].mxu0  ;;  %v2276_v62 = vadd.f32 %v2275_v52, %v3844_v50 }
 0x195   : > { %v3240_v29 = vadd.f32 %v3239_v4, %v3238_v61  ;;  %v3241_v12 = vpop.f32.mrb[78].mxu1  ;;  %v3130_v51 = vpop.f32.mrb[79].mxu0 }
 0x196   : > { %2854 = vst [vmem:[%s3829_s4 + $0x10] sm:$0xff] %v2786_v49   ;;  %v1850_v13 = vadd.f32 %v3128_v2, %v3767_v53  ;;  %v3131_v14 = vadd.f32 %v3130_v51, %v3129_v10  ;;  %v3242_v15 = vpop.f32.mrb[79].mxu1 }
 0x197   : > { %v3243_v31 = vadd.f32 %v3242_v15, %v3241_v12 }
 0x198   : > { %v3853_v16 = vadd.f32 %v3240_v29, %v1850_v13  ;;  %v1853_v17 = vadd.f32 %v3131_v14, %v3769_v55 }
 0x19a   : > { %v3858_v28 = vadd.f32 %v3243_v31, %v1853_v17  ;;  %v3132_v32 = vpop.f32.mrb[80].mxu0  ;;  %v2277_v31 = vadd.f32 %v2276_v62, %v3847_v58 }
 0x19b   : > { %v3244_v33 = vpop.f32.mrb[80].mxu1  ;;  %v3133_v34 = vpop.f32.mrb[81].mxu0 }
 0x19c   : > { %v2791_v53 = vpack.c.bf16 %v3858_v28, %v3853_v16  ;;  %v3134_v36 = vadd.f32 %v3133_v34, %v3132_v32  ;;  %v3245_v38 = vpop.f32.mrb[81].mxu1  ;;  %v3135_v7 = vpop.f32.mrb[82].mxu0 }
 0x19d   : > { %v3246_v40 = vadd.f32 %v3245_v38, %v3244_v33  ;;  %v3247_v42 = vpop.f32.mrb[82].mxu1  ;;  %v3136_v46 = vpop.f32.mrb[83].mxu0  ;;  %v2278_v33 = vadd.f32 %v2277_v31, %v3853_v16 }
 0x19e   : > { %2855 = vst [vmem:[%s3829_s4 + $0x18] sm:$0xff] %v2791_v53   ;;  %v1858_v55 = vadd.f32 %v3134_v36, %v3771_v5  ;;  %v3137_v47 = vadd.f32 %v3136_v46, %v3135_v7  ;;  %v3248_v9 = vpop.f32.mrb[83].mxu1 }
 0x19f   : > { %v3249_v48 = vadd.f32 %v3248_v9, %v3247_v42 }
 0x1a0   : > { %v3866_v60 = vadd.f32 %v3246_v40, %v1858_v55  ;;  %v1861_v61 = vadd.f32 %v3137_v47, %v3773_v8  ;;  %v2279_v40 = vadd.f32 %v2278_v33, %v3858_v28 }
 0x1a2   : > { %v3870_v49 = vadd.f32 %v3249_v48, %v1861_v61  ;;  %v3138_v2 = vpop.f32.mrb[84].mxu0  ;;  %v2280_v52 = vadd.f32 %v2279_v40, %v3866_v60 }
 0x1a3   : > { %v3250_v4 = vpop.f32.mrb[84].mxu1  ;;  %v3139_v10 = vpop.f32.mrb[85].mxu0 }
 0x1a4   : > { %v2796_v5 = vpack.c.bf16 %v3870_v49, %v3866_v60  ;;  %v3140_v29 = vadd.f32 %v3139_v10, %v3138_v2  ;;  %v3251_v12 = vpop.f32.mrb[85].mxu1  ;;  %v3141_v51 = vpop.f32.mrb[86].mxu0 }
 0x1a5   : > { %v3252_v13 = vadd.f32 %v3251_v12, %v3250_v4  ;;  %v3253_v14 = vpop.f32.mrb[86].mxu1  ;;  %v3142_v15 = vpop.f32.mrb[87].mxu0 }
 0x1a6   : > { %2856 = vst [vmem:[%s3829_s4 + $0x20] sm:$0xff] %v2796_v5   ;;  %v1866_v8 = vadd.f32 %v3140_v29, %v3775_v21  ;;  %v3143_v17 = vadd.f32 %v3142_v15, %v3141_v51  ;;  %v3254_v20 = vpop.f32.mrb[87].mxu1  ;;  %v2281_v5 = vadd.f32 %v2280_v52, %v3870_v49 }
 0x1a7   : > { %v3255_v32 = vadd.f32 %v3254_v20, %v3253_v14 }
 0x1a8   : > { %v3878_v34 = vadd.f32 %v3252_v13, %v1866_v8  ;;  %v1869_v35 = vadd.f32 %v3143_v17, %v3777_v23 }
 0x1aa   : > { %v3881_v53 = vadd.f32 %v3255_v32, %v1869_v35  ;;  %v3144_v36 = vpop.f32.mrb[88].mxu0  ;;  %v2282_v14 = vadd.f32 %v2281_v5, %v3878_v34 }
 0x1ab   : > { %v3256_v38 = vpop.f32.mrb[88].mxu1  ;;  %v3145_v7 = vpop.f32.mrb[89].mxu0 }
 0x1ac   : > { %v2801_v21 = vpack.c.bf16 %v3881_v53, %v3878_v34  ;;  %v3146_v42 = vadd.f32 %v3145_v7, %v3144_v36  ;;  %v3257_v46 = vpop.f32.mrb[89].mxu1  ;;  %v3147_v55 = vpop.f32.mrb[90].mxu0 }
 0x1ad   : > { %v3258_v47 = vadd.f32 %v3257_v46, %v3256_v38  ;;  %v3259_v9 = vpop.f32.mrb[90].mxu1  ;;  %v3148_v48 = vpop.f32.mrb[91].mxu0  ;;  %v2283_v38 = vadd.f32 %v2282_v14, %v3881_v53 }
 0x1ae   : > { %2857 = vst [vmem:[%s3829_s4 + $0x28] sm:$0xff] %v2801_v21   ;;  %v1874_v23 = vadd.f32 %v3146_v42, %v3779_v37  ;;  %v3149_v61 = vadd.f32 %v3148_v48, %v3147_v55  ;;  %v3260_v62 = vpop.f32.mrb[91].mxu1 }
 0x1af   : > { %v3261_v2 = vadd.f32 %v3260_v62, %v3259_v9 }
 0x1b0   : > { %v3889_v4 = vadd.f32 %v3258_v47, %v1874_v23  ;;  %v1877_v10 = vadd.f32 %v3149_v61, %v3781_v39 }
 0x1b2   : > { %v3893_v29 = vadd.f32 %v3261_v2, %v1877_v10  ;;  %v3150_v12 = vpop.f32.mrb[92].mxu0  ;;  %v2284_v21 = vadd.f32 %v2283_v38, %v3889_v4 }
 0x1b3   : > { %v3262_v51 = vpop.f32.mrb[92].mxu1  ;;  %v3151_v13 = vpop.f32.mrb[93].mxu0 }
 0x1b4   : > { %v2806_v37 = vpack.c.bf16 %v3893_v29, %v3889_v4  ;;  %v3152_v15 = vadd.f32 %v3151_v13, %v3150_v12  ;;  %v3263_v31 = vpop.f32.mrb[93].mxu1  ;;  %v3153_v8 = vpop.f32.mrb[94].mxu0  ;;  %v2285_v2 = vadd.f32 %v2284_v21, %v3893_v29 }
 0x1b5   : > { %v3264_v17 = vadd.f32 %v3263_v31, %v3262_v51  ;;  %v3265_v20 = vpop.f32.mrb[94].mxu1  ;;  %v3154_v32 = vpop.f32.mrb[95].mxu0 }
 0x1b6   : > { %2858 = vst [vmem:[%s3829_s4 + $0x30] sm:$0xff] %v2806_v37   ;;  %v1882_v39 = vadd.f32 %v3152_v15, %v3783_v54  ;;  %v3155_v33 = vadd.f32 %v3154_v32, %v3153_v8  ;;  %v3266_v35 = vpop.f32.mrb[95].mxu1 }
 0x1b7   : > { %v3267_v36 = vadd.f32 %v3266_v35, %v3265_v20 }
 0x1b8   : > { %v3901_v7 = vadd.f32 %v3264_v17, %v1882_v39  ;;  %v1885_v40 = vadd.f32 %v3155_v33, %v3785_v57 }
 0x1ba   : > { %v3905_v42 = vadd.f32 %v3267_v36, %v1885_v40  ;;  %v3156_v46 = vpop.f32.mrb[96].mxu0  ;;  %v2286_v51 = vadd.f32 %v2285_v2, %v3901_v7 }
 0x1bb   : > { %v3268_v55 = vpop.f32.mrb[96].mxu1  ;;  %v3157_v47 = vpop.f32.mrb[97].mxu0 }
 0x1bc   : > { %v2811_v54 = vpack.c.bf16 %v3905_v42, %v3901_v7  ;;  %v3158_v9 = vadd.f32 %v3157_v47, %v3156_v46  ;;  %v3269_v48 = vpop.f32.mrb[97].mxu1  ;;  %v3159_v52 = vpop.f32.mrb[98].mxu0  ;;  %v2287_v17 = vadd.f32 %v2286_v51, %v3905_v42 }
 0x1bd   : > { %v3270_v23 = vadd.f32 %v3269_v48, %v3268_v55  ;;  %v3271_v61 = vpop.f32.mrb[98].mxu1  ;;  %v3160_v62 = vpop.f32.mrb[99].mxu0 }
 0x1be   : > { %2859 = vst [vmem:[%s3829_s4 + $0x38] sm:$0xff] %v2811_v54   ;;  %v1890_v57 = vadd.f32 %v3158_v9, %v3787_v6  ;;  %v3161_v10 = vadd.f32 %v3160_v62, %v3159_v52  ;;  %v3272_v5 = vpop.f32.mrb[99].mxu1 }
 0x1bf   : > { %v3273_v12 = vadd.f32 %v3272_v5, %v3271_v61 }
 0x1c0   : > { %v3913_v13 = vadd.f32 %v3270_v23, %v1890_v57  ;;  %v1893_v14 = vadd.f32 %v3161_v10, %v3789_v11 }
 0x1c2   : > { %v3916_v37 = vadd.f32 %v3273_v12, %v1893_v14  ;;  %v3162_v15 = vpop.f32.mrb[100].mxu0  ;;  %v2288_v38 = vadd.f32 %v2287_v17, %v3913_v13 }
 0x1c3   : > { %v3274_v31 = vpop.f32.mrb[100].mxu1  ;;  %v3163_v8 = vpop.f32.mrb[101].mxu0 }
 0x1c4   : > { %v2816_v6 = vpack.c.bf16 %v3916_v37, %v3913_v13  ;;  %v3164_v20 = vadd.f32 %v3163_v8, %v3162_v15  ;;  %v3275_v32 = vpop.f32.mrb[101].mxu1  ;;  %v3165_v39 = vpop.f32.mrb[102].mxu0  ;;  %v2289_v54 = vadd.f32 %v2288_v38, %v3916_v37 }
 0x1c5   : > { %v3276_v33 = vadd.f32 %v3275_v32, %v3274_v31  ;;  %v3277_v35 = vpop.f32.mrb[102].mxu1  ;;  %v3166_v36 = vpop.f32.mrb[103].mxu0 }
 0x1c6   : > { %2860 = vst [vmem:[%s3829_s4 + $0x40] sm:$0xff] %v2816_v6   ;;  %v1898_v11 = vadd.f32 %v3164_v20, %v3791_v25  ;;  %v3167_v40 = vadd.f32 %v3166_v36, %v3165_v39  ;;  %v3278_v21 = vpop.f32.mrb[103].mxu1 }
 0x1c7   : > { %v3279_v46 = vadd.f32 %v3278_v21, %v3277_v35 }
 0x1c8   : > { %v3924_v55 = vadd.f32 %v3276_v33, %v1898_v11  ;;  %v1901_v47 = vadd.f32 %v3167_v40, %v3793_v27 }
 0x1ca   : > { %v3928_v9 = vadd.f32 %v3279_v46, %v1901_v47  ;;  %v3168_v48 = vpop.f32.mrb[104].mxu0  ;;  %v2290_v61 = vadd.f32 %v2289_v54, %v3924_v55 }
 0x1cb   : > { %v3280_v52 = vpop.f32.mrb[104].mxu1  ;;  %v3169_v23 = vpop.f32.mrb[105].mxu0 }
 0x1cc   : > { %v2821_v25 = vpack.c.bf16 %v3928_v9, %v3924_v55  ;;  %v3170_v62 = vadd.f32 %v3169_v23, %v3168_v48  ;;  %v3281_v2 = vpop.f32.mrb[105].mxu1  ;;  %v3171_v57 = vpop.f32.mrb[106].mxu0  ;;  %v2291_v31 = vadd.f32 %v2290_v61, %v3928_v9 }
 0x1cd   : > { %v3282_v10 = vadd.f32 %v3281_v2, %v3280_v52  ;;  %v3283_v5 = vpop.f32.mrb[106].mxu1  ;;  %v3172_v12 = vpop.f32.mrb[107].mxu0 }
 0x1ce   : > { %2861 = vst [vmem:[%s3829_s4 + $0x48] sm:$0xff] %v2821_v25   ;;  %v1906_v27 = vadd.f32 %v3170_v62, %v3795_v43  ;;  %v3173_v51 = vadd.f32 %v3172_v12, %v3171_v57  ;;  %v3284_v14 = vpop.f32.mrb[107].mxu1 }
 0x1cf   : > { %v3285_v15 = vadd.f32 %v3284_v14, %v3283_v5 }
 0x1d0   : > { %v3936_v8 = vadd.f32 %v3282_v10, %v1906_v27  ;;  %v1909_v17 = vadd.f32 %v3173_v51, %v3797_v45 }
 0x1d2   : > { %v2292_v6 = vadd.f32 %v2291_v31, %v3936_v8  ;;  %v3940_v20 = vadd.f32 %v3285_v15, %v1909_v17  ;;  %v3174_v32 = vpop.f32.mrb[108].mxu0 }
 0x1d3   : > { %v3286_v39 = vpop.f32.mrb[108].mxu1  ;;  %v3175_v33 = vpop.f32.mrb[109].mxu0 }
 0x1d4   : > { %v2826_v43 = vpack.c.bf16 %v3940_v20, %v3936_v8  ;;  %v2293_v35 = vadd.f32 %v2292_v6, %v3940_v20  ;;  %v3176_v36 = vadd.f32 %v3175_v33, %v3174_v32  ;;  %v3287_v38 = vpop.f32.mrb[109].mxu1  ;;  %v3177_v11 = vpop.f32.mrb[110].mxu0 }
 0x1d5   : > { %v3288_v40 = vadd.f32 %v3287_v38, %v3286_v39  ;;  %v3289_v21 = vpop.f32.mrb[110].mxu1  ;;  %v3178_v46 = vpop.f32.mrb[111].mxu0 }
 0x1d6   : > { %2862 = vst [vmem:[%s3829_s4 + $0x50] sm:$0xff] %v2826_v43   ;;  %v1914_v45 = vadd.f32 %v3176_v36, %v3799_v63  ;;  %v3179_v47 = vadd.f32 %v3178_v46, %v3177_v11  ;;  %v3290_v54 = vpop.f32.mrb[111].mxu1 }
 0x1d7   : > { %v3291_v48 = vadd.f32 %v3290_v54, %v3289_v21 }
 0x1d8   : > { %v3947_v52 = vadd.f32 %v3288_v40, %v1914_v45  ;;  %v1917_v23 = vadd.f32 %v3179_v47, %v3801_v1 }
 0x1da   : > { %v2294_v61 = vadd.f32 %v2293_v35, %v3947_v52  ;;  %v3951_v25 = vadd.f32 %v3291_v48, %v1917_v23  ;;  %v3180_v62 = vpop.f32.mrb[112].mxu0 }
 0x1db   : > { %v3292_v2 = vpop.f32.mrb[112].mxu1  ;;  %v3181_v57 = vpop.f32.mrb[113].mxu0 }
 0x1dc   : > { %v2831_v10 = vpack.c.bf16 %v3951_v25, %v3947_v52  ;;  %v2295_v63 = vadd.f32 %v2294_v61, %v3951_v25  ;;  %v3182_v5 = vadd.f32 %v3181_v57, %v3180_v62  ;;  %v3293_v12 = vpop.f32.mrb[113].mxu1  ;;  %v3183_v27 = vpop.f32.mrb[114].mxu0 }
 0x1dd   : > { %v3294_v51 = vadd.f32 %v3293_v12, %v3292_v2  ;;  %v3295_v14 = vpop.f32.mrb[114].mxu1  ;;  %v3184_v15 = vpop.f32.mrb[115].mxu0 }
 0x1de   : > { %2863 = vst [vmem:[%s3829_s4 + $0x58] sm:$0xff] %v2831_v10   ;;  %v1922_v1 = vadd.f32 %v3182_v5, %v3803_v19  ;;  %v3185_v31 = vadd.f32 %v3184_v15, %v3183_v27  ;;  %v3296_v17 = vpop.f32.mrb[115].mxu1 }
 0x1df   : > { %v3297_v6 = vadd.f32 %v3296_v17, %v3295_v14 }
 0x1e0   : > { %v3958_v32 = vadd.f32 %v3294_v51, %v1922_v1  ;;  %v1925_v39 = vadd.f32 %v3185_v31, %v3805_v22 }
 0x1e2   : > { %v2296_v33 = vadd.f32 %v2295_v63, %v3958_v32  ;;  %v3962_v43 = vadd.f32 %v3297_v6, %v1925_v39  ;;  %v3186_v35 = vpop.f32.mrb[116].mxu0 }
 0x1e3   : > { %v3298_v36 = vpop.f32.mrb[116].mxu1  ;;  %v3187_v38 = vpop.f32.mrb[117].mxu0 }
 0x1e4   : > { %v2836_v11 = vpack.c.bf16 %v3962_v43, %v3958_v32  ;;  %v2297_v19 = vadd.f32 %v2296_v33, %v3962_v43  ;;  %v3188_v40 = vadd.f32 %v3187_v38, %v3186_v35  ;;  %v3299_v21 = vpop.f32.mrb[117].mxu1  ;;  %v3189_v46 = vpop.f32.mrb[118].mxu0 }
 0x1e5   : > { %v3300_v45 = vadd.f32 %v3299_v21, %v3298_v36  ;;  %v3301_v47 = vpop.f32.mrb[118].mxu1  ;;  %v3190_v54 = vpop.f32.mrb[119].mxu0 }
 0x1e6   : > { %2864 = vst [vmem:[%s3829_s4 + $0x60] sm:$0xff] %v2836_v11   ;;  %v1930_v22 = vadd.f32 %v3188_v40, %v3807_v41  ;;  %v3191_v48 = vadd.f32 %v3190_v54, %v3189_v46  ;;  %v3302_v23 = vpop.f32.mrb[119].mxu1 }
 0x1e7   : > { %v3303_v61 = vadd.f32 %v3302_v23, %v3301_v47 }
 0x1e8   : > { %v3969_v62 = vadd.f32 %v3300_v45, %v1930_v22  ;;  %v1933_v2 = vadd.f32 %v3191_v48, %v3809_v44 }
 0x1ea   : > { %v2298_v57 = vadd.f32 %v2297_v19, %v3969_v62  ;;  %v3973_v10 = vadd.f32 %v3303_v61, %v1933_v2  ;;  %v3192_v63 = vpop.f32.mrb[120].mxu0 }
 0x1eb   : > { %v3304_v5 = vpop.f32.mrb[120].mxu1  ;;  %v3193_v12 = vpop.f32.mrb[121].mxu0 }
 0x1ec   : > { %v2841_v27 = vpack.c.bf16 %v3973_v10, %v3969_v62  ;;  %v2299_v41 = vadd.f32 %v2298_v57, %v3973_v10  ;;  %v3194_v51 = vadd.f32 %v3193_v12, %v3192_v63  ;;  %v3305_v14 = vpop.f32.mrb[121].mxu1  ;;  %v3195_v15 = vpop.f32.mrb[122].mxu0 }
 0x1ed   : > { %v3306_v1 = vadd.f32 %v3305_v14, %v3304_v5  ;;  %v3307_v31 = vpop.f32.mrb[122].mxu1  ;;  %v3196_v17 = vpop.f32.mrb[123].mxu0 }
 0x1ee   : > { %2865 = vst [vmem:[%s3829_s4 + $0x68] sm:$0xff] %v2841_v27   ;;  %v1938_v44 = vadd.f32 %v3194_v51, %v3811_v0  ;;  %v3197_v6 = vadd.f32 %v3196_v17, %v3195_v15  ;;  %v3308_v39 = vpop.f32.mrb[123].mxu1 }
 0x1ef   : > { %v3309_v33 = vadd.f32 %v3308_v39, %v3307_v31 }
 0x1f0   : > { %v3980_v35 = vadd.f32 %v3306_v1, %v1938_v44  ;;  %v1941_v36 = vadd.f32 %v3197_v6, %v3813_v3 }
 0x1f2   : > { %v2300_v38 = vadd.f32 %v2299_v41, %v3980_v35  ;;  %v3984_v11 = vadd.f32 %v3309_v33, %v1941_v36  ;;  %v3198_v19 = vpop.f32.mrb[124].mxu0 }
 0x1f3   : > { %v3310_v40 = vpop.f32.mrb[124].mxu1  ;;  %v3199_v21 = vpop.f32.mrb[125].mxu0 }
 0x1f4   : > { %v2846_v46 = vpack.c.bf16 %v3984_v11, %v3980_v35  ;;  %v2301_v0 = vadd.f32 %v2300_v38, %v3984_v11  ;;  %v3200_v45 = vadd.f32 %v3199_v21, %v3198_v19  ;;  %v3311_v47 = vpop.f32.mrb[125].mxu1  ;;  %v3201_v54 = vpop.f32.mrb[126].mxu0 }
 0x1f5   : > { %v3312_v22 = vadd.f32 %v3311_v47, %v3310_v40  ;;  %v3313_v48 = vpop.f32.mrb[126].mxu1  ;;  %v3202_v23 = vpop.f32.mrb[127].mxu0 }
 0x1f6   : > { %2866 = vst [vmem:[%s3829_s4 + $0x70] sm:$0xff] %v2846_v46   ;;  %v1946_v3 = vadd.f32 %v3200_v45, %v3815_v26  ;;  %v3203_v61 = vadd.f32 %v3202_v23, %v3201_v54  ;;  %v3314_v2 = vpop.f32.mrb[127].mxu1 }
 0x1f7   : > { %v3315_v57 = vadd.f32 %v3314_v2, %v3313_v48 }
 0x1f8   : > { %v3991_v63 = vadd.f32 %v3312_v22, %v1946_v3  ;;  %v1949_v5 = vadd.f32 %v3203_v61, %v3817_v30 }
 0x1fa   : > { %v2302_v12 = vadd.f32 %v2301_v0, %v3991_v63  ;;  %v3995_v27 = vadd.f32 %v3315_v57, %v1949_v5 }
 0x1fc   : > { %v2851_v41 = vpack.c.bf16 %v3995_v27, %v3991_v63  ;;  %v2303_v51 = vadd.f32 %v2302_v12, %v3995_v27 }
 0x1fe   : > { %2867 = vst [vmem:[%s3829_s4 + $0x78] sm:$0xff] %v2851_v41   ;;  %v2304_v14 = vrot.slane %v2303_v51, 4 }
 0x200   : > { %v2305_v15 = vadd.f32 %v2304_v14, %v2303_v51 }
 0x202   : > { %v2306_v26 = vrot.slane %v2305_v15, 2 }
 0x204   : > { %v2307_v1 = vadd.f32 %v2306_v26, %v2305_v15 }
 0x206   : > { %v2308_v31 = vrot.slane %v2307_v1, 1 }
 0x208   : > { %v2309_v17 = vadd.f32 %v2308_v31, %v2307_v1 }
 0x20a   : > { %v4001_v44 = vmul.f32 0.00390625, %v2309_v17 }
 0x20c   : > { %v2312_v30 = vsub.f32 %v3820_v56, %v4001_v44  ;;  %v2313_v6 = vsub.f32 %v3824_v59, %v4001_v44  ;;  %v2314_v39 = vsub.f32 %v3835_v18, %v4001_v44  ;;  %v2315_v38 = vsub.f32 %v3838_v24, %v4001_v44 }
 0x20d   : > { %v2316_v19 = vsub.f32 %v3844_v50, %v4001_v44  ;;  %v2317_v46 = vsub.f32 %v3847_v58, %v4001_v44  ;;  %v2318_v59 = vsub.f32 %v3853_v16, %v4001_v44  ;;  %v2319_v47 = vsub.f32 %v3858_v28, %v4001_v44 }
 0x20e   : > { %v2344_v33 = vmul.f32 %v2312_v30, %v2312_v30  ;;  %v2345_v36 = vmul.f32 %v2313_v6, %v2313_v6  ;;  %v2346_v40 = vmul.f32 %v2314_v39, %v2314_v39  ;;  %v2347_v56 = vmul.f32 %v2315_v38, %v2315_v38 }
 0x20f   : > { %v2348_v45 = vmul.f32 %v2316_v19, %v2316_v19  ;;  %v2349_v54 = vmul.f32 %v2317_v46, %v2317_v46  ;;  %v2320_v50 = vsub.f32 %v3866_v60, %v4001_v44  ;;  %v2350_v22 = vmul.f32 %v2318_v59, %v2318_v59 }
 0x210   : > { %v2376_v21 = vadd.f32 %v2345_v36, %v2344_v33  ;;  %v2321_v58 = vsub.f32 %v3870_v49, %v4001_v44  ;;  %v2351_v23 = vmul.f32 %v2319_v47, %v2319_v47  ;;  %v2322_v16 = vsub.f32 %v3878_v34, %v4001_v44 }
 0x211   : > { %v2352_v61 = vmul.f32 %v2320_v50, %v2320_v50  ;;  %v2323_v28 = vsub.f32 %v3881_v53, %v4001_v44  ;;  %v2324_v60 = vsub.f32 %v3889_v4, %v4001_v44  ;;  %v2325_v49 = vsub.f32 %v3893_v29, %v4001_v44 }
 0x212   : > { %v2377_v0 = vadd.f32 %v2376_v21, %v2346_v40  ;;  %v2353_v57 = vmul.f32 %v2321_v58, %v2321_v58  ;;  %v2354_v12 = vmul.f32 %v2322_v16, %v2322_v16  ;;  %v2326_v34 = vsub.f32 %v3901_v7, %v4001_v44 }
 0x213   : > { %v2355_v51 = vmul.f32 %v2323_v28, %v2323_v28  ;;  %v2356_v15 = vmul.f32 %v2324_v60, %v2324_v60  ;;  %v2327_v53 = vsub.f32 %v3905_v42, %v4001_v44  ;;  %v2357_v1 = vmul.f32 %v2325_v49, %v2325_v49 }
 0x214   : > { %v2378_v18 = vadd.f32 %v2377_v0, %v2347_v56  ;;  %v2328_v4 = vsub.f32 %v3913_v13, %v4001_v44  ;;  %v2358_v17 = vmul.f32 %v2326_v34, %v2326_v34  ;;  %v2329_v29 = vsub.f32 %v3916_v37, %v4001_v44 }
 0x215   : > { %v2359_v6 = vmul.f32 %v2327_v53, %v2327_v53  ;;  %v2330_v7 = vsub.f32 %v3924_v55, %v4001_v44  ;;  %v2331_v42 = vsub.f32 %v3928_v9, %v4001_v44  ;;  %v2332_v13 = vsub.f32 %v3936_v8, %v4001_v44 }
 0x216   : > { %v2379_v24 = vadd.f32 %v2378_v18, %v2348_v45  ;;  %v2360_v33 = vmul.f32 %v2328_v4, %v2328_v4  ;;  %v2361_v38 = vmul.f32 %v2329_v29, %v2329_v29  ;;  %v2333_v37 = vsub.f32 %v3940_v20, %v4001_v44 }
 0x217   : > { %v2362_v40 = vmul.f32 %v2330_v7, %v2330_v7  ;;  %v2363_v46 = vmul.f32 %v2331_v42, %v2331_v42  ;;  %v2334_v55 = vsub.f32 %v3947_v52, %v4001_v44  ;;  %v2364_v0 = vmul.f32 %v2332_v13, %v2332_v13 }
 0x218   : > { %v2380_v48 = vadd.f32 %v2379_v24, %v2349_v54  ;;  %v2335_v9 = vsub.f32 %v3951_v25, %v4001_v44  ;;  %v2365_v45 = vmul.f32 %v2333_v37, %v2333_v37  ;;  %v2336_v8 = vsub.f32 %v3958_v32, %v4001_v44 }
 0x219   : > { %v2366_v47 = vmul.f32 %v2334_v55, %v2334_v55  ;;  %v2337_v20 = vsub.f32 %v3962_v43, %v4001_v44  ;;  %v2338_v52 = vsub.f32 %v3969_v62, %v4001_v44  ;;  %v2339_v25 = vsub.f32 %v3973_v10, %v4001_v44 }
 0x21a   : > { %v2381_v3 = vadd.f32 %v2380_v48, %v2350_v22  ;;  %v2367_v24 = vmul.f32 %v2335_v9, %v2335_v9  ;;  %v2368_v22 = vmul.f32 %v2336_v8, %v2336_v8  ;;  %v2340_v32 = vsub.f32 %v3980_v35, %v4001_v44 }
 0x21b   : > { %v2369_v58 = vmul.f32 %v2337_v20, %v2337_v20  ;;  %v2341_v43 = vsub.f32 %v3984_v11, %v4001_v44  ;;  %v2342_v62 = vsub.f32 %v3991_v63, %v4001_v44  ;;  %v2343_v10 = vsub.f32 %v3995_v27, %v4001_v44 }
 0x21c   : > { %v2382_v2 = vadd.f32 %v2381_v3, %v2351_v23  ;;  %v2370_v3 = vmul.f32 %v2338_v52, %v2338_v52  ;;  %v2372_v28 = vmul.f32 %v2340_v32, %v2340_v32 }
 0x21d   : > { %v2374_v35 = vmul.f32 %v2342_v62, %v2342_v62 }
 0x21e   : > { %v2383_v5 = vadd.f32 %v2382_v2, %v2352_v61  ;;  %v2371_v61 = vmul.f32 %v2339_v25, %v2339_v25 }
 0x220   : > { %v2384_v41 = vadd.f32 %v2383_v5, %v2353_v57  ;;  %v2373_v5 = vmul.f32 %v2341_v43, %v2341_v43 }
 0x222   : > { %v2385_v14 = vadd.f32 %v2384_v41, %v2354_v12  ;;  %v2375_v41 = vmul.f32 %v2343_v10, %v2343_v10 }
 0x224   : > { %v2386_v26 = vadd.f32 %v2385_v14, %v2355_v51 }
 0x226   : > { %v2387_v31 = vadd.f32 %v2386_v26, %v2356_v15 }
 0x228   : > { %v2388_v30 = vadd.f32 %v2387_v31, %v2357_v1 }
 0x22a   : > { %v2389_v39 = vadd.f32 %v2388_v30, %v2358_v17 }
 0x22c   : > { %v2390_v36 = vadd.f32 %v2389_v39, %v2359_v6 }
 0x22e   : > { %v2391_v19 = vadd.f32 %v2390_v36, %v2360_v33 }
 0x230   : > { %v2392_v21 = vadd.f32 %v2391_v19, %v2361_v38 }
 0x232   : > { %v2393_v56 = vadd.f32 %v2392_v21, %v2362_v40 }
 0x234   : > { %v2394_v59 = vadd.f32 %v2393_v56, %v2363_v46 }
 0x236   : > { %v2395_v18 = vadd.f32 %v2394_v59, %v2364_v0 }
 0x238   : > { %v2396_v54 = vadd.f32 %v2395_v18, %v2365_v45 }
 0x23a   : > { %v2397_v50 = vadd.f32 %v2396_v54, %v2366_v47 }
 0x23c   : > { %v2398_v48 = vadd.f32 %v2397_v50, %v2367_v24 }
 0x23e   : > { %v2399_v23 = vadd.f32 %v2398_v48, %v2368_v22 }
 0x240   : > { %v2400_v16 = vadd.f32 %v2399_v23, %v2369_v58 }
 0x242   : > { %v2401_v2 = vadd.f32 %v2400_v16, %v2370_v3 }
 0x244   : > { %v2402_v57 = vadd.f32 %v2401_v2, %v2371_v61 }
 0x246   : > { %v2403_v60 = vadd.f32 %v2402_v57, %v2372_v28 }
 0x248   : > { %v2404_v12 = vadd.f32 %v2403_v60, %v2373_v5 }
 0x24a   : > { %v2405_v49 = vadd.f32 %v2404_v12, %v2374_v35 }
 0x24c   : > { %v2406_v51 = vadd.f32 %v2405_v49, %v2375_v41 }
 0x24e   : > { %v2407_v11 = vrot.slane %v2406_v51, 4 }
 0x250   : > { %v2408_v14 = vadd.f32 %v2407_v11, %v2406_v51 }
 0x252   : > { %v2409_v34 = vrot.slane %v2408_v14, 2 }
 0x254   : > { %v2410_v15 = vadd.f32 %v2409_v34, %v2408_v14 }
 0x256   : > { %v2411_v63 = vrot.slane %v2410_v15, 1 }
 0x258   : > { %v2412_v27 = vadd.f32 %v2411_v63, %v2410_v15 }
 0x25a   : > { %v2414_v26 = vsel %vm2413_vm0, %v4001_v44, %v2412_v27 }
 0x25b   : > { %2415 = vst [vmem:[%s187_s7] sm:$0x3] %v2414_v26 }
 0x25c PF: > { %s14_s12 = sadd.s32 1, %s3394_s12  }
 0x25d   : > { %p11_p5 = scmp.ge.s32.totalorder %s14_s12, 4  }
 0x25f   :  { %13 = sbr.rel (!%p11_p5) target bundleno = 1 (0x1), region = 70 }

// kernel: discriminator_forward.12
= control target key start
LH: loop header
LB: loop body
LE: loop exit
PB: predicated region body
PF: predicated region fallthrough
CT: control target
= control target key end

     0   :  { %s3821_s12 = smov 0   ;;  %s4809_s0 = inlined_call_operand.vmem [shape: bf16[128,2048], index: 0, kind: input, shape index: {}]   ;;  %s4810_s1 = inlined_call_operand.vmem [shape: bf16[2048,256], index: 1, kind: input, shape index: {}]   ;;  %s4811_s2 = inlined_call_operand.vmem [shape: bf16[128,256], index: 2, kind: output, shape index: {0}]   ;;  %s4812_s3 = inlined_call_operand.vmem [shape: f32[16,256], index: 3, kind: output, shape index: {1}]  }
   0x1 LB: > { %s3827_s13 = sadd.s32 4294967295, %s3799_s12   ;;  %p2939_p0 = scmp.ge.s32.totalorder %s3799_s12, 1  ;;  %s3799_s12 = sphi %s3821_s12, %s14_s12  }
   0x2   : > { %p142_p1 = scmp.lt.s32.totalorder %s3799_s12, 3 }
   0x4   : > { %p143_p2 = pnand %p2939_p0, %p142_p1 }
   0x5   : > { %v3409_v0 = vld [vmem:[%s4810_s1 + $0x4] ss:$8 sps:$4 sm:$0xff] (!%p143_p2)   ;;  %v3413_v2 = vld [vmem:[%s4810_s1] ss:$8 sps:$4 sm:$0xff] (!%p143_p2)   ;;  %v3415_v4 = vld [vmem:[%s4810_s1 + $0x14] ss:$8 sps:$4 sm:$0xff] (!%p143_p2)  }
   0x6   : > { %146 = sbr.rel (%p143_p2) target bundleno = 554 (0x22a), region = 28  ;;  %v3411_v1 = vld [vmem:[%s4810_s1 + $0x404] ss:$8 sps:$4 sm:$0xff] (!%p143_p2)   ;;  %2112 = vmatprep.subr.bf16.mxu1 (!%p143_p2), %v3409_v0  ;;  %v3414_v3 = vld [vmem:[%s4810_s1 + $0x400] ss:$8 sps:$4 sm:$0xff] (!%p143_p2)   ;;  %s2940_s24 = sshll.u32 (!%p143_p2), %s3827_s13, 3 }
   0x7   : > { %2404 = vmatprep.subr.bf16.mxu0 (!%p143_p2), %v3411_v1  ;;  %2113 = vmatpush1.bf16.msra.mxu1 (!%p143_p2), %v3413_v2  ;;  %v3417_v5 = vld [vmem:[%s4810_s1 + $0x414] ss:$8 sps:$4 sm:$0xff] (!%p143_p2)   ;;  %v3419_v6 = vld [vmem:[%s4810_s1 + $0x10] ss:$8 sps:$4 sm:$0xff] (!%p143_p2)   ;;  %v3421_v8 = vld [vmem:[%s4810_s1 + $0x24] ss:$8 sps:$4 sm:$0xff] (!%p143_p2)  }
   0x8   : > { %2405 = vmatpush1.bf16.msra.mxu0 (!%p143_p2), %v3414_v3  ;;  %2114 = vmatprep.subr.bf16.mxu1 (!%p143_p2), %v3415_v4  ;;  %v3420_v7 = vld [vmem:[%s4810_s1 + $0x410] ss:$8 sps:$4 sm:$0xff] (!%p143_p2)   ;;  %v3423_v9 = vld [vmem:[%s4810_s1 + $0x424] ss:$8 sps:$4 sm:$0xff] (!%p143_p2)   ;;  %v3425_v10 = vld [vmem:[%s4810_s1 + $0x20] ss:$8 sps:$4 sm:$0xff] (!%p143_p2)  }
   0x9   : > { %2406 = vmatprep.subr.bf16.mxu0 (!%p143_p2), %v3417_v5  ;;  %v3426_v11 = vld [vmem:[%s4810_s1 + $0x420] ss:$8 sps:$4 sm:$0xff] (!%p143_p2)   ;;  %v3427_v12 = vld [vmem:[%s4810_s1 + $0x34] ss:$8 sps:$4 sm:$0xff] (!%p143_p2)   ;;  %v3431_v14 = vld [vmem:[%s4810_s1 + $0x30] ss:$8 sps:$4 sm:$0xff] (!%p143_p2)  }
   0xa   : > { %v3429_v13 = vld [vmem:[%s4810_s1 + $0x434] ss:$8 sps:$4 sm:$0xff] (!%p143_p2)   ;;  %v3432_v15 = vld [vmem:[%s4810_s1 + $0x430] ss:$8 sps:$4 sm:$0xff] (!%p143_p2)   ;;  %v3433_v16 = vld [vmem:[%s4810_s1 + $0x44] ss:$8 sps:$4 sm:$0xff] (!%p143_p2)  }
   0xb   : > { %2115 = vmatpush1.bf16.msra.mxu1 (!%p143_p2), %v3419_v6  ;;  %v3435_v17 = vld [vmem:[%s4810_s1 + $0x444] ss:$8 sps:$4 sm:$0xff] (!%p143_p2)   ;;  %v3437_v18 = vld [vmem:[%s4810_s1 + $0x40] ss:$8 sps:$4 sm:$0xff] (!%p143_p2)   ;;  %v3439_v20 = vld [vmem:[%s4810_s1 + $0x54] ss:$8 sps:$4 sm:$0xff] (!%p143_p2)  }
   0xc   : > { %2407 = vmatpush1.bf16.msra.mxu0 (!%p143_p2), %v3420_v7  ;;  %2116 = vmatprep.subr.bf16.mxu1 (!%p143_p2), %v3421_v8  ;;  %v3438_v19 = vld [vmem:[%s4810_s1 + $0x440] ss:$8 sps:$4 sm:$0xff] (!%p143_p2)   ;;  %v3441_v21 = vld [vmem:[%s4810_s1 + $0x454] ss:$8 sps:$4 sm:$0xff] (!%p143_p2)   ;;  %v3443_v22 = vld [vmem:[%s4810_s1 + $0x50] ss:$8 sps:$4 sm:$0xff] (!%p143_p2)  }
   0xd   : > { %2408 = vmatprep.subr.bf16.mxu0 %v3423_v9  ;;  %v3444_v23 = vld [vmem:[%s4810_s1 + $0x450] ss:$8 sps:$4 sm:$0xff]   ;;  %v3445_v24 = vld [vmem:[%s4810_s1 + $0x64] ss:$8 sps:$4 sm:$0xff]   ;;  %v3449_v26 = vld [vmem:[%s4810_s1 + $0x60] ss:$8 sps:$4 sm:$0xff]  }
   0xe   : > { %v3447_v25 = vld [vmem:[%s4810_s1 + $0x464] ss:$8 sps:$4 sm:$0xff]   ;;  %v3450_v27 = vld [vmem:[%s4810_s1 + $0x460] ss:$8 sps:$4 sm:$0xff]   ;;  %v3451_v28 = vld [vmem:[%s4810_s1 + $0x74] ss:$8 sps:$4 sm:$0xff]  }
   0xf   : > { %2117 = vmatpush1.bf16.msra.mxu1 %v3425_v10  ;;  %v3453_v29 = vld [vmem:[%s4810_s1 + $0x474] ss:$8 sps:$4 sm:$0xff]   ;;  %v3455_v30 = vld [vmem:[%s4810_s1 + $0x70] ss:$8 sps:$4 sm:$0xff]   ;;  %v3457_v32 = vld [vmem:[%s4810_s1 + $0x84] ss:$8 sps:$4 sm:$0xff]  }
  0x10   : > { %2409 = vmatpush1.bf16.msra.mxu0 %v3426_v11  ;;  %2118 = vmatprep.subr.bf16.mxu1 %v3427_v12  ;;  %v3456_v31 = vld [vmem:[%s4810_s1 + $0x470] ss:$8 sps:$4 sm:$0xff]   ;;  %p174_p3 = scmp.lt.s32.totalorder %s2940_s24, 15  ;;  %v3459_v33 = vld [vmem:[%s4810_s1 + $0x484] ss:$8 sps:$4 sm:$0xff]   ;;  %p187_p4 = scmp.lt.s32.totalorder %s3827_s13, 1 }
  0x11   : > { %2410 = vmatprep.subr.bf16.mxu0 %v3429_v13  ;;  %v3461_v34 = vld [vmem:[%s4810_s1 + $0x80] ss:$8 sps:$4 sm:$0xff]   ;;  %v3463_v36 = vld [vmem:[%s4810_s1 + $0x94] ss:$8 sps:$4 sm:$0xff]   ;;  %v3467_v38 = vld [vmem:[%s4810_s1 + $0x90] ss:$8 sps:$4 sm:$0xff]  }
  0x12   : > { %v3462_v35 = vld [vmem:[%s4810_s1 + $0x480] ss:$8 sps:$4 sm:$0xff]   ;;  %s4814_s24 = smov (!%p174_p3, %s2940_s24), 15  ;;  %v3465_v37 = vld [vmem:[%s4810_s1 + $0x494] ss:$8 sps:$4 sm:$0xff]   ;;  %s4816_s13 = smov (!%p187_p4, %s3827_s13), 1 }
  0x13   : > { %2119 = vmatpush1.bf16.msra.mxu1 %v3431_v14  ;;  %v3468_v39 = vld [vmem:[%s4810_s1 + $0x490] ss:$8 sps:$4 sm:$0xff]   ;;  %v3469_v40 = vld [vmem:[%s4810_s1 + $0xa4] ss:$8 sps:$4 sm:$0xff]   ;;  %s3278_s22 = sshll.u32 %s4814_s24, 6  ;;  %s3279_s18 = sshll.u32 %s4814_s24, 3 }
  0x14   : > { %2411 = vmatpush1.bf16.msra.mxu0 %v3432_v15  ;;  %2120 = vmatprep.subr.bf16.mxu1 %v3433_v16  ;;  %v3471_v41 = vld [vmem:[%s4810_s1 + $0x4a4] ss:$8 sps:$4 sm:$0xff]   ;;  %v3473_v42 = vld [vmem:[%s4810_s1 + $0xa0] ss:$8 sps:$4 sm:$0xff]   ;;  %s3970_s5 = scalar_lea.vmem %s4809_s0, %s3278_s22  ;;  %v3475_v44 = vld [vmem:[%s4810_s1 + $0xb4] ss:$8 sps:$4 sm:$0xff]   ;;  %s4728_s20 = scalar_lea.vmem %s4811_s2, %s3279_s18 }
  0x15   : > { %2412 = vmatprep.subr.bf16.mxu0 %v3435_v17  ;;  %v3474_v43 = vld [vmem:[%s4810_s1 + $0x4a0] ss:$8 sps:$4 sm:$0xff]   ;;  %v3477_v45 = vld [vmem:[%s4810_s1 + $0x4b4] ss:$8 sps:$4 sm:$0xff]   ;;  %v3479_v46 = vld [vmem:[%s4810_s1 + $0xb0] ss:$8 sps:$4 sm:$0xff]  }
  0x16   : > { %v3480_v47 = vld [vmem:[%s4810_s1 + $0x4b0] ss:$8 sps:$4 sm:$0xff]   ;;  %v192_v48 = vld [vmem:[%s3970_s5] sm:$0xff]  ;;  %v3487_v58 = vld [vmem:[%s4810_s1 + $0xd4] ss:$8 sps:$4 sm:$0xff]   ;;  %s3280_s24 = sshll.u32 %s4816_s13, 4 }
  0x17   : > { %2121 = vmatpush1.bf16.msra.mxu1 %v3437_v18  ;;  %v200_v49 = vld [vmem:[%s3970_s5 + $0x40] sm:$0xff]  ;;  %v3489_v59 = vld [vmem:[%s4810_s1 + $0x4d4] ss:$8 sps:$4 sm:$0xff]   ;;  %v3491_v60 = vld [vmem:[%s4810_s1 + $0xd0] ss:$8 sps:$4 sm:$0xff]   ;;  %vm2839_vm0 = vcmask 1040384   ;;  %s191_s23 = scalar_lea.vmem %s4812_s3, %s3280_s24 }
  0x18   : > { %2413 = vmatpush1.bf16.msra.mxu0 %v3438_v19  ;;  %2122 = vmatprep.subr.bf16.mxu1 %v3439_v20  ;;  %v3481_v50 = vld [vmem:[%s4810_s1 + $0xc4] ss:$8 sps:$4 sm:$0xff]   ;;  %v2949_v52 = vcombine.high %v192_v48, %v200_v49  ;;  %v3485_v56 = vld [vmem:[%s4810_s1 + $0xc0] ss:$8 sps:$4 sm:$0xff]   ;;  %v3492_v61 = vld [vmem:[%s4810_s1 + $0x4d0] ss:$8 sps:$4 sm:$0xff]   ;;  %v2948_v8 = vcombine.low %v192_v48, %v200_v49 }
  0x19   : > { %2414 = vmatprep.subr.bf16.mxu0 %v3441_v21  ;;  %v3483_v51 = vld [vmem:[%s4810_s1 + $0x4c4] ss:$8 sps:$4 sm:$0xff]   ;;  %v3486_v57 = vld [vmem:[%s4810_s1 + $0x4c0] ss:$8 sps:$4 sm:$0xff]   ;;  %v3499_v2 = vld [vmem:[%s4810_s1 + $0xf4] ss:$8 sps:$4 sm:$0xff]  }
  0x1a   : > { %v196_v53 = vld [vmem:[%s3970_s5 + $0x20] sm:$0xff]  ;;  %2144 = vmatprep.mubr.bf16.mxu1 %v2949_v52  ;;  %v3501_v3 = vld [vmem:[%s4810_s1 + $0x4f4] ss:$8 sps:$4 sm:$0xff]   ;;  %v3503_v4 = vld [vmem:[%s4810_s1 + $0xf0] ss:$8 sps:$4 sm:$0xff]  }
  0x1b   : > { %2123 = vmatpush1.bf16.msra.mxu1 %v3443_v22  ;;  %v204_v54 = vld [vmem:[%s3970_s5 + $0x60] sm:$0xff]  ;;  %v3504_v5 = vld [vmem:[%s4810_s1 + $0x4f0] ss:$8 sps:$4 sm:$0xff]   ;;  %v3513_v12 = vld [vmem:[%s4810_s1 + $0x114] ss:$8 sps:$4 sm:$0xff]  }
  0x1c   : > { %2415 = vmatpush1.bf16.msra.mxu0 %v3444_v23  ;;  %2124 = vmatprep.subr.bf16.mxu1 %v3445_v24  ;;  %v2957_v55 = vcombine.high %v196_v53, %v204_v54  ;;  %v3493_v62 = vld [vmem:[%s4810_s1 + $0xe4] ss:$8 sps:$4 sm:$0xff]   ;;  %v3497_v0 = vld [vmem:[%s4810_s1 + $0xe0] ss:$8 sps:$4 sm:$0xff]   ;;  %v2956_v10 = vcombine.low %v196_v53, %v204_v54  ;;  %v3516_v13 = vld [vmem:[%s4810_s1 + $0x514] ss:$8 sps:$4 sm:$0xff]  }
  0x1d   : > { %2416 = vmatprep.subr.bf16.mxu0 %v3447_v25  ;;  %v3495_v63 = vld [vmem:[%s4810_s1 + $0x4e4] ss:$8 sps:$4 sm:$0xff]   ;;  %v3498_v1 = vld [vmem:[%s4810_s1 + $0x4e0] ss:$8 sps:$4 sm:$0xff]   ;;  %v3511_v14 = vld [vmem:[%s4810_s1 + $0x110] ss:$8 sps:$4 sm:$0xff]  }
  0x1e   : > { %2436 = vmatprep.mubr.bf16.mxu0 %v2957_v55  ;;  %v3507_v6 = vld [vmem:[%s4810_s1 + $0x104] ss:$8 sps:$4 sm:$0xff]   ;;  %v3505_v9 = vld [vmem:[%s4810_s1 + $0x100] ss:$8 sps:$4 sm:$0xff]   ;;  %v3514_v15 = vld [vmem:[%s4810_s1 + $0x510] ss:$8 sps:$4 sm:$0xff]  }
  0x1f   : > { %2125 = vmatpush1.bf16.msra.mxu1 %v3449_v26  ;;  %v3510_v7 = vld [vmem:[%s4810_s1 + $0x504] ss:$8 sps:$4 sm:$0xff]   ;;  %v3508_v11 = vld [vmem:[%s4810_s1 + $0x500] ss:$8 sps:$4 sm:$0xff]   ;;  %v3525_v22 = vld [vmem:[%s4810_s1 + $0x134] ss:$8 sps:$4 sm:$0xff]  }
  0x20   : > { %2417 = vmatpush1.bf16.msra.mxu0 %v3450_v27  ;;  %2126 = vmatprep.subr.bf16.mxu1 %v3451_v28  ;;  %v3519_v16 = vld [vmem:[%s4810_s1 + $0x124] ss:$8 sps:$4 sm:$0xff]   ;;  %v3517_v18 = vld [vmem:[%s4810_s1 + $0x120] ss:$8 sps:$4 sm:$0xff]   ;;  %v3528_v23 = vld [vmem:[%s4810_s1 + $0x534] ss:$8 sps:$4 sm:$0xff]  }
  0x21   : > { %2418 = vmatprep.subr.bf16.mxu0 %v3453_v29  ;;  %v3522_v17 = vld [vmem:[%s4810_s1 + $0x524] ss:$8 sps:$4 sm:$0xff]   ;;  %v3520_v19 = vld [vmem:[%s4810_s1 + $0x520] ss:$8 sps:$4 sm:$0xff]   ;;  %v3523_v29 = vld [vmem:[%s4810_s1 + $0x130] ss:$8 sps:$4 sm:$0xff]  }
  0x22   : > { %v208_v20 = vld [vmem:[%s3970_s5 + $0x80] sm:$0xff] }
  0x23   : > { %2127 = vmatpush1.bf16.msra.mxu1 %v3455_v30  ;;  %v216_v21 = vld [vmem:[%s3970_s5 + $0xc0] sm:$0xff]  ;;  %v3526_v30 = vld [vmem:[%s4810_s1 + $0x530] ss:$8 sps:$4 sm:$0xff]  }
  0x24   : > { %2419 = vmatpush1.bf16.msra.mxu0 %v3456_v31  ;;  %2128 = vmatprep.subr.bf16.mxu1 %v3457_v32  ;;  %v2965_v24 = vcombine.high %v208_v20, %v216_v21  ;;  %v212_v25 = vld [vmem:[%s3970_s5 + $0xa0] sm:$0xff]  ;;  %v2964_v26 = vcombine.low %v208_v20, %v216_v21  ;;  %v3571_v20 = vld [vmem:[%s4810_s1 + $0x1b0] ss:$8 sps:$4 sm:$0xff]  }
  0x25   : > { %2420 = vmatprep.subr.bf16.mxu0 %v3459_v33  ;;  %v220_v27 = vld [vmem:[%s3970_s5 + $0xe0] sm:$0xff]  ;;  %v3574_v21 = vld [vmem:[%s4810_s1 + $0x5b0] ss:$8 sps:$4 sm:$0xff]  }
  0x26   : > { %v2973_v28 = vcombine.high %v212_v25, %v220_v27  ;;  %v2972_v31 = vcombine.low %v212_v25, %v220_v27  ;;  %v3531_v32 = vld [vmem:[%s4810_s1 + $0x144] ss:$8 sps:$4 sm:$0xff]   ;;  %v3541_v55 = vld [vmem:[%s4810_s1 + $0x160] ss:$8 sps:$4 sm:$0xff]   ;;  %v3588_v27 = vld [vmem:[%s4810_s1 + $0x5d4] ss:$8 sps:$4 sm:$0xff]  }
  0x27   : > { %2129 = vmatpush1.bf16.msra.mxu1 %v3461_v34  ;;  %v3534_v33 = vld [vmem:[%s4810_s1 + $0x544] ss:$8 sps:$4 sm:$0xff]   ;;  %v3580_v25 = vld [vmem:[%s4810_s1 + $0x5c0] ss:$8 sps:$4 sm:$0xff]  }
  0x28   : > { %2421 = vmatpush1.bf16.msra.mxu0 %v3462_v35  ;;  %2130 = vmatprep.subr.bf16.mxu1 %v3463_v36  ;;  %v224_v34 = vld [vmem:[%s3970_s5 + $0x100] sm:$0xff] }
  0x29   : > { %2422 = vmatprep.subr.bf16.mxu0 %v3465_v37  ;;  %v232_v35 = vld [vmem:[%s3970_s5 + $0x140] sm:$0xff] }
  0x2a   : > { %v3529_v36 = vld [vmem:[%s4810_s1 + $0x140] ss:$8 sps:$4 sm:$0xff]   ;;  %v2981_v37 = vcombine.high %v224_v34, %v232_v35 }
  0x2b   : > { %2131 = vmatpush1.bf16.msra.mxu1 %v3467_v38  ;;  %v3532_v38 = vld [vmem:[%s4810_s1 + $0x540] ss:$8 sps:$4 sm:$0xff]  }
  0x2c   : > { %2423 = vmatpush1.bf16.msra.mxu0 %v3468_v39  ;;  %2132 = vmatprep.subr.bf16.mxu1 %v3469_v40  ;;  %v228_v39 = vld [vmem:[%s3970_s5 + $0x120] sm:$0xff] }
  0x2d   : > { %2424 = vmatprep.subr.bf16.mxu0 %v3471_v41  ;;  %v236_v40 = vld [vmem:[%s3970_s5 + $0x160] sm:$0xff]  ;;  %v2980_v41 = vcombine.low %v224_v34, %v232_v35  ;;  %v3597_v34 = vld [vmem:[%s4810_s1 + $0x1f4] ss:$8 sps:$4 sm:$0xff]  }
  0x2e   : > { %v240_v48 = vld [vmem:[%s3970_s5 + $0x180] sm:$0xff]  ;;  %v3600_v35 = vld [vmem:[%s4810_s1 + $0x5f4] ss:$8 sps:$4 sm:$0xff]  }
  0x2f   : > { %2133 = vmatpush1.bf16.msra.mxu1 %v3473_v42  ;;  %v3537_v42 = vld [vmem:[%s4810_s1 + $0x154] ss:$8 sps:$4 sm:$0xff]   ;;  %v248_v49 = vld [vmem:[%s3970_s5 + $0x1c0] sm:$0xff] }
  0x30   : > { %2425 = vmatpush1.bf16.msra.mxu0 %v3474_v43  ;;  %2134 = vmatprep.subr.bf16.mxu1 %v3475_v44  ;;  %v2989_v43 = vcombine.high %v228_v39, %v236_v40  ;;  %v3540_v44 = vld [vmem:[%s4810_s1 + $0x554] ss:$8 sps:$4 sm:$0xff]   ;;  %v2997_v52 = vcombine.high %v240_v48, %v248_v49  ;;  %v244_v53 = vld [vmem:[%s3970_s5 + $0x1a0] sm:$0xff] }
  0x31   : > { %2426 = vmatprep.subr.bf16.mxu0 %v3477_v45  ;;  %v3535_v45 = vld [vmem:[%s4810_s1 + $0x150] ss:$8 sps:$4 sm:$0xff]   ;;  %v252_v54 = vld [vmem:[%s3970_s5 + $0x1e0] sm:$0xff] }
  0x33   : > { %2135 = vmatpush1.bf16.msra.mxu1 %v3479_v46  ;;  %v3538_v46 = vld [vmem:[%s4810_s1 + $0x550] ss:$8 sps:$4 sm:$0xff]  }
  0x34   : > { %2427 = vmatpush1.bf16.msra.mxu0 %v3480_v47  ;;  %2136 = vmatprep.subr.bf16.mxu1 %v3481_v50  ;;  %v2988_v47 = vcombine.low %v228_v39, %v236_v40  ;;  %v3543_v50 = vld [vmem:[%s4810_s1 + $0x164] ss:$8 sps:$4 sm:$0xff]   ;;  %v3601_v40 = vld [vmem:[%s4810_s1 + $0x200] ss:$8 sps:$4 sm:$0xff]  }
  0x35   : > { %2428 = vmatprep.subr.bf16.mxu0 %v3483_v51  ;;  %v3546_v51 = vld [vmem:[%s4810_s1 + $0x564] ss:$8 sps:$4 sm:$0xff]  }
  0x36   : > { %v3606_v39 = vld [vmem:[%s4810_s1 + $0x604] ss:$8 sps:$4 sm:$0xff]  }
  0x37   : > { %2137 = vmatpush1.bf16.msra.mxu1 %v3485_v56  ;;  %v3544_v56 = vld [vmem:[%s4810_s1 + $0x560] ss:$8 sps:$4 sm:$0xff]  }
  0x38   : > { %2429 = vmatpush1.bf16.msra.mxu0 %v3486_v57  ;;  %2138 = vmatprep.subr.bf16.mxu1 %v3487_v58  ;;  %v3005_v57 = vcombine.high %v244_v53, %v252_v54  ;;  %v2996_v58 = vcombine.low %v240_v48, %v248_v49  ;;  %v3609_v48 = vld [vmem:[%s4810_s1 + $0x214] ss:$8 sps:$4 sm:$0xff]  }
  0x39   : > { %2430 = vmatprep.subr.bf16.mxu0 %v3489_v59  ;;  %v3549_v59 = vld [vmem:[%s4810_s1 + $0x174] ss:$8 sps:$4 sm:$0xff]  }
  0x3a   : > { %v3612_v49 = vld [vmem:[%s4810_s1 + $0x614] ss:$8 sps:$4 sm:$0xff]  }
  0x3b   : > { %2139 = vmatpush1.bf16.msra.mxu1 %v3491_v60  ;;  %v3552_v60 = vld [vmem:[%s4810_s1 + $0x574] ss:$8 sps:$4 sm:$0xff]  }
  0x3c   : > { %2431 = vmatpush1.bf16.msra.mxu0 %v3492_v61  ;;  %2140 = vmatprep.subr.bf16.mxu1 %v3493_v62  ;;  %v3547_v61 = vld [vmem:[%s4810_s1 + $0x170] ss:$8 sps:$4 sm:$0xff]  }
  0x3d   : > { %2432 = vmatprep.subr.bf16.mxu0 %v3495_v63  ;;  %v3550_v62 = vld [vmem:[%s4810_s1 + $0x570] ss:$8 sps:$4 sm:$0xff]   ;;  %v4145_v63 = vld [vmem:[%s3970_s5 + $0x8] sm:$0xff] }
  0x3f   : > { %2141 = vmatpush1.bf16.msra.mxu1 %v3497_v0  ;;  %v3004_v0 = vcombine.low %v244_v53, %v252_v54  ;;  %v3610_v53 = vld [vmem:[%s4810_s1 + $0x610] ss:$8 sps:$4 sm:$0xff]   ;;  %v3615_v54 = vld [vmem:[%s4810_s1 + $0x224] ss:$8 sps:$4 sm:$0xff]  }
  0x40   : > { %2433 = vmatpush1.bf16.msra.mxu0 %v3498_v1  ;;  %2142 = vmatprep.subr.bf16.mxu1 %v3499_v2  ;;  %v4148_v1 = vld [vmem:[%s3970_s5 + $0x48] sm:$0xff] }
  0x41   : > { %2434 = vmatprep.subr.bf16.mxu0 %v3501_v3  ;;  %v3555_v2 = vld [vmem:[%s4810_s1 + $0x184] ss:$8 sps:$4 sm:$0xff]  }
  0x42   : > { %v3558_v3 = vld [vmem:[%s4810_s1 + $0x584] ss:$8 sps:$4 sm:$0xff]  }
  0x43   : > { %2143 = vmatpush1.bf16.msra.mxu1 %v3503_v4  ;;  %v2951_v4 = vcombine.high %v4145_v63, %v4148_v1 }
  0x44   : > { %2435 = vmatpush1.bf16.msra.mxu0 %v3504_v5  ;;  %2185 = vmatprep.subr.bf16.mxu1 %v3507_v6  ;;  %v4159_v5 = vld [vmem:[%s3970_s5 + $0x28] sm:$0xff] }
  0x45   : > { %2477 = vmatprep.subr.bf16.mxu0 %v3510_v7  ;;  %v4162_v6 = vld [vmem:[%s3970_s5 + $0x68] sm:$0xff] }
  0x46   : > { %2145 = vmatmul.mubr.bf16.vlgmr.msra.gmra.mrb[0].mxu1 %v2948_v8  ;;  %v2959_v7 = vcombine.high %v4159_v5, %v4162_v6  ;;  %v3553_v8 = vld [vmem:[%s4810_s1 + $0x180] ss:$8 sps:$4 sm:$0xff]  }
  0x47   : > { %2437 = vmatmul.mubr.bf16.vlgmr.msra.gmra.mrb[0].mxu0 %v2956_v10  ;;  %2186 = vmatpush1.bf16.msra.mxu1 %v3505_v9  ;;  %v3556_v9 = vld [vmem:[%s4810_s1 + $0x580] ss:$8 sps:$4 sm:$0xff]   ;;  %v3561_v10 = vld [vmem:[%s4810_s1 + $0x194] ss:$8 sps:$4 sm:$0xff]  }
  0x48   : > { %2478 = vmatpush1.bf16.msra.mxu0 %v3508_v11  ;;  %2187 = vmatprep.subr.bf16.mxu1 %v3513_v12  ;;  %v3564_v11 = vld [vmem:[%s4810_s1 + $0x594] ss:$8 sps:$4 sm:$0xff]   ;;  %v3559_v12 = vld [vmem:[%s4810_s1 + $0x190] ss:$8 sps:$4 sm:$0xff]  }
  0x49   : > { %2479 = vmatprep.subr.bf16.mxu0 %v3516_v13  ;;  %2154 = vmatprep.mubr.bf16.mxu1 %v2965_v24  ;;  %v3562_v13 = vld [vmem:[%s4810_s1 + $0x590] ss:$8 sps:$4 sm:$0xff]   ;;  %v3577_v24 = vld [vmem:[%s4810_s1 + $0x1c0] ss:$8 sps:$4 sm:$0xff]  }
  0x4a   : > { %2446 = vmatprep.mubr.bf16.mxu0 %v2973_v28  ;;  %v3583_v28 = vld [vmem:[%s4810_s1 + $0x1d0] ss:$8 sps:$4 sm:$0xff]  }
  0x4b   : > { %2188 = vmatpush1.bf16.msra.mxu1 %v3511_v14  ;;  %v3567_v14 = vld [vmem:[%s4810_s1 + $0x1a4] ss:$8 sps:$4 sm:$0xff]  }
  0x4c   : > { %2480 = vmatpush1.bf16.msra.mxu0 %v3514_v15  ;;  %2189 = vmatprep.subr.bf16.mxu1 %v3519_v16  ;;  %v3570_v15 = vld [vmem:[%s4810_s1 + $0x5a4] ss:$8 sps:$4 sm:$0xff]   ;;  %v3565_v16 = vld [vmem:[%s4810_s1 + $0x1a0] ss:$8 sps:$4 sm:$0xff]  }
  0x4d   : > { %2481 = vmatprep.subr.bf16.mxu0 %v3522_v17  ;;  %v3568_v17 = vld [vmem:[%s4810_s1 + $0x5a0] ss:$8 sps:$4 sm:$0xff]  }
  0x4e   : > { %2155 = vmatmul.mubr.bf16.gmra.mrb[4].mxu1 %v2964_v26  ;;  %v3585_v26 = vld [vmem:[%s4810_s1 + $0x1d4] ss:$8 sps:$4 sm:$0xff]  }
  0x4f   : > { %2190 = vmatpush1.bf16.msra.mxu1 %v3517_v18  ;;  %2447 = vmatmul.mubr.bf16.gmra.mrb[4].mxu0 %v2972_v31  ;;  %v3573_v18 = vld [vmem:[%s4810_s1 + $0x1b4] ss:$8 sps:$4 sm:$0xff]   ;;  %v3594_v31 = vld [vmem:[%s4810_s1 + $0x5e4] ss:$8 sps:$4 sm:$0xff]  }
  0x50   : > { %2482 = vmatpush1.bf16.msra.mxu0 %v3520_v19  ;;  %2191 = vmatprep.subr.bf16.mxu1 %v3525_v22  ;;  %v3576_v19 = vld [vmem:[%s4810_s1 + $0x5b4] ss:$8 sps:$4 sm:$0xff]   ;;  %v3579_v22 = vld [vmem:[%s4810_s1 + $0x1c4] ss:$8 sps:$4 sm:$0xff]  }
  0x51   : > { %2483 = vmatprep.subr.bf16.mxu0 %v3528_v23  ;;  %2164 = vmatprep.mubr.bf16.mxu1 %v2981_v37  ;;  %v3582_v23 = vld [vmem:[%s4810_s1 + $0x5c4] ss:$8 sps:$4 sm:$0xff]   ;;  %v3598_v37 = vld [vmem:[%s4810_s1 + $0x5f0] ss:$8 sps:$4 sm:$0xff]  }
  0x52   : > { %2456 = vmatprep.mubr.bf16.mxu0 %v2989_v43  ;;  %v2950_v43 = vcombine.low %v4145_v63, %v4148_v1  ;;  %v237_v63 = vld [vmem:[%s3970_s5 + $0x168] sm:$0xff]  ;;  %v3624_v1 = vld [vmem:[%s4810_s1 + $0x634] ss:$8 sps:$4 sm:$0xff]  }
  0x53   : > { %2192 = vmatpush1.bf16.msra.mxu1 %v3523_v29  ;;  %v3586_v29 = vld [vmem:[%s4810_s1 + $0x5d0] ss:$8 sps:$4 sm:$0xff]  }
  0x54   : > { %2484 = vmatpush1.bf16.msra.mxu0 %v3526_v30  ;;  %2193 = vmatprep.subr.bf16.mxu1 %v3531_v32  ;;  %v3591_v30 = vld [vmem:[%s4810_s1 + $0x1e4] ss:$8 sps:$4 sm:$0xff]   ;;  %v3589_v32 = vld [vmem:[%s4810_s1 + $0x1e0] ss:$8 sps:$4 sm:$0xff]  }
  0x55   : > { %2485 = vmatprep.subr.bf16.mxu0 %v3534_v33  ;;  %v3592_v33 = vld [vmem:[%s4810_s1 + $0x5e0] ss:$8 sps:$4 sm:$0xff]  }
  0x56   : > { %2165 = vmatmul.mubr.bf16.gmra.mrb[8].mxu1 %v2980_v41  ;;  %v3604_v41 = vld [vmem:[%s4810_s1 + $0x600] ss:$8 sps:$4 sm:$0xff]  }
  0x57   : > { %2194 = vmatpush1.bf16.msra.mxu1 %v3529_v36  ;;  %2457 = vmatmul.mubr.bf16.gmra.mrb[8].mxu0 %v2988_v47  ;;  %v3595_v36 = vld [vmem:[%s4810_s1 + $0x1f0] ss:$8 sps:$4 sm:$0xff]   ;;  %v221_v47 = vld [vmem:[%s3970_s5 + $0xe8] sm:$0xff] }
  0x58   : > { %2486 = vmatpush1.bf16.msra.mxu0 %v3532_v38  ;;  %2195 = vmatprep.subr.bf16.mxu1 %v3537_v42  ;;  %v3603_v38 = vld [vmem:[%s4810_s1 + $0x204] ss:$8 sps:$4 sm:$0xff]  }
  0x59   : > { %2487 = vmatprep.subr.bf16.mxu0 %v3540_v44  ;;  %2174 = vmatprep.mubr.bf16.mxu1 %v2997_v52  ;;  %v209_v42 = vld [vmem:[%s3970_s5 + $0x88] sm:$0xff]  ;;  %v2958_v44 = vcombine.low %v4159_v5, %v4162_v6  ;;  %v3607_v52 = vld [vmem:[%s4810_s1 + $0x210] ss:$8 sps:$4 sm:$0xff]  }
  0x5a   : > { %2466 = vmatprep.mubr.bf16.mxu0 %v3005_v57  ;;  %v3616_v57 = vld [vmem:[%s4810_s1 + $0x620] ss:$8 sps:$4 sm:$0xff]   ;;  %v3622_v5 = vld [vmem:[%s4810_s1 + $0x630] ss:$8 sps:$4 sm:$0xff]   ;;  %v3627_v6 = vld [vmem:[%s4810_s1 + $0x244] ss:$8 sps:$4 sm:$0xff]  }
  0x5b   : > { %2196 = vmatpush1.bf16.msra.mxu1 %v3535_v45  ;;  %v217_v45 = vld [vmem:[%s3970_s5 + $0xc8] sm:$0xff] }
  0x5c   : > { %2488 = vmatpush1.bf16.msra.mxu0 %v3538_v46  ;;  %2197 = vmatprep.subr.bf16.mxu1 %v3543_v50  ;;  %v213_v46 = vld [vmem:[%s3970_s5 + $0xa8] sm:$0xff]  ;;  %v2967_v50 = vcombine.high %v209_v42, %v217_v45 }
  0x5d   : > { %2489 = vmatprep.subr.bf16.mxu0 %v3546_v51  ;;  %v2975_v51 = vcombine.high %v213_v46, %v221_v47 }
  0x5e   : > { %2175 = vmatmul.mubr.bf16.gmra.mrb[12].mxu1 %v2996_v58  ;;  %v225_v58 = vld [vmem:[%s3970_s5 + $0x108] sm:$0xff] }
  0x5f   : > { %2198 = vmatpush1.bf16.msra.mxu1 %v3541_v55  ;;  %2217 = vmatprep.mubr.bf16.mxu1 %v2951_v4  ;;  %v3618_v55 = vld [vmem:[%s4810_s1 + $0x624] ss:$8 sps:$4 sm:$0xff]   ;;  %v3619_v4 = vld [vmem:[%s4810_s1 + $0x230] ss:$8 sps:$4 sm:$0xff]  }
  0x60   : > { %2490 = vmatpush1.bf16.msra.mxu0 %v3544_v56  ;;  %2199 = vmatprep.subr.bf16.mxu1 %v3549_v59  ;;  %v3613_v56 = vld [vmem:[%s4810_s1 + $0x220] ss:$8 sps:$4 sm:$0xff]  }
  0x61   : > { %2491 = vmatprep.subr.bf16.mxu0 %v3552_v60  ;;  %2467 = vmatmul.mubr.bf16.gmra.mrb[12].mxu0 %v3004_v0  ;;  %v233_v59 = vld [vmem:[%s3970_s5 + $0x148] sm:$0xff]  ;;  %v2966_v60 = vcombine.low %v209_v42, %v217_v45  ;;  %v3621_v0 = vld [vmem:[%s4810_s1 + $0x234] ss:$8 sps:$4 sm:$0xff]   ;;  %v3658_v45 = vld [vmem:[%s4810_s1 + $0x690] ss:$8 sps:$4 sm:$0xff]  }
  0x62   : > { %2509 = vmatprep.mubr.bf16.mxu0 %v2959_v7  ;;  %v3630_v7 = vld [vmem:[%s4810_s1 + $0x644] ss:$8 sps:$4 sm:$0xff]   ;;  %v3657_v42 = vld [vmem:[%s4810_s1 + $0x294] ss:$8 sps:$4 sm:$0xff]  }
  0x63   : > { %2200 = vmatpush1.bf16.msra.mxu1 %v3547_v61  ;;  %v2974_v61 = vcombine.low %v213_v46, %v221_v47  ;;  %v3663_v46 = vld [vmem:[%s4810_s1 + $0x2a4] ss:$8 sps:$4 sm:$0xff]  }
  0x64   : > { %2492 = vmatpush1.bf16.msra.mxu0 %v3550_v62  ;;  %2201 = vmatprep.subr.bf16.mxu1 %v3555_v2  ;;  %v229_v62 = vld [vmem:[%s3970_s5 + $0x128] sm:$0xff]  ;;  %v2983_v2 = vcombine.high %v225_v58, %v233_v59 }
  0x65   : > { %2493 = vmatprep.subr.bf16.mxu0 %v3558_v3  ;;  %v2991_v3 = vcombine.high %v229_v62, %v237_v63  ;;  %v3666_v47 = vld [vmem:[%s4810_s1 + $0x6a4] ss:$8 sps:$4 sm:$0xff]  }
  0x67   : > { %2202 = vmatpush1.bf16.msra.mxu1 %v3553_v8  ;;  %v3625_v8 = vld [vmem:[%s4810_s1 + $0x240] ss:$8 sps:$4 sm:$0xff]  }
  0x68   : > { %2494 = vmatpush1.bf16.msra.mxu0 %v3556_v9  ;;  %2203 = vmatprep.subr.bf16.mxu1 %v3561_v10  ;;  %v3628_v9 = vld [vmem:[%s4810_s1 + $0x640] ss:$8 sps:$4 sm:$0xff]  }
  0x69   : > { %2495 = vmatprep.subr.bf16.mxu0 %v3564_v11  ;;  %v241_v10 = vld [vmem:[%s3970_s5 + $0x188] sm:$0xff] }
  0x6a   : > { %v249_v11 = vld [vmem:[%s3970_s5 + $0x1c8] sm:$0xff] }
  0x6b   : > { %2204 = vmatpush1.bf16.msra.mxu1 %v3559_v12  ;;  %v2982_v12 = vcombine.low %v225_v58, %v233_v59  ;;  %v3681_v58 = vld [vmem:[%s4810_s1 + $0x2d4] ss:$8 sps:$4 sm:$0xff]  }
  0x6c   : > { %2496 = vmatpush1.bf16.msra.mxu0 %v3562_v13  ;;  %2205 = vmatprep.subr.bf16.mxu1 %v3567_v14  ;;  %v2990_v13 = vcombine.low %v229_v62, %v237_v63  ;;  %v245_v14 = vld [vmem:[%s3970_s5 + $0x1a8] sm:$0xff]  ;;  %v3684_v59 = vld [vmem:[%s4810_s1 + $0x6d4] ss:$8 sps:$4 sm:$0xff]  }
  0x6d   : > { %2497 = vmatprep.subr.bf16.mxu0 %v3570_v15  ;;  %v253_v15 = vld [vmem:[%s3970_s5 + $0x1e8] sm:$0xff] }
  0x6e   : > { %v3687_v62 = vld [vmem:[%s4810_s1 + $0x2e4] ss:$8 sps:$4 sm:$0xff]  }
  0x6f   : > { %2206 = vmatpush1.bf16.msra.mxu1 %v3565_v16  ;;  %v3633_v16 = vld [vmem:[%s4810_s1 + $0x254] ss:$8 sps:$4 sm:$0xff]   ;;  %v3690_v63 = vld [vmem:[%s4810_s1 + $0x6e4] ss:$8 sps:$4 sm:$0xff]  }
  0x70   : > { %2498 = vmatpush1.bf16.msra.mxu0 %v3568_v17  ;;  %2207 = vmatprep.subr.bf16.mxu1 %v3573_v18  ;;  %v3636_v17 = vld [vmem:[%s4810_s1 + $0x654] ss:$8 sps:$4 sm:$0xff]   ;;  %v2999_v18 = vcombine.high %v241_v10, %v249_v11 }
  0x71   : > { %2499 = vmatprep.subr.bf16.mxu0 %v3576_v19  ;;  %v3007_v19 = vcombine.high %v245_v14, %v253_v15 }
  0x73   : > { %2208 = vmatpush1.bf16.msra.mxu1 %v3571_v20  ;;  %v3631_v20 = vld [vmem:[%s4810_s1 + $0x250] ss:$8 sps:$4 sm:$0xff]  }
  0x74   : > { %2500 = vmatpush1.bf16.msra.mxu0 %v3574_v21  ;;  %2209 = vmatprep.subr.bf16.mxu1 %v3579_v22  ;;  %v3634_v21 = vld [vmem:[%s4810_s1 + $0x650] ss:$8 sps:$4 sm:$0xff]   ;;  %v3639_v22 = vld [vmem:[%s4810_s1 + $0x264] ss:$8 sps:$4 sm:$0xff]  }
  0x75   : > { %2501 = vmatprep.subr.bf16.mxu0 %v3582_v23  ;;  %v3642_v23 = vld [vmem:[%s4810_s1 + $0x664] ss:$8 sps:$4 sm:$0xff]  }
  0x77   : > { %2210 = vmatpush1.bf16.msra.mxu1 %v3577_v24  ;;  %v3637_v24 = vld [vmem:[%s4810_s1 + $0x260] ss:$8 sps:$4 sm:$0xff]  }
  0x78   : > { %2502 = vmatpush1.bf16.msra.mxu0 %v3580_v25  ;;  %2211 = vmatprep.subr.bf16.mxu1 %v3585_v26  ;;  %v3640_v25 = vld [vmem:[%s4810_s1 + $0x660] ss:$8 sps:$4 sm:$0xff]   ;;  %v4357_v26 = vld [vmem:[%s3970_s5 + $0x10] sm:$0xff] }
  0x79   : > { %2503 = vmatprep.subr.bf16.mxu0 %v3588_v27  ;;  %v4360_v27 = vld [vmem:[%s3970_s5 + $0x50] sm:$0xff] }
  0x7b   : > { %2212 = vmatpush1.bf16.msra.mxu1 %v3583_v28  ;;  %v2998_v28 = vcombine.low %v241_v10, %v249_v11  ;;  %v218_v11 = vld [vmem:[%s3970_s5 + $0xd0] sm:$0xff] }
  0x7c   : > { %2504 = vmatpush1.bf16.msra.mxu0 %v3586_v29  ;;  %2213 = vmatprep.subr.bf16.mxu1 %v3591_v30  ;;  %v3006_v29 = vcombine.low %v245_v14, %v253_v15  ;;  %v4363_v30 = vld [vmem:[%s3970_s5 + $0x30] sm:$0xff]  ;;  %v3697_v14 = vld [vmem:[%s4810_s1 + $0x300] ss:$8 sps:$4 sm:$0xff]  }
  0x7d   : > { %2505 = vmatprep.subr.bf16.mxu0 %v3594_v31  ;;  %v4366_v31 = vld [vmem:[%s3970_s5 + $0x70] sm:$0xff]  ;;  %v3700_v15 = vld [vmem:[%s4810_s1 + $0x700] ss:$8 sps:$4 sm:$0xff]  }
  0x7e   : > { %v2960_v10 = vcombine.low %v4363_v30, %v4366_v31 }
  0x7f   : > { %2214 = vmatpush1.bf16.msra.mxu1 %v3589_v32  ;;  %v3645_v32 = vld [vmem:[%s4810_s1 + $0x274] ss:$8 sps:$4 sm:$0xff]  }
  0x80   : > { %2506 = vmatpush1.bf16.msra.mxu0 %v3592_v33  ;;  %2215 = vmatprep.subr.bf16.mxu1 %v3597_v34  ;;  %v3648_v33 = vld [vmem:[%s4810_s1 + $0x674] ss:$8 sps:$4 sm:$0xff]   ;;  %v2953_v34 = vcombine.high %v4357_v26, %v4360_v27 }
  0x81   : > { %2507 = vmatprep.subr.bf16.mxu0 %v3600_v35  ;;  %v2961_v35 = vcombine.high %v4363_v30, %v4366_v31  ;;  %v3709_v30 = vld [vmem:[%s4810_s1 + $0x320] ss:$8 sps:$4 sm:$0xff]  }
  0x82   : > { %v3712_v31 = vld [vmem:[%s4810_s1 + $0x720] ss:$8 sps:$4 sm:$0xff]  }
  0x83   : > { %2216 = vmatpush1.bf16.msra.mxu1 %v3595_v36  ;;  %v3643_v36 = vld [vmem:[%s4810_s1 + $0x270] ss:$8 sps:$4 sm:$0xff]  }
  0x84   : > { %2508 = vmatpush1.bf16.msra.mxu0 %v3598_v37  ;;  %2258 = vmatprep.subr.bf16.mxu1 %v3603_v38  ;;  %v3646_v37 = vld [vmem:[%s4810_s1 + $0x670] ss:$8 sps:$4 sm:$0xff]   ;;  %v3651_v38 = vld [vmem:[%s4810_s1 + $0x284] ss:$8 sps:$4 sm:$0xff]  }
  0x85   : > { %2550 = vmatprep.subr.bf16.mxu0 %v3606_v39  ;;  %v3654_v39 = vld [vmem:[%s4810_s1 + $0x684] ss:$8 sps:$4 sm:$0xff]  }
  0x86   : > { %2218 = vmatmul.mubr.bf16.vlgmr.msra.gmra.mrb[0].mxu1 %v2950_v43  ;;  %v3660_v43 = vld [vmem:[%s4810_s1 + $0x694] ss:$8 sps:$4 sm:$0xff]  }
  0x87   : > { %2510 = vmatmul.mubr.bf16.vlgmr.msra.gmra.mrb[0].mxu0 %v2958_v44  ;;  %2259 = vmatpush1.bf16.msra.mxu1 %v3601_v40  ;;  %v3649_v40 = vld [vmem:[%s4810_s1 + $0x280] ss:$8 sps:$4 sm:$0xff]   ;;  %v3655_v44 = vld [vmem:[%s4810_s1 + $0x290] ss:$8 sps:$4 sm:$0xff]  }
  0x88   : > { %2551 = vmatpush1.bf16.msra.mxu0 %v3604_v41  ;;  %2260 = vmatprep.subr.bf16.mxu1 %v3609_v48  ;;  %v3652_v41 = vld [vmem:[%s4810_s1 + $0x680] ss:$8 sps:$4 sm:$0xff]  }
  0x89   : > { %2552 = vmatprep.subr.bf16.mxu0 %v3612_v49  ;;  %2227 = vmatprep.mubr.bf16.mxu1 %v2967_v50  ;;  %v3661_v48 = vld [vmem:[%s4810_s1 + $0x2a0] ss:$8 sps:$4 sm:$0xff]   ;;  %v3669_v50 = vld [vmem:[%s4810_s1 + $0x2b4] ss:$8 sps:$4 sm:$0xff]  }
  0x8a   : > { %2519 = vmatprep.mubr.bf16.mxu0 %v2975_v51  ;;  %v3664_v49 = vld [vmem:[%s4810_s1 + $0x6a0] ss:$8 sps:$4 sm:$0xff]   ;;  %v3672_v51 = vld [vmem:[%s4810_s1 + $0x6b4] ss:$8 sps:$4 sm:$0xff]  }
  0x8b   : > { %2261 = vmatpush1.bf16.msra.mxu1 %v3607_v52  ;;  %v3667_v52 = vld [vmem:[%s4810_s1 + $0x2b0] ss:$8 sps:$4 sm:$0xff]  }
  0x8c   : > { %2553 = vmatpush1.bf16.msra.mxu0 %v3610_v53  ;;  %2262 = vmatprep.subr.bf16.mxu1 %v3615_v54  ;;  %v3670_v53 = vld [vmem:[%s4810_s1 + $0x6b0] ss:$8 sps:$4 sm:$0xff]   ;;  %v3675_v54 = vld [vmem:[%s4810_s1 + $0x2c4] ss:$8 sps:$4 sm:$0xff]  }
  0x8d   : > { %2554 = vmatprep.subr.bf16.mxu0 %v3618_v55  ;;  %v3678_v55 = vld [vmem:[%s4810_s1 + $0x6c4] ss:$8 sps:$4 sm:$0xff]  }
  0x8e   : > { %2228 = vmatmul.mubr.bf16.gmra.mrb[4].mxu1 %v2966_v60  ;;  %v3679_v60 = vld [vmem:[%s4810_s1 + $0x2d0] ss:$8 sps:$4 sm:$0xff]  }
  0x8f   : > { %2520 = vmatmul.mubr.bf16.gmra.mrb[4].mxu0 %v2974_v61  ;;  %2263 = vmatpush1.bf16.msra.mxu1 %v3613_v56  ;;  %v3673_v56 = vld [vmem:[%s4810_s1 + $0x2c0] ss:$8 sps:$4 sm:$0xff]   ;;  %v3682_v61 = vld [vmem:[%s4810_s1 + $0x6d0] ss:$8 sps:$4 sm:$0xff]  }
  0x90   : > { %2555 = vmatpush1.bf16.msra.mxu0 %v3616_v57  ;;  %2264 = vmatprep.subr.bf16.mxu1 %v3621_v0  ;;  %v3676_v57 = vld [vmem:[%s4810_s1 + $0x6c0] ss:$8 sps:$4 sm:$0xff]  }
  0x91   : > { %2556 = vmatprep.subr.bf16.mxu0 %v3624_v1  ;;  %2237 = vmatprep.mubr.bf16.mxu1 %v2983_v2  ;;  %v3685_v0 = vld [vmem:[%s4810_s1 + $0x2e0] ss:$8 sps:$4 sm:$0xff]   ;;  %v3693_v2 = vld [vmem:[%s4810_s1 + $0x2f4] ss:$8 sps:$4 sm:$0xff]  }
  0x92   : > { %2529 = vmatprep.mubr.bf16.mxu0 %v2991_v3  ;;  %v3688_v1 = vld [vmem:[%s4810_s1 + $0x6e0] ss:$8 sps:$4 sm:$0xff]   ;;  %v3696_v3 = vld [vmem:[%s4810_s1 + $0x6f4] ss:$8 sps:$4 sm:$0xff]  }
  0x93   : > { %2265 = vmatpush1.bf16.msra.mxu1 %v3619_v4  ;;  %v3691_v4 = vld [vmem:[%s4810_s1 + $0x2f0] ss:$8 sps:$4 sm:$0xff]  }
  0x94   : > { %2557 = vmatpush1.bf16.msra.mxu0 %v3622_v5  ;;  %2266 = vmatprep.subr.bf16.mxu1 %v3627_v6  ;;  %v3694_v5 = vld [vmem:[%s4810_s1 + $0x6f0] ss:$8 sps:$4 sm:$0xff]   ;;  %v3699_v6 = vld [vmem:[%s4810_s1 + $0x304] ss:$8 sps:$4 sm:$0xff]  }
  0x95   : > { %2558 = vmatprep.subr.bf16.mxu0 %v3630_v7  ;;  %v3702_v7 = vld [vmem:[%s4810_s1 + $0x704] ss:$8 sps:$4 sm:$0xff]  }
  0x96   : > { %2238 = vmatmul.mubr.bf16.gmra.mrb[8].mxu1 %v2982_v12  ;;  %v214_v12 = vld [vmem:[%s3970_s5 + $0xb0] sm:$0xff] }
  0x97   : > { %2530 = vmatmul.mubr.bf16.gmra.mrb[8].mxu0 %v2990_v13  ;;  %2267 = vmatpush1.bf16.msra.mxu1 %v3625_v8  ;;  %v210_v8 = vld [vmem:[%s3970_s5 + $0x90] sm:$0xff] }
  0x98   : > { %2559 = vmatpush1.bf16.msra.mxu0 %v3628_v9  ;;  %2268 = vmatprep.subr.bf16.mxu1 %v3633_v16  ;;  %v2952_v9 = vcombine.low %v4357_v26, %v4360_v27  ;;  %v222_v13 = vld [vmem:[%s3970_s5 + $0xf0] sm:$0xff] }
  0x99   : > { %2560 = vmatprep.subr.bf16.mxu0 %v3636_v17  ;;  %2247 = vmatprep.mubr.bf16.mxu1 %v2999_v18  ;;  %v3705_v16 = vld [vmem:[%s4810_s1 + $0x314] ss:$8 sps:$4 sm:$0xff]   ;;  %v2969_v18 = vcombine.high %v210_v8, %v218_v11  ;;  %v2976_v26 = vcombine.low %v214_v12, %v222_v13 }
  0x9a   : > { %2539 = vmatprep.mubr.bf16.mxu0 %v3007_v19  ;;  %v3708_v17 = vld [vmem:[%s4810_s1 + $0x714] ss:$8 sps:$4 sm:$0xff]   ;;  %v2977_v19 = vcombine.high %v214_v12, %v222_v13  ;;  %v3751_v12 = vld [vmem:[%s4810_s1 + $0x390] ss:$8 sps:$4 sm:$0xff]  }
  0x9b   : > { %2269 = vmatpush1.bf16.msra.mxu1 %v3631_v20  ;;  %v3703_v20 = vld [vmem:[%s4810_s1 + $0x310] ss:$8 sps:$4 sm:$0xff]  }
  0x9c   : > { %2561 = vmatpush1.bf16.msra.mxu0 %v3634_v21  ;;  %2270 = vmatprep.subr.bf16.mxu1 %v3639_v22  ;;  %v3706_v21 = vld [vmem:[%s4810_s1 + $0x710] ss:$8 sps:$4 sm:$0xff]   ;;  %v3711_v22 = vld [vmem:[%s4810_s1 + $0x324] ss:$8 sps:$4 sm:$0xff]  }
  0x9d   : > { %2562 = vmatprep.subr.bf16.mxu0 %v3642_v23  ;;  %v3714_v23 = vld [vmem:[%s4810_s1 + $0x724] ss:$8 sps:$4 sm:$0xff]   ;;  %v234_v27 = vld [vmem:[%s3970_s5 + $0x150] sm:$0xff] }
  0x9e   : > { %2248 = vmatmul.mubr.bf16.gmra.mrb[12].mxu1 %v2998_v28  ;;  %v230_v28 = vld [vmem:[%s3970_s5 + $0x130] sm:$0xff] }
  0x9f   : > { %2540 = vmatmul.mubr.bf16.gmra.mrb[12].mxu0 %v3006_v29  ;;  %2271 = vmatpush1.bf16.msra.mxu1 %v3637_v24  ;;  %v226_v24 = vld [vmem:[%s3970_s5 + $0x110] sm:$0xff] }
  0xa0   : > { %2563 = vmatpush1.bf16.msra.mxu0 %v3640_v25  ;;  %2272 = vmatprep.subr.bf16.mxu1 %v3645_v32  ;;  %v2968_v25 = vcombine.low %v210_v8, %v218_v11  ;;  %v238_v29 = vld [vmem:[%s3970_s5 + $0x170] sm:$0xff]  ;;  %v3745_v8 = vld [vmem:[%s4810_s1 + $0x380] ss:$8 sps:$4 sm:$0xff]  }
  0xa1   : > { %2564 = vmatprep.subr.bf16.mxu0 %v3648_v33  ;;  %2290 = vmatprep.mubr.bf16.mxu1 %v2953_v34  ;;  %v3717_v32 = vld [vmem:[%s4810_s1 + $0x334] ss:$8 sps:$4 sm:$0xff]   ;;  %v2985_v34 = vcombine.high %v226_v24, %v234_v27  ;;  %v3754_v13 = vld [vmem:[%s4810_s1 + $0x790] ss:$8 sps:$4 sm:$0xff]  }
  0xa2   : > { %2582 = vmatprep.mubr.bf16.mxu0 %v2961_v35  ;;  %v3720_v33 = vld [vmem:[%s4810_s1 + $0x734] ss:$8 sps:$4 sm:$0xff]   ;;  %v2993_v35 = vcombine.high %v230_v28, %v238_v29 }
  0xa3   : > { %2273 = vmatpush1.bf16.msra.mxu1 %v3643_v36  ;;  %v3715_v36 = vld [vmem:[%s4810_s1 + $0x330] ss:$8 sps:$4 sm:$0xff]   ;;  %v3756_v11 = vld [vmem:[%s4810_s1 + $0x794] ss:$8 sps:$4 sm:$0xff]  }
  0xa4   : > { %2565 = vmatpush1.bf16.msra.mxu0 %v3646_v37  ;;  %2274 = vmatprep.subr.bf16.mxu1 %v3651_v38  ;;  %v3718_v37 = vld [vmem:[%s4810_s1 + $0x730] ss:$8 sps:$4 sm:$0xff]   ;;  %v3723_v38 = vld [vmem:[%s4810_s1 + $0x344] ss:$8 sps:$4 sm:$0xff]  }
  0xa5   : > { %2566 = vmatprep.subr.bf16.mxu0 %v3654_v39  ;;  %v3726_v39 = vld [vmem:[%s4810_s1 + $0x744] ss:$8 sps:$4 sm:$0xff]  }
  0xa7   : > { %2275 = vmatpush1.bf16.msra.mxu1 %v3649_v40  ;;  %v242_v40 = vld [vmem:[%s3970_s5 + $0x190] sm:$0xff] }
  0xa8   : > { %2567 = vmatpush1.bf16.msra.mxu0 %v3652_v41  ;;  %2276 = vmatprep.subr.bf16.mxu1 %v3657_v42  ;;  %v2984_v41 = vcombine.low %v226_v24, %v234_v27  ;;  %v2992_v42 = vcombine.low %v230_v28, %v238_v29  ;;  %v3769_v24 = vld [vmem:[%s4810_s1 + $0x3c0] ss:$8 sps:$4 sm:$0xff]   ;;  %v3780_v27 = vld [vmem:[%s4810_s1 + $0x7d4] ss:$8 sps:$4 sm:$0xff]   ;;  %v3775_v28 = vld [vmem:[%s4810_s1 + $0x3d0] ss:$8 sps:$4 sm:$0xff]  }
  0xa9   : > { %2568 = vmatprep.subr.bf16.mxu0 %v3660_v43  ;;  %v250_v43 = vld [vmem:[%s3970_s5 + $0x1d0] sm:$0xff] }
  0xaa   : > { %v3778_v29 = vld [vmem:[%s4810_s1 + $0x7d0] ss:$8 sps:$4 sm:$0xff]  }
  0xab   : > { %2277 = vmatpush1.bf16.msra.mxu1 %v3655_v44  ;;  %v246_v44 = vld [vmem:[%s3970_s5 + $0x1b0] sm:$0xff] }
  0xac   : > { %2569 = vmatpush1.bf16.msra.mxu0 %v3658_v45  ;;  %2278 = vmatprep.subr.bf16.mxu1 %v3663_v46  ;;  %v254_v45 = vld [vmem:[%s3970_s5 + $0x1f0] sm:$0xff]  ;;  %v3721_v46 = vld [vmem:[%s4810_s1 + $0x340] ss:$8 sps:$4 sm:$0xff]  }
  0xad   : > { %2570 = vmatprep.subr.bf16.mxu0 %v3666_v47  ;;  %v3724_v47 = vld [vmem:[%s4810_s1 + $0x740] ss:$8 sps:$4 sm:$0xff]  }
  0xaf   : > { %2279 = vmatpush1.bf16.msra.mxu1 %v3661_v48  ;;  %v3729_v48 = vld [vmem:[%s4810_s1 + $0x354] ss:$8 sps:$4 sm:$0xff]  }
  0xb0   : > { %2571 = vmatpush1.bf16.msra.mxu0 %v3664_v49  ;;  %2280 = vmatprep.subr.bf16.mxu1 %v3669_v50  ;;  %v3732_v49 = vld [vmem:[%s4810_s1 + $0x754] ss:$8 sps:$4 sm:$0xff]   ;;  %v3001_v50 = vcombine.high %v242_v40, %v250_v43 }
  0xb1   : > { %2572 = vmatprep.subr.bf16.mxu0 %v3672_v51  ;;  %v3009_v51 = vcombine.high %v246_v44, %v254_v45 }
  0xb3   : > { %2281 = vmatpush1.bf16.msra.mxu1 %v3667_v52  ;;  %v3727_v52 = vld [vmem:[%s4810_s1 + $0x350] ss:$8 sps:$4 sm:$0xff]  }
  0xb4   : > { %2573 = vmatpush1.bf16.msra.mxu0 %v3670_v53  ;;  %2282 = vmatprep.subr.bf16.mxu1 %v3675_v54  ;;  %v3730_v53 = vld [vmem:[%s4810_s1 + $0x750] ss:$8 sps:$4 sm:$0xff]   ;;  %v3735_v54 = vld [vmem:[%s4810_s1 + $0x364] ss:$8 sps:$4 sm:$0xff]  }
  0xb5   : > { %2574 = vmatprep.subr.bf16.mxu0 %v3678_v55  ;;  %v3738_v55 = vld [vmem:[%s4810_s1 + $0x764] ss:$8 sps:$4 sm:$0xff]  }
  0xb7   : > { %2283 = vmatpush1.bf16.msra.mxu1 %v3673_v56  ;;  %v4575_v56 = vld [vmem:[%s3970_s5 + $0x18] sm:$0xff] }
  0xb8   : > { %2575 = vmatpush1.bf16.msra.mxu0 %v3676_v57  ;;  %2284 = vmatprep.subr.bf16.mxu1 %v3681_v58  ;;  %v3000_v57 = vcombine.low %v242_v40, %v250_v43  ;;  %v3008_v58 = vcombine.low %v246_v44, %v254_v45  ;;  %v215_v40 = vld [vmem:[%s3970_s5 + $0xb8] sm:$0xff] }
  0xb9   : > { %2576 = vmatprep.subr.bf16.mxu0 %v3684_v59  ;;  %v4578_v59 = vld [vmem:[%s3970_s5 + $0x58] sm:$0xff] }
  0xbb   : > { %2285 = vmatpush1.bf16.msra.mxu1 %v3679_v60  ;;  %v4581_v60 = vld [vmem:[%s3970_s5 + $0x38] sm:$0xff] }
  0xbc   : > { %2577 = vmatpush1.bf16.msra.mxu0 %v3682_v61  ;;  %2286 = vmatprep.subr.bf16.mxu1 %v3687_v62  ;;  %v4584_v61 = vld [vmem:[%s3970_s5 + $0x78] sm:$0xff]  ;;  %v3733_v62 = vld [vmem:[%s4810_s1 + $0x360] ss:$8 sps:$4 sm:$0xff]  }
  0xbd   : > { %2578 = vmatprep.subr.bf16.mxu0 %v3690_v63  ;;  %v3736_v63 = vld [vmem:[%s4810_s1 + $0x760] ss:$8 sps:$4 sm:$0xff]   ;;  %v2962_v43 = vcombine.low %v4581_v60, %v4584_v61 }
  0xbf   : > { %2287 = vmatpush1.bf16.msra.mxu1 %v3685_v0  ;;  %v3741_v0 = vld [vmem:[%s4810_s1 + $0x374] ss:$8 sps:$4 sm:$0xff]  }
  0xc0   : > { %2579 = vmatpush1.bf16.msra.mxu0 %v3688_v1  ;;  %2288 = vmatprep.subr.bf16.mxu1 %v3693_v2  ;;  %v3744_v1 = vld [vmem:[%s4810_s1 + $0x774] ss:$8 sps:$4 sm:$0xff]   ;;  %v2955_v2 = vcombine.high %v4575_v56, %v4578_v59 }
  0xc1   : > { %2580 = vmatprep.subr.bf16.mxu0 %v3696_v3  ;;  %v2963_v3 = vcombine.high %v4581_v60, %v4584_v61 }
  0xc3   : > { %2289 = vmatpush1.bf16.msra.mxu1 %v3691_v4  ;;  %v3739_v4 = vld [vmem:[%s4810_s1 + $0x370] ss:$8 sps:$4 sm:$0xff]  }
  0xc4   : > { %2581 = vmatpush1.bf16.msra.mxu0 %v3694_v5  ;;  %2331 = vmatprep.subr.bf16.mxu1 %v3699_v6  ;;  %v3742_v5 = vld [vmem:[%s4810_s1 + $0x770] ss:$8 sps:$4 sm:$0xff]   ;;  %v3747_v6 = vld [vmem:[%s4810_s1 + $0x384] ss:$8 sps:$4 sm:$0xff]  }
  0xc5   : > { %2623 = vmatprep.subr.bf16.mxu0 %v3702_v7  ;;  %v3750_v7 = vld [vmem:[%s4810_s1 + $0x784] ss:$8 sps:$4 sm:$0xff]  }
  0xc6   : > { %2291 = vmatmul.mubr.bf16.vlgmr.msra.gmra.mrb[0].mxu1 %v2952_v9  ;;  %v3748_v9 = vld [vmem:[%s4810_s1 + $0x780] ss:$8 sps:$4 sm:$0xff]  }
  0xc7   : > { %2583 = vmatmul.mubr.bf16.vlgmr.msra.gmra.mrb[0].mxu0 %v2960_v10  ;;  %2332 = vmatpush1.bf16.msra.mxu1 %v3697_v14  ;;  %v3753_v10 = vld [vmem:[%s4810_s1 + $0x394] ss:$8 sps:$4 sm:$0xff]   ;;  %v3759_v14 = vld [vmem:[%s4810_s1 + $0x3a4] ss:$8 sps:$4 sm:$0xff]  }
  0xc8   : > { %2624 = vmatpush1.bf16.msra.mxu0 %v3700_v15  ;;  %2333 = vmatprep.subr.bf16.mxu1 %v3705_v16  ;;  %v3762_v15 = vld [vmem:[%s4810_s1 + $0x7a4] ss:$8 sps:$4 sm:$0xff]   ;;  %v3757_v16 = vld [vmem:[%s4810_s1 + $0x3a0] ss:$8 sps:$4 sm:$0xff]  }
  0xc9   : > { %2625 = vmatprep.subr.bf16.mxu0 %v3708_v17  ;;  %2300 = vmatprep.mubr.bf16.mxu1 %v2969_v18  ;;  %v3760_v17 = vld [vmem:[%s4810_s1 + $0x7a0] ss:$8 sps:$4 sm:$0xff]   ;;  %v3765_v18 = vld [vmem:[%s4810_s1 + $0x3b4] ss:$8 sps:$4 sm:$0xff]  }
  0xca   : > { %2592 = vmatprep.mubr.bf16.mxu0 %v2977_v19  ;;  %v3768_v19 = vld [vmem:[%s4810_s1 + $0x7b4] ss:$8 sps:$4 sm:$0xff]  }
  0xcb   : > { %2334 = vmatpush1.bf16.msra.mxu1 %v3703_v20  ;;  %v3763_v20 = vld [vmem:[%s4810_s1 + $0x3b0] ss:$8 sps:$4 sm:$0xff]  }
  0xcc   : > { %2626 = vmatpush1.bf16.msra.mxu0 %v3706_v21  ;;  %2335 = vmatprep.subr.bf16.mxu1 %v3711_v22  ;;  %v3766_v21 = vld [vmem:[%s4810_s1 + $0x7b0] ss:$8 sps:$4 sm:$0xff]   ;;  %v3771_v22 = vld [vmem:[%s4810_s1 + $0x3c4] ss:$8 sps:$4 sm:$0xff]  }
  0xcd   : > { %2627 = vmatprep.subr.bf16.mxu0 %v3714_v23  ;;  %v3774_v23 = vld [vmem:[%s4810_s1 + $0x7c4] ss:$8 sps:$4 sm:$0xff]  }
  0xce   : > { %2301 = vmatmul.mubr.bf16.gmra.mrb[4].mxu1 %v2968_v25  ;;  %v3772_v25 = vld [vmem:[%s4810_s1 + $0x7c0] ss:$8 sps:$4 sm:$0xff]  }
  0xcf   : > { %2593 = vmatmul.mubr.bf16.gmra.mrb[4].mxu0 %v2976_v26  ;;  %2336 = vmatpush1.bf16.msra.mxu1 %v3709_v30  ;;  %v3777_v26 = vld [vmem:[%s4810_s1 + $0x3d4] ss:$8 sps:$4 sm:$0xff]   ;;  %v3783_v30 = vld [vmem:[%s4810_s1 + $0x3e4] ss:$8 sps:$4 sm:$0xff]  }
  0xd0   : > { %2628 = vmatpush1.bf16.msra.mxu0 %v3712_v31  ;;  %2337 = vmatprep.subr.bf16.mxu1 %v3717_v32  ;;  %v3786_v31 = vld [vmem:[%s4810_s1 + $0x7e4] ss:$8 sps:$4 sm:$0xff]   ;;  %v3781_v32 = vld [vmem:[%s4810_s1 + $0x3e0] ss:$8 sps:$4 sm:$0xff]  }
  0xd1   : > { %2629 = vmatprep.subr.bf16.mxu0 %v3720_v33  ;;  %2310 = vmatprep.mubr.bf16.mxu1 %v2985_v34  ;;  %v3784_v33 = vld [vmem:[%s4810_s1 + $0x7e0] ss:$8 sps:$4 sm:$0xff]   ;;  %v3789_v34 = vld [vmem:[%s4810_s1 + $0x3f4] ss:$8 sps:$4 sm:$0xff]  }
  0xd2   : > { %2602 = vmatprep.mubr.bf16.mxu0 %v2993_v35  ;;  %v3792_v35 = vld [vmem:[%s4810_s1 + $0x7f4] ss:$8 sps:$4 sm:$0xff]  }
  0xd3   : > { %2338 = vmatpush1.bf16.msra.mxu1 %v3715_v36  ;;  %v3787_v36 = vld [vmem:[%s4810_s1 + $0x3f0] ss:$8 sps:$4 sm:$0xff]  }
  0xd4   : > { %2630 = vmatpush1.bf16.msra.mxu0 %v3718_v37  ;;  %2339 = vmatprep.subr.bf16.mxu1 %v3723_v38  ;;  %v3790_v37 = vld [vmem:[%s4810_s1 + $0x7f0] ss:$8 sps:$4 sm:$0xff]  }
  0xd5   : > { %2631 = vmatprep.subr.bf16.mxu0 %v3726_v39  ;;  %v211_v38 = vld [vmem:[%s3970_s5 + $0x98] sm:$0xff] }
  0xd6   : > { %2311 = vmatmul.mubr.bf16.gmra.mrb[8].mxu1 %v2984_v41  ;;  %v219_v39 = vld [vmem:[%s3970_s5 + $0xd8] sm:$0xff] }
  0xd7   : > { %2603 = vmatmul.mubr.bf16.gmra.mrb[8].mxu0 %v2992_v42  ;;  %2340 = vmatpush1.bf16.msra.mxu1 %v3721_v46  ;;  %v223_v41 = vld [vmem:[%s3970_s5 + $0xf8] sm:$0xff]  ;;  %v2954_v42 = vcombine.low %v4575_v56, %v4578_v59  ;;  %v2971_v44 = vcombine.high %v211_v38, %v219_v39 }
  0xd8   : > { %2632 = vmatpush1.bf16.msra.mxu0 %v3724_v47  ;;  %2341 = vmatprep.subr.bf16.mxu1 %v3729_v48  ;;  %v2979_v45 = vcombine.high %v215_v40, %v223_v41  ;;  %v227_v46 = vld [vmem:[%s3970_s5 + $0x118] sm:$0xff] }
  0xd9   : > { %2633 = vmatprep.subr.bf16.mxu0 %v3732_v49  ;;  %2320 = vmatprep.mubr.bf16.mxu1 %v3001_v50  ;;  %v235_v47 = vld [vmem:[%s3970_s5 + $0x158] sm:$0xff]  ;;  %v2970_v50 = vcombine.low %v211_v38, %v219_v39 }
  0xda   : > { %2612 = vmatprep.mubr.bf16.mxu0 %v3009_v51  ;;  %v231_v48 = vld [vmem:[%s3970_s5 + $0x138] sm:$0xff]  ;;  %v2978_v51 = vcombine.low %v215_v40, %v223_v41 }
  0xdb   : > { %2342 = vmatpush1.bf16.msra.mxu1 %v3727_v52  ;;  %v239_v49 = vld [vmem:[%s3970_s5 + $0x178] sm:$0xff]  ;;  %v2987_v52 = vcombine.high %v227_v46, %v235_v47 }
  0xdc   : > { %2634 = vmatpush1.bf16.msra.mxu0 %v3730_v53  ;;  %2343 = vmatprep.subr.bf16.mxu1 %v3735_v54  ;;  %v2995_v53 = vcombine.high %v231_v48, %v239_v49  ;;  %v243_v54 = vld [vmem:[%s3970_s5 + $0x198] sm:$0xff]  ;;  %v2994_v59 = vcombine.low %v231_v48, %v239_v49 }
  0xdd   : > { %2635 = vmatprep.subr.bf16.mxu0 %v3738_v55  ;;  %v251_v55 = vld [vmem:[%s3970_s5 + $0x1d8] sm:$0xff] }
  0xde   : > { %2321 = vmatmul.mubr.bf16.gmra.mrb[12].mxu1 %v3000_v57  ;;  %v247_v56 = vld [vmem:[%s3970_s5 + $0x1b8] sm:$0xff]  ;;  %v3003_v60 = vcombine.high %v243_v54, %v251_v55 }
  0xdf   : > { %2613 = vmatmul.mubr.bf16.gmra.mrb[12].mxu0 %v3008_v58  ;;  %2344 = vmatpush1.bf16.msra.mxu1 %v3733_v62  ;;  %v255_v57 = vld [vmem:[%s3970_s5 + $0x1f8] sm:$0xff]  ;;  %v2986_v58 = vcombine.low %v227_v46, %v235_v47  ;;  %v3002_v62 = vcombine.low %v243_v54, %v251_v55 }
  0xe0   : > { %2636 = vmatpush1.bf16.msra.mxu0 %v3736_v63  ;;  %2345 = vmatprep.subr.bf16.mxu1 %v3741_v0  ;;  %v3011_v61 = vcombine.high %v247_v56, %v255_v57  ;;  %v3010_v63 = vcombine.low %v247_v56, %v255_v57 }
  0xe1   : > { %2637 = vmatprep.subr.bf16.mxu0 %v3744_v1  ;;  %2363 = vmatprep.mubr.bf16.mxu1 %v2955_v2 }
  0xe2   : > { %2655 = vmatprep.mubr.bf16.mxu0 %v2963_v3 }
  0xe3   : > { %2346 = vmatpush1.bf16.msra.mxu1 %v3739_v4 }
  0xe4   : > { %2638 = vmatpush1.bf16.msra.mxu0 %v3742_v5  ;;  %2347 = vmatprep.subr.bf16.mxu1 %v3747_v6 }
  0xe5   : > { %2639 = vmatprep.subr.bf16.mxu0 %v3750_v7 }
  0xe7   : > { %2348 = vmatpush1.bf16.msra.mxu1 %v3745_v8 }
  0xe8   : > { %2640 = vmatpush1.bf16.msra.mxu0 %v3748_v9  ;;  %2349 = vmatprep.subr.bf16.mxu1 %v3753_v10 }
  0xe9   : > { %2641 = vmatprep.subr.bf16.mxu0 %v3756_v11 }
  0xeb   : > { %2350 = vmatpush1.bf16.msra.mxu1 %v3751_v12 }
  0xec   : > { %2642 = vmatpush1.bf16.msra.mxu0 %v3754_v13  ;;  %2351 = vmatprep.subr.bf16.mxu1 %v3759_v14 }
  0xed   : > { %2643 = vmatprep.subr.bf16.mxu0 %v3762_v15 }
  0xef   : > { %2352 = vmatpush1.bf16.msra.mxu1 %v3757_v16 }
  0xf0   : > { %2644 = vmatpush1.bf16.msra.mxu0 %v3760_v17  ;;  %2353 = vmatprep.subr.bf16.mxu1 %v3765_v18 }
  0xf1   : > { %2645 = vmatprep.subr.bf16.mxu0 %v3768_v19 }
  0xf3   : > { %2354 = vmatpush1.bf16.msra.mxu1 %v3763_v20 }
  0xf4   : > { %2646 = vmatpush1.bf16.msra.mxu0 %v3766_v21  ;;  %2355 = vmatprep.subr.bf16.mxu1 %v3771_v22 }
  0xf5   : > { %2647 = vmatprep.subr.bf16.mxu0 %v3774_v23 }
  0xf7   : > { %2356 = vmatpush1.bf16.msra.mxu1 %v3769_v24 }
  0xf8   : > { %2648 = vmatpush1.bf16.msra.mxu0 %v3772_v25  ;;  %2357 = vmatprep.subr.bf16.mxu1 %v3777_v26 }
  0xf9   : > { %2649 = vmatprep.subr.bf16.mxu0 %v3780_v27 }
  0xfb   : > { %2358 = vmatpush1.bf16.msra.mxu1 %v3775_v28 }
  0xfc   : > { %2650 = vmatpush1.bf16.msra.mxu0 %v3778_v29  ;;  %2359 = vmatprep.subr.bf16.mxu1 %v3783_v30 }
  0xfd   : > { %2651 = vmatprep.subr.bf16.mxu0 %v3786_v31 }
  0xff   : > { %2360 = vmatpush1.bf16.msra.mxu1 %v3781_v32 }
 0x100   : > { %2652 = vmatpush1.bf16.msra.mxu0 %v3784_v33  ;;  %2361 = vmatprep.subr.bf16.mxu1 %v3789_v34 }
 0x101   : > { %2653 = vmatprep.subr.bf16.mxu0 %v3792_v35 }
 0x103   : > { %2362 = vmatpush1.bf16.msra.mxu1 %v3787_v36 }
 0x104   : > { %2654 = vmatpush1.bf16.msra.mxu0 %v3790_v37 }
 0x106   : > { %2364 = vmatmul.mubr.bf16.vlgmr.msra.gmra.mrb[0].mxu1 %v2954_v42 }
 0x107   : > { %2656 = vmatmul.mubr.bf16.vlgmr.msra.gmra.mrb[0].mxu0 %v2962_v43  ;;  %2373 = vmatprep.mubr.bf16.mxu1 %v2971_v44 }
 0x108   : > { %2665 = vmatprep.mubr.bf16.mxu0 %v2979_v45 }
 0x10e   : > { %2374 = vmatmul.mubr.bf16.gmra.mrb[4].mxu1 %v2970_v50 }
 0x10f   : > { %2666 = vmatmul.mubr.bf16.gmra.mrb[4].mxu0 %v2978_v51  ;;  %2383 = vmatprep.mubr.bf16.mxu1 %v2987_v52 }
 0x110   : > { %2675 = vmatprep.mubr.bf16.mxu0 %v2995_v53 }
 0x116   : > { %2384 = vmatmul.mubr.bf16.gmra.mrb[8].mxu1 %v2986_v58 }
 0x117   : > { %2676 = vmatmul.mubr.bf16.gmra.mrb[8].mxu0 %v2994_v59  ;;  %2393 = vmatprep.mubr.bf16.mxu1 %v3003_v60 }
 0x118   : > { %2685 = vmatprep.mubr.bf16.mxu0 %v3011_v61 }
 0x11e   : > { %2394 = vmatmul.mubr.bf16.gmra.mrb[12].mxu1 %v3002_v62 }
 0x11f   : > { %2686 = vmatmul.mubr.bf16.gmra.mrb[12].mxu0 %v3010_v63 }
 0x1d9   : > { %v2365_v0 = vpop.f32.mrb[0].mxu1 }
 0x1da   : > { %v2657_v1 = vpop.f32.mrb[0].mxu0  ;;  %v2367_v3 = vpop.f32.mrb[1].mxu1 }
 0x1db   : > { %v4721_v2 = vadd.f32 %v2657_v1, %v2365_v0  ;;  %v2659_v4 = vpop.f32.mrb[1].mxu0  ;;  %v2369_v6 = vpop.f32.mrb[2].mxu1 }
 0x1dc   : > { %v4723_v5 = vadd.f32 %v2659_v4, %v2367_v3  ;;  %v2661_v7 = vpop.f32.mrb[2].mxu0  ;;  %v2371_v9 = vpop.f32.mrb[3].mxu1 }
 0x1dd   : > { %v4730_v8 = vadd.f32 %v2661_v7, %v2369_v6  ;;  %v2663_v10 = vpop.f32.mrb[3].mxu0 }
 0x1de   : > { %v3281_v11 = vpack.c.bf16 %v4723_v5, %v4721_v2  ;;  %v4734_v12 = vadd.f32 %v2663_v10, %v2371_v9 }
 0x1df   : > { %v2752_v13 = vadd.f32 %v4730_v8, %v4721_v2 }
 0x1e0   : > { %2744 = vst [vmem:[%s4728_s20] sm:$0xff] %v3281_v11  ;;  %v3282_v14 = vpack.c.bf16 %v4734_v12, %v4730_v8  ;;  %v2765_v15 = vadd.f32 %v4734_v12, %v4723_v5 }
 0x1e1   : > { %v2375_v16 = vpop.f32.mrb[4].mxu1 }
 0x1e2   : > { %2745 = vst [vmem:[%s4728_s20 + $0x8] sm:$0xff] %v3282_v14  ;;  %v2667_v17 = vpop.f32.mrb[4].mxu0  ;;  %v2377_v19 = vpop.f32.mrb[5].mxu1 }
 0x1e3   : > { %v4744_v18 = vadd.f32 %v2667_v17, %v2375_v16  ;;  %v2669_v20 = vpop.f32.mrb[5].mxu0  ;;  %v2379_v22 = vpop.f32.mrb[6].mxu1 }
 0x1e4   : > { %v4746_v21 = vadd.f32 %v2669_v20, %v2377_v19  ;;  %v2671_v23 = vpop.f32.mrb[6].mxu0  ;;  %v2381_v26 = vpop.f32.mrb[7].mxu1 }
 0x1e5   : > { %v2753_v24 = vadd.f32 %v4744_v18, %v2752_v13  ;;  %v4749_v25 = vadd.f32 %v2671_v23, %v2379_v22  ;;  %v2673_v27 = vpop.f32.mrb[7].mxu0 }
 0x1e6   : > { %v3283_v28 = vpack.c.bf16 %v4746_v21, %v4744_v18  ;;  %v2766_v29 = vadd.f32 %v4746_v21, %v2765_v15  ;;  %v4754_v30 = vadd.f32 %v2673_v27, %v2381_v26 }
 0x1e7   : > { %v2754_v31 = vadd.f32 %v4749_v25, %v2753_v24 }
 0x1e8   : > { %2746 = vst [vmem:[%s4728_s20 + $0x10] sm:$0xff] %v3283_v28  ;;  %v3284_v32 = vpack.c.bf16 %v4754_v30, %v4749_v25  ;;  %v2767_v33 = vadd.f32 %v4754_v30, %v2766_v29 }
 0x1e9   : > { %v2385_v34 = vpop.f32.mrb[8].mxu1 }
 0x1ea   : > { %2747 = vst [vmem:[%s4728_s20 + $0x18] sm:$0xff] %v3284_v32  ;;  %v2677_v35 = vpop.f32.mrb[8].mxu0  ;;  %v2387_v37 = vpop.f32.mrb[9].mxu1 }
 0x1eb   : > { %v3297_v36 = vadd.f32 %v2677_v35, %v2385_v34  ;;  %v2679_v38 = vpop.f32.mrb[9].mxu0  ;;  %v2389_v40 = vpop.f32.mrb[10].mxu1 }
 0x1ec   : > { %v4762_v39 = vadd.f32 %v2679_v38, %v2387_v37  ;;  %v2681_v41 = vpop.f32.mrb[10].mxu0  ;;  %v2391_v44 = vpop.f32.mrb[11].mxu1 }
 0x1ed   : > { %v2755_v42 = vadd.f32 %v3297_v36, %v2754_v31  ;;  %v3299_v43 = vadd.f32 %v2681_v41, %v2389_v40  ;;  %v2683_v45 = vpop.f32.mrb[11].mxu0 }
 0x1ee   : > { %v3285_v46 = vpack.c.bf16 %v4762_v39, %v3297_v36  ;;  %v2768_v47 = vadd.f32 %v4762_v39, %v2767_v33  ;;  %v3300_v48 = vadd.f32 %v2683_v45, %v2391_v44 }
 0x1ef   : > { %v2756_v49 = vadd.f32 %v3299_v43, %v2755_v42 }
 0x1f0   : > { %2748 = vst [vmem:[%s4728_s20 + $0x20] sm:$0xff] %v3285_v46  ;;  %v3286_v50 = vpack.c.bf16 %v3300_v48, %v3299_v43  ;;  %v2769_v51 = vadd.f32 %v3300_v48, %v2768_v47 }
 0x1f1   : > { %v2395_v52 = vpop.f32.mrb[12].mxu1 }
 0x1f2   : > { %2749 = vst [vmem:[%s4728_s20 + $0x28] sm:$0xff] %v3286_v50  ;;  %v2687_v53 = vpop.f32.mrb[12].mxu0  ;;  %v2397_v55 = vpop.f32.mrb[13].mxu1 }
 0x1f3   : > { %v3301_v54 = vadd.f32 %v2687_v53, %v2395_v52  ;;  %v2689_v56 = vpop.f32.mrb[13].mxu0  ;;  %v2399_v58 = vpop.f32.mrb[14].mxu1 }
 0x1f4   : > { %v3302_v57 = vadd.f32 %v2689_v56, %v2397_v55  ;;  %v2691_v59 = vpop.f32.mrb[14].mxu0  ;;  %v2401_v62 = vpop.f32.mrb[15].mxu1 }
 0x1f5   : > { %v2757_v60 = vadd.f32 %v3301_v54, %v2756_v49  ;;  %v3303_v61 = vadd.f32 %v2691_v59, %v2399_v58  ;;  %v2693_v63 = vpop.f32.mrb[15].mxu0 }
 0x1f6   : > { %v3287_v0 = vpack.c.bf16 %v3302_v57, %v3301_v54  ;;  %v2770_v1 = vadd.f32 %v3302_v57, %v2769_v51  ;;  %v3304_v3 = vadd.f32 %v2693_v63, %v2401_v62 }
 0x1f7   : > { %v2758_v4 = vadd.f32 %v3303_v61, %v2757_v60 }
 0x1f8   : > { %2750 = vst [vmem:[%s4728_s20 + $0x30] sm:$0xff] %v3287_v0  ;;  %v3288_v6 = vpack.c.bf16 %v3304_v3, %v3303_v61  ;;  %v2771_v7 = vadd.f32 %v3304_v3, %v2770_v1 }
 0x1f9   : > { %v2759_v9 = vrot.slane %v2758_v4, 4 }
 0x1fa   : > { %2751 = vst [vmem:[%s4728_s20 + $0x38] sm:$0xff] %v3288_v6  ;;  %v2772_v10 = vrot.slane %v2771_v7, 4 }
 0x1fb   : > { %v2760_v11 = vadd.f32 %v2759_v9, %v2758_v4 }
 0x1fc   : > { %v2773_v13 = vadd.f32 %v2772_v10, %v2771_v7 }
 0x1fd   : > { %v2761_v14 = vrot.slane %v2760_v11, 2 }
 0x1fe   : > { %v2774_v15 = vrot.slane %v2773_v13, 2 }
 0x1ff   : > { %v2762_v16 = vadd.f32 %v2761_v14, %v2760_v11 }
 0x200   : > { %v2775_v17 = vadd.f32 %v2774_v15, %v2773_v13 }
 0x201   : > { %v2763_v19 = vrot.slane %v2762_v16, 1 }
 0x202   : > { %v2776_v20 = vrot.slane %v2775_v17, 1 }
 0x203   : > { %v2764_v22 = vadd.f32 %v2763_v19, %v2762_v16 }
 0x204   : > { %v2777_v23 = vadd.f32 %v2776_v20, %v2775_v17 }
 0x205   : > { %v4770_v24 = vmul.f32 0.015625, %v2764_v22 }
 0x206   : > { %v4772_v26 = vmul.f32 0.015625, %v2777_v23 }
 0x207   : > { %v2781_v27 = vsub.f32 %v4721_v2, %v4770_v24  ;;  %v2783_v28 = vsub.f32 %v4730_v8, %v4770_v24  ;;  %v2785_v29 = vsub.f32 %v4744_v18, %v4770_v24  ;;  %v2787_v31 = vsub.f32 %v4749_v25, %v4770_v24 }
 0x208   : > { %v2789_v32 = vsub.f32 %v3297_v36, %v4770_v24  ;;  %v2791_v33 = vsub.f32 %v3299_v43, %v4770_v24  ;;  %v2793_v34 = vsub.f32 %v3301_v54, %v4770_v24  ;;  %v2795_v35 = vsub.f32 %v3303_v61, %v4770_v24 }
 0x209   : > { %v2797_v37 = vmul.f32 %v2781_v27, %v2781_v27  ;;  %v2799_v38 = vmul.f32 %v2783_v28, %v2783_v28  ;;  %v2801_v2 = vmul.f32 %v2785_v29, %v2785_v29  ;;  %v2803_v40 = vmul.f32 %v2787_v31, %v2787_v31 }
 0x20a   : > { %v2782_v8 = vsub.f32 %v4723_v5, %v4772_v26  ;;  %v2784_v18 = vsub.f32 %v4734_v12, %v4772_v26  ;;  %v2786_v25 = vsub.f32 %v4746_v21, %v4772_v26  ;;  %v2788_v36 = vsub.f32 %v4754_v30, %v4772_v26 }
 0x20b   : > { %v2813_v41 = vadd.f32 %v2799_v38, %v2797_v37  ;;  %v2790_v42 = vsub.f32 %v4762_v39, %v4772_v26  ;;  %v2792_v43 = vsub.f32 %v3300_v48, %v4772_v26  ;;  %v2794_v44 = vsub.f32 %v3302_v57, %v4772_v26 }
 0x20c   : > { %v2796_v46 = vsub.f32 %v3304_v3, %v4772_v26  ;;  %v2798_v5 = vmul.f32 %v2782_v8, %v2782_v8  ;;  %v2800_v47 = vmul.f32 %v2784_v18, %v2784_v18  ;;  %v2805_v49 = vmul.f32 %v2789_v32, %v2789_v32 }
 0x20d   : > { %v2814_v45 = vadd.f32 %v2813_v41, %v2801_v2  ;;  %v2802_v50 = vmul.f32 %v2786_v25, %v2786_v25  ;;  %v2807_v21 = vmul.f32 %v2791_v33, %v2791_v33  ;;  %v2804_v30 = vmul.f32 %v2788_v36, %v2788_v36 }
 0x20e   : > { %v2826_v51 = vadd.f32 %v2800_v47, %v2798_v5  ;;  %v2809_v54 = vmul.f32 %v2793_v34, %v2793_v34  ;;  %v2806_v48 = vmul.f32 %v2790_v42, %v2790_v42  ;;  %v2811_v56 = vmul.f32 %v2795_v35, %v2795_v35 }
 0x20f   : > { %v2815_v12 = vadd.f32 %v2814_v45, %v2803_v40  ;;  %v2808_v58 = vmul.f32 %v2792_v43, %v2792_v43  ;;  %v2810_v61 = vmul.f32 %v2794_v44, %v2794_v44  ;;  %v2812_v0 = vmul.f32 %v2796_v46, %v2796_v46 }
 0x210   : > { %v2827_v53 = vadd.f32 %v2826_v51, %v2802_v50 }
 0x211   : > { %v2816_v52 = vadd.f32 %v2815_v12, %v2805_v49 }
 0x212   : > { %v2828_v55 = vadd.f32 %v2827_v53, %v2804_v30 }
 0x213   : > { %v2817_v39 = vadd.f32 %v2816_v52, %v2807_v21 }
 0x214   : > { %v2829_v59 = vadd.f32 %v2828_v55, %v2806_v48 }
 0x215   : > { %v2818_v57 = vadd.f32 %v2817_v39, %v2809_v54 }
 0x216   : > { %v2830_v62 = vadd.f32 %v2829_v59, %v2808_v58 }
 0x217   : > { %v2819_v60 = vadd.f32 %v2818_v57, %v2811_v56 }
 0x218   : > { %v2831_v1 = vadd.f32 %v2830_v62, %v2810_v61 }
 0x219   : > { %v2820_v63 = vrot.slane %v2819_v60, 4 }
 0x21a   : > { %v2832_v4 = vadd.f32 %v2831_v1, %v2812_v0 }
 0x21b   : > { %v2821_v3 = vadd.f32 %v2820_v63, %v2819_v60 }
 0x21c   : > { %v2833_v7 = vrot.slane %v2832_v4, 4 }
 0x21d   : > { %v2822_v6 = vrot.slane %v2821_v3, 2 }
 0x21e   : > { %v2834_v10 = vadd.f32 %v2833_v7, %v2832_v4 }
 0x21f   : > { %v2823_v9 = vadd.f32 %v2822_v6, %v2821_v3 }
 0x220   : > { %v2835_v13 = vrot.slane %v2834_v10, 2 }
 0x221   : > { %v2824_v11 = vrot.slane %v2823_v9, 1 }
 0x222   : > { %v2836_v15 = vadd.f32 %v2835_v13, %v2834_v10 }
 0x223   : > { %v2825_v14 = vadd.f32 %v2824_v11, %v2823_v9 }
 0x224   : > { %v2837_v17 = vrot.slane %v2836_v15, 1 }
 0x225   : > { %v2840_v16 = vsel %vm2839_vm0, %v4770_v24, %v2825_v14 }
 0x226   : > { %2842 = vst [vmem:[%s191_s23] sm:$0x3] %v2840_v16  ;;  %v2838_v19 = vadd.f32 %v2837_v17, %v2836_v15 }
 0x228   : > { %v2841_v20 = vsel %vm2839_vm0, %v4772_v26, %v2838_v19 }
 0x229   : > { %2843 = vst [vmem:[%s191_s23 + $0x8] sm:$0x3] %v2841_v20 }
 0x22a PF: > { %s14_s12 = sadd.s32 1, %s3799_s12  }
 0x22b   : > { %p11_p5 = scmp.ge.s32.totalorder %s14_s12, 4  }
 0x22d   :  { %13 = sbr.rel (!%p11_p5) target bundleno = 1 (0x1), region = 70 }

// kernel: discriminator_forward.13
= control target key start
LH: loop header
LB: loop body
LE: loop exit
PB: predicated region body
PF: predicated region fallthrough
CT: control target
= control target key end

     0   :  { %s472_s12 = smov 0   ;;  %s562_s0 = inlined_call_operand.vmem [shape: bf16[128,256], index: 0, kind: input, shape index: {}]   ;;  %s563_s1 = inlined_call_operand.vmem [shape: f32[1,256], index: 1, kind: input, shape index: {}]   ;;  %s564_s2 = inlined_call_operand.vmem [shape: f32[1,256], index: 2, kind: input, shape index: {}]   ;;  %s565_s3 = inlined_call_operand.vmem [shape: bf16[128,256], index: 3, kind: output, shape index: {}]  }
   0x1 LB: > { %s405_s13 = sadd.s32 4294967295, %s450_s12   ;;  %p409_p0 = scmp.ge.s32.totalorder %s450_s12, 1  ;;  %s450_s12 = sphi %s472_s12, %s13_s12  }
   0x2   : > { %p139_p1 = scmp.lt.s32.totalorder %s450_s12, 3 }
   0x4   : > { %p140_p2 = pnand %p409_p0, %p139_p1 }
   0x5   : > { %s410_s14 = sshll.u32 (!%p140_p2), %s405_s13, 3  ;;  %v205_v0 = vlaneseq (!%p140_p2)  ;;  %v203_v2 = vld [vmem:[%s563_s1] sm:$0x3] (!%p140_p2) }
   0x6   : > { %143 = sbr.rel (%p140_p2) target bundleno = 45 (0x2d), region = 32  ;;  %p166_p3 = scmp.lt.s32.totalorder (!%p140_p2), %s410_s14, 15  ;;  %v231_v5 = vld [vmem:[%s564_s2] sm:$0x3] (!%p140_p2) }
   0x7   : > { %v206_v1 = vshrl.u32 (!%p140_p2), %v205_v0, 7 }
   0x9   : > { %v207_v3 = vsub.s32 (!%p140_p2), 0, %v206_v1  ;;  %v211_v4 = vsub.s32 (!%p140_p2), 1, %v206_v1 }
   0xb   : > { %v496_v6 = vrot.slane (!%p140_p2), %v203_v2, %v207_v3  ;;  %v498_v7 = vrot.slane (!%p140_p2), %v203_v2, %v211_v4  ;;  %v501_v9 = vrot.slane (!%p140_p2), %v231_v5, %v207_v3  ;;  %v503_v10 = vrot.slane (!%p140_p2), %v231_v5, %v211_v4 }
   0xd   : > { %s567_s14 = smov (!%p166_p3, %s410_s14), 15 }
   0xe   : > { %s426_s19 = sshll.u32 %s567_s14, 3 }
   0xf   : > { %s494_s22 = scalar_lea.vmem %s562_s0, %s426_s19  ;;  %s531_s25 = scalar_lea.vmem %s565_s3, %s426_s19 }
  0x10   : > { %v179_v8 = vld [vmem:[%s494_s22] sm:$0xff]  ;;  %v180_v11 = vld [vmem:[%s494_s22 + $0x8] sm:$0xff]  ;;  %v181_v12 = vld [vmem:[%s494_s22 + $0x10] sm:$0xff] }
  0x11   : > { %v187_v13 = vunpack.c.l.bf16 %v179_v8  ;;  %v188_v14 = vunpack.c.h.bf16 %v179_v8  ;;  %v189_v15 = vunpack.c.l.bf16 %v180_v11  ;;  %v190_v16 = vunpack.c.h.bf16 %v180_v11  ;;  %v182_v17 = vld [vmem:[%s494_s22 + $0x18] sm:$0xff]  ;;  %v183_v30 = vld [vmem:[%s494_s22 + $0x20] sm:$0xff]  ;;  %v184_v51 = vld [vmem:[%s494_s22 + $0x28] sm:$0xff] }
  0x12   : > { %v191_v18 = vunpack.c.l.bf16 %v181_v12  ;;  %v192_v19 = vunpack.c.h.bf16 %v181_v12  ;;  %v193_v20 = vunpack.c.l.bf16 %v182_v17  ;;  %v194_v21 = vunpack.c.h.bf16 %v182_v17  ;;  %v185_v56 = vld [vmem:[%s494_s22 + $0x30] sm:$0xff]  ;;  %v186_v61 = vld [vmem:[%s494_s22 + $0x38] sm:$0xff] }
  0x13   : > { %v215_v22 = vmul.f32 %v496_v6, %v187_v13  ;;  %v216_v23 = vmul.f32 %v498_v7, %v188_v14  ;;  %v217_v24 = vmul.f32 %v496_v6, %v189_v15  ;;  %v218_v25 = vmul.f32 %v498_v7, %v190_v16 }
  0x14   : > { %v219_v26 = vmul.f32 %v496_v6, %v191_v18  ;;  %v220_v27 = vmul.f32 %v498_v7, %v192_v19  ;;  %v221_v28 = vmul.f32 %v496_v6, %v193_v20  ;;  %v222_v29 = vmul.f32 %v498_v7, %v194_v21 }
  0x15   : > { %v243_v31 = vadd.f32 %v501_v9, %v215_v22  ;;  %v244_v32 = vadd.f32 %v503_v10, %v216_v23  ;;  %v245_v33 = vadd.f32 %v501_v9, %v217_v24  ;;  %v246_v34 = vadd.f32 %v503_v10, %v218_v25 }
  0x16   : > { %v247_v35 = vadd.f32 %v501_v9, %v219_v26  ;;  %v248_v36 = vadd.f32 %v503_v10, %v220_v27  ;;  %v249_v37 = vadd.f32 %v501_v9, %v221_v28  ;;  %v250_v38 = vadd.f32 %v503_v10, %v222_v29 }
  0x17   : > { %v259_v39 = vmul.f32 0.2, %v243_v31  ;;  %v260_v40 = vmul.f32 0.2, %v244_v32  ;;  %v261_v41 = vmul.f32 0.2, %v245_v33  ;;  %v195_v42 = vunpack.c.l.bf16 %v183_v30 }
  0x18   : > { %v262_v43 = vmul.f32 0.2, %v246_v34  ;;  %v263_v44 = vmul.f32 0.2, %v247_v35  ;;  %v264_v45 = vmul.f32 0.2, %v248_v36  ;;  %v196_v46 = vunpack.c.h.bf16 %v183_v30 }
  0x19   : > { %v275_v47 = vmax.f32 %v243_v31, %v259_v39  ;;  %v276_v48 = vmax.f32 %v244_v32, %v260_v40  ;;  %v277_v49 = vmax.f32 %v245_v33, %v261_v41  ;;  %v265_v50 = vmul.f32 0.2, %v249_v37 }
  0x1a   : > { %v278_v52 = vmax.f32 %v246_v34, %v262_v43  ;;  %v279_v53 = vmax.f32 %v247_v35, %v263_v44  ;;  %v280_v54 = vmax.f32 %v248_v36, %v264_v45  ;;  %v266_v55 = vmul.f32 0.2, %v250_v38 }
  0x1b   : > { %v428_v57 = vpack.c.bf16 %v276_v48, %v275_v47  ;;  %v281_v58 = vmax.f32 %v249_v37, %v265_v50  ;;  %v223_v59 = vmul.f32 %v496_v6, %v195_v42  ;;  %v224_v60 = vmul.f32 %v498_v7, %v196_v46 }
  0x1c   : > { %v429_v62 = vpack.c.bf16 %v278_v52, %v277_v49  ;;  %v430_v63 = vpack.c.bf16 %v280_v54, %v279_v53  ;;  %v282_v0 = vmax.f32 %v250_v38, %v266_v55  ;;  %v197_v1 = vunpack.c.l.bf16 %v184_v51 }
  0x1d   : > { %339 = vst [vmem:[%s531_s25] sm:$0xff] %v428_v57  ;;  %v251_v2 = vadd.f32 %v501_v9, %v223_v59  ;;  %v252_v3 = vadd.f32 %v503_v10, %v224_v60  ;;  %v198_v4 = vunpack.c.h.bf16 %v184_v51  ;;  %v199_v5 = vunpack.c.l.bf16 %v185_v56 }
  0x1e   : > { %340 = vst [vmem:[%s531_s25 + $0x8] sm:$0xff] %v429_v62  ;;  %341 = vst [vmem:[%s531_s25 + $0x10] sm:$0xff] %v430_v63  ;;  %v431_v8 = vpack.c.bf16 %v282_v0, %v281_v58  ;;  %v225_v11 = vmul.f32 %v496_v6, %v197_v1  ;;  %v200_v12 = vunpack.c.h.bf16 %v185_v56  ;;  %v201_v13 = vunpack.c.l.bf16 %v186_v61 }
  0x1f   : > { %v267_v14 = vmul.f32 0.2, %v251_v2  ;;  %v268_v15 = vmul.f32 0.2, %v252_v3  ;;  %v226_v16 = vmul.f32 %v498_v7, %v198_v4  ;;  %v227_v17 = vmul.f32 %v496_v6, %v199_v5 }
  0x20   : > { %342 = vst [vmem:[%s531_s25 + $0x18] sm:$0xff] %v431_v8  ;;  %v253_v18 = vadd.f32 %v501_v9, %v225_v11  ;;  %v228_v19 = vmul.f32 %v498_v7, %v200_v12  ;;  %v202_v20 = vunpack.c.h.bf16 %v186_v61  ;;  %v229_v21 = vmul.f32 %v496_v6, %v201_v13 }
  0x21   : > { %v283_v22 = vmax.f32 %v251_v2, %v267_v14  ;;  %v284_v23 = vmax.f32 %v252_v3, %v268_v15  ;;  %v254_v24 = vadd.f32 %v503_v10, %v226_v16  ;;  %v255_v25 = vadd.f32 %v501_v9, %v227_v17 }
  0x22   : > { %v269_v26 = vmul.f32 0.2, %v253_v18  ;;  %v256_v27 = vadd.f32 %v503_v10, %v228_v19  ;;  %v230_v28 = vmul.f32 %v498_v7, %v202_v20  ;;  %v257_v29 = vadd.f32 %v501_v9, %v229_v21 }
  0x23   : > { %v432_v30 = vpack.c.bf16 %v284_v23, %v283_v22  ;;  %v270_v31 = vmul.f32 0.2, %v254_v24  ;;  %v271_v32 = vmul.f32 0.2, %v255_v25 }
  0x24   : > { %v285_v6 = vmax.f32 %v253_v18, %v269_v26  ;;  %v272_v33 = vmul.f32 0.2, %v256_v27  ;;  %v258_v34 = vadd.f32 %v503_v10, %v230_v28  ;;  %v273_v35 = vmul.f32 0.2, %v257_v29 }
  0x25   : > { %343 = vst [vmem:[%s531_s25 + $0x20] sm:$0xff] %v432_v30  ;;  %v286_v36 = vmax.f32 %v254_v24, %v270_v31  ;;  %v287_v37 = vmax.f32 %v255_v25, %v271_v32 }
  0x26   : > { %v288_v38 = vmax.f32 %v256_v27, %v272_v33  ;;  %v274_v39 = vmul.f32 0.2, %v258_v34  ;;  %v289_v40 = vmax.f32 %v257_v29, %v273_v35 }
  0x27   : > { %v433_v7 = vpack.c.bf16 %v286_v36, %v285_v6 }
  0x28   : > { %v434_v41 = vpack.c.bf16 %v288_v38, %v287_v37  ;;  %v290_v9 = vmax.f32 %v258_v34, %v274_v39 }
  0x29   : > { %344 = vst [vmem:[%s531_s25 + $0x28] sm:$0xff] %v433_v7 }
  0x2a   : > { %345 = vst [vmem:[%s531_s25 + $0x30] sm:$0xff] %v434_v41  ;;  %v435_v42 = vpack.c.bf16 %v290_v9, %v289_v40 }
  0x2c   : > { %346 = vst [vmem:[%s531_s25 + $0x38] sm:$0xff] %v435_v42 }
  0x2d PF: > { %s13_s12 = sadd.s32 1, %s450_s12  }
  0x2e   : > { %p10_p4 = scmp.ge.s32.totalorder %s13_s12, 4  }
  0x30   :  { %12 = sbr.rel (!%p10_p4) target bundleno = 1 (0x1), region = 62 }

// kernel: discriminator_forward.14
= control target key start
LH: loop header
LB: loop body
LE: loop exit
PB: predicated region body
PF: predicated region fallthrough
CT: control target
= control target key end

     0   :  { %s10883_s12 = smov 0   ;;  %s14138_s0 = inlined_call_operand.vmem [shape: bf16[32,4096], index: 0, kind: input, shape index: {}]   ;;  %s14139_s1 = inlined_call_operand.vmem [shape: bf16[4096,512], index: 1, kind: input, shape index: {}]   ;;  %s14140_s2 = inlined_call_operand.vmem [shape: bf16[32,512], index: 2, kind: output, shape index: {0}]   ;;  %s14141_s3 = inlined_call_operand.vmem [shape: f32[16,512], index: 3, kind: output, shape index: {1}]  }
   0x1 LB: > { %s10889_s13 = sadd.s32 4294967295, %s10861_s12   ;;  %p8113_p0 = scmp.ge.s32.totalorder %s10861_s12, 1  ;;  %s10861_s12 = sphi %s10883_s12, %s14_s12  }
   0x2   : > { %p142_p1 = scmp.lt.s32.totalorder %s10861_s12, 3 }
   0x4   : > { %p143_p2 = pnand %p8113_p0, %p142_p1 }
   0x5   : > { %v9319_v0 = vld [vmem:[%s14139_s1 + $0x4] ss:$16 sps:$4 sm:$0xff] (!%p143_p2)   ;;  %v9321_v1 = vld [vmem:[%s14139_s1 + $0xc] ss:$16 sps:$4 sm:$0xff] (!%p143_p2)   ;;  %v9323_v2 = vld [vmem:[%s14139_s1] ss:$16 sps:$4 sm:$0xff] (!%p143_p2)  }
   0x6   : > { %146 = sbr.rel (%p143_p2) target bundleno = 1282 (0x502), region = 28  ;;  %6528 = vmatprep.subr.bf16.mxu0 (!%p143_p2), %v9319_v0  ;;  %v9324_v3 = vld [vmem:[%s14139_s1 + $0x8] ss:$16 sps:$4 sm:$0xff] (!%p143_p2)   ;;  %7216 = vmatprep.subr.bf16.mxu1 (!%p143_p2), %v9321_v1  ;;  %v9325_v4 = vld [vmem:[%s14139_s1 + $0x24] ss:$16 sps:$4 sm:$0xff] (!%p143_p2)   ;;  %s8114_s24 = sshll.u32 (!%p143_p2), %s10889_s13, 1 }
   0x7   : > { %6529 = vmatpush1.bf16.msra.mxu0 (!%p143_p2), %v9323_v2  ;;  %7217 = vmatpush1.bf16.msra.mxu1 (!%p143_p2), %v9324_v3  ;;  %v9327_v5 = vld [vmem:[%s14139_s1 + $0x2c] ss:$16 sps:$4 sm:$0xff] (!%p143_p2)   ;;  %v9329_v6 = vld [vmem:[%s14139_s1 + $0x20] ss:$16 sps:$4 sm:$0xff] (!%p143_p2)   ;;  %v9330_v7 = vld [vmem:[%s14139_s1 + $0x28] ss:$16 sps:$4 sm:$0xff] (!%p143_p2)  }
   0x8   : > { %6530 = vmatprep.subr.bf16.mxu0 (!%p143_p2), %v9325_v4  ;;  %7218 = vmatprep.subr.bf16.mxu1 (!%p143_p2), %v9327_v5  ;;  %v9331_v8 = vld [vmem:[%s14139_s1 + $0x44] ss:$16 sps:$4 sm:$0xff] (!%p143_p2)   ;;  %v9333_v9 = vld [vmem:[%s14139_s1 + $0x4c] ss:$16 sps:$4 sm:$0xff] (!%p143_p2)   ;;  %v9335_v10 = vld [vmem:[%s14139_s1 + $0x40] ss:$16 sps:$4 sm:$0xff] (!%p143_p2)  }
   0x9   : > { %v9336_v11 = vld [vmem:[%s14139_s1 + $0x48] ss:$16 sps:$4 sm:$0xff] (!%p143_p2)   ;;  %v9337_v12 = vld [vmem:[%s14139_s1 + $0x64] ss:$16 sps:$4 sm:$0xff] (!%p143_p2)   ;;  %v9339_v13 = vld [vmem:[%s14139_s1 + $0x6c] ss:$16 sps:$4 sm:$0xff] (!%p143_p2)  }
   0xa   : > { %v9341_v14 = vld [vmem:[%s14139_s1 + $0x60] ss:$16 sps:$4 sm:$0xff] (!%p143_p2)   ;;  %v9342_v15 = vld [vmem:[%s14139_s1 + $0x68] ss:$16 sps:$4 sm:$0xff] (!%p143_p2)   ;;  %v9343_v16 = vld [vmem:[%s14139_s1 + $0x84] ss:$16 sps:$4 sm:$0xff] (!%p143_p2)  }
   0xb   : > { %6531 = vmatpush1.bf16.msra.mxu0 (!%p143_p2), %v9329_v6  ;;  %7219 = vmatpush1.bf16.msra.mxu1 (!%p143_p2), %v9330_v7  ;;  %v9345_v17 = vld [vmem:[%s14139_s1 + $0x8c] ss:$16 sps:$4 sm:$0xff] (!%p143_p2)   ;;  %v9347_v18 = vld [vmem:[%s14139_s1 + $0x80] ss:$16 sps:$4 sm:$0xff] (!%p143_p2)   ;;  %v9348_v19 = vld [vmem:[%s14139_s1 + $0x88] ss:$16 sps:$4 sm:$0xff] (!%p143_p2)  }
   0xc   : > { %6532 = vmatprep.subr.bf16.mxu0 (!%p143_p2), %v9331_v8  ;;  %7220 = vmatprep.subr.bf16.mxu1 (!%p143_p2), %v9333_v9  ;;  %v9349_v20 = vld [vmem:[%s14139_s1 + $0xa4] ss:$16 sps:$4 sm:$0xff] (!%p143_p2)   ;;  %v9351_v21 = vld [vmem:[%s14139_s1 + $0xac] ss:$16 sps:$4 sm:$0xff] (!%p143_p2)   ;;  %v9353_v22 = vld [vmem:[%s14139_s1 + $0xa0] ss:$16 sps:$4 sm:$0xff] (!%p143_p2)  }
   0xd   : > { %v9354_v23 = vld [vmem:[%s14139_s1 + $0xa8] ss:$16 sps:$4 sm:$0xff]   ;;  %v9355_v24 = vld [vmem:[%s14139_s1 + $0xc4] ss:$16 sps:$4 sm:$0xff]   ;;  %v9357_v25 = vld [vmem:[%s14139_s1 + $0xcc] ss:$16 sps:$4 sm:$0xff]  }
   0xe   : > { %v9359_v26 = vld [vmem:[%s14139_s1 + $0xc0] ss:$16 sps:$4 sm:$0xff]   ;;  %v9360_v27 = vld [vmem:[%s14139_s1 + $0xc8] ss:$16 sps:$4 sm:$0xff]   ;;  %v9361_v28 = vld [vmem:[%s14139_s1 + $0xe4] ss:$16 sps:$4 sm:$0xff]  }
   0xf   : > { %6533 = vmatpush1.bf16.msra.mxu0 %v9335_v10  ;;  %7221 = vmatpush1.bf16.msra.mxu1 %v9336_v11  ;;  %v9363_v29 = vld [vmem:[%s14139_s1 + $0xec] ss:$16 sps:$4 sm:$0xff]   ;;  %v9365_v30 = vld [vmem:[%s14139_s1 + $0xe0] ss:$16 sps:$4 sm:$0xff]   ;;  %v9366_v31 = vld [vmem:[%s14139_s1 + $0xe8] ss:$16 sps:$4 sm:$0xff]  }
  0x10   : > { %6534 = vmatprep.subr.bf16.mxu0 %v9337_v12  ;;  %7222 = vmatprep.subr.bf16.mxu1 %v9339_v13  ;;  %v9367_v32 = vld [vmem:[%s14139_s1 + $0x104] ss:$16 sps:$4 sm:$0xff]   ;;  %p174_p3 = scmp.lt.s32.totalorder %s8114_s24, 3  ;;  %v9369_v33 = vld [vmem:[%s14139_s1 + $0x10c] ss:$16 sps:$4 sm:$0xff]   ;;  %p187_p4 = scmp.lt.s32.totalorder %s10889_s13, 1 }
  0x11   : > { %v9371_v34 = vld [vmem:[%s14139_s1 + $0x100] ss:$16 sps:$4 sm:$0xff]   ;;  %v9372_v35 = vld [vmem:[%s14139_s1 + $0x108] ss:$16 sps:$4 sm:$0xff]   ;;  %v9373_v36 = vld [vmem:[%s14139_s1 + $0x124] ss:$16 sps:$4 sm:$0xff]  }
  0x12   : > { %s14143_s24 = smov (!%p174_p3, %s8114_s24), 3  ;;  %v9375_v37 = vld [vmem:[%s14139_s1 + $0x12c] ss:$16 sps:$4 sm:$0xff]   ;;  %v9377_v38 = vld [vmem:[%s14139_s1 + $0x120] ss:$16 sps:$4 sm:$0xff]   ;;  %s14145_s13 = smov (!%p187_p4, %s10889_s13), 1 }
  0x13   : > { %6535 = vmatpush1.bf16.msra.mxu0 %v9341_v14  ;;  %7223 = vmatpush1.bf16.msra.mxu1 %v9342_v15  ;;  %v9378_v39 = vld [vmem:[%s14139_s1 + $0x128] ss:$16 sps:$4 sm:$0xff]   ;;  %v9379_v40 = vld [vmem:[%s14139_s1 + $0x144] ss:$16 sps:$4 sm:$0xff]   ;;  %s9184_s22 = sshll.u32 %s14143_s24, 7  ;;  %s9185_s6 = sshll.u32 %s14143_s24, 4 }
  0x14   : > { %6536 = vmatprep.subr.bf16.mxu0 %v9343_v16  ;;  %7224 = vmatprep.subr.bf16.mxu1 %v9345_v17  ;;  %v9381_v41 = vld [vmem:[%s14139_s1 + $0x14c] ss:$16 sps:$4 sm:$0xff]   ;;  %v9383_v42 = vld [vmem:[%s14139_s1 + $0x140] ss:$16 sps:$4 sm:$0xff]   ;;  %v9384_v43 = vld [vmem:[%s14139_s1 + $0x148] ss:$16 sps:$4 sm:$0xff]   ;;  %s11032_s5 = scalar_lea.vmem %s14138_s0, %s9184_s22  ;;  %s185_s9 = scalar_lea.vmem %s14140_s2, %s9185_s6 }
  0x15   : > { %v9385_v44 = vld [vmem:[%s14139_s1 + $0x164] ss:$16 sps:$4 sm:$0xff]   ;;  %v9387_v45 = vld [vmem:[%s14139_s1 + $0x16c] ss:$16 sps:$4 sm:$0xff]   ;;  %v9389_v48 = vld [vmem:[%s14139_s1 + $0x160] ss:$16 sps:$4 sm:$0xff]  }
  0x16   : > { %v192_v46 = vld [vmem:[%s11032_s5] sm:$0xff]  ;;  %v9390_v49 = vld [vmem:[%s14139_s1 + $0x168] ss:$16 sps:$4 sm:$0xff]   ;;  %v9393_v52 = vld [vmem:[%s14139_s1 + $0x18c] ss:$16 sps:$4 sm:$0xff]   ;;  %s9186_s24 = sshll.u32 %s14145_s13, 5 }
  0x17   : > { %6537 = vmatpush1.bf16.msra.mxu0 %v9347_v18  ;;  %7225 = vmatpush1.bf16.msra.mxu1 %v9348_v19  ;;  %v208_v47 = vld [vmem:[%s11032_s5 + $0x80] sm:$0xff]  ;;  %v9396_v54 = vld [vmem:[%s14139_s1 + $0x188] ss:$16 sps:$4 sm:$0xff]   ;;  %v9399_v56 = vld [vmem:[%s14139_s1 + $0x1ac] ss:$16 sps:$4 sm:$0xff]   ;;  %vm8009_vm0 = vcmask 1040384   ;;  %s191_s11 = scalar_lea.vmem %s14141_s3, %s9186_s24 }
  0x18   : > { %6538 = vmatprep.subr.bf16.mxu0 %v9349_v20  ;;  %7226 = vmatprep.subr.bf16.mxu1 %v9351_v21  ;;  %v8123_v50 = vcombine.high %v192_v46, %v208_v47  ;;  %v9391_v51 = vld [vmem:[%s14139_s1 + $0x184] ss:$16 sps:$4 sm:$0xff]   ;;  %v9395_v53 = vld [vmem:[%s14139_s1 + $0x180] ss:$16 sps:$4 sm:$0xff]   ;;  %v9402_v58 = vld [vmem:[%s14139_s1 + $0x1a8] ss:$16 sps:$4 sm:$0xff]   ;;  %v8122_v5 = vcombine.low %v192_v46, %v208_v47 }
  0x19   : > { %v9397_v55 = vld [vmem:[%s14139_s1 + $0x1a4] ss:$16 sps:$4 sm:$0xff]   ;;  %v9401_v57 = vld [vmem:[%s14139_s1 + $0x1a0] ss:$16 sps:$4 sm:$0xff]   ;;  %v9405_v60 = vld [vmem:[%s14139_s1 + $0x1cc] ss:$16 sps:$4 sm:$0xff]  }
  0x1a   : > { %6560 = vmatprep.mubr.bf16.mxu0 %v8123_v50  ;;  %7248 = vmatprep.mubr.bf16.mxu1 %v8123_v50  ;;  %v9403_v59 = vld [vmem:[%s14139_s1 + $0x1c4] ss:$16 sps:$4 sm:$0xff]   ;;  %v9407_v61 = vld [vmem:[%s14139_s1 + $0x1c0] ss:$16 sps:$4 sm:$0xff]   ;;  %v9408_v62 = vld [vmem:[%s14139_s1 + $0x1c8] ss:$16 sps:$4 sm:$0xff]  }
  0x1b   : > { %6539 = vmatpush1.bf16.msra.mxu0 %v9353_v22  ;;  %7227 = vmatpush1.bf16.msra.mxu1 %v9354_v23  ;;  %v9409_v63 = vld [vmem:[%s14139_s1 + $0x1e4] ss:$16 sps:$4 sm:$0xff]   ;;  %v9411_v0 = vld [vmem:[%s14139_s1 + $0x1ec] ss:$16 sps:$4 sm:$0xff]   ;;  %v9413_v1 = vld [vmem:[%s14139_s1 + $0x1e0] ss:$16 sps:$4 sm:$0xff]  }
  0x1c   : > { %6540 = vmatprep.subr.bf16.mxu0 %v9355_v24  ;;  %7228 = vmatprep.subr.bf16.mxu1 %v9357_v25  ;;  %v9414_v2 = vld [vmem:[%s14139_s1 + $0x1e8] ss:$16 sps:$4 sm:$0xff]   ;;  %v9417_v3 = vld [vmem:[%s14139_s1 + $0x204] ss:$16 sps:$4 sm:$0xff]   ;;  %v9420_v4 = vld [vmem:[%s14139_s1 + $0x20c] ss:$16 sps:$4 sm:$0xff]  }
  0x1d   : > { %v9415_v6 = vld [vmem:[%s14139_s1 + $0x200] ss:$16 sps:$4 sm:$0xff]   ;;  %v9418_v7 = vld [vmem:[%s14139_s1 + $0x208] ss:$16 sps:$4 sm:$0xff]   ;;  %v9423_v8 = vld [vmem:[%s14139_s1 + $0x224] ss:$16 sps:$4 sm:$0xff]  }
  0x1e   : > { %v9426_v9 = vld [vmem:[%s14139_s1 + $0x22c] ss:$16 sps:$4 sm:$0xff]   ;;  %v9421_v10 = vld [vmem:[%s14139_s1 + $0x220] ss:$16 sps:$4 sm:$0xff]   ;;  %v9424_v11 = vld [vmem:[%s14139_s1 + $0x228] ss:$16 sps:$4 sm:$0xff]  }
  0x1f   : > { %6541 = vmatpush1.bf16.msra.mxu0 %v9359_v26  ;;  %7229 = vmatpush1.bf16.msra.mxu1 %v9360_v27  ;;  %v9429_v12 = vld [vmem:[%s14139_s1 + $0x244] ss:$16 sps:$4 sm:$0xff]   ;;  %v9432_v13 = vld [vmem:[%s14139_s1 + $0x24c] ss:$16 sps:$4 sm:$0xff]   ;;  %v9427_v14 = vld [vmem:[%s14139_s1 + $0x240] ss:$16 sps:$4 sm:$0xff]  }
  0x20   : > { %6542 = vmatprep.subr.bf16.mxu0 %v9361_v28  ;;  %7230 = vmatprep.subr.bf16.mxu1 %v9363_v29  ;;  %v9430_v15 = vld [vmem:[%s14139_s1 + $0x248] ss:$16 sps:$4 sm:$0xff]   ;;  %v9435_v16 = vld [vmem:[%s14139_s1 + $0x264] ss:$16 sps:$4 sm:$0xff]   ;;  %v9438_v17 = vld [vmem:[%s14139_s1 + $0x26c] ss:$16 sps:$4 sm:$0xff]  }
  0x21   : > { %v9433_v18 = vld [vmem:[%s14139_s1 + $0x260] ss:$16 sps:$4 sm:$0xff]   ;;  %v9436_v19 = vld [vmem:[%s14139_s1 + $0x268] ss:$16 sps:$4 sm:$0xff]   ;;  %v9441_v20 = vld [vmem:[%s14139_s1 + $0x284] ss:$16 sps:$4 sm:$0xff]  }
  0x22   : > { %v9444_v21 = vld [vmem:[%s14139_s1 + $0x28c] ss:$16 sps:$4 sm:$0xff]   ;;  %v9439_v22 = vld [vmem:[%s14139_s1 + $0x280] ss:$16 sps:$4 sm:$0xff]   ;;  %v9442_v23 = vld [vmem:[%s14139_s1 + $0x288] ss:$16 sps:$4 sm:$0xff]  }
  0x23   : > { %6543 = vmatpush1.bf16.msra.mxu0 %v9365_v30  ;;  %7231 = vmatpush1.bf16.msra.mxu1 %v9366_v31  ;;  %v9447_v24 = vld [vmem:[%s14139_s1 + $0x2a4] ss:$16 sps:$4 sm:$0xff]   ;;  %v9450_v25 = vld [vmem:[%s14139_s1 + $0x2ac] ss:$16 sps:$4 sm:$0xff]   ;;  %v9445_v26 = vld [vmem:[%s14139_s1 + $0x2a0] ss:$16 sps:$4 sm:$0xff]  }
  0x24   : > { %6544 = vmatprep.subr.bf16.mxu0 %v9367_v32  ;;  %7232 = vmatprep.subr.bf16.mxu1 %v9369_v33  ;;  %v9448_v27 = vld [vmem:[%s14139_s1 + $0x2a8] ss:$16 sps:$4 sm:$0xff]   ;;  %v9453_v28 = vld [vmem:[%s14139_s1 + $0x2c4] ss:$16 sps:$4 sm:$0xff]   ;;  %v9456_v29 = vld [vmem:[%s14139_s1 + $0x2cc] ss:$16 sps:$4 sm:$0xff]  }
  0x25   : > { %v11175_v30 = vld [vmem:[%s11032_s5 + $0x8] sm:$0xff]  ;;  %v9451_v32 = vld [vmem:[%s14139_s1 + $0x2c0] ss:$16 sps:$4 sm:$0xff]   ;;  %v9477_v47 = vld [vmem:[%s14139_s1 + $0x344] ss:$16 sps:$4 sm:$0xff]  }
  0x26   : > { %v11178_v31 = vld [vmem:[%s11032_s5 + $0x88] sm:$0xff] }
  0x27   : > { %6545 = vmatpush1.bf16.msra.mxu0 %v9371_v34  ;;  %7233 = vmatpush1.bf16.msra.mxu1 %v9372_v35  ;;  %v9454_v33 = vld [vmem:[%s14139_s1 + $0x2c8] ss:$16 sps:$4 sm:$0xff]   ;;  %v8125_v34 = vcombine.high %v11175_v30, %v11178_v31  ;;  %v9459_v35 = vld [vmem:[%s14139_s1 + $0x2e4] ss:$16 sps:$4 sm:$0xff]  }
  0x28   : > { %6546 = vmatprep.subr.bf16.mxu0 %v9373_v36  ;;  %7234 = vmatprep.subr.bf16.mxu1 %v9375_v37  ;;  %v9462_v36 = vld [vmem:[%s14139_s1 + $0x2ec] ss:$16 sps:$4 sm:$0xff]   ;;  %v9457_v37 = vld [vmem:[%s14139_s1 + $0x2e0] ss:$16 sps:$4 sm:$0xff]   ;;  %v9472_v46 = vld [vmem:[%s14139_s1 + $0x328] ss:$16 sps:$4 sm:$0xff]  }
  0x29   : > { %v9478_v50 = vld [vmem:[%s14139_s1 + $0x348] ss:$16 sps:$4 sm:$0xff]  }
  0x2b   : > { %6547 = vmatpush1.bf16.msra.mxu0 %v9377_v38  ;;  %7235 = vmatpush1.bf16.msra.mxu1 %v9378_v39  ;;  %v9460_v38 = vld [vmem:[%s14139_s1 + $0x2e8] ss:$16 sps:$4 sm:$0xff]   ;;  %v9465_v39 = vld [vmem:[%s14139_s1 + $0x304] ss:$16 sps:$4 sm:$0xff]  }
  0x2c   : > { %6548 = vmatprep.subr.bf16.mxu0 %v9379_v40  ;;  %7236 = vmatprep.subr.bf16.mxu1 %v9381_v41  ;;  %v9468_v40 = vld [vmem:[%s14139_s1 + $0x30c] ss:$16 sps:$4 sm:$0xff]   ;;  %v9463_v41 = vld [vmem:[%s14139_s1 + $0x300] ss:$16 sps:$4 sm:$0xff]  }
  0x2f   : > { %6549 = vmatpush1.bf16.msra.mxu0 %v9383_v42  ;;  %7237 = vmatpush1.bf16.msra.mxu1 %v9384_v43  ;;  %v9466_v42 = vld [vmem:[%s14139_s1 + $0x308] ss:$16 sps:$4 sm:$0xff]   ;;  %v9471_v43 = vld [vmem:[%s14139_s1 + $0x324] ss:$16 sps:$4 sm:$0xff]  }
  0x30   : > { %6550 = vmatprep.subr.bf16.mxu0 %v9385_v44  ;;  %7238 = vmatprep.subr.bf16.mxu1 %v9387_v45  ;;  %v9474_v44 = vld [vmem:[%s14139_s1 + $0x32c] ss:$16 sps:$4 sm:$0xff]   ;;  %v9469_v45 = vld [vmem:[%s14139_s1 + $0x320] ss:$16 sps:$4 sm:$0xff]  }
  0x33   : > { %6551 = vmatpush1.bf16.msra.mxu0 %v9389_v48  ;;  %7239 = vmatpush1.bf16.msra.mxu1 %v9390_v49  ;;  %v9480_v48 = vld [vmem:[%s14139_s1 + $0x34c] ss:$16 sps:$4 sm:$0xff]   ;;  %v9475_v49 = vld [vmem:[%s14139_s1 + $0x340] ss:$16 sps:$4 sm:$0xff]  }
  0x34   : > { %6552 = vmatprep.subr.bf16.mxu0 %v9391_v51  ;;  %7240 = vmatprep.subr.bf16.mxu1 %v9393_v52  ;;  %v9483_v51 = vld [vmem:[%s14139_s1 + $0x364] ss:$16 sps:$4 sm:$0xff]   ;;  %v9486_v52 = vld [vmem:[%s14139_s1 + $0x36c] ss:$16 sps:$4 sm:$0xff]  }
  0x37   : > { %6553 = vmatpush1.bf16.msra.mxu0 %v9395_v53  ;;  %7241 = vmatpush1.bf16.msra.mxu1 %v9396_v54  ;;  %v9481_v53 = vld [vmem:[%s14139_s1 + $0x360] ss:$16 sps:$4 sm:$0xff]   ;;  %v9484_v54 = vld [vmem:[%s14139_s1 + $0x368] ss:$16 sps:$4 sm:$0xff]  }
  0x38   : > { %6554 = vmatprep.subr.bf16.mxu0 %v9397_v55  ;;  %7242 = vmatprep.subr.bf16.mxu1 %v9399_v56  ;;  %v9489_v55 = vld [vmem:[%s14139_s1 + $0x384] ss:$16 sps:$4 sm:$0xff]   ;;  %v9492_v56 = vld [vmem:[%s14139_s1 + $0x38c] ss:$16 sps:$4 sm:$0xff]  }
  0x3b   : > { %6555 = vmatpush1.bf16.msra.mxu0 %v9401_v57  ;;  %7243 = vmatpush1.bf16.msra.mxu1 %v9402_v58  ;;  %v9487_v57 = vld [vmem:[%s14139_s1 + $0x380] ss:$16 sps:$4 sm:$0xff]   ;;  %v9490_v58 = vld [vmem:[%s14139_s1 + $0x388] ss:$16 sps:$4 sm:$0xff]  }
  0x3c   : > { %6556 = vmatprep.subr.bf16.mxu0 %v9403_v59  ;;  %7244 = vmatprep.subr.bf16.mxu1 %v9405_v60  ;;  %v9495_v59 = vld [vmem:[%s14139_s1 + $0x3a4] ss:$16 sps:$4 sm:$0xff]   ;;  %v9498_v60 = vld [vmem:[%s14139_s1 + $0x3ac] ss:$16 sps:$4 sm:$0xff]  }
  0x3f   : > { %6557 = vmatpush1.bf16.msra.mxu0 %v9407_v61  ;;  %7245 = vmatpush1.bf16.msra.mxu1 %v9408_v62  ;;  %v9493_v61 = vld [vmem:[%s14139_s1 + $0x3a0] ss:$16 sps:$4 sm:$0xff]   ;;  %v9496_v62 = vld [vmem:[%s14139_s1 + $0x3a8] ss:$16 sps:$4 sm:$0xff]  }
  0x40   : > { %6558 = vmatprep.subr.bf16.mxu0 %v9409_v63  ;;  %7246 = vmatprep.subr.bf16.mxu1 %v9411_v0  ;;  %v9501_v63 = vld [vmem:[%s14139_s1 + $0x3c4] ss:$16 sps:$4 sm:$0xff]   ;;  %v9504_v0 = vld [vmem:[%s14139_s1 + $0x3cc] ss:$16 sps:$4 sm:$0xff]  }
  0x43   : > { %6559 = vmatpush1.bf16.msra.mxu0 %v9413_v1  ;;  %7247 = vmatpush1.bf16.msra.mxu1 %v9414_v2  ;;  %v9499_v1 = vld [vmem:[%s14139_s1 + $0x3c0] ss:$16 sps:$4 sm:$0xff]   ;;  %v9502_v2 = vld [vmem:[%s14139_s1 + $0x3c8] ss:$16 sps:$4 sm:$0xff]  }
  0x44   : > { %6571 = vmatprep.subr.bf16.mxu0 %v9417_v3  ;;  %7259 = vmatprep.subr.bf16.mxu1 %v9420_v4  ;;  %v9507_v3 = vld [vmem:[%s14139_s1 + $0x3e4] ss:$16 sps:$4 sm:$0xff]   ;;  %v9510_v4 = vld [vmem:[%s14139_s1 + $0x3ec] ss:$16 sps:$4 sm:$0xff]  }
  0x46   : > { %6561 = vmatmul.mubr.bf16.vlgmr.msra.gmra.mrb[0].mxu0 %v8122_v5  ;;  %7249 = vmatmul.mubr.bf16.vlgmr.msra.gmra.mrb[0].mxu1 %v8122_v5  ;;  %v9505_v5 = vld [vmem:[%s14139_s1 + $0x3e0] ss:$16 sps:$4 sm:$0xff]  }
  0x47   : > { %6572 = vmatpush1.bf16.msra.mxu0 %v9415_v6  ;;  %7260 = vmatpush1.bf16.msra.mxu1 %v9418_v7  ;;  %v9508_v6 = vld [vmem:[%s14139_s1 + $0x3e8] ss:$16 sps:$4 sm:$0xff]   ;;  %v9513_v7 = vld [vmem:[%s14139_s1 + $0x404] ss:$16 sps:$4 sm:$0xff]  }
  0x48   : > { %6573 = vmatprep.subr.bf16.mxu0 %v9423_v8  ;;  %7261 = vmatprep.subr.bf16.mxu1 %v9426_v9  ;;  %v9516_v8 = vld [vmem:[%s14139_s1 + $0x40c] ss:$16 sps:$4 sm:$0xff]   ;;  %v8124_v9 = vcombine.low %v11175_v30, %v11178_v31  ;;  %v9538_v30 = vld [vmem:[%s14139_s1 + $0x488] ss:$16 sps:$4 sm:$0xff]   ;;  %v9543_v31 = vld [vmem:[%s14139_s1 + $0x4a4] ss:$16 sps:$4 sm:$0xff]  }
  0x49   : > { %6603 = vmatprep.mubr.bf16.mxu0 %v8125_v34  ;;  %7291 = vmatprep.mubr.bf16.mxu1 %v8125_v34  ;;  %v9544_v34 = vld [vmem:[%s14139_s1 + $0x4a8] ss:$16 sps:$4 sm:$0xff]  }
  0x4b   : > { %6574 = vmatpush1.bf16.msra.mxu0 %v9421_v10  ;;  %7262 = vmatpush1.bf16.msra.mxu1 %v9424_v11  ;;  %v9511_v10 = vld [vmem:[%s14139_s1 + $0x400] ss:$16 sps:$4 sm:$0xff]   ;;  %v9514_v11 = vld [vmem:[%s14139_s1 + $0x408] ss:$16 sps:$4 sm:$0xff]  }
  0x4c   : > { %6575 = vmatprep.subr.bf16.mxu0 %v9429_v12  ;;  %7263 = vmatprep.subr.bf16.mxu1 %v9432_v13  ;;  %v9519_v12 = vld [vmem:[%s14139_s1 + $0x424] ss:$16 sps:$4 sm:$0xff]   ;;  %v9522_v13 = vld [vmem:[%s14139_s1 + $0x42c] ss:$16 sps:$4 sm:$0xff]  }
  0x4f   : > { %6576 = vmatpush1.bf16.msra.mxu0 %v9427_v14  ;;  %7264 = vmatpush1.bf16.msra.mxu1 %v9430_v15  ;;  %v11317_v14 = vld [vmem:[%s11032_s5 + $0x10] sm:$0xff] }
  0x50   : > { %6577 = vmatprep.subr.bf16.mxu0 %v9435_v16  ;;  %7265 = vmatprep.subr.bf16.mxu1 %v9438_v17  ;;  %v11320_v15 = vld [vmem:[%s11032_s5 + $0x90] sm:$0xff] }
  0x51   : > { %v8127_v16 = vcombine.high %v11317_v14, %v11320_v15  ;;  %v9517_v17 = vld [vmem:[%s14139_s1 + $0x420] ss:$16 sps:$4 sm:$0xff]  }
  0x53   : > { %6578 = vmatpush1.bf16.msra.mxu0 %v9433_v18  ;;  %7266 = vmatpush1.bf16.msra.mxu1 %v9436_v19  ;;  %v9520_v18 = vld [vmem:[%s14139_s1 + $0x428] ss:$16 sps:$4 sm:$0xff]   ;;  %v9525_v19 = vld [vmem:[%s14139_s1 + $0x444] ss:$16 sps:$4 sm:$0xff]  }
  0x54   : > { %6579 = vmatprep.subr.bf16.mxu0 %v9441_v20  ;;  %7267 = vmatprep.subr.bf16.mxu1 %v9444_v21  ;;  %v9528_v20 = vld [vmem:[%s14139_s1 + $0x44c] ss:$16 sps:$4 sm:$0xff]   ;;  %v9523_v21 = vld [vmem:[%s14139_s1 + $0x440] ss:$16 sps:$4 sm:$0xff]  }
  0x57   : > { %6580 = vmatpush1.bf16.msra.mxu0 %v9439_v22  ;;  %7268 = vmatpush1.bf16.msra.mxu1 %v9442_v23  ;;  %v9526_v22 = vld [vmem:[%s14139_s1 + $0x448] ss:$16 sps:$4 sm:$0xff]   ;;  %v9531_v23 = vld [vmem:[%s14139_s1 + $0x464] ss:$16 sps:$4 sm:$0xff]  }
  0x58   : > { %6581 = vmatprep.subr.bf16.mxu0 %v9447_v24  ;;  %7269 = vmatprep.subr.bf16.mxu1 %v9450_v25  ;;  %v9534_v24 = vld [vmem:[%s14139_s1 + $0x46c] ss:$16 sps:$4 sm:$0xff]   ;;  %v9529_v25 = vld [vmem:[%s14139_s1 + $0x460] ss:$16 sps:$4 sm:$0xff]  }
  0x5b   : > { %6582 = vmatpush1.bf16.msra.mxu0 %v9445_v26  ;;  %7270 = vmatpush1.bf16.msra.mxu1 %v9448_v27  ;;  %v9532_v26 = vld [vmem:[%s14139_s1 + $0x468] ss:$16 sps:$4 sm:$0xff]   ;;  %v9537_v27 = vld [vmem:[%s14139_s1 + $0x484] ss:$16 sps:$4 sm:$0xff]  }
  0x5c   : > { %6583 = vmatprep.subr.bf16.mxu0 %v9453_v28  ;;  %7271 = vmatprep.subr.bf16.mxu1 %v9456_v29  ;;  %v9540_v28 = vld [vmem:[%s14139_s1 + $0x48c] ss:$16 sps:$4 sm:$0xff]   ;;  %v9535_v29 = vld [vmem:[%s14139_s1 + $0x480] ss:$16 sps:$4 sm:$0xff]  }
  0x5f   : > { %6584 = vmatpush1.bf16.msra.mxu0 %v9451_v32  ;;  %7272 = vmatpush1.bf16.msra.mxu1 %v9454_v33  ;;  %v9546_v32 = vld [vmem:[%s14139_s1 + $0x4ac] ss:$16 sps:$4 sm:$0xff]   ;;  %v9541_v33 = vld [vmem:[%s14139_s1 + $0x4a0] ss:$16 sps:$4 sm:$0xff]  }
  0x60   : > { %6585 = vmatprep.subr.bf16.mxu0 %v9459_v35  ;;  %7273 = vmatprep.subr.bf16.mxu1 %v9462_v36  ;;  %v9549_v35 = vld [vmem:[%s14139_s1 + $0x4c4] ss:$16 sps:$4 sm:$0xff]   ;;  %v9552_v36 = vld [vmem:[%s14139_s1 + $0x4cc] ss:$16 sps:$4 sm:$0xff]  }
  0x63   : > { %6586 = vmatpush1.bf16.msra.mxu0 %v9457_v37  ;;  %7274 = vmatpush1.bf16.msra.mxu1 %v9460_v38  ;;  %v9547_v37 = vld [vmem:[%s14139_s1 + $0x4c0] ss:$16 sps:$4 sm:$0xff]   ;;  %v9550_v38 = vld [vmem:[%s14139_s1 + $0x4c8] ss:$16 sps:$4 sm:$0xff]  }
  0x64   : > { %6587 = vmatprep.subr.bf16.mxu0 %v9465_v39  ;;  %7275 = vmatprep.subr.bf16.mxu1 %v9468_v40  ;;  %v9555_v39 = vld [vmem:[%s14139_s1 + $0x4e4] ss:$16 sps:$4 sm:$0xff]   ;;  %v9558_v40 = vld [vmem:[%s14139_s1 + $0x4ec] ss:$16 sps:$4 sm:$0xff]  }
  0x67   : > { %6588 = vmatpush1.bf16.msra.mxu0 %v9463_v41  ;;  %7276 = vmatpush1.bf16.msra.mxu1 %v9466_v42  ;;  %v9553_v41 = vld [vmem:[%s14139_s1 + $0x4e0] ss:$16 sps:$4 sm:$0xff]   ;;  %v9556_v42 = vld [vmem:[%s14139_s1 + $0x4e8] ss:$16 sps:$4 sm:$0xff]  }
  0x68   : > { %6589 = vmatprep.subr.bf16.mxu0 %v9471_v43  ;;  %7277 = vmatprep.subr.bf16.mxu1 %v9474_v44  ;;  %v9561_v43 = vld [vmem:[%s14139_s1 + $0x504] ss:$16 sps:$4 sm:$0xff]   ;;  %v9564_v44 = vld [vmem:[%s14139_s1 + $0x50c] ss:$16 sps:$4 sm:$0xff]  }
  0x6b   : > { %6590 = vmatpush1.bf16.msra.mxu0 %v9469_v45  ;;  %7278 = vmatpush1.bf16.msra.mxu1 %v9472_v46  ;;  %v9559_v45 = vld [vmem:[%s14139_s1 + $0x500] ss:$16 sps:$4 sm:$0xff]   ;;  %v9562_v46 = vld [vmem:[%s14139_s1 + $0x508] ss:$16 sps:$4 sm:$0xff]  }
  0x6c   : > { %6591 = vmatprep.subr.bf16.mxu0 %v9477_v47  ;;  %7279 = vmatprep.subr.bf16.mxu1 %v9480_v48  ;;  %v9567_v47 = vld [vmem:[%s14139_s1 + $0x524] ss:$16 sps:$4 sm:$0xff]   ;;  %v9570_v48 = vld [vmem:[%s14139_s1 + $0x52c] ss:$16 sps:$4 sm:$0xff]  }
  0x6f   : > { %6592 = vmatpush1.bf16.msra.mxu0 %v9475_v49  ;;  %7280 = vmatpush1.bf16.msra.mxu1 %v9478_v50  ;;  %v9565_v49 = vld [vmem:[%s14139_s1 + $0x520] ss:$16 sps:$4 sm:$0xff]   ;;  %v9568_v50 = vld [vmem:[%s14139_s1 + $0x528] ss:$16 sps:$4 sm:$0xff]  }
  0x70   : > { %6593 = vmatprep.subr.bf16.mxu0 %v9483_v51  ;;  %7281 = vmatprep.subr.bf16.mxu1 %v9486_v52  ;;  %v9573_v51 = vld [vmem:[%s14139_s1 + $0x544] ss:$16 sps:$4 sm:$0xff]   ;;  %v9576_v52 = vld [vmem:[%s14139_s1 + $0x54c] ss:$16 sps:$4 sm:$0xff]  }
  0x73   : > { %6594 = vmatpush1.bf16.msra.mxu0 %v9481_v53  ;;  %7282 = vmatpush1.bf16.msra.mxu1 %v9484_v54  ;;  %v9571_v53 = vld [vmem:[%s14139_s1 + $0x540] ss:$16 sps:$4 sm:$0xff]   ;;  %v9574_v54 = vld [vmem:[%s14139_s1 + $0x548] ss:$16 sps:$4 sm:$0xff]  }
  0x74   : > { %6595 = vmatprep.subr.bf16.mxu0 %v9489_v55  ;;  %7283 = vmatprep.subr.bf16.mxu1 %v9492_v56  ;;  %v9579_v55 = vld [vmem:[%s14139_s1 + $0x564] ss:$16 sps:$4 sm:$0xff]   ;;  %v9582_v56 = vld [vmem:[%s14139_s1 + $0x56c] ss:$16 sps:$4 sm:$0xff]  }
  0x77   : > { %6596 = vmatpush1.bf16.msra.mxu0 %v9487_v57  ;;  %7284 = vmatpush1.bf16.msra.mxu1 %v9490_v58  ;;  %v9577_v57 = vld [vmem:[%s14139_s1 + $0x560] ss:$16 sps:$4 sm:$0xff]   ;;  %v9580_v58 = vld [vmem:[%s14139_s1 + $0x568] ss:$16 sps:$4 sm:$0xff]  }
  0x78   : > { %6597 = vmatprep.subr.bf16.mxu0 %v9495_v59  ;;  %7285 = vmatprep.subr.bf16.mxu1 %v9498_v60  ;;  %v9585_v59 = vld [vmem:[%s14139_s1 + $0x584] ss:$16 sps:$4 sm:$0xff]   ;;  %v9588_v60 = vld [vmem:[%s14139_s1 + $0x58c] ss:$16 sps:$4 sm:$0xff]  }
  0x7b   : > { %6598 = vmatpush1.bf16.msra.mxu0 %v9493_v61  ;;  %7286 = vmatpush1.bf16.msra.mxu1 %v9496_v62  ;;  %v9583_v61 = vld [vmem:[%s14139_s1 + $0x580] ss:$16 sps:$4 sm:$0xff]   ;;  %v9586_v62 = vld [vmem:[%s14139_s1 + $0x588] ss:$16 sps:$4 sm:$0xff]  }
  0x7c   : > { %6599 = vmatprep.subr.bf16.mxu0 %v9501_v63  ;;  %7287 = vmatprep.subr.bf16.mxu1 %v9504_v0  ;;  %v9591_v63 = vld [vmem:[%s14139_s1 + $0x5a4] ss:$16 sps:$4 sm:$0xff]   ;;  %v9594_v0 = vld [vmem:[%s14139_s1 + $0x5ac] ss:$16 sps:$4 sm:$0xff]  }
  0x7f   : > { %6600 = vmatpush1.bf16.msra.mxu0 %v9499_v1  ;;  %7288 = vmatpush1.bf16.msra.mxu1 %v9502_v2  ;;  %v9589_v1 = vld [vmem:[%s14139_s1 + $0x5a0] ss:$16 sps:$4 sm:$0xff]   ;;  %v9592_v2 = vld [vmem:[%s14139_s1 + $0x5a8] ss:$16 sps:$4 sm:$0xff]  }
  0x80   : > { %6601 = vmatprep.subr.bf16.mxu0 %v9507_v3  ;;  %7289 = vmatprep.subr.bf16.mxu1 %v9510_v4  ;;  %v9597_v3 = vld [vmem:[%s14139_s1 + $0x5c4] ss:$16 sps:$4 sm:$0xff]   ;;  %v9600_v4 = vld [vmem:[%s14139_s1 + $0x5cc] ss:$16 sps:$4 sm:$0xff]  }
  0x83   : > { %6602 = vmatpush1.bf16.msra.mxu0 %v9505_v5  ;;  %7290 = vmatpush1.bf16.msra.mxu1 %v9508_v6  ;;  %v9595_v5 = vld [vmem:[%s14139_s1 + $0x5c0] ss:$16 sps:$4 sm:$0xff]   ;;  %v9598_v6 = vld [vmem:[%s14139_s1 + $0x5c8] ss:$16 sps:$4 sm:$0xff]  }
  0x84   : > { %6614 = vmatprep.subr.bf16.mxu0 %v9513_v7  ;;  %7302 = vmatprep.subr.bf16.mxu1 %v9516_v8  ;;  %v9603_v7 = vld [vmem:[%s14139_s1 + $0x5e4] ss:$16 sps:$4 sm:$0xff]   ;;  %v9606_v8 = vld [vmem:[%s14139_s1 + $0x5ec] ss:$16 sps:$4 sm:$0xff]  }
  0x86   : > { %6604 = vmatmul.mubr.bf16.vlgmr.msra.gmra.mrb[0].mxu0 %v8124_v9  ;;  %7292 = vmatmul.mubr.bf16.vlgmr.msra.gmra.mrb[0].mxu1 %v8124_v9  ;;  %v9601_v9 = vld [vmem:[%s14139_s1 + $0x5e0] ss:$16 sps:$4 sm:$0xff]  }
  0x87   : > { %6615 = vmatpush1.bf16.msra.mxu0 %v9511_v10  ;;  %7303 = vmatpush1.bf16.msra.mxu1 %v9514_v11  ;;  %v9604_v10 = vld [vmem:[%s14139_s1 + $0x5e8] ss:$16 sps:$4 sm:$0xff]   ;;  %v9609_v11 = vld [vmem:[%s14139_s1 + $0x604] ss:$16 sps:$4 sm:$0xff]  }
  0x88   : > { %6616 = vmatprep.subr.bf16.mxu0 %v9519_v12  ;;  %7304 = vmatprep.subr.bf16.mxu1 %v9522_v13  ;;  %v9612_v12 = vld [vmem:[%s14139_s1 + $0x60c] ss:$16 sps:$4 sm:$0xff]   ;;  %v9607_v13 = vld [vmem:[%s14139_s1 + $0x600] ss:$16 sps:$4 sm:$0xff]  }
  0x89   : > { %6646 = vmatprep.mubr.bf16.mxu0 %v8127_v16  ;;  %7334 = vmatprep.mubr.bf16.mxu1 %v8127_v16  ;;  %v9610_v16 = vld [vmem:[%s14139_s1 + $0x608] ss:$16 sps:$4 sm:$0xff]  }
  0x8b   : > { %6617 = vmatpush1.bf16.msra.mxu0 %v9517_v17  ;;  %7305 = vmatpush1.bf16.msra.mxu1 %v9520_v18  ;;  %v8126_v17 = vcombine.low %v11317_v14, %v11320_v15  ;;  %v11513_v18 = vld [vmem:[%s11032_s5 + $0x18] sm:$0xff]  ;;  %v9613_v14 = vld [vmem:[%s14139_s1 + $0x620] ss:$16 sps:$4 sm:$0xff]  }
  0x8c   : > { %6618 = vmatprep.subr.bf16.mxu0 %v9525_v19  ;;  %7306 = vmatprep.subr.bf16.mxu1 %v9528_v20  ;;  %v11516_v19 = vld [vmem:[%s11032_s5 + $0x98] sm:$0xff]  ;;  %v9615_v20 = vld [vmem:[%s14139_s1 + $0x624] ss:$16 sps:$4 sm:$0xff]  }
  0x8d   : > { %v9616_v15 = vld [vmem:[%s14139_s1 + $0x628] ss:$16 sps:$4 sm:$0xff]  }
  0x8f   : > { %6619 = vmatpush1.bf16.msra.mxu0 %v9523_v21  ;;  %7307 = vmatpush1.bf16.msra.mxu1 %v9526_v22  ;;  %v9618_v21 = vld [vmem:[%s14139_s1 + $0x62c] ss:$16 sps:$4 sm:$0xff]   ;;  %v8129_v22 = vcombine.high %v11513_v18, %v11516_v19 }
  0x90   : > { %6620 = vmatprep.subr.bf16.mxu0 %v9531_v23  ;;  %7308 = vmatprep.subr.bf16.mxu1 %v9534_v24  ;;  %v9621_v23 = vld [vmem:[%s14139_s1 + $0x644] ss:$16 sps:$4 sm:$0xff]   ;;  %v9624_v24 = vld [vmem:[%s14139_s1 + $0x64c] ss:$16 sps:$4 sm:$0xff]  }
  0x93   : > { %6621 = vmatpush1.bf16.msra.mxu0 %v9529_v25  ;;  %7309 = vmatpush1.bf16.msra.mxu1 %v9532_v26  ;;  %v9619_v25 = vld [vmem:[%s14139_s1 + $0x640] ss:$16 sps:$4 sm:$0xff]   ;;  %v9622_v26 = vld [vmem:[%s14139_s1 + $0x648] ss:$16 sps:$4 sm:$0xff]  }
  0x94   : > { %6622 = vmatprep.subr.bf16.mxu0 %v9537_v27  ;;  %7310 = vmatprep.subr.bf16.mxu1 %v9540_v28  ;;  %v9627_v27 = vld [vmem:[%s14139_s1 + $0x664] ss:$16 sps:$4 sm:$0xff]   ;;  %v9630_v28 = vld [vmem:[%s14139_s1 + $0x66c] ss:$16 sps:$4 sm:$0xff]  }
  0x97   : > { %6623 = vmatpush1.bf16.msra.mxu0 %v9535_v29  ;;  %7311 = vmatpush1.bf16.msra.mxu1 %v9538_v30  ;;  %v9625_v29 = vld [vmem:[%s14139_s1 + $0x660] ss:$16 sps:$4 sm:$0xff]   ;;  %v9628_v30 = vld [vmem:[%s14139_s1 + $0x668] ss:$16 sps:$4 sm:$0xff]  }
  0x98   : > { %6624 = vmatprep.subr.bf16.mxu0 %v9543_v31  ;;  %7312 = vmatprep.subr.bf16.mxu1 %v9546_v32  ;;  %v9633_v31 = vld [vmem:[%s14139_s1 + $0x684] ss:$16 sps:$4 sm:$0xff]   ;;  %v9636_v32 = vld [vmem:[%s14139_s1 + $0x68c] ss:$16 sps:$4 sm:$0xff]  }
  0x9b   : > { %6625 = vmatpush1.bf16.msra.mxu0 %v9541_v33  ;;  %7313 = vmatpush1.bf16.msra.mxu1 %v9544_v34  ;;  %v9631_v33 = vld [vmem:[%s14139_s1 + $0x680] ss:$16 sps:$4 sm:$0xff]   ;;  %v9634_v34 = vld [vmem:[%s14139_s1 + $0x688] ss:$16 sps:$4 sm:$0xff]  }
  0x9c   : > { %6626 = vmatprep.subr.bf16.mxu0 %v9549_v35  ;;  %7314 = vmatprep.subr.bf16.mxu1 %v9552_v36  ;;  %v9639_v35 = vld [vmem:[%s14139_s1 + $0x6a4] ss:$16 sps:$4 sm:$0xff]   ;;  %v9642_v36 = vld [vmem:[%s14139_s1 + $0x6ac] ss:$16 sps:$4 sm:$0xff]  }
  0x9f   : > { %6627 = vmatpush1.bf16.msra.mxu0 %v9547_v37  ;;  %7315 = vmatpush1.bf16.msra.mxu1 %v9550_v38  ;;  %v9637_v37 = vld [vmem:[%s14139_s1 + $0x6a0] ss:$16 sps:$4 sm:$0xff]   ;;  %v9640_v38 = vld [vmem:[%s14139_s1 + $0x6a8] ss:$16 sps:$4 sm:$0xff]  }
  0xa0   : > { %6628 = vmatprep.subr.bf16.mxu0 %v9555_v39  ;;  %7316 = vmatprep.subr.bf16.mxu1 %v9558_v40  ;;  %v9645_v39 = vld [vmem:[%s14139_s1 + $0x6c4] ss:$16 sps:$4 sm:$0xff]   ;;  %v9648_v40 = vld [vmem:[%s14139_s1 + $0x6cc] ss:$16 sps:$4 sm:$0xff]  }
  0xa3   : > { %6629 = vmatpush1.bf16.msra.mxu0 %v9553_v41  ;;  %7317 = vmatpush1.bf16.msra.mxu1 %v9556_v42  ;;  %v9643_v41 = vld [vmem:[%s14139_s1 + $0x6c0] ss:$16 sps:$4 sm:$0xff]   ;;  %v9646_v42 = vld [vmem:[%s14139_s1 + $0x6c8] ss:$16 sps:$4 sm:$0xff]  }
  0xa4   : > { %6630 = vmatprep.subr.bf16.mxu0 %v9561_v43  ;;  %7318 = vmatprep.subr.bf16.mxu1 %v9564_v44  ;;  %v9651_v43 = vld [vmem:[%s14139_s1 + $0x6e4] ss:$16 sps:$4 sm:$0xff]   ;;  %v9654_v44 = vld [vmem:[%s14139_s1 + $0x6ec] ss:$16 sps:$4 sm:$0xff]  }
  0xa7   : > { %6631 = vmatpush1.bf16.msra.mxu0 %v9559_v45  ;;  %7319 = vmatpush1.bf16.msra.mxu1 %v9562_v46  ;;  %v9649_v45 = vld [vmem:[%s14139_s1 + $0x6e0] ss:$16 sps:$4 sm:$0xff]   ;;  %v9652_v46 = vld [vmem:[%s14139_s1 + $0x6e8] ss:$16 sps:$4 sm:$0xff]  }
  0xa8   : > { %6632 = vmatprep.subr.bf16.mxu0 %v9567_v47  ;;  %7320 = vmatprep.subr.bf16.mxu1 %v9570_v48  ;;  %v9657_v47 = vld [vmem:[%s14139_s1 + $0x704] ss:$16 sps:$4 sm:$0xff]   ;;  %v9660_v48 = vld [vmem:[%s14139_s1 + $0x70c] ss:$16 sps:$4 sm:$0xff]  }
  0xab   : > { %6633 = vmatpush1.bf16.msra.mxu0 %v9565_v49  ;;  %7321 = vmatpush1.bf16.msra.mxu1 %v9568_v50  ;;  %v9655_v49 = vld [vmem:[%s14139_s1 + $0x700] ss:$16 sps:$4 sm:$0xff]   ;;  %v9658_v50 = vld [vmem:[%s14139_s1 + $0x708] ss:$16 sps:$4 sm:$0xff]  }
  0xac   : > { %6634 = vmatprep.subr.bf16.mxu0 %v9573_v51  ;;  %7322 = vmatprep.subr.bf16.mxu1 %v9576_v52  ;;  %v9663_v51 = vld [vmem:[%s14139_s1 + $0x724] ss:$16 sps:$4 sm:$0xff]   ;;  %v9666_v52 = vld [vmem:[%s14139_s1 + $0x72c] ss:$16 sps:$4 sm:$0xff]  }
  0xaf   : > { %6635 = vmatpush1.bf16.msra.mxu0 %v9571_v53  ;;  %7323 = vmatpush1.bf16.msra.mxu1 %v9574_v54  ;;  %v9661_v53 = vld [vmem:[%s14139_s1 + $0x720] ss:$16 sps:$4 sm:$0xff]   ;;  %v9664_v54 = vld [vmem:[%s14139_s1 + $0x728] ss:$16 sps:$4 sm:$0xff]  }
  0xb0   : > { %6636 = vmatprep.subr.bf16.mxu0 %v9579_v55  ;;  %7324 = vmatprep.subr.bf16.mxu1 %v9582_v56  ;;  %v9669_v55 = vld [vmem:[%s14139_s1 + $0x744] ss:$16 sps:$4 sm:$0xff]   ;;  %v9672_v56 = vld [vmem:[%s14139_s1 + $0x74c] ss:$16 sps:$4 sm:$0xff]  }
  0xb3   : > { %6637 = vmatpush1.bf16.msra.mxu0 %v9577_v57  ;;  %7325 = vmatpush1.bf16.msra.mxu1 %v9580_v58  ;;  %v9667_v57 = vld [vmem:[%s14139_s1 + $0x740] ss:$16 sps:$4 sm:$0xff]   ;;  %v9670_v58 = vld [vmem:[%s14139_s1 + $0x748] ss:$16 sps:$4 sm:$0xff]  }
  0xb4   : > { %6638 = vmatprep.subr.bf16.mxu0 %v9585_v59  ;;  %7326 = vmatprep.subr.bf16.mxu1 %v9588_v60  ;;  %v9675_v59 = vld [vmem:[%s14139_s1 + $0x764] ss:$16 sps:$4 sm:$0xff]   ;;  %v9678_v60 = vld [vmem:[%s14139_s1 + $0x76c] ss:$16 sps:$4 sm:$0xff]  }
  0xb7   : > { %6639 = vmatpush1.bf16.msra.mxu0 %v9583_v61  ;;  %7327 = vmatpush1.bf16.msra.mxu1 %v9586_v62  ;;  %v9673_v61 = vld [vmem:[%s14139_s1 + $0x760] ss:$16 sps:$4 sm:$0xff]   ;;  %v9676_v62 = vld [vmem:[%s14139_s1 + $0x768] ss:$16 sps:$4 sm:$0xff]  }
  0xb8   : > { %6640 = vmatprep.subr.bf16.mxu0 %v9591_v63  ;;  %7328 = vmatprep.subr.bf16.mxu1 %v9594_v0  ;;  %v9681_v63 = vld [vmem:[%s14139_s1 + $0x784] ss:$16 sps:$4 sm:$0xff]   ;;  %v9684_v0 = vld [vmem:[%s14139_s1 + $0x78c] ss:$16 sps:$4 sm:$0xff]  }
  0xbb   : > { %6641 = vmatpush1.bf16.msra.mxu0 %v9589_v1  ;;  %7329 = vmatpush1.bf16.msra.mxu1 %v9592_v2  ;;  %v9679_v1 = vld [vmem:[%s14139_s1 + $0x780] ss:$16 sps:$4 sm:$0xff]   ;;  %v9682_v2 = vld [vmem:[%s14139_s1 + $0x788] ss:$16 sps:$4 sm:$0xff]  }
  0xbc   : > { %6642 = vmatprep.subr.bf16.mxu0 %v9597_v3  ;;  %7330 = vmatprep.subr.bf16.mxu1 %v9600_v4  ;;  %v9687_v3 = vld [vmem:[%s14139_s1 + $0x7a4] ss:$16 sps:$4 sm:$0xff]   ;;  %v9690_v4 = vld [vmem:[%s14139_s1 + $0x7ac] ss:$16 sps:$4 sm:$0xff]  }
  0xbf   : > { %6643 = vmatpush1.bf16.msra.mxu0 %v9595_v5  ;;  %7331 = vmatpush1.bf16.msra.mxu1 %v9598_v6  ;;  %v9685_v5 = vld [vmem:[%s14139_s1 + $0x7a0] ss:$16 sps:$4 sm:$0xff]   ;;  %v9688_v6 = vld [vmem:[%s14139_s1 + $0x7a8] ss:$16 sps:$4 sm:$0xff]  }
  0xc0   : > { %6644 = vmatprep.subr.bf16.mxu0 %v9603_v7  ;;  %7332 = vmatprep.subr.bf16.mxu1 %v9606_v8  ;;  %v9693_v7 = vld [vmem:[%s14139_s1 + $0x7c4] ss:$16 sps:$4 sm:$0xff]   ;;  %v9696_v8 = vld [vmem:[%s14139_s1 + $0x7cc] ss:$16 sps:$4 sm:$0xff]  }
  0xc3   : > { %6645 = vmatpush1.bf16.msra.mxu0 %v9601_v9  ;;  %7333 = vmatpush1.bf16.msra.mxu1 %v9604_v10  ;;  %v9691_v9 = vld [vmem:[%s14139_s1 + $0x7c0] ss:$16 sps:$4 sm:$0xff]   ;;  %v9694_v10 = vld [vmem:[%s14139_s1 + $0x7c8] ss:$16 sps:$4 sm:$0xff]  }
  0xc4   : > { %6657 = vmatprep.subr.bf16.mxu0 %v9609_v11  ;;  %7345 = vmatprep.subr.bf16.mxu1 %v9612_v12  ;;  %v9699_v11 = vld [vmem:[%s14139_s1 + $0x7e4] ss:$16 sps:$4 sm:$0xff]   ;;  %v9702_v12 = vld [vmem:[%s14139_s1 + $0x7ec] ss:$16 sps:$4 sm:$0xff]  }
  0xc6   : > { %6647 = vmatmul.mubr.bf16.vlgmr.msra.gmra.mrb[0].mxu0 %v8126_v17  ;;  %7335 = vmatmul.mubr.bf16.vlgmr.msra.gmra.mrb[0].mxu1 %v8126_v17  ;;  %v9705_v17 = vld [vmem:[%s14139_s1 + $0x804] ss:$16 sps:$4 sm:$0xff]  }
  0xc7   : > { %6658 = vmatpush1.bf16.msra.mxu0 %v9607_v13  ;;  %7346 = vmatpush1.bf16.msra.mxu1 %v9610_v16  ;;  %v9697_v13 = vld [vmem:[%s14139_s1 + $0x7e0] ss:$16 sps:$4 sm:$0xff]   ;;  %v9700_v16 = vld [vmem:[%s14139_s1 + $0x7e8] ss:$16 sps:$4 sm:$0xff]  }
  0xc8   : > { %6659 = vmatprep.subr.bf16.mxu0 %v9615_v20  ;;  %7347 = vmatprep.subr.bf16.mxu1 %v9618_v21  ;;  %v9708_v20 = vld [vmem:[%s14139_s1 + $0x80c] ss:$16 sps:$4 sm:$0xff]   ;;  %v11707_v21 = vld [vmem:[%s11032_s5 + $0x20] sm:$0xff] }
  0xc9   : > { %6689 = vmatprep.mubr.bf16.mxu0 %v8129_v22  ;;  %7377 = vmatprep.mubr.bf16.mxu1 %v8129_v22  ;;  %v8128_v22 = vcombine.low %v11513_v18, %v11516_v19  ;;  %v9714_v18 = vld [vmem:[%s14139_s1 + $0x82c] ss:$16 sps:$4 sm:$0xff]  }
  0xcb   : > { %6660 = vmatpush1.bf16.msra.mxu0 %v9613_v14  ;;  %7348 = vmatpush1.bf16.msra.mxu1 %v9616_v15  ;;  %v11712_v14 = vld [vmem:[%s11032_s5 + $0xa0] sm:$0xff] }
  0xcc   : > { %6661 = vmatprep.subr.bf16.mxu0 %v9621_v23  ;;  %7349 = vmatprep.subr.bf16.mxu1 %v9624_v24  ;;  %v9703_v15 = vld [vmem:[%s14139_s1 + $0x800] ss:$16 sps:$4 sm:$0xff]   ;;  %v9706_v23 = vld [vmem:[%s14139_s1 + $0x808] ss:$16 sps:$4 sm:$0xff]   ;;  %v9711_v24 = vld [vmem:[%s14139_s1 + $0x824] ss:$16 sps:$4 sm:$0xff]   ;;  %v8131_v19 = vcombine.high %v11707_v21, %v11712_v14 }
  0xcf   : > { %6662 = vmatpush1.bf16.msra.mxu0 %v9619_v25  ;;  %7350 = vmatpush1.bf16.msra.mxu1 %v9622_v26  ;;  %v9709_v25 = vld [vmem:[%s14139_s1 + $0x820] ss:$16 sps:$4 sm:$0xff]   ;;  %v9712_v26 = vld [vmem:[%s14139_s1 + $0x828] ss:$16 sps:$4 sm:$0xff]  }
  0xd0   : > { %6663 = vmatprep.subr.bf16.mxu0 %v9627_v27  ;;  %7351 = vmatprep.subr.bf16.mxu1 %v9630_v28  ;;  %v9717_v27 = vld [vmem:[%s14139_s1 + $0x844] ss:$16 sps:$4 sm:$0xff]   ;;  %v9720_v28 = vld [vmem:[%s14139_s1 + $0x84c] ss:$16 sps:$4 sm:$0xff]  }
  0xd3   : > { %6664 = vmatpush1.bf16.msra.mxu0 %v9625_v29  ;;  %7352 = vmatpush1.bf16.msra.mxu1 %v9628_v30  ;;  %v9715_v29 = vld [vmem:[%s14139_s1 + $0x840] ss:$16 sps:$4 sm:$0xff]   ;;  %v9718_v30 = vld [vmem:[%s14139_s1 + $0x848] ss:$16 sps:$4 sm:$0xff]  }
  0xd4   : > { %6665 = vmatprep.subr.bf16.mxu0 %v9633_v31  ;;  %7353 = vmatprep.subr.bf16.mxu1 %v9636_v32  ;;  %v9723_v31 = vld [vmem:[%s14139_s1 + $0x864] ss:$16 sps:$4 sm:$0xff]   ;;  %v9726_v32 = vld [vmem:[%s14139_s1 + $0x86c] ss:$16 sps:$4 sm:$0xff]  }
  0xd7   : > { %6666 = vmatpush1.bf16.msra.mxu0 %v9631_v33  ;;  %7354 = vmatpush1.bf16.msra.mxu1 %v9634_v34  ;;  %v9721_v33 = vld [vmem:[%s14139_s1 + $0x860] ss:$16 sps:$4 sm:$0xff]   ;;  %v9724_v34 = vld [vmem:[%s14139_s1 + $0x868] ss:$16 sps:$4 sm:$0xff]  }
  0xd8   : > { %6667 = vmatprep.subr.bf16.mxu0 %v9639_v35  ;;  %7355 = vmatprep.subr.bf16.mxu1 %v9642_v36  ;;  %v9729_v35 = vld [vmem:[%s14139_s1 + $0x884] ss:$16 sps:$4 sm:$0xff]   ;;  %v9732_v36 = vld [vmem:[%s14139_s1 + $0x88c] ss:$16 sps:$4 sm:$0xff]  }
  0xdb   : > { %6668 = vmatpush1.bf16.msra.mxu0 %v9637_v37  ;;  %7356 = vmatpush1.bf16.msra.mxu1 %v9640_v38  ;;  %v9727_v37 = vld [vmem:[%s14139_s1 + $0x880] ss:$16 sps:$4 sm:$0xff]   ;;  %v9730_v38 = vld [vmem:[%s14139_s1 + $0x888] ss:$16 sps:$4 sm:$0xff]  }
  0xdc   : > { %6669 = vmatprep.subr.bf16.mxu0 %v9645_v39  ;;  %7357 = vmatprep.subr.bf16.mxu1 %v9648_v40  ;;  %v9735_v39 = vld [vmem:[%s14139_s1 + $0x8a4] ss:$16 sps:$4 sm:$0xff]   ;;  %v9738_v40 = vld [vmem:[%s14139_s1 + $0x8ac] ss:$16 sps:$4 sm:$0xff]  }
  0xdf   : > { %6670 = vmatpush1.bf16.msra.mxu0 %v9643_v41  ;;  %7358 = vmatpush1.bf16.msra.mxu1 %v9646_v42  ;;  %v9733_v41 = vld [vmem:[%s14139_s1 + $0x8a0] ss:$16 sps:$4 sm:$0xff]   ;;  %v9736_v42 = vld [vmem:[%s14139_s1 + $0x8a8] ss:$16 sps:$4 sm:$0xff]  }
  0xe0   : > { %6671 = vmatprep.subr.bf16.mxu0 %v9651_v43  ;;  %7359 = vmatprep.subr.bf16.mxu1 %v9654_v44  ;;  %v9741_v43 = vld [vmem:[%s14139_s1 + $0x8c4] ss:$16 sps:$4 sm:$0xff]   ;;  %v9744_v44 = vld [vmem:[%s14139_s1 + $0x8cc] ss:$16 sps:$4 sm:$0xff]  }
  0xe3   : > { %6672 = vmatpush1.bf16.msra.mxu0 %v9649_v45  ;;  %7360 = vmatpush1.bf16.msra.mxu1 %v9652_v46  ;;  %v9739_v45 = vld [vmem:[%s14139_s1 + $0x8c0] ss:$16 sps:$4 sm:$0xff]   ;;  %v9742_v46 = vld [vmem:[%s14139_s1 + $0x8c8] ss:$16 sps:$4 sm:$0xff]  }
  0xe4   : > { %6673 = vmatprep.subr.bf16.mxu0 %v9657_v47  ;;  %7361 = vmatprep.subr.bf16.mxu1 %v9660_v48  ;;  %v9747_v47 = vld [vmem:[%s14139_s1 + $0x8e4] ss:$16 sps:$4 sm:$0xff]   ;;  %v9750_v48 = vld [vmem:[%s14139_s1 + $0x8ec] ss:$16 sps:$4 sm:$0xff]  }
  0xe7   : > { %6674 = vmatpush1.bf16.msra.mxu0 %v9655_v49  ;;  %7362 = vmatpush1.bf16.msra.mxu1 %v9658_v50  ;;  %v9745_v49 = vld [vmem:[%s14139_s1 + $0x8e0] ss:$16 sps:$4 sm:$0xff]   ;;  %v9748_v50 = vld [vmem:[%s14139_s1 + $0x8e8] ss:$16 sps:$4 sm:$0xff]  }
  0xe8   : > { %6675 = vmatprep.subr.bf16.mxu0 %v9663_v51  ;;  %7363 = vmatprep.subr.bf16.mxu1 %v9666_v52  ;;  %v9753_v51 = vld [vmem:[%s14139_s1 + $0x904] ss:$16 sps:$4 sm:$0xff]   ;;  %v9756_v52 = vld [vmem:[%s14139_s1 + $0x90c] ss:$16 sps:$4 sm:$0xff]  }
  0xeb   : > { %6676 = vmatpush1.bf16.msra.mxu0 %v9661_v53  ;;  %7364 = vmatpush1.bf16.msra.mxu1 %v9664_v54  ;;  %v9751_v53 = vld [vmem:[%s14139_s1 + $0x900] ss:$16 sps:$4 sm:$0xff]   ;;  %v9754_v54 = vld [vmem:[%s14139_s1 + $0x908] ss:$16 sps:$4 sm:$0xff]  }
  0xec   : > { %6677 = vmatprep.subr.bf16.mxu0 %v9669_v55  ;;  %7365 = vmatprep.subr.bf16.mxu1 %v9672_v56  ;;  %v9759_v55 = vld [vmem:[%s14139_s1 + $0x924] ss:$16 sps:$4 sm:$0xff]   ;;  %v9762_v56 = vld [vmem:[%s14139_s1 + $0x92c] ss:$16 sps:$4 sm:$0xff]  }
  0xef   : > { %6678 = vmatpush1.bf16.msra.mxu0 %v9667_v57  ;;  %7366 = vmatpush1.bf16.msra.mxu1 %v9670_v58  ;;  %v9757_v57 = vld [vmem:[%s14139_s1 + $0x920] ss:$16 sps:$4 sm:$0xff]   ;;  %v9760_v58 = vld [vmem:[%s14139_s1 + $0x928] ss:$16 sps:$4 sm:$0xff]  }
  0xf0   : > { %6679 = vmatprep.subr.bf16.mxu0 %v9675_v59  ;;  %7367 = vmatprep.subr.bf16.mxu1 %v9678_v60  ;;  %v9765_v59 = vld [vmem:[%s14139_s1 + $0x944] ss:$16 sps:$4 sm:$0xff]   ;;  %v9768_v60 = vld [vmem:[%s14139_s1 + $0x94c] ss:$16 sps:$4 sm:$0xff]  }
  0xf3   : > { %6680 = vmatpush1.bf16.msra.mxu0 %v9673_v61  ;;  %7368 = vmatpush1.bf16.msra.mxu1 %v9676_v62  ;;  %v9763_v61 = vld [vmem:[%s14139_s1 + $0x940] ss:$16 sps:$4 sm:$0xff]   ;;  %v9766_v62 = vld [vmem:[%s14139_s1 + $0x948] ss:$16 sps:$4 sm:$0xff]  }
  0xf4   : > { %6681 = vmatprep.subr.bf16.mxu0 %v9681_v63  ;;  %7369 = vmatprep.subr.bf16.mxu1 %v9684_v0  ;;  %v9771_v63 = vld [vmem:[%s14139_s1 + $0x964] ss:$16 sps:$4 sm:$0xff]   ;;  %v9774_v0 = vld [vmem:[%s14139_s1 + $0x96c] ss:$16 sps:$4 sm:$0xff]  }
  0xf7   : > { %6682 = vmatpush1.bf16.msra.mxu0 %v9679_v1  ;;  %7370 = vmatpush1.bf16.msra.mxu1 %v9682_v2  ;;  %v9769_v1 = vld [vmem:[%s14139_s1 + $0x960] ss:$16 sps:$4 sm:$0xff]   ;;  %v9772_v2 = vld [vmem:[%s14139_s1 + $0x968] ss:$16 sps:$4 sm:$0xff]  }
  0xf8   : > { %6683 = vmatprep.subr.bf16.mxu0 %v9687_v3  ;;  %7371 = vmatprep.subr.bf16.mxu1 %v9690_v4  ;;  %v9777_v3 = vld [vmem:[%s14139_s1 + $0x984] ss:$16 sps:$4 sm:$0xff]   ;;  %v9780_v4 = vld [vmem:[%s14139_s1 + $0x98c] ss:$16 sps:$4 sm:$0xff]  }
  0xfb   : > { %6684 = vmatpush1.bf16.msra.mxu0 %v9685_v5  ;;  %7372 = vmatpush1.bf16.msra.mxu1 %v9688_v6  ;;  %v9775_v5 = vld [vmem:[%s14139_s1 + $0x980] ss:$16 sps:$4 sm:$0xff]   ;;  %v9778_v6 = vld [vmem:[%s14139_s1 + $0x988] ss:$16 sps:$4 sm:$0xff]  }
  0xfc   : > { %6685 = vmatprep.subr.bf16.mxu0 %v9693_v7  ;;  %7373 = vmatprep.subr.bf16.mxu1 %v9696_v8  ;;  %v9783_v7 = vld [vmem:[%s14139_s1 + $0x9a4] ss:$16 sps:$4 sm:$0xff]   ;;  %v9786_v8 = vld [vmem:[%s14139_s1 + $0x9ac] ss:$16 sps:$4 sm:$0xff]  }
  0xff   : > { %6686 = vmatpush1.bf16.msra.mxu0 %v9691_v9  ;;  %7374 = vmatpush1.bf16.msra.mxu1 %v9694_v10  ;;  %v9781_v9 = vld [vmem:[%s14139_s1 + $0x9a0] ss:$16 sps:$4 sm:$0xff]   ;;  %v9784_v10 = vld [vmem:[%s14139_s1 + $0x9a8] ss:$16 sps:$4 sm:$0xff]  }
 0x100   : > { %6687 = vmatprep.subr.bf16.mxu0 %v9699_v11  ;;  %7375 = vmatprep.subr.bf16.mxu1 %v9702_v12  ;;  %v9789_v11 = vld [vmem:[%s14139_s1 + $0x9c4] ss:$16 sps:$4 sm:$0xff]   ;;  %v9792_v12 = vld [vmem:[%s14139_s1 + $0x9cc] ss:$16 sps:$4 sm:$0xff]  }
 0x103   : > { %6688 = vmatpush1.bf16.msra.mxu0 %v9697_v13  ;;  %7376 = vmatpush1.bf16.msra.mxu1 %v9700_v16  ;;  %v9787_v13 = vld [vmem:[%s14139_s1 + $0x9c0] ss:$16 sps:$4 sm:$0xff]   ;;  %v9790_v16 = vld [vmem:[%s14139_s1 + $0x9c8] ss:$16 sps:$4 sm:$0xff]  }
 0x104   : > { %6700 = vmatprep.subr.bf16.mxu0 %v9705_v17  ;;  %7388 = vmatprep.subr.bf16.mxu1 %v9708_v20  ;;  %v9795_v17 = vld [vmem:[%s14139_s1 + $0x9e4] ss:$16 sps:$4 sm:$0xff]   ;;  %v9798_v20 = vld [vmem:[%s14139_s1 + $0x9ec] ss:$16 sps:$4 sm:$0xff]  }
 0x106   : > { %6690 = vmatmul.mubr.bf16.vlgmr.msra.gmra.mrb[0].mxu0 %v8128_v22  ;;  %7378 = vmatmul.mubr.bf16.vlgmr.msra.gmra.mrb[0].mxu1 %v8128_v22  ;;  %v9793_v22 = vld [vmem:[%s14139_s1 + $0x9e0] ss:$16 sps:$4 sm:$0xff]  }
 0x107   : > { %6701 = vmatpush1.bf16.msra.mxu0 %v9703_v15  ;;  %7389 = vmatpush1.bf16.msra.mxu1 %v9706_v23  ;;  %v9796_v15 = vld [vmem:[%s14139_s1 + $0x9e8] ss:$16 sps:$4 sm:$0xff]   ;;  %v9801_v23 = vld [vmem:[%s14139_s1 + $0xa04] ss:$16 sps:$4 sm:$0xff]  }
 0x108   : > { %6702 = vmatprep.subr.bf16.mxu0 %v9711_v24  ;;  %7390 = vmatprep.subr.bf16.mxu1 %v9714_v18  ;;  %v9804_v24 = vld [vmem:[%s14139_s1 + $0xa0c] ss:$16 sps:$4 sm:$0xff]  }
 0x109   : > { %6732 = vmatprep.mubr.bf16.mxu0 %v8131_v19  ;;  %7420 = vmatprep.mubr.bf16.mxu1 %v8131_v19  ;;  %v11909_v18 = vld [vmem:[%s11032_s5 + $0x28] sm:$0xff] }
 0x10a   : > { %v11912_v19 = vld [vmem:[%s11032_s5 + $0xa8] sm:$0xff] }
 0x10b   : > { %6703 = vmatpush1.bf16.msra.mxu0 %v9709_v25  ;;  %7391 = vmatpush1.bf16.msra.mxu1 %v9712_v26  ;;  %v8130_v25 = vcombine.low %v11707_v21, %v11712_v14  ;;  %v9799_v26 = vld [vmem:[%s14139_s1 + $0xa00] ss:$16 sps:$4 sm:$0xff]   ;;  %v9810_v21 = vld [vmem:[%s14139_s1 + $0xa2c] ss:$16 sps:$4 sm:$0xff]   ;;  %v8133_v14 = vcombine.high %v11909_v18, %v11912_v19 }
 0x10c   : > { %6704 = vmatprep.subr.bf16.mxu0 %v9717_v27  ;;  %7392 = vmatprep.subr.bf16.mxu1 %v9720_v28  ;;  %v9802_v27 = vld [vmem:[%s14139_s1 + $0xa08] ss:$16 sps:$4 sm:$0xff]   ;;  %v9807_v28 = vld [vmem:[%s14139_s1 + $0xa24] ss:$16 sps:$4 sm:$0xff]  }
 0x10f   : > { %6705 = vmatpush1.bf16.msra.mxu0 %v9715_v29  ;;  %7393 = vmatpush1.bf16.msra.mxu1 %v9718_v30  ;;  %v9805_v29 = vld [vmem:[%s14139_s1 + $0xa20] ss:$16 sps:$4 sm:$0xff]   ;;  %v9808_v30 = vld [vmem:[%s14139_s1 + $0xa28] ss:$16 sps:$4 sm:$0xff]  }
 0x110   : > { %6706 = vmatprep.subr.bf16.mxu0 %v9723_v31  ;;  %7394 = vmatprep.subr.bf16.mxu1 %v9726_v32  ;;  %v9813_v31 = vld [vmem:[%s14139_s1 + $0xa44] ss:$16 sps:$4 sm:$0xff]   ;;  %v9816_v32 = vld [vmem:[%s14139_s1 + $0xa4c] ss:$16 sps:$4 sm:$0xff]  }
 0x113   : > { %6707 = vmatpush1.bf16.msra.mxu0 %v9721_v33  ;;  %7395 = vmatpush1.bf16.msra.mxu1 %v9724_v34  ;;  %v9811_v33 = vld [vmem:[%s14139_s1 + $0xa40] ss:$16 sps:$4 sm:$0xff]   ;;  %v9814_v34 = vld [vmem:[%s14139_s1 + $0xa48] ss:$16 sps:$4 sm:$0xff]  }
 0x114   : > { %6708 = vmatprep.subr.bf16.mxu0 %v9729_v35  ;;  %7396 = vmatprep.subr.bf16.mxu1 %v9732_v36  ;;  %v9819_v35 = vld [vmem:[%s14139_s1 + $0xa64] ss:$16 sps:$4 sm:$0xff]   ;;  %v9822_v36 = vld [vmem:[%s14139_s1 + $0xa6c] ss:$16 sps:$4 sm:$0xff]  }
 0x117   : > { %6709 = vmatpush1.bf16.msra.mxu0 %v9727_v37  ;;  %7397 = vmatpush1.bf16.msra.mxu1 %v9730_v38  ;;  %v9817_v37 = vld [vmem:[%s14139_s1 + $0xa60] ss:$16 sps:$4 sm:$0xff]   ;;  %v9820_v38 = vld [vmem:[%s14139_s1 + $0xa68] ss:$16 sps:$4 sm:$0xff]  }
 0x118   : > { %6710 = vmatprep.subr.bf16.mxu0 %v9735_v39  ;;  %7398 = vmatprep.subr.bf16.mxu1 %v9738_v40  ;;  %v9825_v39 = vld [vmem:[%s14139_s1 + $0xa84] ss:$16 sps:$4 sm:$0xff]   ;;  %v9828_v40 = vld [vmem:[%s14139_s1 + $0xa8c] ss:$16 sps:$4 sm:$0xff]  }
 0x11b   : > { %6711 = vmatpush1.bf16.msra.mxu0 %v9733_v41  ;;  %7399 = vmatpush1.bf16.msra.mxu1 %v9736_v42  ;;  %v9823_v41 = vld [vmem:[%s14139_s1 + $0xa80] ss:$16 sps:$4 sm:$0xff]   ;;  %v9826_v42 = vld [vmem:[%s14139_s1 + $0xa88] ss:$16 sps:$4 sm:$0xff]  }
 0x11c   : > { %6712 = vmatprep.subr.bf16.mxu0 %v9741_v43  ;;  %7400 = vmatprep.subr.bf16.mxu1 %v9744_v44  ;;  %v9831_v43 = vld [vmem:[%s14139_s1 + $0xaa4] ss:$16 sps:$4 sm:$0xff]   ;;  %v9834_v44 = vld [vmem:[%s14139_s1 + $0xaac] ss:$16 sps:$4 sm:$0xff]  }
 0x11f   : > { %6713 = vmatpush1.bf16.msra.mxu0 %v9739_v45  ;;  %7401 = vmatpush1.bf16.msra.mxu1 %v9742_v46  ;;  %v9829_v45 = vld [vmem:[%s14139_s1 + $0xaa0] ss:$16 sps:$4 sm:$0xff]   ;;  %v9832_v46 = vld [vmem:[%s14139_s1 + $0xaa8] ss:$16 sps:$4 sm:$0xff]  }
 0x120   : > { %6714 = vmatprep.subr.bf16.mxu0 %v9747_v47  ;;  %7402 = vmatprep.subr.bf16.mxu1 %v9750_v48  ;;  %v9837_v47 = vld [vmem:[%s14139_s1 + $0xac4] ss:$16 sps:$4 sm:$0xff]   ;;  %v9840_v48 = vld [vmem:[%s14139_s1 + $0xacc] ss:$16 sps:$4 sm:$0xff]  }
 0x123   : > { %6715 = vmatpush1.bf16.msra.mxu0 %v9745_v49  ;;  %7403 = vmatpush1.bf16.msra.mxu1 %v9748_v50  ;;  %v9835_v49 = vld [vmem:[%s14139_s1 + $0xac0] ss:$16 sps:$4 sm:$0xff]   ;;  %v9838_v50 = vld [vmem:[%s14139_s1 + $0xac8] ss:$16 sps:$4 sm:$0xff]  }
 0x124   : > { %6716 = vmatprep.subr.bf16.mxu0 %v9753_v51  ;;  %7404 = vmatprep.subr.bf16.mxu1 %v9756_v52  ;;  %v9843_v51 = vld [vmem:[%s14139_s1 + $0xae4] ss:$16 sps:$4 sm:$0xff]   ;;  %v9846_v52 = vld [vmem:[%s14139_s1 + $0xaec] ss:$16 sps:$4 sm:$0xff]  }
 0x127   : > { %6717 = vmatpush1.bf16.msra.mxu0 %v9751_v53  ;;  %7405 = vmatpush1.bf16.msra.mxu1 %v9754_v54  ;;  %v9841_v53 = vld [vmem:[%s14139_s1 + $0xae0] ss:$16 sps:$4 sm:$0xff]   ;;  %v9844_v54 = vld [vmem:[%s14139_s1 + $0xae8] ss:$16 sps:$4 sm:$0xff]  }
 0x128   : > { %6718 = vmatprep.subr.bf16.mxu0 %v9759_v55  ;;  %7406 = vmatprep.subr.bf16.mxu1 %v9762_v56  ;;  %v9849_v55 = vld [vmem:[%s14139_s1 + $0xb04] ss:$16 sps:$4 sm:$0xff]   ;;  %v9852_v56 = vld [vmem:[%s14139_s1 + $0xb0c] ss:$16 sps:$4 sm:$0xff]  }
 0x12b   : > { %6719 = vmatpush1.bf16.msra.mxu0 %v9757_v57  ;;  %7407 = vmatpush1.bf16.msra.mxu1 %v9760_v58  ;;  %v9847_v57 = vld [vmem:[%s14139_s1 + $0xb00] ss:$16 sps:$4 sm:$0xff]   ;;  %v9850_v58 = vld [vmem:[%s14139_s1 + $0xb08] ss:$16 sps:$4 sm:$0xff]  }
 0x12c   : > { %6720 = vmatprep.subr.bf16.mxu0 %v9765_v59  ;;  %7408 = vmatprep.subr.bf16.mxu1 %v9768_v60  ;;  %v9855_v59 = vld [vmem:[%s14139_s1 + $0xb24] ss:$16 sps:$4 sm:$0xff]   ;;  %v9858_v60 = vld [vmem:[%s14139_s1 + $0xb2c] ss:$16 sps:$4 sm:$0xff]  }
 0x12f   : > { %6721 = vmatpush1.bf16.msra.mxu0 %v9763_v61  ;;  %7409 = vmatpush1.bf16.msra.mxu1 %v9766_v62  ;;  %v9853_v61 = vld [vmem:[%s14139_s1 + $0xb20] ss:$16 sps:$4 sm:$0xff]   ;;  %v9856_v62 = vld [vmem:[%s14139_s1 + $0xb28] ss:$16 sps:$4 sm:$0xff]  }
 0x130   : > { %6722 = vmatprep.subr.bf16.mxu0 %v9771_v63  ;;  %7410 = vmatprep.subr.bf16.mxu1 %v9774_v0  ;;  %v9861_v63 = vld [vmem:[%s14139_s1 + $0xb44] ss:$16 sps:$4 sm:$0xff]   ;;  %v9864_v0 = vld [vmem:[%s14139_s1 + $0xb4c] ss:$16 sps:$4 sm:$0xff]  }
 0x133   : > { %6723 = vmatpush1.bf16.msra.mxu0 %v9769_v1  ;;  %7411 = vmatpush1.bf16.msra.mxu1 %v9772_v2  ;;  %v9859_v1 = vld [vmem:[%s14139_s1 + $0xb40] ss:$16 sps:$4 sm:$0xff]   ;;  %v9862_v2 = vld [vmem:[%s14139_s1 + $0xb48] ss:$16 sps:$4 sm:$0xff]  }
 0x134   : > { %6724 = vmatprep.subr.bf16.mxu0 %v9777_v3  ;;  %7412 = vmatprep.subr.bf16.mxu1 %v9780_v4  ;;  %v9867_v3 = vld [vmem:[%s14139_s1 + $0xb64] ss:$16 sps:$4 sm:$0xff]   ;;  %v9870_v4 = vld [vmem:[%s14139_s1 + $0xb6c] ss:$16 sps:$4 sm:$0xff]  }
 0x137   : > { %6725 = vmatpush1.bf16.msra.mxu0 %v9775_v5  ;;  %7413 = vmatpush1.bf16.msra.mxu1 %v9778_v6  ;;  %v9865_v5 = vld [vmem:[%s14139_s1 + $0xb60] ss:$16 sps:$4 sm:$0xff]   ;;  %v9868_v6 = vld [vmem:[%s14139_s1 + $0xb68] ss:$16 sps:$4 sm:$0xff]  }
 0x138   : > { %6726 = vmatprep.subr.bf16.mxu0 %v9783_v7  ;;  %7414 = vmatprep.subr.bf16.mxu1 %v9786_v8  ;;  %v9873_v7 = vld [vmem:[%s14139_s1 + $0xb84] ss:$16 sps:$4 sm:$0xff]   ;;  %v9876_v8 = vld [vmem:[%s14139_s1 + $0xb8c] ss:$16 sps:$4 sm:$0xff]  }
 0x13b   : > { %6727 = vmatpush1.bf16.msra.mxu0 %v9781_v9  ;;  %7415 = vmatpush1.bf16.msra.mxu1 %v9784_v10  ;;  %v9871_v9 = vld [vmem:[%s14139_s1 + $0xb80] ss:$16 sps:$4 sm:$0xff]   ;;  %v9874_v10 = vld [vmem:[%s14139_s1 + $0xb88] ss:$16 sps:$4 sm:$0xff]  }
 0x13c   : > { %6728 = vmatprep.subr.bf16.mxu0 %v9789_v11  ;;  %7416 = vmatprep.subr.bf16.mxu1 %v9792_v12  ;;  %v9879_v11 = vld [vmem:[%s14139_s1 + $0xba4] ss:$16 sps:$4 sm:$0xff]   ;;  %v9882_v12 = vld [vmem:[%s14139_s1 + $0xbac] ss:$16 sps:$4 sm:$0xff]  }
 0x13f   : > { %6729 = vmatpush1.bf16.msra.mxu0 %v9787_v13  ;;  %7417 = vmatpush1.bf16.msra.mxu1 %v9790_v16  ;;  %v9877_v13 = vld [vmem:[%s14139_s1 + $0xba0] ss:$16 sps:$4 sm:$0xff]   ;;  %v9880_v16 = vld [vmem:[%s14139_s1 + $0xba8] ss:$16 sps:$4 sm:$0xff]  }
 0x140   : > { %6730 = vmatprep.subr.bf16.mxu0 %v9795_v17  ;;  %7418 = vmatprep.subr.bf16.mxu1 %v9798_v20  ;;  %v9885_v17 = vld [vmem:[%s14139_s1 + $0xbc4] ss:$16 sps:$4 sm:$0xff]   ;;  %v9888_v20 = vld [vmem:[%s14139_s1 + $0xbcc] ss:$16 sps:$4 sm:$0xff]  }
 0x143   : > { %6731 = vmatpush1.bf16.msra.mxu0 %v9793_v22  ;;  %7419 = vmatpush1.bf16.msra.mxu1 %v9796_v15  ;;  %v9883_v22 = vld [vmem:[%s14139_s1 + $0xbc0] ss:$16 sps:$4 sm:$0xff]   ;;  %v9886_v15 = vld [vmem:[%s14139_s1 + $0xbc8] ss:$16 sps:$4 sm:$0xff]  }
 0x144   : > { %6743 = vmatprep.subr.bf16.mxu0 %v9801_v23  ;;  %7431 = vmatprep.subr.bf16.mxu1 %v9804_v24  ;;  %v9891_v23 = vld [vmem:[%s14139_s1 + $0xbe4] ss:$16 sps:$4 sm:$0xff]   ;;  %v9894_v24 = vld [vmem:[%s14139_s1 + $0xbec] ss:$16 sps:$4 sm:$0xff]  }
 0x146   : > { %6733 = vmatmul.mubr.bf16.vlgmr.msra.gmra.mrb[0].mxu0 %v8130_v25  ;;  %7421 = vmatmul.mubr.bf16.vlgmr.msra.gmra.mrb[0].mxu1 %v8130_v25  ;;  %v9889_v25 = vld [vmem:[%s14139_s1 + $0xbe0] ss:$16 sps:$4 sm:$0xff]  }
 0x147   : > { %6744 = vmatpush1.bf16.msra.mxu0 %v9799_v26  ;;  %7432 = vmatpush1.bf16.msra.mxu1 %v9802_v27  ;;  %v9892_v26 = vld [vmem:[%s14139_s1 + $0xbe8] ss:$16 sps:$4 sm:$0xff]   ;;  %v9897_v27 = vld [vmem:[%s14139_s1 + $0xc04] ss:$16 sps:$4 sm:$0xff]  }
 0x148   : > { %6745 = vmatprep.subr.bf16.mxu0 %v9807_v28  ;;  %7433 = vmatprep.subr.bf16.mxu1 %v9810_v21  ;;  %v9900_v28 = vld [vmem:[%s14139_s1 + $0xc0c] ss:$16 sps:$4 sm:$0xff]   ;;  %v12111_v21 = vld [vmem:[%s11032_s5 + $0x30] sm:$0xff] }
 0x149   : > { %6775 = vmatprep.mubr.bf16.mxu0 %v8133_v14  ;;  %7463 = vmatprep.mubr.bf16.mxu1 %v8133_v14  ;;  %v12114_v14 = vld [vmem:[%s11032_s5 + $0xb0] sm:$0xff] }
 0x14b   : > { %6746 = vmatpush1.bf16.msra.mxu0 %v9805_v29  ;;  %7434 = vmatpush1.bf16.msra.mxu1 %v9808_v30  ;;  %v8132_v29 = vcombine.low %v11909_v18, %v11912_v19  ;;  %v9895_v30 = vld [vmem:[%s14139_s1 + $0xc00] ss:$16 sps:$4 sm:$0xff]   ;;  %v9906_v18 = vld [vmem:[%s14139_s1 + $0xc2c] ss:$16 sps:$4 sm:$0xff]   ;;  %v8135_v19 = vcombine.high %v12111_v21, %v12114_v14 }
 0x14c   : > { %6747 = vmatprep.subr.bf16.mxu0 %v9813_v31  ;;  %7435 = vmatprep.subr.bf16.mxu1 %v9816_v32  ;;  %v9898_v31 = vld [vmem:[%s14139_s1 + $0xc08] ss:$16 sps:$4 sm:$0xff]   ;;  %v9903_v32 = vld [vmem:[%s14139_s1 + $0xc24] ss:$16 sps:$4 sm:$0xff]  }
 0x14f   : > { %6748 = vmatpush1.bf16.msra.mxu0 %v9811_v33  ;;  %7436 = vmatpush1.bf16.msra.mxu1 %v9814_v34  ;;  %v9901_v33 = vld [vmem:[%s14139_s1 + $0xc20] ss:$16 sps:$4 sm:$0xff]   ;;  %v9904_v34 = vld [vmem:[%s14139_s1 + $0xc28] ss:$16 sps:$4 sm:$0xff]  }
 0x150   : > { %6749 = vmatprep.subr.bf16.mxu0 %v9819_v35  ;;  %7437 = vmatprep.subr.bf16.mxu1 %v9822_v36  ;;  %v9909_v35 = vld [vmem:[%s14139_s1 + $0xc44] ss:$16 sps:$4 sm:$0xff]   ;;  %v9912_v36 = vld [vmem:[%s14139_s1 + $0xc4c] ss:$16 sps:$4 sm:$0xff]  }
 0x153   : > { %6750 = vmatpush1.bf16.msra.mxu0 %v9817_v37  ;;  %7438 = vmatpush1.bf16.msra.mxu1 %v9820_v38  ;;  %v9907_v37 = vld [vmem:[%s14139_s1 + $0xc40] ss:$16 sps:$4 sm:$0xff]   ;;  %v9910_v38 = vld [vmem:[%s14139_s1 + $0xc48] ss:$16 sps:$4 sm:$0xff]  }
 0x154   : > { %6751 = vmatprep.subr.bf16.mxu0 %v9825_v39  ;;  %7439 = vmatprep.subr.bf16.mxu1 %v9828_v40  ;;  %v9915_v39 = vld [vmem:[%s14139_s1 + $0xc64] ss:$16 sps:$4 sm:$0xff]   ;;  %v9918_v40 = vld [vmem:[%s14139_s1 + $0xc6c] ss:$16 sps:$4 sm:$0xff]  }
 0x157   : > { %6752 = vmatpush1.bf16.msra.mxu0 %v9823_v41  ;;  %7440 = vmatpush1.bf16.msra.mxu1 %v9826_v42  ;;  %v9913_v41 = vld [vmem:[%s14139_s1 + $0xc60] ss:$16 sps:$4 sm:$0xff]   ;;  %v9916_v42 = vld [vmem:[%s14139_s1 + $0xc68] ss:$16 sps:$4 sm:$0xff]  }
 0x158   : > { %6753 = vmatprep.subr.bf16.mxu0 %v9831_v43  ;;  %7441 = vmatprep.subr.bf16.mxu1 %v9834_v44  ;;  %v9921_v43 = vld [vmem:[%s14139_s1 + $0xc84] ss:$16 sps:$4 sm:$0xff]   ;;  %v9924_v44 = vld [vmem:[%s14139_s1 + $0xc8c] ss:$16 sps:$4 sm:$0xff]  }
 0x15b   : > { %6754 = vmatpush1.bf16.msra.mxu0 %v9829_v45  ;;  %7442 = vmatpush1.bf16.msra.mxu1 %v9832_v46  ;;  %v9919_v45 = vld [vmem:[%s14139_s1 + $0xc80] ss:$16 sps:$4 sm:$0xff]   ;;  %v9922_v46 = vld [vmem:[%s14139_s1 + $0xc88] ss:$16 sps:$4 sm:$0xff]  }
 0x15c   : > { %6755 = vmatprep.subr.bf16.mxu0 %v9837_v47  ;;  %7443 = vmatprep.subr.bf16.mxu1 %v9840_v48  ;;  %v9927_v47 = vld [vmem:[%s14139_s1 + $0xca4] ss:$16 sps:$4 sm:$0xff]   ;;  %v9930_v48 = vld [vmem:[%s14139_s1 + $0xcac] ss:$16 sps:$4 sm:$0xff]  }
 0x15f   : > { %6756 = vmatpush1.bf16.msra.mxu0 %v9835_v49  ;;  %7444 = vmatpush1.bf16.msra.mxu1 %v9838_v50  ;;  %v9925_v49 = vld [vmem:[%s14139_s1 + $0xca0] ss:$16 sps:$4 sm:$0xff]   ;;  %v9928_v50 = vld [vmem:[%s14139_s1 + $0xca8] ss:$16 sps:$4 sm:$0xff]  }
 0x160   : > { %6757 = vmatprep.subr.bf16.mxu0 %v9843_v51  ;;  %7445 = vmatprep.subr.bf16.mxu1 %v9846_v52  ;;  %v9933_v51 = vld [vmem:[%s14139_s1 + $0xcc4] ss:$16 sps:$4 sm:$0xff]   ;;  %v9936_v52 = vld [vmem:[%s14139_s1 + $0xccc] ss:$16 sps:$4 sm:$0xff]  }
 0x163   : > { %6758 = vmatpush1.bf16.msra.mxu0 %v9841_v53  ;;  %7446 = vmatpush1.bf16.msra.mxu1 %v9844_v54  ;;  %v9931_v53 = vld [vmem:[%s14139_s1 + $0xcc0] ss:$16 sps:$4 sm:$0xff]   ;;  %v9934_v54 = vld [vmem:[%s14139_s1 + $0xcc8] ss:$16 sps:$4 sm:$0xff]  }
 0x164   : > { %6759 = vmatprep.subr.bf16.mxu0 %v9849_v55  ;;  %7447 = vmatprep.subr.bf16.mxu1 %v9852_v56  ;;  %v9939_v55 = vld [vmem:[%s14139_s1 + $0xce4] ss:$16 sps:$4 sm:$0xff]   ;;  %v9942_v56 = vld [vmem:[%s14139_s1 + $0xcec] ss:$16 sps:$4 sm:$0xff]  }
 0x167   : > { %6760 = vmatpush1.bf16.msra.mxu0 %v9847_v57  ;;  %7448 = vmatpush1.bf16.msra.mxu1 %v9850_v58  ;;  %v9937_v57 = vld [vmem:[%s14139_s1 + $0xce0] ss:$16 sps:$4 sm:$0xff]   ;;  %v9940_v58 = vld [vmem:[%s14139_s1 + $0xce8] ss:$16 sps:$4 sm:$0xff]  }
 0x168   : > { %6761 = vmatprep.subr.bf16.mxu0 %v9855_v59  ;;  %7449 = vmatprep.subr.bf16.mxu1 %v9858_v60  ;;  %v9945_v59 = vld [vmem:[%s14139_s1 + $0xd04] ss:$16 sps:$4 sm:$0xff]   ;;  %v9948_v60 = vld [vmem:[%s14139_s1 + $0xd0c] ss:$16 sps:$4 sm:$0xff]  }
 0x16b   : > { %6762 = vmatpush1.bf16.msra.mxu0 %v9853_v61  ;;  %7450 = vmatpush1.bf16.msra.mxu1 %v9856_v62  ;;  %v9943_v61 = vld [vmem:[%s14139_s1 + $0xd00] ss:$16 sps:$4 sm:$0xff]   ;;  %v9946_v62 = vld [vmem:[%s14139_s1 + $0xd08] ss:$16 sps:$4 sm:$0xff]  }
 0x16c   : > { %6763 = vmatprep.subr.bf16.mxu0 %v9861_v63  ;;  %7451 = vmatprep.subr.bf16.mxu1 %v9864_v0  ;;  %v9951_v63 = vld [vmem:[%s14139_s1 + $0xd24] ss:$16 sps:$4 sm:$0xff]   ;;  %v9954_v0 = vld [vmem:[%s14139_s1 + $0xd2c] ss:$16 sps:$4 sm:$0xff]  }
 0x16f   : > { %6764 = vmatpush1.bf16.msra.mxu0 %v9859_v1  ;;  %7452 = vmatpush1.bf16.msra.mxu1 %v9862_v2  ;;  %v9949_v1 = vld [vmem:[%s14139_s1 + $0xd20] ss:$16 sps:$4 sm:$0xff]   ;;  %v9952_v2 = vld [vmem:[%s14139_s1 + $0xd28] ss:$16 sps:$4 sm:$0xff]  }
 0x170   : > { %6765 = vmatprep.subr.bf16.mxu0 %v9867_v3  ;;  %7453 = vmatprep.subr.bf16.mxu1 %v9870_v4  ;;  %v9957_v3 = vld [vmem:[%s14139_s1 + $0xd44] ss:$16 sps:$4 sm:$0xff]   ;;  %v9960_v4 = vld [vmem:[%s14139_s1 + $0xd4c] ss:$16 sps:$4 sm:$0xff]  }
 0x173   : > { %6766 = vmatpush1.bf16.msra.mxu0 %v9865_v5  ;;  %7454 = vmatpush1.bf16.msra.mxu1 %v9868_v6  ;;  %v9955_v5 = vld [vmem:[%s14139_s1 + $0xd40] ss:$16 sps:$4 sm:$0xff]   ;;  %v9958_v6 = vld [vmem:[%s14139_s1 + $0xd48] ss:$16 sps:$4 sm:$0xff]  }
 0x174   : > { %6767 = vmatprep.subr.bf16.mxu0 %v9873_v7  ;;  %7455 = vmatprep.subr.bf16.mxu1 %v9876_v8  ;;  %v9963_v7 = vld [vmem:[%s14139_s1 + $0xd64] ss:$16 sps:$4 sm:$0xff]   ;;  %v9966_v8 = vld [vmem:[%s14139_s1 + $0xd6c] ss:$16 sps:$4 sm:$0xff]  }
 0x177   : > { %6768 = vmatpush1.bf16.msra.mxu0 %v9871_v9  ;;  %7456 = vmatpush1.bf16.msra.mxu1 %v9874_v10  ;;  %v9961_v9 = vld [vmem:[%s14139_s1 + $0xd60] ss:$16 sps:$4 sm:$0xff]   ;;  %v9964_v10 = vld [vmem:[%s14139_s1 + $0xd68] ss:$16 sps:$4 sm:$0xff]  }
 0x178   : > { %6769 = vmatprep.subr.bf16.mxu0 %v9879_v11  ;;  %7457 = vmatprep.subr.bf16.mxu1 %v9882_v12  ;;  %v9969_v11 = vld [vmem:[%s14139_s1 + $0xd84] ss:$16 sps:$4 sm:$0xff]   ;;  %v9972_v12 = vld [vmem:[%s14139_s1 + $0xd8c] ss:$16 sps:$4 sm:$0xff]  }
 0x17b   : > { %6770 = vmatpush1.bf16.msra.mxu0 %v9877_v13  ;;  %7458 = vmatpush1.bf16.msra.mxu1 %v9880_v16  ;;  %v9967_v13 = vld [vmem:[%s14139_s1 + $0xd80] ss:$16 sps:$4 sm:$0xff]   ;;  %v9970_v16 = vld [vmem:[%s14139_s1 + $0xd88] ss:$16 sps:$4 sm:$0xff]  }
 0x17c   : > { %6771 = vmatprep.subr.bf16.mxu0 %v9885_v17  ;;  %7459 = vmatprep.subr.bf16.mxu1 %v9888_v20  ;;  %v9975_v17 = vld [vmem:[%s14139_s1 + $0xda4] ss:$16 sps:$4 sm:$0xff]   ;;  %v9978_v20 = vld [vmem:[%s14139_s1 + $0xdac] ss:$16 sps:$4 sm:$0xff]  }
 0x17f   : > { %6772 = vmatpush1.bf16.msra.mxu0 %v9883_v22  ;;  %7460 = vmatpush1.bf16.msra.mxu1 %v9886_v15  ;;  %v9973_v22 = vld [vmem:[%s14139_s1 + $0xda0] ss:$16 sps:$4 sm:$0xff]   ;;  %v9976_v15 = vld [vmem:[%s14139_s1 + $0xda8] ss:$16 sps:$4 sm:$0xff]  }
 0x180   : > { %6773 = vmatprep.subr.bf16.mxu0 %v9891_v23  ;;  %7461 = vmatprep.subr.bf16.mxu1 %v9894_v24  ;;  %v9981_v23 = vld [vmem:[%s14139_s1 + $0xdc4] ss:$16 sps:$4 sm:$0xff]   ;;  %v9984_v24 = vld [vmem:[%s14139_s1 + $0xdcc] ss:$16 sps:$4 sm:$0xff]  }
 0x183   : > { %6774 = vmatpush1.bf16.msra.mxu0 %v9889_v25  ;;  %7462 = vmatpush1.bf16.msra.mxu1 %v9892_v26  ;;  %v9979_v25 = vld [vmem:[%s14139_s1 + $0xdc0] ss:$16 sps:$4 sm:$0xff]   ;;  %v9982_v26 = vld [vmem:[%s14139_s1 + $0xdc8] ss:$16 sps:$4 sm:$0xff]  }
 0x184   : > { %6786 = vmatprep.subr.bf16.mxu0 %v9897_v27  ;;  %7474 = vmatprep.subr.bf16.mxu1 %v9900_v28  ;;  %v9987_v27 = vld [vmem:[%s14139_s1 + $0xde4] ss:$16 sps:$4 sm:$0xff]   ;;  %v9990_v28 = vld [vmem:[%s14139_s1 + $0xdec] ss:$16 sps:$4 sm:$0xff]  }
 0x186   : > { %6776 = vmatmul.mubr.bf16.vlgmr.msra.gmra.mrb[0].mxu0 %v8132_v29  ;;  %7464 = vmatmul.mubr.bf16.vlgmr.msra.gmra.mrb[0].mxu1 %v8132_v29  ;;  %v9985_v29 = vld [vmem:[%s14139_s1 + $0xde0] ss:$16 sps:$4 sm:$0xff]  }
 0x187   : > { %6787 = vmatpush1.bf16.msra.mxu0 %v9895_v30  ;;  %7475 = vmatpush1.bf16.msra.mxu1 %v9898_v31  ;;  %v9988_v30 = vld [vmem:[%s14139_s1 + $0xde8] ss:$16 sps:$4 sm:$0xff]   ;;  %v9993_v31 = vld [vmem:[%s14139_s1 + $0xe04] ss:$16 sps:$4 sm:$0xff]  }
 0x188   : > { %6788 = vmatprep.subr.bf16.mxu0 %v9903_v32  ;;  %7476 = vmatprep.subr.bf16.mxu1 %v9906_v18  ;;  %v9996_v32 = vld [vmem:[%s14139_s1 + $0xe0c] ss:$16 sps:$4 sm:$0xff]  }
 0x189   : > { %6818 = vmatprep.mubr.bf16.mxu0 %v8135_v19  ;;  %7506 = vmatprep.mubr.bf16.mxu1 %v8135_v19  ;;  %v12313_v18 = vld [vmem:[%s11032_s5 + $0x38] sm:$0xff] }
 0x18a   : > { %v12316_v19 = vld [vmem:[%s11032_s5 + $0xb8] sm:$0xff] }
 0x18b   : > { %6789 = vmatpush1.bf16.msra.mxu0 %v9901_v33  ;;  %7477 = vmatpush1.bf16.msra.mxu1 %v9904_v34  ;;  %v8134_v33 = vcombine.low %v12111_v21, %v12114_v14  ;;  %v9991_v34 = vld [vmem:[%s14139_s1 + $0xe00] ss:$16 sps:$4 sm:$0xff]   ;;  %v10002_v21 = vld [vmem:[%s14139_s1 + $0xe2c] ss:$16 sps:$4 sm:$0xff]   ;;  %v8137_v14 = vcombine.high %v12313_v18, %v12316_v19 }
 0x18c   : > { %6790 = vmatprep.subr.bf16.mxu0 %v9909_v35  ;;  %7478 = vmatprep.subr.bf16.mxu1 %v9912_v36  ;;  %v9994_v35 = vld [vmem:[%s14139_s1 + $0xe08] ss:$16 sps:$4 sm:$0xff]   ;;  %v9999_v36 = vld [vmem:[%s14139_s1 + $0xe24] ss:$16 sps:$4 sm:$0xff]  }
 0x18f   : > { %6791 = vmatpush1.bf16.msra.mxu0 %v9907_v37  ;;  %7479 = vmatpush1.bf16.msra.mxu1 %v9910_v38  ;;  %v9997_v37 = vld [vmem:[%s14139_s1 + $0xe20] ss:$16 sps:$4 sm:$0xff]   ;;  %v10000_v38 = vld [vmem:[%s14139_s1 + $0xe28] ss:$16 sps:$4 sm:$0xff]  }
 0x190   : > { %6792 = vmatprep.subr.bf16.mxu0 %v9915_v39  ;;  %7480 = vmatprep.subr.bf16.mxu1 %v9918_v40  ;;  %v10005_v39 = vld [vmem:[%s14139_s1 + $0xe44] ss:$16 sps:$4 sm:$0xff]   ;;  %v10008_v40 = vld [vmem:[%s14139_s1 + $0xe4c] ss:$16 sps:$4 sm:$0xff]  }
 0x193   : > { %6793 = vmatpush1.bf16.msra.mxu0 %v9913_v41  ;;  %7481 = vmatpush1.bf16.msra.mxu1 %v9916_v42  ;;  %v10003_v41 = vld [vmem:[%s14139_s1 + $0xe40] ss:$16 sps:$4 sm:$0xff]   ;;  %v10006_v42 = vld [vmem:[%s14139_s1 + $0xe48] ss:$16 sps:$4 sm:$0xff]  }
 0x194   : > { %6794 = vmatprep.subr.bf16.mxu0 %v9921_v43  ;;  %7482 = vmatprep.subr.bf16.mxu1 %v9924_v44  ;;  %v10011_v43 = vld [vmem:[%s14139_s1 + $0xe64] ss:$16 sps:$4 sm:$0xff]   ;;  %v10014_v44 = vld [vmem:[%s14139_s1 + $0xe6c] ss:$16 sps:$4 sm:$0xff]  }
 0x197   : > { %6795 = vmatpush1.bf16.msra.mxu0 %v9919_v45  ;;  %7483 = vmatpush1.bf16.msra.mxu1 %v9922_v46  ;;  %v10009_v45 = vld [vmem:[%s14139_s1 + $0xe60] ss:$16 sps:$4 sm:$0xff]   ;;  %v10012_v46 = vld [vmem:[%s14139_s1 + $0xe68] ss:$16 sps:$4 sm:$0xff]  }
 0x198   : > { %6796 = vmatprep.subr.bf16.mxu0 %v9927_v47  ;;  %7484 = vmatprep.subr.bf16.mxu1 %v9930_v48  ;;  %v10017_v47 = vld [vmem:[%s14139_s1 + $0xe84] ss:$16 sps:$4 sm:$0xff]   ;;  %v10020_v48 = vld [vmem:[%s14139_s1 + $0xe8c] ss:$16 sps:$4 sm:$0xff]  }
 0x19b   : > { %6797 = vmatpush1.bf16.msra.mxu0 %v9925_v49  ;;  %7485 = vmatpush1.bf16.msra.mxu1 %v9928_v50  ;;  %v10015_v49 = vld [vmem:[%s14139_s1 + $0xe80] ss:$16 sps:$4 sm:$0xff]   ;;  %v10018_v50 = vld [vmem:[%s14139_s1 + $0xe88] ss:$16 sps:$4 sm:$0xff]  }
 0x19c   : > { %6798 = vmatprep.subr.bf16.mxu0 %v9933_v51  ;;  %7486 = vmatprep.subr.bf16.mxu1 %v9936_v52  ;;  %v10023_v51 = vld [vmem:[%s14139_s1 + $0xea4] ss:$16 sps:$4 sm:$0xff]   ;;  %v10026_v52 = vld [vmem:[%s14139_s1 + $0xeac] ss:$16 sps:$4 sm:$0xff]  }
 0x19f   : > { %6799 = vmatpush1.bf16.msra.mxu0 %v9931_v53  ;;  %7487 = vmatpush1.bf16.msra.mxu1 %v9934_v54  ;;  %v10021_v53 = vld [vmem:[%s14139_s1 + $0xea0] ss:$16 sps:$4 sm:$0xff]   ;;  %v10024_v54 = vld [vmem:[%s14139_s1 + $0xea8] ss:$16 sps:$4 sm:$0xff]  }
 0x1a0   : > { %6800 = vmatprep.subr.bf16.mxu0 %v9939_v55  ;;  %7488 = vmatprep.subr.bf16.mxu1 %v9942_v56  ;;  %v10029_v55 = vld [vmem:[%s14139_s1 + $0xec4] ss:$16 sps:$4 sm:$0xff]   ;;  %v10032_v56 = vld [vmem:[%s14139_s1 + $0xecc] ss:$16 sps:$4 sm:$0xff]  }
 0x1a3   : > { %6801 = vmatpush1.bf16.msra.mxu0 %v9937_v57  ;;  %7489 = vmatpush1.bf16.msra.mxu1 %v9940_v58  ;;  %v10027_v57 = vld [vmem:[%s14139_s1 + $0xec0] ss:$16 sps:$4 sm:$0xff]   ;;  %v10030_v58 = vld [vmem:[%s14139_s1 + $0xec8] ss:$16 sps:$4 sm:$0xff]  }
 0x1a4   : > { %6802 = vmatprep.subr.bf16.mxu0 %v9945_v59  ;;  %7490 = vmatprep.subr.bf16.mxu1 %v9948_v60  ;;  %v10035_v59 = vld [vmem:[%s14139_s1 + $0xee4] ss:$16 sps:$4 sm:$0xff]   ;;  %v10038_v60 = vld [vmem:[%s14139_s1 + $0xeec] ss:$16 sps:$4 sm:$0xff]  }
 0x1a7   : > { %6803 = vmatpush1.bf16.msra.mxu0 %v9943_v61  ;;  %7491 = vmatpush1.bf16.msra.mxu1 %v9946_v62  ;;  %v10033_v61 = vld [vmem:[%s14139_s1 + $0xee0] ss:$16 sps:$4 sm:$0xff]   ;;  %v10036_v62 = vld [vmem:[%s14139_s1 + $0xee8] ss:$16 sps:$4 sm:$0xff]  }
 0x1a8   : > { %6804 = vmatprep.subr.bf16.mxu0 %v9951_v63  ;;  %7492 = vmatprep.subr.bf16.mxu1 %v9954_v0  ;;  %v10041_v63 = vld [vmem:[%s14139_s1 + $0xf04] ss:$16 sps:$4 sm:$0xff]   ;;  %v10044_v0 = vld [vmem:[%s14139_s1 + $0xf0c] ss:$16 sps:$4 sm:$0xff]  }
 0x1ab   : > { %6805 = vmatpush1.bf16.msra.mxu0 %v9949_v1  ;;  %7493 = vmatpush1.bf16.msra.mxu1 %v9952_v2  ;;  %v10039_v1 = vld [vmem:[%s14139_s1 + $0xf00] ss:$16 sps:$4 sm:$0xff]   ;;  %v10042_v2 = vld [vmem:[%s14139_s1 + $0xf08] ss:$16 sps:$4 sm:$0xff]  }
 0x1ac   : > { %6806 = vmatprep.subr.bf16.mxu0 %v9957_v3  ;;  %7494 = vmatprep.subr.bf16.mxu1 %v9960_v4  ;;  %v10047_v3 = vld [vmem:[%s14139_s1 + $0xf24] ss:$16 sps:$4 sm:$0xff]   ;;  %v10050_v4 = vld [vmem:[%s14139_s1 + $0xf2c] ss:$16 sps:$4 sm:$0xff]  }
 0x1af   : > { %6807 = vmatpush1.bf16.msra.mxu0 %v9955_v5  ;;  %7495 = vmatpush1.bf16.msra.mxu1 %v9958_v6  ;;  %v10045_v5 = vld [vmem:[%s14139_s1 + $0xf20] ss:$16 sps:$4 sm:$0xff]   ;;  %v10048_v6 = vld [vmem:[%s14139_s1 + $0xf28] ss:$16 sps:$4 sm:$0xff]  }
 0x1b0   : > { %6808 = vmatprep.subr.bf16.mxu0 %v9963_v7  ;;  %7496 = vmatprep.subr.bf16.mxu1 %v9966_v8  ;;  %v10053_v7 = vld [vmem:[%s14139_s1 + $0xf44] ss:$16 sps:$4 sm:$0xff]   ;;  %v10056_v8 = vld [vmem:[%s14139_s1 + $0xf4c] ss:$16 sps:$4 sm:$0xff]  }
 0x1b3   : > { %6809 = vmatpush1.bf16.msra.mxu0 %v9961_v9  ;;  %7497 = vmatpush1.bf16.msra.mxu1 %v9964_v10  ;;  %v10051_v9 = vld [vmem:[%s14139_s1 + $0xf40] ss:$16 sps:$4 sm:$0xff]   ;;  %v10054_v10 = vld [vmem:[%s14139_s1 + $0xf48] ss:$16 sps:$4 sm:$0xff]  }
 0x1b4   : > { %6810 = vmatprep.subr.bf16.mxu0 %v9969_v11  ;;  %7498 = vmatprep.subr.bf16.mxu1 %v9972_v12  ;;  %v10059_v11 = vld [vmem:[%s14139_s1 + $0xf64] ss:$16 sps:$4 sm:$0xff]   ;;  %v10062_v12 = vld [vmem:[%s14139_s1 + $0xf6c] ss:$16 sps:$4 sm:$0xff]  }
 0x1b7   : > { %6811 = vmatpush1.bf16.msra.mxu0 %v9967_v13  ;;  %7499 = vmatpush1.bf16.msra.mxu1 %v9970_v16  ;;  %v10057_v13 = vld [vmem:[%s14139_s1 + $0xf60] ss:$16 sps:$4 sm:$0xff]   ;;  %v10060_v16 = vld [vmem:[%s14139_s1 + $0xf68] ss:$16 sps:$4 sm:$0xff]  }
 0x1b8   : > { %6812 = vmatprep.subr.bf16.mxu0 %v9975_v17  ;;  %7500 = vmatprep.subr.bf16.mxu1 %v9978_v20  ;;  %v10065_v17 = vld [vmem:[%s14139_s1 + $0xf84] ss:$16 sps:$4 sm:$0xff]   ;;  %v10068_v20 = vld [vmem:[%s14139_s1 + $0xf8c] ss:$16 sps:$4 sm:$0xff]  }
 0x1bb   : > { %6813 = vmatpush1.bf16.msra.mxu0 %v9973_v22  ;;  %7501 = vmatpush1.bf16.msra.mxu1 %v9976_v15  ;;  %v10063_v22 = vld [vmem:[%s14139_s1 + $0xf80] ss:$16 sps:$4 sm:$0xff]   ;;  %v10066_v15 = vld [vmem:[%s14139_s1 + $0xf88] ss:$16 sps:$4 sm:$0xff]  }
 0x1bc   : > { %6814 = vmatprep.subr.bf16.mxu0 %v9981_v23  ;;  %7502 = vmatprep.subr.bf16.mxu1 %v9984_v24  ;;  %v10071_v23 = vld [vmem:[%s14139_s1 + $0xfa4] ss:$16 sps:$4 sm:$0xff]   ;;  %v10074_v24 = vld [vmem:[%s14139_s1 + $0xfac] ss:$16 sps:$4 sm:$0xff]  }
 0x1bf   : > { %6815 = vmatpush1.bf16.msra.mxu0 %v9979_v25  ;;  %7503 = vmatpush1.bf16.msra.mxu1 %v9982_v26  ;;  %v10069_v25 = vld [vmem:[%s14139_s1 + $0xfa0] ss:$16 sps:$4 sm:$0xff]   ;;  %v10072_v26 = vld [vmem:[%s14139_s1 + $0xfa8] ss:$16 sps:$4 sm:$0xff]  }
 0x1c0   : > { %6816 = vmatprep.subr.bf16.mxu0 %v9987_v27  ;;  %7504 = vmatprep.subr.bf16.mxu1 %v9990_v28  ;;  %v10077_v27 = vld [vmem:[%s14139_s1 + $0xfc4] ss:$16 sps:$4 sm:$0xff]   ;;  %v10080_v28 = vld [vmem:[%s14139_s1 + $0xfcc] ss:$16 sps:$4 sm:$0xff]  }
 0x1c3   : > { %6817 = vmatpush1.bf16.msra.mxu0 %v9985_v29  ;;  %7505 = vmatpush1.bf16.msra.mxu1 %v9988_v30  ;;  %v10075_v29 = vld [vmem:[%s14139_s1 + $0xfc0] ss:$16 sps:$4 sm:$0xff]   ;;  %v10078_v30 = vld [vmem:[%s14139_s1 + $0xfc8] ss:$16 sps:$4 sm:$0xff]  }
 0x1c4   : > { %6829 = vmatprep.subr.bf16.mxu0 %v9993_v31  ;;  %7517 = vmatprep.subr.bf16.mxu1 %v9996_v32  ;;  %v10083_v31 = vld [vmem:[%s14139_s1 + $0xfe4] ss:$16 sps:$4 sm:$0xff]   ;;  %v10086_v32 = vld [vmem:[%s14139_s1 + $0xfec] ss:$16 sps:$4 sm:$0xff]  }
 0x1c6   : > { %6819 = vmatmul.mubr.bf16.vlgmr.msra.gmra.mrb[0].mxu0 %v8134_v33  ;;  %7507 = vmatmul.mubr.bf16.vlgmr.msra.gmra.mrb[0].mxu1 %v8134_v33  ;;  %v10081_v33 = vld [vmem:[%s14139_s1 + $0xfe0] ss:$16 sps:$4 sm:$0xff]  }
 0x1c7   : > { %6830 = vmatpush1.bf16.msra.mxu0 %v9991_v34  ;;  %7518 = vmatpush1.bf16.msra.mxu1 %v9994_v35  ;;  %v10084_v34 = vld [vmem:[%s14139_s1 + $0xfe8] ss:$16 sps:$4 sm:$0xff]   ;;  %v10089_v35 = vld [vmem:[%s14139_s1 + $0x1004] ss:$16 sps:$4 sm:$0xff]  }
 0x1c8   : > { %6831 = vmatprep.subr.bf16.mxu0 %v9999_v36  ;;  %7519 = vmatprep.subr.bf16.mxu1 %v10002_v21  ;;  %v10092_v36 = vld [vmem:[%s14139_s1 + $0x100c] ss:$16 sps:$4 sm:$0xff]   ;;  %v12515_v21 = vld [vmem:[%s11032_s5 + $0x40] sm:$0xff] }
 0x1c9   : > { %6861 = vmatprep.mubr.bf16.mxu0 %v8137_v14  ;;  %7549 = vmatprep.mubr.bf16.mxu1 %v8137_v14  ;;  %v12518_v14 = vld [vmem:[%s11032_s5 + $0xc0] sm:$0xff] }
 0x1cb   : > { %6832 = vmatpush1.bf16.msra.mxu0 %v9997_v37  ;;  %7520 = vmatpush1.bf16.msra.mxu1 %v10000_v38  ;;  %v8136_v37 = vcombine.low %v12313_v18, %v12316_v19  ;;  %v10087_v38 = vld [vmem:[%s14139_s1 + $0x1000] ss:$16 sps:$4 sm:$0xff]   ;;  %v10098_v18 = vld [vmem:[%s14139_s1 + $0x102c] ss:$16 sps:$4 sm:$0xff]   ;;  %v8139_v19 = vcombine.high %v12515_v21, %v12518_v14 }
 0x1cc   : > { %6833 = vmatprep.subr.bf16.mxu0 %v10005_v39  ;;  %7521 = vmatprep.subr.bf16.mxu1 %v10008_v40  ;;  %v10090_v39 = vld [vmem:[%s14139_s1 + $0x1008] ss:$16 sps:$4 sm:$0xff]   ;;  %v10095_v40 = vld [vmem:[%s14139_s1 + $0x1024] ss:$16 sps:$4 sm:$0xff]  }
 0x1cf   : > { %6834 = vmatpush1.bf16.msra.mxu0 %v10003_v41  ;;  %7522 = vmatpush1.bf16.msra.mxu1 %v10006_v42  ;;  %v10093_v41 = vld [vmem:[%s14139_s1 + $0x1020] ss:$16 sps:$4 sm:$0xff]   ;;  %v10096_v42 = vld [vmem:[%s14139_s1 + $0x1028] ss:$16 sps:$4 sm:$0xff]  }
 0x1d0   : > { %6835 = vmatprep.subr.bf16.mxu0 %v10011_v43  ;;  %7523 = vmatprep.subr.bf16.mxu1 %v10014_v44  ;;  %v10101_v43 = vld [vmem:[%s14139_s1 + $0x1044] ss:$16 sps:$4 sm:$0xff]   ;;  %v10104_v44 = vld [vmem:[%s14139_s1 + $0x104c] ss:$16 sps:$4 sm:$0xff]  }
 0x1d3   : > { %6836 = vmatpush1.bf16.msra.mxu0 %v10009_v45  ;;  %7524 = vmatpush1.bf16.msra.mxu1 %v10012_v46  ;;  %v10099_v45 = vld [vmem:[%s14139_s1 + $0x1040] ss:$16 sps:$4 sm:$0xff]   ;;  %v10102_v46 = vld [vmem:[%s14139_s1 + $0x1048] ss:$16 sps:$4 sm:$0xff]  }
 0x1d4   : > { %6837 = vmatprep.subr.bf16.mxu0 %v10017_v47  ;;  %7525 = vmatprep.subr.bf16.mxu1 %v10020_v48  ;;  %v10107_v47 = vld [vmem:[%s14139_s1 + $0x1064] ss:$16 sps:$4 sm:$0xff]   ;;  %v10110_v48 = vld [vmem:[%s14139_s1 + $0x106c] ss:$16 sps:$4 sm:$0xff]  }
 0x1d7   : > { %6838 = vmatpush1.bf16.msra.mxu0 %v10015_v49  ;;  %7526 = vmatpush1.bf16.msra.mxu1 %v10018_v50  ;;  %v10105_v49 = vld [vmem:[%s14139_s1 + $0x1060] ss:$16 sps:$4 sm:$0xff]   ;;  %v10108_v50 = vld [vmem:[%s14139_s1 + $0x1068] ss:$16 sps:$4 sm:$0xff]  }
 0x1d8   : > { %6839 = vmatprep.subr.bf16.mxu0 %v10023_v51  ;;  %7527 = vmatprep.subr.bf16.mxu1 %v10026_v52  ;;  %v10113_v51 = vld [vmem:[%s14139_s1 + $0x1084] ss:$16 sps:$4 sm:$0xff]   ;;  %v10116_v52 = vld [vmem:[%s14139_s1 + $0x108c] ss:$16 sps:$4 sm:$0xff]  }
 0x1db   : > { %6840 = vmatpush1.bf16.msra.mxu0 %v10021_v53  ;;  %7528 = vmatpush1.bf16.msra.mxu1 %v10024_v54  ;;  %v10111_v53 = vld [vmem:[%s14139_s1 + $0x1080] ss:$16 sps:$4 sm:$0xff]   ;;  %v10114_v54 = vld [vmem:[%s14139_s1 + $0x1088] ss:$16 sps:$4 sm:$0xff]  }
 0x1dc   : > { %6841 = vmatprep.subr.bf16.mxu0 %v10029_v55  ;;  %7529 = vmatprep.subr.bf16.mxu1 %v10032_v56  ;;  %v10119_v55 = vld [vmem:[%s14139_s1 + $0x10a4] ss:$16 sps:$4 sm:$0xff]   ;;  %v10122_v56 = vld [vmem:[%s14139_s1 + $0x10ac] ss:$16 sps:$4 sm:$0xff]  }
 0x1df   : > { %6842 = vmatpush1.bf16.msra.mxu0 %v10027_v57  ;;  %7530 = vmatpush1.bf16.msra.mxu1 %v10030_v58  ;;  %v10117_v57 = vld [vmem:[%s14139_s1 + $0x10a0] ss:$16 sps:$4 sm:$0xff]   ;;  %v10120_v58 = vld [vmem:[%s14139_s1 + $0x10a8] ss:$16 sps:$4 sm:$0xff]  }
 0x1e0   : > { %6843 = vmatprep.subr.bf16.mxu0 %v10035_v59  ;;  %7531 = vmatprep.subr.bf16.mxu1 %v10038_v60  ;;  %v10125_v59 = vld [vmem:[%s14139_s1 + $0x10c4] ss:$16 sps:$4 sm:$0xff]   ;;  %v10128_v60 = vld [vmem:[%s14139_s1 + $0x10cc] ss:$16 sps:$4 sm:$0xff]  }
 0x1e3   : > { %6844 = vmatpush1.bf16.msra.mxu0 %v10033_v61  ;;  %7532 = vmatpush1.bf16.msra.mxu1 %v10036_v62  ;;  %v10123_v61 = vld [vmem:[%s14139_s1 + $0x10c0] ss:$16 sps:$4 sm:$0xff]   ;;  %v10126_v62 = vld [vmem:[%s14139_s1 + $0x10c8] ss:$16 sps:$4 sm:$0xff]  }
 0x1e4   : > { %6845 = vmatprep.subr.bf16.mxu0 %v10041_v63  ;;  %7533 = vmatprep.subr.bf16.mxu1 %v10044_v0  ;;  %v10131_v63 = vld [vmem:[%s14139_s1 + $0x10e4] ss:$16 sps:$4 sm:$0xff]   ;;  %v10134_v0 = vld [vmem:[%s14139_s1 + $0x10ec] ss:$16 sps:$4 sm:$0xff]  }
 0x1e7   : > { %6846 = vmatpush1.bf16.msra.mxu0 %v10039_v1  ;;  %7534 = vmatpush1.bf16.msra.mxu1 %v10042_v2  ;;  %v10129_v1 = vld [vmem:[%s14139_s1 + $0x10e0] ss:$16 sps:$4 sm:$0xff]   ;;  %v10132_v2 = vld [vmem:[%s14139_s1 + $0x10e8] ss:$16 sps:$4 sm:$0xff]  }
 0x1e8   : > { %6847 = vmatprep.subr.bf16.mxu0 %v10047_v3  ;;  %7535 = vmatprep.subr.bf16.mxu1 %v10050_v4  ;;  %v10137_v3 = vld [vmem:[%s14139_s1 + $0x1104] ss:$16 sps:$4 sm:$0xff]   ;;  %v10140_v4 = vld [vmem:[%s14139_s1 + $0x110c] ss:$16 sps:$4 sm:$0xff]  }
 0x1eb   : > { %6848 = vmatpush1.bf16.msra.mxu0 %v10045_v5  ;;  %7536 = vmatpush1.bf16.msra.mxu1 %v10048_v6  ;;  %v10135_v5 = vld [vmem:[%s14139_s1 + $0x1100] ss:$16 sps:$4 sm:$0xff]   ;;  %v10138_v6 = vld [vmem:[%s14139_s1 + $0x1108] ss:$16 sps:$4 sm:$0xff]  }
 0x1ec   : > { %6849 = vmatprep.subr.bf16.mxu0 %v10053_v7  ;;  %7537 = vmatprep.subr.bf16.mxu1 %v10056_v8  ;;  %v10143_v7 = vld [vmem:[%s14139_s1 + $0x1124] ss:$16 sps:$4 sm:$0xff]   ;;  %v10146_v8 = vld [vmem:[%s14139_s1 + $0x112c] ss:$16 sps:$4 sm:$0xff]  }
 0x1ef   : > { %6850 = vmatpush1.bf16.msra.mxu0 %v10051_v9  ;;  %7538 = vmatpush1.bf16.msra.mxu1 %v10054_v10  ;;  %v10141_v9 = vld [vmem:[%s14139_s1 + $0x1120] ss:$16 sps:$4 sm:$0xff]   ;;  %v10144_v10 = vld [vmem:[%s14139_s1 + $0x1128] ss:$16 sps:$4 sm:$0xff]  }
 0x1f0   : > { %6851 = vmatprep.subr.bf16.mxu0 %v10059_v11  ;;  %7539 = vmatprep.subr.bf16.mxu1 %v10062_v12  ;;  %v10149_v11 = vld [vmem:[%s14139_s1 + $0x1144] ss:$16 sps:$4 sm:$0xff]   ;;  %v10152_v12 = vld [vmem:[%s14139_s1 + $0x114c] ss:$16 sps:$4 sm:$0xff]  }
 0x1f3   : > { %6852 = vmatpush1.bf16.msra.mxu0 %v10057_v13  ;;  %7540 = vmatpush1.bf16.msra.mxu1 %v10060_v16  ;;  %v10147_v13 = vld [vmem:[%s14139_s1 + $0x1140] ss:$16 sps:$4 sm:$0xff]   ;;  %v10150_v16 = vld [vmem:[%s14139_s1 + $0x1148] ss:$16 sps:$4 sm:$0xff]  }
 0x1f4   : > { %6853 = vmatprep.subr.bf16.mxu0 %v10065_v17  ;;  %7541 = vmatprep.subr.bf16.mxu1 %v10068_v20  ;;  %v10155_v17 = vld [vmem:[%s14139_s1 + $0x1164] ss:$16 sps:$4 sm:$0xff]   ;;  %v10158_v20 = vld [vmem:[%s14139_s1 + $0x116c] ss:$16 sps:$4 sm:$0xff]  }
 0x1f7   : > { %6854 = vmatpush1.bf16.msra.mxu0 %v10063_v22  ;;  %7542 = vmatpush1.bf16.msra.mxu1 %v10066_v15  ;;  %v10153_v22 = vld [vmem:[%s14139_s1 + $0x1160] ss:$16 sps:$4 sm:$0xff]   ;;  %v10156_v15 = vld [vmem:[%s14139_s1 + $0x1168] ss:$16 sps:$4 sm:$0xff]  }
 0x1f8   : > { %6855 = vmatprep.subr.bf16.mxu0 %v10071_v23  ;;  %7543 = vmatprep.subr.bf16.mxu1 %v10074_v24  ;;  %v10161_v23 = vld [vmem:[%s14139_s1 + $0x1184] ss:$16 sps:$4 sm:$0xff]   ;;  %v10164_v24 = vld [vmem:[%s14139_s1 + $0x118c] ss:$16 sps:$4 sm:$0xff]  }
 0x1fb   : > { %6856 = vmatpush1.bf16.msra.mxu0 %v10069_v25  ;;  %7544 = vmatpush1.bf16.msra.mxu1 %v10072_v26  ;;  %v10159_v25 = vld [vmem:[%s14139_s1 + $0x1180] ss:$16 sps:$4 sm:$0xff]   ;;  %v10162_v26 = vld [vmem:[%s14139_s1 + $0x1188] ss:$16 sps:$4 sm:$0xff]  }
 0x1fc   : > { %6857 = vmatprep.subr.bf16.mxu0 %v10077_v27  ;;  %7545 = vmatprep.subr.bf16.mxu1 %v10080_v28  ;;  %v10167_v27 = vld [vmem:[%s14139_s1 + $0x11a4] ss:$16 sps:$4 sm:$0xff]   ;;  %v10170_v28 = vld [vmem:[%s14139_s1 + $0x11ac] ss:$16 sps:$4 sm:$0xff]  }
 0x1ff   : > { %6858 = vmatpush1.bf16.msra.mxu0 %v10075_v29  ;;  %7546 = vmatpush1.bf16.msra.mxu1 %v10078_v30  ;;  %v10165_v29 = vld [vmem:[%s14139_s1 + $0x11a0] ss:$16 sps:$4 sm:$0xff]   ;;  %v10168_v30 = vld [vmem:[%s14139_s1 + $0x11a8] ss:$16 sps:$4 sm:$0xff]  }
 0x200   : > { %6859 = vmatprep.subr.bf16.mxu0 %v10083_v31  ;;  %7547 = vmatprep.subr.bf16.mxu1 %v10086_v32  ;;  %v10173_v31 = vld [vmem:[%s14139_s1 + $0x11c4] ss:$16 sps:$4 sm:$0xff]   ;;  %v10176_v32 = vld [vmem:[%s14139_s1 + $0x11cc] ss:$16 sps:$4 sm:$0xff]  }
 0x203   : > { %6860 = vmatpush1.bf16.msra.mxu0 %v10081_v33  ;;  %7548 = vmatpush1.bf16.msra.mxu1 %v10084_v34  ;;  %v10171_v33 = vld [vmem:[%s14139_s1 + $0x11c0] ss:$16 sps:$4 sm:$0xff]   ;;  %v10174_v34 = vld [vmem:[%s14139_s1 + $0x11c8] ss:$16 sps:$4 sm:$0xff]  }
 0x204   : > { %6872 = vmatprep.subr.bf16.mxu0 %v10089_v35  ;;  %7560 = vmatprep.subr.bf16.mxu1 %v10092_v36  ;;  %v10179_v35 = vld [vmem:[%s14139_s1 + $0x11e4] ss:$16 sps:$4 sm:$0xff]   ;;  %v10182_v36 = vld [vmem:[%s14139_s1 + $0x11ec] ss:$16 sps:$4 sm:$0xff]  }
 0x206   : > { %6862 = vmatmul.mubr.bf16.vlgmr.msra.gmra.mrb[0].mxu0 %v8136_v37  ;;  %7550 = vmatmul.mubr.bf16.vlgmr.msra.gmra.mrb[0].mxu1 %v8136_v37  ;;  %v10177_v37 = vld [vmem:[%s14139_s1 + $0x11e0] ss:$16 sps:$4 sm:$0xff]  }
 0x207   : > { %6873 = vmatpush1.bf16.msra.mxu0 %v10087_v38  ;;  %7561 = vmatpush1.bf16.msra.mxu1 %v10090_v39  ;;  %v10180_v38 = vld [vmem:[%s14139_s1 + $0x11e8] ss:$16 sps:$4 sm:$0xff]   ;;  %v10185_v39 = vld [vmem:[%s14139_s1 + $0x1204] ss:$16 sps:$4 sm:$0xff]  }
 0x208   : > { %6874 = vmatprep.subr.bf16.mxu0 %v10095_v40  ;;  %7562 = vmatprep.subr.bf16.mxu1 %v10098_v18  ;;  %v10188_v40 = vld [vmem:[%s14139_s1 + $0x120c] ss:$16 sps:$4 sm:$0xff]  }
 0x209   : > { %6904 = vmatprep.mubr.bf16.mxu0 %v8139_v19  ;;  %7592 = vmatprep.mubr.bf16.mxu1 %v8139_v19  ;;  %v12717_v18 = vld [vmem:[%s11032_s5 + $0x48] sm:$0xff] }
 0x20a   : > { %v12720_v19 = vld [vmem:[%s11032_s5 + $0xc8] sm:$0xff] }
 0x20b   : > { %6875 = vmatpush1.bf16.msra.mxu0 %v10093_v41  ;;  %7563 = vmatpush1.bf16.msra.mxu1 %v10096_v42  ;;  %v8138_v41 = vcombine.low %v12515_v21, %v12518_v14  ;;  %v10183_v42 = vld [vmem:[%s14139_s1 + $0x1200] ss:$16 sps:$4 sm:$0xff]   ;;  %v10194_v21 = vld [vmem:[%s14139_s1 + $0x122c] ss:$16 sps:$4 sm:$0xff]   ;;  %v8141_v14 = vcombine.high %v12717_v18, %v12720_v19 }
 0x20c   : > { %6876 = vmatprep.subr.bf16.mxu0 %v10101_v43  ;;  %7564 = vmatprep.subr.bf16.mxu1 %v10104_v44  ;;  %v10186_v43 = vld [vmem:[%s14139_s1 + $0x1208] ss:$16 sps:$4 sm:$0xff]   ;;  %v10191_v44 = vld [vmem:[%s14139_s1 + $0x1224] ss:$16 sps:$4 sm:$0xff]  }
 0x20f   : > { %6877 = vmatpush1.bf16.msra.mxu0 %v10099_v45  ;;  %7565 = vmatpush1.bf16.msra.mxu1 %v10102_v46  ;;  %v10189_v45 = vld [vmem:[%s14139_s1 + $0x1220] ss:$16 sps:$4 sm:$0xff]   ;;  %v10192_v46 = vld [vmem:[%s14139_s1 + $0x1228] ss:$16 sps:$4 sm:$0xff]  }
 0x210   : > { %6878 = vmatprep.subr.bf16.mxu0 %v10107_v47  ;;  %7566 = vmatprep.subr.bf16.mxu1 %v10110_v48  ;;  %v10197_v47 = vld [vmem:[%s14139_s1 + $0x1244] ss:$16 sps:$4 sm:$0xff]   ;;  %v10200_v48 = vld [vmem:[%s14139_s1 + $0x124c] ss:$16 sps:$4 sm:$0xff]  }
 0x213   : > { %6879 = vmatpush1.bf16.msra.mxu0 %v10105_v49  ;;  %7567 = vmatpush1.bf16.msra.mxu1 %v10108_v50  ;;  %v10195_v49 = vld [vmem:[%s14139_s1 + $0x1240] ss:$16 sps:$4 sm:$0xff]   ;;  %v10198_v50 = vld [vmem:[%s14139_s1 + $0x1248] ss:$16 sps:$4 sm:$0xff]  }
 0x214   : > { %6880 = vmatprep.subr.bf16.mxu0 %v10113_v51  ;;  %7568 = vmatprep.subr.bf16.mxu1 %v10116_v52  ;;  %v10203_v51 = vld [vmem:[%s14139_s1 + $0x1264] ss:$16 sps:$4 sm:$0xff]   ;;  %v10206_v52 = vld [vmem:[%s14139_s1 + $0x126c] ss:$16 sps:$4 sm:$0xff]  }
 0x217   : > { %6881 = vmatpush1.bf16.msra.mxu0 %v10111_v53  ;;  %7569 = vmatpush1.bf16.msra.mxu1 %v10114_v54  ;;  %v10201_v53 = vld [vmem:[%s14139_s1 + $0x1260] ss:$16 sps:$4 sm:$0xff]   ;;  %v10204_v54 = vld [vmem:[%s14139_s1 + $0x1268] ss:$16 sps:$4 sm:$0xff]  }
 0x218   : > { %6882 = vmatprep.subr.bf16.mxu0 %v10119_v55  ;;  %7570 = vmatprep.subr.bf16.mxu1 %v10122_v56  ;;  %v10209_v55 = vld [vmem:[%s14139_s1 + $0x1284] ss:$16 sps:$4 sm:$0xff]   ;;  %v10212_v56 = vld [vmem:[%s14139_s1 + $0x128c] ss:$16 sps:$4 sm:$0xff]  }
 0x21b   : > { %6883 = vmatpush1.bf16.msra.mxu0 %v10117_v57  ;;  %7571 = vmatpush1.bf16.msra.mxu1 %v10120_v58  ;;  %v10207_v57 = vld [vmem:[%s14139_s1 + $0x1280] ss:$16 sps:$4 sm:$0xff]   ;;  %v10210_v58 = vld [vmem:[%s14139_s1 + $0x1288] ss:$16 sps:$4 sm:$0xff]  }
 0x21c   : > { %6884 = vmatprep.subr.bf16.mxu0 %v10125_v59  ;;  %7572 = vmatprep.subr.bf16.mxu1 %v10128_v60  ;;  %v10215_v59 = vld [vmem:[%s14139_s1 + $0x12a4] ss:$16 sps:$4 sm:$0xff]   ;;  %v10218_v60 = vld [vmem:[%s14139_s1 + $0x12ac] ss:$16 sps:$4 sm:$0xff]  }
 0x21f   : > { %6885 = vmatpush1.bf16.msra.mxu0 %v10123_v61  ;;  %7573 = vmatpush1.bf16.msra.mxu1 %v10126_v62  ;;  %v10213_v61 = vld [vmem:[%s14139_s1 + $0x12a0] ss:$16 sps:$4 sm:$0xff]   ;;  %v10216_v62 = vld [vmem:[%s14139_s1 + $0x12a8] ss:$16 sps:$4 sm:$0xff]  }
 0x220   : > { %6886 = vmatprep.subr.bf16.mxu0 %v10131_v63  ;;  %7574 = vmatprep.subr.bf16.mxu1 %v10134_v0  ;;  %v10221_v63 = vld [vmem:[%s14139_s1 + $0x12c4] ss:$16 sps:$4 sm:$0xff]   ;;  %v10224_v0 = vld [vmem:[%s14139_s1 + $0x12cc] ss:$16 sps:$4 sm:$0xff]  }
 0x223   : > { %6887 = vmatpush1.bf16.msra.mxu0 %v10129_v1  ;;  %7575 = vmatpush1.bf16.msra.mxu1 %v10132_v2  ;;  %v10219_v1 = vld [vmem:[%s14139_s1 + $0x12c0] ss:$16 sps:$4 sm:$0xff]   ;;  %v10222_v2 = vld [vmem:[%s14139_s1 + $0x12c8] ss:$16 sps:$4 sm:$0xff]  }
 0x224   : > { %6888 = vmatprep.subr.bf16.mxu0 %v10137_v3  ;;  %7576 = vmatprep.subr.bf16.mxu1 %v10140_v4  ;;  %v10227_v3 = vld [vmem:[%s14139_s1 + $0x12e4] ss:$16 sps:$4 sm:$0xff]   ;;  %v10230_v4 = vld [vmem:[%s14139_s1 + $0x12ec] ss:$16 sps:$4 sm:$0xff]  }
 0x227   : > { %6889 = vmatpush1.bf16.msra.mxu0 %v10135_v5  ;;  %7577 = vmatpush1.bf16.msra.mxu1 %v10138_v6  ;;  %v10225_v5 = vld [vmem:[%s14139_s1 + $0x12e0] ss:$16 sps:$4 sm:$0xff]   ;;  %v10228_v6 = vld [vmem:[%s14139_s1 + $0x12e8] ss:$16 sps:$4 sm:$0xff]  }
 0x228   : > { %6890 = vmatprep.subr.bf16.mxu0 %v10143_v7  ;;  %7578 = vmatprep.subr.bf16.mxu1 %v10146_v8  ;;  %v10233_v7 = vld [vmem:[%s14139_s1 + $0x1304] ss:$16 sps:$4 sm:$0xff]   ;;  %v10236_v8 = vld [vmem:[%s14139_s1 + $0x130c] ss:$16 sps:$4 sm:$0xff]  }
 0x22b   : > { %6891 = vmatpush1.bf16.msra.mxu0 %v10141_v9  ;;  %7579 = vmatpush1.bf16.msra.mxu1 %v10144_v10  ;;  %v10231_v9 = vld [vmem:[%s14139_s1 + $0x1300] ss:$16 sps:$4 sm:$0xff]   ;;  %v10234_v10 = vld [vmem:[%s14139_s1 + $0x1308] ss:$16 sps:$4 sm:$0xff]  }
 0x22c   : > { %6892 = vmatprep.subr.bf16.mxu0 %v10149_v11  ;;  %7580 = vmatprep.subr.bf16.mxu1 %v10152_v12  ;;  %v10239_v11 = vld [vmem:[%s14139_s1 + $0x1324] ss:$16 sps:$4 sm:$0xff]   ;;  %v10242_v12 = vld [vmem:[%s14139_s1 + $0x132c] ss:$16 sps:$4 sm:$0xff]  }
 0x22f   : > { %6893 = vmatpush1.bf16.msra.mxu0 %v10147_v13  ;;  %7581 = vmatpush1.bf16.msra.mxu1 %v10150_v16  ;;  %v10237_v13 = vld [vmem:[%s14139_s1 + $0x1320] ss:$16 sps:$4 sm:$0xff]   ;;  %v10240_v16 = vld [vmem:[%s14139_s1 + $0x1328] ss:$16 sps:$4 sm:$0xff]  }
 0x230   : > { %6894 = vmatprep.subr.bf16.mxu0 %v10155_v17  ;;  %7582 = vmatprep.subr.bf16.mxu1 %v10158_v20  ;;  %v10245_v17 = vld [vmem:[%s14139_s1 + $0x1344] ss:$16 sps:$4 sm:$0xff]   ;;  %v10248_v20 = vld [vmem:[%s14139_s1 + $0x134c] ss:$16 sps:$4 sm:$0xff]  }
 0x233   : > { %6895 = vmatpush1.bf16.msra.mxu0 %v10153_v22  ;;  %7583 = vmatpush1.bf16.msra.mxu1 %v10156_v15  ;;  %v10243_v22 = vld [vmem:[%s14139_s1 + $0x1340] ss:$16 sps:$4 sm:$0xff]   ;;  %v10246_v15 = vld [vmem:[%s14139_s1 + $0x1348] ss:$16 sps:$4 sm:$0xff]  }
 0x234   : > { %6896 = vmatprep.subr.bf16.mxu0 %v10161_v23  ;;  %7584 = vmatprep.subr.bf16.mxu1 %v10164_v24  ;;  %v10251_v23 = vld [vmem:[%s14139_s1 + $0x1364] ss:$16 sps:$4 sm:$0xff]   ;;  %v10254_v24 = vld [vmem:[%s14139_s1 + $0x136c] ss:$16 sps:$4 sm:$0xff]  }
 0x237   : > { %6897 = vmatpush1.bf16.msra.mxu0 %v10159_v25  ;;  %7585 = vmatpush1.bf16.msra.mxu1 %v10162_v26  ;;  %v10249_v25 = vld [vmem:[%s14139_s1 + $0x1360] ss:$16 sps:$4 sm:$0xff]   ;;  %v10252_v26 = vld [vmem:[%s14139_s1 + $0x1368] ss:$16 sps:$4 sm:$0xff]  }
 0x238   : > { %6898 = vmatprep.subr.bf16.mxu0 %v10167_v27  ;;  %7586 = vmatprep.subr.bf16.mxu1 %v10170_v28  ;;  %v10257_v27 = vld [vmem:[%s14139_s1 + $0x1384] ss:$16 sps:$4 sm:$0xff]   ;;  %v10260_v28 = vld [vmem:[%s14139_s1 + $0x138c] ss:$16 sps:$4 sm:$0xff]  }
 0x23b   : > { %6899 = vmatpush1.bf16.msra.mxu0 %v10165_v29  ;;  %7587 = vmatpush1.bf16.msra.mxu1 %v10168_v30  ;;  %v10255_v29 = vld [vmem:[%s14139_s1 + $0x1380] ss:$16 sps:$4 sm:$0xff]   ;;  %v10258_v30 = vld [vmem:[%s14139_s1 + $0x1388] ss:$16 sps:$4 sm:$0xff]  }
 0x23c   : > { %6900 = vmatprep.subr.bf16.mxu0 %v10173_v31  ;;  %7588 = vmatprep.subr.bf16.mxu1 %v10176_v32  ;;  %v10263_v31 = vld [vmem:[%s14139_s1 + $0x13a4] ss:$16 sps:$4 sm:$0xff]   ;;  %v10266_v32 = vld [vmem:[%s14139_s1 + $0x13ac] ss:$16 sps:$4 sm:$0xff]  }
 0x23f   : > { %6901 = vmatpush1.bf16.msra.mxu0 %v10171_v33  ;;  %7589 = vmatpush1.bf16.msra.mxu1 %v10174_v34  ;;  %v10261_v33 = vld [vmem:[%s14139_s1 + $0x13a0] ss:$16 sps:$4 sm:$0xff]   ;;  %v10264_v34 = vld [vmem:[%s14139_s1 + $0x13a8] ss:$16 sps:$4 sm:$0xff]  }
 0x240   : > { %6902 = vmatprep.subr.bf16.mxu0 %v10179_v35  ;;  %7590 = vmatprep.subr.bf16.mxu1 %v10182_v36  ;;  %v10269_v35 = vld [vmem:[%s14139_s1 + $0x13c4] ss:$16 sps:$4 sm:$0xff]   ;;  %v10272_v36 = vld [vmem:[%s14139_s1 + $0x13cc] ss:$16 sps:$4 sm:$0xff]  }
 0x243   : > { %6903 = vmatpush1.bf16.msra.mxu0 %v10177_v37  ;;  %7591 = vmatpush1.bf16.msra.mxu1 %v10180_v38  ;;  %v10267_v37 = vld [vmem:[%s14139_s1 + $0x13c0] ss:$16 sps:$4 sm:$0xff]   ;;  %v10270_v38 = vld [vmem:[%s14139_s1 + $0x13c8] ss:$16 sps:$4 sm:$0xff]  }
 0x244   : > { %6915 = vmatprep.subr.bf16.mxu0 %v10185_v39  ;;  %7603 = vmatprep.subr.bf16.mxu1 %v10188_v40  ;;  %v10275_v39 = vld [vmem:[%s14139_s1 + $0x13e4] ss:$16 sps:$4 sm:$0xff]   ;;  %v10278_v40 = vld [vmem:[%s14139_s1 + $0x13ec] ss:$16 sps:$4 sm:$0xff]  }
 0x246   : > { %6905 = vmatmul.mubr.bf16.vlgmr.msra.gmra.mrb[0].mxu0 %v8138_v41  ;;  %7593 = vmatmul.mubr.bf16.vlgmr.msra.gmra.mrb[0].mxu1 %v8138_v41  ;;  %v10273_v41 = vld [vmem:[%s14139_s1 + $0x13e0] ss:$16 sps:$4 sm:$0xff]  }
 0x247   : > { %6916 = vmatpush1.bf16.msra.mxu0 %v10183_v42  ;;  %7604 = vmatpush1.bf16.msra.mxu1 %v10186_v43  ;;  %v10276_v42 = vld [vmem:[%s14139_s1 + $0x13e8] ss:$16 sps:$4 sm:$0xff]   ;;  %v10281_v43 = vld [vmem:[%s14139_s1 + $0x1404] ss:$16 sps:$4 sm:$0xff]  }
 0x248   : > { %6917 = vmatprep.subr.bf16.mxu0 %v10191_v44  ;;  %7605 = vmatprep.subr.bf16.mxu1 %v10194_v21  ;;  %v10284_v44 = vld [vmem:[%s14139_s1 + $0x140c] ss:$16 sps:$4 sm:$0xff]   ;;  %v8140_v21 = vcombine.low %v12717_v18, %v12720_v19  ;;  %v10287_v18 = vld [vmem:[%s14139_s1 + $0x1424] ss:$16 sps:$4 sm:$0xff]  }
 0x249   : > { %6947 = vmatprep.mubr.bf16.mxu0 %v8141_v14  ;;  %7635 = vmatprep.mubr.bf16.mxu1 %v8141_v14  ;;  %v12921_v14 = vld [vmem:[%s11032_s5 + $0x50] sm:$0xff]  ;;  %v10290_v19 = vld [vmem:[%s14139_s1 + $0x142c] ss:$16 sps:$4 sm:$0xff]  }
 0x24b   : > { %6918 = vmatpush1.bf16.msra.mxu0 %v10189_v45  ;;  %7606 = vmatpush1.bf16.msra.mxu1 %v10192_v46  ;;  %v12924_v45 = vld [vmem:[%s11032_s5 + $0xd0] sm:$0xff] }
 0x24c   : > { %6919 = vmatprep.subr.bf16.mxu0 %v10197_v47  ;;  %7607 = vmatprep.subr.bf16.mxu1 %v10200_v48  ;;  %v10279_v46 = vld [vmem:[%s14139_s1 + $0x1400] ss:$16 sps:$4 sm:$0xff]   ;;  %v10282_v47 = vld [vmem:[%s14139_s1 + $0x1408] ss:$16 sps:$4 sm:$0xff]   ;;  %v8143_v48 = vcombine.high %v12921_v14, %v12924_v45 }
 0x24f   : > { %6920 = vmatpush1.bf16.msra.mxu0 %v10195_v49  ;;  %7608 = vmatpush1.bf16.msra.mxu1 %v10198_v50  ;;  %v10285_v49 = vld [vmem:[%s14139_s1 + $0x1420] ss:$16 sps:$4 sm:$0xff]   ;;  %v10288_v50 = vld [vmem:[%s14139_s1 + $0x1428] ss:$16 sps:$4 sm:$0xff]  }
 0x250   : > { %6921 = vmatprep.subr.bf16.mxu0 %v10203_v51  ;;  %7609 = vmatprep.subr.bf16.mxu1 %v10206_v52  ;;  %v10293_v51 = vld [vmem:[%s14139_s1 + $0x1444] ss:$16 sps:$4 sm:$0xff]   ;;  %v10296_v52 = vld [vmem:[%s14139_s1 + $0x144c] ss:$16 sps:$4 sm:$0xff]  }
 0x253   : > { %6922 = vmatpush1.bf16.msra.mxu0 %v10201_v53  ;;  %7610 = vmatpush1.bf16.msra.mxu1 %v10204_v54  ;;  %v10291_v53 = vld [vmem:[%s14139_s1 + $0x1440] ss:$16 sps:$4 sm:$0xff]   ;;  %v10294_v54 = vld [vmem:[%s14139_s1 + $0x1448] ss:$16 sps:$4 sm:$0xff]  }
 0x254   : > { %6923 = vmatprep.subr.bf16.mxu0 %v10209_v55  ;;  %7611 = vmatprep.subr.bf16.mxu1 %v10212_v56  ;;  %v10299_v55 = vld [vmem:[%s14139_s1 + $0x1464] ss:$16 sps:$4 sm:$0xff]   ;;  %v10302_v56 = vld [vmem:[%s14139_s1 + $0x146c] ss:$16 sps:$4 sm:$0xff]  }
 0x257   : > { %6924 = vmatpush1.bf16.msra.mxu0 %v10207_v57  ;;  %7612 = vmatpush1.bf16.msra.mxu1 %v10210_v58  ;;  %v10297_v57 = vld [vmem:[%s14139_s1 + $0x1460] ss:$16 sps:$4 sm:$0xff]   ;;  %v10300_v58 = vld [vmem:[%s14139_s1 + $0x1468] ss:$16 sps:$4 sm:$0xff]  }
 0x258   : > { %6925 = vmatprep.subr.bf16.mxu0 %v10215_v59  ;;  %7613 = vmatprep.subr.bf16.mxu1 %v10218_v60  ;;  %v10305_v59 = vld [vmem:[%s14139_s1 + $0x1484] ss:$16 sps:$4 sm:$0xff]   ;;  %v10308_v60 = vld [vmem:[%s14139_s1 + $0x148c] ss:$16 sps:$4 sm:$0xff]  }
 0x25b   : > { %6926 = vmatpush1.bf16.msra.mxu0 %v10213_v61  ;;  %7614 = vmatpush1.bf16.msra.mxu1 %v10216_v62  ;;  %v10303_v61 = vld [vmem:[%s14139_s1 + $0x1480] ss:$16 sps:$4 sm:$0xff]   ;;  %v10306_v62 = vld [vmem:[%s14139_s1 + $0x1488] ss:$16 sps:$4 sm:$0xff]  }
 0x25c   : > { %6927 = vmatprep.subr.bf16.mxu0 %v10221_v63  ;;  %7615 = vmatprep.subr.bf16.mxu1 %v10224_v0  ;;  %v10311_v63 = vld [vmem:[%s14139_s1 + $0x14a4] ss:$16 sps:$4 sm:$0xff]   ;;  %v10314_v0 = vld [vmem:[%s14139_s1 + $0x14ac] ss:$16 sps:$4 sm:$0xff]  }
 0x25f   : > { %6928 = vmatpush1.bf16.msra.mxu0 %v10219_v1  ;;  %7616 = vmatpush1.bf16.msra.mxu1 %v10222_v2  ;;  %v10309_v1 = vld [vmem:[%s14139_s1 + $0x14a0] ss:$16 sps:$4 sm:$0xff]   ;;  %v10312_v2 = vld [vmem:[%s14139_s1 + $0x14a8] ss:$16 sps:$4 sm:$0xff]  }
 0x260   : > { %6929 = vmatprep.subr.bf16.mxu0 %v10227_v3  ;;  %7617 = vmatprep.subr.bf16.mxu1 %v10230_v4  ;;  %v10317_v3 = vld [vmem:[%s14139_s1 + $0x14c4] ss:$16 sps:$4 sm:$0xff]   ;;  %v10320_v4 = vld [vmem:[%s14139_s1 + $0x14cc] ss:$16 sps:$4 sm:$0xff]  }
 0x263   : > { %6930 = vmatpush1.bf16.msra.mxu0 %v10225_v5  ;;  %7618 = vmatpush1.bf16.msra.mxu1 %v10228_v6  ;;  %v10315_v5 = vld [vmem:[%s14139_s1 + $0x14c0] ss:$16 sps:$4 sm:$0xff]   ;;  %v10318_v6 = vld [vmem:[%s14139_s1 + $0x14c8] ss:$16 sps:$4 sm:$0xff]  }
 0x264   : > { %6931 = vmatprep.subr.bf16.mxu0 %v10233_v7  ;;  %7619 = vmatprep.subr.bf16.mxu1 %v10236_v8  ;;  %v10323_v7 = vld [vmem:[%s14139_s1 + $0x14e4] ss:$16 sps:$4 sm:$0xff]   ;;  %v10326_v8 = vld [vmem:[%s14139_s1 + $0x14ec] ss:$16 sps:$4 sm:$0xff]  }
 0x267   : > { %6932 = vmatpush1.bf16.msra.mxu0 %v10231_v9  ;;  %7620 = vmatpush1.bf16.msra.mxu1 %v10234_v10  ;;  %v10321_v9 = vld [vmem:[%s14139_s1 + $0x14e0] ss:$16 sps:$4 sm:$0xff]   ;;  %v10324_v10 = vld [vmem:[%s14139_s1 + $0x14e8] ss:$16 sps:$4 sm:$0xff]  }
 0x268   : > { %6933 = vmatprep.subr.bf16.mxu0 %v10239_v11  ;;  %7621 = vmatprep.subr.bf16.mxu1 %v10242_v12  ;;  %v10329_v11 = vld [vmem:[%s14139_s1 + $0x1504] ss:$16 sps:$4 sm:$0xff]   ;;  %v10332_v12 = vld [vmem:[%s14139_s1 + $0x150c] ss:$16 sps:$4 sm:$0xff]  }
 0x26b   : > { %6934 = vmatpush1.bf16.msra.mxu0 %v10237_v13  ;;  %7622 = vmatpush1.bf16.msra.mxu1 %v10240_v16  ;;  %v10327_v13 = vld [vmem:[%s14139_s1 + $0x1500] ss:$16 sps:$4 sm:$0xff]   ;;  %v10330_v16 = vld [vmem:[%s14139_s1 + $0x1508] ss:$16 sps:$4 sm:$0xff]  }
 0x26c   : > { %6935 = vmatprep.subr.bf16.mxu0 %v10245_v17  ;;  %7623 = vmatprep.subr.bf16.mxu1 %v10248_v20  ;;  %v10335_v17 = vld [vmem:[%s14139_s1 + $0x1524] ss:$16 sps:$4 sm:$0xff]   ;;  %v10338_v20 = vld [vmem:[%s14139_s1 + $0x152c] ss:$16 sps:$4 sm:$0xff]  }
 0x26f   : > { %6936 = vmatpush1.bf16.msra.mxu0 %v10243_v22  ;;  %7624 = vmatpush1.bf16.msra.mxu1 %v10246_v15  ;;  %v10333_v22 = vld [vmem:[%s14139_s1 + $0x1520] ss:$16 sps:$4 sm:$0xff]   ;;  %v10336_v15 = vld [vmem:[%s14139_s1 + $0x1528] ss:$16 sps:$4 sm:$0xff]  }
 0x270   : > { %6937 = vmatprep.subr.bf16.mxu0 %v10251_v23  ;;  %7625 = vmatprep.subr.bf16.mxu1 %v10254_v24  ;;  %v10341_v23 = vld [vmem:[%s14139_s1 + $0x1544] ss:$16 sps:$4 sm:$0xff]   ;;  %v10344_v24 = vld [vmem:[%s14139_s1 + $0x154c] ss:$16 sps:$4 sm:$0xff]  }
 0x273   : > { %6938 = vmatpush1.bf16.msra.mxu0 %v10249_v25  ;;  %7626 = vmatpush1.bf16.msra.mxu1 %v10252_v26  ;;  %v10339_v25 = vld [vmem:[%s14139_s1 + $0x1540] ss:$16 sps:$4 sm:$0xff]   ;;  %v10342_v26 = vld [vmem:[%s14139_s1 + $0x1548] ss:$16 sps:$4 sm:$0xff]  }
 0x274   : > { %6939 = vmatprep.subr.bf16.mxu0 %v10257_v27  ;;  %7627 = vmatprep.subr.bf16.mxu1 %v10260_v28  ;;  %v10347_v27 = vld [vmem:[%s14139_s1 + $0x1564] ss:$16 sps:$4 sm:$0xff]   ;;  %v10350_v28 = vld [vmem:[%s14139_s1 + $0x156c] ss:$16 sps:$4 sm:$0xff]  }
 0x277   : > { %6940 = vmatpush1.bf16.msra.mxu0 %v10255_v29  ;;  %7628 = vmatpush1.bf16.msra.mxu1 %v10258_v30  ;;  %v10345_v29 = vld [vmem:[%s14139_s1 + $0x1560] ss:$16 sps:$4 sm:$0xff]   ;;  %v10348_v30 = vld [vmem:[%s14139_s1 + $0x1568] ss:$16 sps:$4 sm:$0xff]  }
 0x278   : > { %6941 = vmatprep.subr.bf16.mxu0 %v10263_v31  ;;  %7629 = vmatprep.subr.bf16.mxu1 %v10266_v32  ;;  %v10353_v31 = vld [vmem:[%s14139_s1 + $0x1584] ss:$16 sps:$4 sm:$0xff]   ;;  %v10356_v32 = vld [vmem:[%s14139_s1 + $0x158c] ss:$16 sps:$4 sm:$0xff]  }
 0x27b   : > { %6942 = vmatpush1.bf16.msra.mxu0 %v10261_v33  ;;  %7630 = vmatpush1.bf16.msra.mxu1 %v10264_v34  ;;  %v10351_v33 = vld [vmem:[%s14139_s1 + $0x1580] ss:$16 sps:$4 sm:$0xff]   ;;  %v10354_v34 = vld [vmem:[%s14139_s1 + $0x1588] ss:$16 sps:$4 sm:$0xff]  }
 0x27c   : > { %6943 = vmatprep.subr.bf16.mxu0 %v10269_v35  ;;  %7631 = vmatprep.subr.bf16.mxu1 %v10272_v36  ;;  %v10359_v35 = vld [vmem:[%s14139_s1 + $0x15a4] ss:$16 sps:$4 sm:$0xff]   ;;  %v10362_v36 = vld [vmem:[%s14139_s1 + $0x15ac] ss:$16 sps:$4 sm:$0xff]  }
 0x27f   : > { %6944 = vmatpush1.bf16.msra.mxu0 %v10267_v37  ;;  %7632 = vmatpush1.bf16.msra.mxu1 %v10270_v38  ;;  %v10357_v37 = vld [vmem:[%s14139_s1 + $0x15a0] ss:$16 sps:$4 sm:$0xff]   ;;  %v10360_v38 = vld [vmem:[%s14139_s1 + $0x15a8] ss:$16 sps:$4 sm:$0xff]  }
 0x280   : > { %6945 = vmatprep.subr.bf16.mxu0 %v10275_v39  ;;  %7633 = vmatprep.subr.bf16.mxu1 %v10278_v40  ;;  %v10365_v39 = vld [vmem:[%s14139_s1 + $0x15c4] ss:$16 sps:$4 sm:$0xff]   ;;  %v10368_v40 = vld [vmem:[%s14139_s1 + $0x15cc] ss:$16 sps:$4 sm:$0xff]  }
 0x283   : > { %6946 = vmatpush1.bf16.msra.mxu0 %v10273_v41  ;;  %7634 = vmatpush1.bf16.msra.mxu1 %v10276_v42  ;;  %v10363_v41 = vld [vmem:[%s14139_s1 + $0x15c0] ss:$16 sps:$4 sm:$0xff]   ;;  %v10366_v42 = vld [vmem:[%s14139_s1 + $0x15c8] ss:$16 sps:$4 sm:$0xff]  }
 0x284   : > { %6958 = vmatprep.subr.bf16.mxu0 %v10281_v43  ;;  %7646 = vmatprep.subr.bf16.mxu1 %v10284_v44  ;;  %v10371_v43 = vld [vmem:[%s14139_s1 + $0x15e4] ss:$16 sps:$4 sm:$0xff]   ;;  %v10374_v44 = vld [vmem:[%s14139_s1 + $0x15ec] ss:$16 sps:$4 sm:$0xff]  }
 0x286   : > { %6948 = vmatmul.mubr.bf16.vlgmr.msra.gmra.mrb[0].mxu0 %v8140_v21  ;;  %7636 = vmatmul.mubr.bf16.vlgmr.msra.gmra.mrb[0].mxu1 %v8140_v21  ;;  %v10369_v21 = vld [vmem:[%s14139_s1 + $0x15e0] ss:$16 sps:$4 sm:$0xff]  }
 0x287   : > { %6959 = vmatpush1.bf16.msra.mxu0 %v10279_v46  ;;  %7647 = vmatpush1.bf16.msra.mxu1 %v10282_v47  ;;  %v10372_v46 = vld [vmem:[%s14139_s1 + $0x15e8] ss:$16 sps:$4 sm:$0xff]   ;;  %v10377_v47 = vld [vmem:[%s14139_s1 + $0x1604] ss:$16 sps:$4 sm:$0xff]  }
 0x288   : > { %6960 = vmatprep.subr.bf16.mxu0 %v10287_v18  ;;  %7648 = vmatprep.subr.bf16.mxu1 %v10290_v19  ;;  %v10380_v18 = vld [vmem:[%s14139_s1 + $0x160c] ss:$16 sps:$4 sm:$0xff]   ;;  %v8142_v19 = vcombine.low %v12921_v14, %v12924_v45  ;;  %v10383_v14 = vld [vmem:[%s14139_s1 + $0x1624] ss:$16 sps:$4 sm:$0xff]  }
 0x289   : > { %6990 = vmatprep.mubr.bf16.mxu0 %v8143_v48  ;;  %7678 = vmatprep.mubr.bf16.mxu1 %v8143_v48  ;;  %v13123_v48 = vld [vmem:[%s11032_s5 + $0x58] sm:$0xff] }
 0x28a   : > { %v10386_v45 = vld [vmem:[%s14139_s1 + $0x162c] ss:$16 sps:$4 sm:$0xff]  }
 0x28b   : > { %6961 = vmatpush1.bf16.msra.mxu0 %v10285_v49  ;;  %7649 = vmatpush1.bf16.msra.mxu1 %v10288_v50  ;;  %v13126_v49 = vld [vmem:[%s11032_s5 + $0xd8] sm:$0xff]  ;;  %v10375_v50 = vld [vmem:[%s14139_s1 + $0x1600] ss:$16 sps:$4 sm:$0xff]  }
 0x28c   : > { %6962 = vmatprep.subr.bf16.mxu0 %v10293_v51  ;;  %7650 = vmatprep.subr.bf16.mxu1 %v10296_v52  ;;  %v10378_v51 = vld [vmem:[%s14139_s1 + $0x1608] ss:$16 sps:$4 sm:$0xff]   ;;  %v8145_v52 = vcombine.high %v13123_v48, %v13126_v49 }
 0x28f   : > { %6963 = vmatpush1.bf16.msra.mxu0 %v10291_v53  ;;  %7651 = vmatpush1.bf16.msra.mxu1 %v10294_v54  ;;  %v10381_v53 = vld [vmem:[%s14139_s1 + $0x1620] ss:$16 sps:$4 sm:$0xff]   ;;  %v10384_v54 = vld [vmem:[%s14139_s1 + $0x1628] ss:$16 sps:$4 sm:$0xff]  }
 0x290   : > { %6964 = vmatprep.subr.bf16.mxu0 %v10299_v55  ;;  %7652 = vmatprep.subr.bf16.mxu1 %v10302_v56  ;;  %v10389_v55 = vld [vmem:[%s14139_s1 + $0x1644] ss:$16 sps:$4 sm:$0xff]   ;;  %v10392_v56 = vld [vmem:[%s14139_s1 + $0x164c] ss:$16 sps:$4 sm:$0xff]  }
 0x293   : > { %6965 = vmatpush1.bf16.msra.mxu0 %v10297_v57  ;;  %7653 = vmatpush1.bf16.msra.mxu1 %v10300_v58  ;;  %v10387_v57 = vld [vmem:[%s14139_s1 + $0x1640] ss:$16 sps:$4 sm:$0xff]   ;;  %v10390_v58 = vld [vmem:[%s14139_s1 + $0x1648] ss:$16 sps:$4 sm:$0xff]  }
 0x294   : > { %6966 = vmatprep.subr.bf16.mxu0 %v10305_v59  ;;  %7654 = vmatprep.subr.bf16.mxu1 %v10308_v60  ;;  %v10395_v59 = vld [vmem:[%s14139_s1 + $0x1664] ss:$16 sps:$4 sm:$0xff]   ;;  %v10398_v60 = vld [vmem:[%s14139_s1 + $0x166c] ss:$16 sps:$4 sm:$0xff]  }
 0x297   : > { %6967 = vmatpush1.bf16.msra.mxu0 %v10303_v61  ;;  %7655 = vmatpush1.bf16.msra.mxu1 %v10306_v62  ;;  %v10393_v61 = vld [vmem:[%s14139_s1 + $0x1660] ss:$16 sps:$4 sm:$0xff]   ;;  %v10396_v62 = vld [vmem:[%s14139_s1 + $0x1668] ss:$16 sps:$4 sm:$0xff]  }
 0x298   : > { %6968 = vmatprep.subr.bf16.mxu0 %v10311_v63  ;;  %7656 = vmatprep.subr.bf16.mxu1 %v10314_v0  ;;  %v10401_v63 = vld [vmem:[%s14139_s1 + $0x1684] ss:$16 sps:$4 sm:$0xff]   ;;  %v10404_v0 = vld [vmem:[%s14139_s1 + $0x168c] ss:$16 sps:$4 sm:$0xff]  }
 0x29b   : > { %6969 = vmatpush1.bf16.msra.mxu0 %v10309_v1  ;;  %7657 = vmatpush1.bf16.msra.mxu1 %v10312_v2  ;;  %v10399_v1 = vld [vmem:[%s14139_s1 + $0x1680] ss:$16 sps:$4 sm:$0xff]   ;;  %v10402_v2 = vld [vmem:[%s14139_s1 + $0x1688] ss:$16 sps:$4 sm:$0xff]  }
 0x29c   : > { %6970 = vmatprep.subr.bf16.mxu0 %v10317_v3  ;;  %7658 = vmatprep.subr.bf16.mxu1 %v10320_v4  ;;  %v10407_v3 = vld [vmem:[%s14139_s1 + $0x16a4] ss:$16 sps:$4 sm:$0xff]   ;;  %v10410_v4 = vld [vmem:[%s14139_s1 + $0x16ac] ss:$16 sps:$4 sm:$0xff]  }
 0x29f   : > { %6971 = vmatpush1.bf16.msra.mxu0 %v10315_v5  ;;  %7659 = vmatpush1.bf16.msra.mxu1 %v10318_v6  ;;  %v10405_v5 = vld [vmem:[%s14139_s1 + $0x16a0] ss:$16 sps:$4 sm:$0xff]   ;;  %v10408_v6 = vld [vmem:[%s14139_s1 + $0x16a8] ss:$16 sps:$4 sm:$0xff]  }
 0x2a0   : > { %6972 = vmatprep.subr.bf16.mxu0 %v10323_v7  ;;  %7660 = vmatprep.subr.bf16.mxu1 %v10326_v8  ;;  %v10413_v7 = vld [vmem:[%s14139_s1 + $0x16c4] ss:$16 sps:$4 sm:$0xff]   ;;  %v10416_v8 = vld [vmem:[%s14139_s1 + $0x16cc] ss:$16 sps:$4 sm:$0xff]  }
 0x2a3   : > { %6973 = vmatpush1.bf16.msra.mxu0 %v10321_v9  ;;  %7661 = vmatpush1.bf16.msra.mxu1 %v10324_v10  ;;  %v10411_v9 = vld [vmem:[%s14139_s1 + $0x16c0] ss:$16 sps:$4 sm:$0xff]   ;;  %v10414_v10 = vld [vmem:[%s14139_s1 + $0x16c8] ss:$16 sps:$4 sm:$0xff]  }
 0x2a4   : > { %6974 = vmatprep.subr.bf16.mxu0 %v10329_v11  ;;  %7662 = vmatprep.subr.bf16.mxu1 %v10332_v12  ;;  %v10419_v11 = vld [vmem:[%s14139_s1 + $0x16e4] ss:$16 sps:$4 sm:$0xff]   ;;  %v10422_v12 = vld [vmem:[%s14139_s1 + $0x16ec] ss:$16 sps:$4 sm:$0xff]  }
 0x2a7   : > { %6975 = vmatpush1.bf16.msra.mxu0 %v10327_v13  ;;  %7663 = vmatpush1.bf16.msra.mxu1 %v10330_v16  ;;  %v10417_v13 = vld [vmem:[%s14139_s1 + $0x16e0] ss:$16 sps:$4 sm:$0xff]   ;;  %v10420_v16 = vld [vmem:[%s14139_s1 + $0x16e8] ss:$16 sps:$4 sm:$0xff]  }
 0x2a8   : > { %6976 = vmatprep.subr.bf16.mxu0 %v10335_v17  ;;  %7664 = vmatprep.subr.bf16.mxu1 %v10338_v20  ;;  %v10425_v17 = vld [vmem:[%s14139_s1 + $0x1704] ss:$16 sps:$4 sm:$0xff]   ;;  %v10428_v20 = vld [vmem:[%s14139_s1 + $0x170c] ss:$16 sps:$4 sm:$0xff]  }
 0x2ab   : > { %6977 = vmatpush1.bf16.msra.mxu0 %v10333_v22  ;;  %7665 = vmatpush1.bf16.msra.mxu1 %v10336_v15  ;;  %v10423_v22 = vld [vmem:[%s14139_s1 + $0x1700] ss:$16 sps:$4 sm:$0xff]   ;;  %v10426_v15 = vld [vmem:[%s14139_s1 + $0x1708] ss:$16 sps:$4 sm:$0xff]  }
 0x2ac   : > { %6978 = vmatprep.subr.bf16.mxu0 %v10341_v23  ;;  %7666 = vmatprep.subr.bf16.mxu1 %v10344_v24  ;;  %v10431_v23 = vld [vmem:[%s14139_s1 + $0x1724] ss:$16 sps:$4 sm:$0xff]   ;;  %v10434_v24 = vld [vmem:[%s14139_s1 + $0x172c] ss:$16 sps:$4 sm:$0xff]  }
 0x2af   : > { %6979 = vmatpush1.bf16.msra.mxu0 %v10339_v25  ;;  %7667 = vmatpush1.bf16.msra.mxu1 %v10342_v26  ;;  %v10429_v25 = vld [vmem:[%s14139_s1 + $0x1720] ss:$16 sps:$4 sm:$0xff]   ;;  %v10432_v26 = vld [vmem:[%s14139_s1 + $0x1728] ss:$16 sps:$4 sm:$0xff]  }
 0x2b0   : > { %6980 = vmatprep.subr.bf16.mxu0 %v10347_v27  ;;  %7668 = vmatprep.subr.bf16.mxu1 %v10350_v28  ;;  %v10437_v27 = vld [vmem:[%s14139_s1 + $0x1744] ss:$16 sps:$4 sm:$0xff]   ;;  %v10440_v28 = vld [vmem:[%s14139_s1 + $0x174c] ss:$16 sps:$4 sm:$0xff]  }
 0x2b3   : > { %6981 = vmatpush1.bf16.msra.mxu0 %v10345_v29  ;;  %7669 = vmatpush1.bf16.msra.mxu1 %v10348_v30  ;;  %v10435_v29 = vld [vmem:[%s14139_s1 + $0x1740] ss:$16 sps:$4 sm:$0xff]   ;;  %v10438_v30 = vld [vmem:[%s14139_s1 + $0x1748] ss:$16 sps:$4 sm:$0xff]  }
 0x2b4   : > { %6982 = vmatprep.subr.bf16.mxu0 %v10353_v31  ;;  %7670 = vmatprep.subr.bf16.mxu1 %v10356_v32  ;;  %v10443_v31 = vld [vmem:[%s14139_s1 + $0x1764] ss:$16 sps:$4 sm:$0xff]   ;;  %v10446_v32 = vld [vmem:[%s14139_s1 + $0x176c] ss:$16 sps:$4 sm:$0xff]  }
 0x2b7   : > { %6983 = vmatpush1.bf16.msra.mxu0 %v10351_v33  ;;  %7671 = vmatpush1.bf16.msra.mxu1 %v10354_v34  ;;  %v10441_v33 = vld [vmem:[%s14139_s1 + $0x1760] ss:$16 sps:$4 sm:$0xff]   ;;  %v10444_v34 = vld [vmem:[%s14139_s1 + $0x1768] ss:$16 sps:$4 sm:$0xff]  }
 0x2b8   : > { %6984 = vmatprep.subr.bf16.mxu0 %v10359_v35  ;;  %7672 = vmatprep.subr.bf16.mxu1 %v10362_v36  ;;  %v10449_v35 = vld [vmem:[%s14139_s1 + $0x1784] ss:$16 sps:$4 sm:$0xff]   ;;  %v10452_v36 = vld [vmem:[%s14139_s1 + $0x178c] ss:$16 sps:$4 sm:$0xff]  }
 0x2bb   : > { %6985 = vmatpush1.bf16.msra.mxu0 %v10357_v37  ;;  %7673 = vmatpush1.bf16.msra.mxu1 %v10360_v38  ;;  %v10447_v37 = vld [vmem:[%s14139_s1 + $0x1780] ss:$16 sps:$4 sm:$0xff]   ;;  %v10450_v38 = vld [vmem:[%s14139_s1 + $0x1788] ss:$16 sps:$4 sm:$0xff]  }
 0x2bc   : > { %6986 = vmatprep.subr.bf16.mxu0 %v10365_v39  ;;  %7674 = vmatprep.subr.bf16.mxu1 %v10368_v40  ;;  %v10455_v39 = vld [vmem:[%s14139_s1 + $0x17a4] ss:$16 sps:$4 sm:$0xff]   ;;  %v10458_v40 = vld [vmem:[%s14139_s1 + $0x17ac] ss:$16 sps:$4 sm:$0xff]  }
 0x2bf   : > { %6987 = vmatpush1.bf16.msra.mxu0 %v10363_v41  ;;  %7675 = vmatpush1.bf16.msra.mxu1 %v10366_v42  ;;  %v10453_v41 = vld [vmem:[%s14139_s1 + $0x17a0] ss:$16 sps:$4 sm:$0xff]   ;;  %v10456_v42 = vld [vmem:[%s14139_s1 + $0x17a8] ss:$16 sps:$4 sm:$0xff]  }
 0x2c0   : > { %6988 = vmatprep.subr.bf16.mxu0 %v10371_v43  ;;  %7676 = vmatprep.subr.bf16.mxu1 %v10374_v44  ;;  %v10461_v43 = vld [vmem:[%s14139_s1 + $0x17c4] ss:$16 sps:$4 sm:$0xff]   ;;  %v10464_v44 = vld [vmem:[%s14139_s1 + $0x17cc] ss:$16 sps:$4 sm:$0xff]  }
 0x2c3   : > { %6989 = vmatpush1.bf16.msra.mxu0 %v10369_v21  ;;  %7677 = vmatpush1.bf16.msra.mxu1 %v10372_v46  ;;  %v10459_v21 = vld [vmem:[%s14139_s1 + $0x17c0] ss:$16 sps:$4 sm:$0xff]   ;;  %v10462_v46 = vld [vmem:[%s14139_s1 + $0x17c8] ss:$16 sps:$4 sm:$0xff]  }
 0x2c4   : > { %7001 = vmatprep.subr.bf16.mxu0 %v10377_v47  ;;  %7689 = vmatprep.subr.bf16.mxu1 %v10380_v18  ;;  %v10467_v47 = vld [vmem:[%s14139_s1 + $0x17e4] ss:$16 sps:$4 sm:$0xff]   ;;  %v10470_v18 = vld [vmem:[%s14139_s1 + $0x17ec] ss:$16 sps:$4 sm:$0xff]  }
 0x2c6   : > { %6991 = vmatmul.mubr.bf16.vlgmr.msra.gmra.mrb[0].mxu0 %v8142_v19  ;;  %7679 = vmatmul.mubr.bf16.vlgmr.msra.gmra.mrb[0].mxu1 %v8142_v19  ;;  %v10465_v19 = vld [vmem:[%s14139_s1 + $0x17e0] ss:$16 sps:$4 sm:$0xff]  }
 0x2c7   : > { %7002 = vmatpush1.bf16.msra.mxu0 %v10375_v50  ;;  %7690 = vmatpush1.bf16.msra.mxu1 %v10378_v51  ;;  %v10468_v50 = vld [vmem:[%s14139_s1 + $0x17e8] ss:$16 sps:$4 sm:$0xff]   ;;  %v10473_v51 = vld [vmem:[%s14139_s1 + $0x1804] ss:$16 sps:$4 sm:$0xff]  }
 0x2c8   : > { %7003 = vmatprep.subr.bf16.mxu0 %v10383_v14  ;;  %7691 = vmatprep.subr.bf16.mxu1 %v10386_v45  ;;  %v10476_v14 = vld [vmem:[%s14139_s1 + $0x180c] ss:$16 sps:$4 sm:$0xff]   ;;  %v8144_v45 = vcombine.low %v13123_v48, %v13126_v49  ;;  %v10479_v48 = vld [vmem:[%s14139_s1 + $0x1824] ss:$16 sps:$4 sm:$0xff]  }
 0x2c9   : > { %7033 = vmatprep.mubr.bf16.mxu0 %v8145_v52  ;;  %7721 = vmatprep.mubr.bf16.mxu1 %v8145_v52  ;;  %v13325_v52 = vld [vmem:[%s11032_s5 + $0x60] sm:$0xff]  ;;  %v10482_v49 = vld [vmem:[%s14139_s1 + $0x182c] ss:$16 sps:$4 sm:$0xff]  }
 0x2cb   : > { %7004 = vmatpush1.bf16.msra.mxu0 %v10381_v53  ;;  %7692 = vmatpush1.bf16.msra.mxu1 %v10384_v54  ;;  %v13328_v53 = vld [vmem:[%s11032_s5 + $0xe0] sm:$0xff] }
 0x2cc   : > { %7005 = vmatprep.subr.bf16.mxu0 %v10389_v55  ;;  %7693 = vmatprep.subr.bf16.mxu1 %v10392_v56  ;;  %v10471_v54 = vld [vmem:[%s14139_s1 + $0x1800] ss:$16 sps:$4 sm:$0xff]   ;;  %v10474_v55 = vld [vmem:[%s14139_s1 + $0x1808] ss:$16 sps:$4 sm:$0xff]   ;;  %v8147_v56 = vcombine.high %v13325_v52, %v13328_v53 }
 0x2cf   : > { %7006 = vmatpush1.bf16.msra.mxu0 %v10387_v57  ;;  %7694 = vmatpush1.bf16.msra.mxu1 %v10390_v58  ;;  %v10477_v57 = vld [vmem:[%s14139_s1 + $0x1820] ss:$16 sps:$4 sm:$0xff]   ;;  %v10480_v58 = vld [vmem:[%s14139_s1 + $0x1828] ss:$16 sps:$4 sm:$0xff]  }
 0x2d0   : > { %7007 = vmatprep.subr.bf16.mxu0 %v10395_v59  ;;  %7695 = vmatprep.subr.bf16.mxu1 %v10398_v60  ;;  %v10485_v59 = vld [vmem:[%s14139_s1 + $0x1844] ss:$16 sps:$4 sm:$0xff]   ;;  %v10488_v60 = vld [vmem:[%s14139_s1 + $0x184c] ss:$16 sps:$4 sm:$0xff]  }
 0x2d3   : > { %7008 = vmatpush1.bf16.msra.mxu0 %v10393_v61  ;;  %7696 = vmatpush1.bf16.msra.mxu1 %v10396_v62  ;;  %v10483_v61 = vld [vmem:[%s14139_s1 + $0x1840] ss:$16 sps:$4 sm:$0xff]   ;;  %v10486_v62 = vld [vmem:[%s14139_s1 + $0x1848] ss:$16 sps:$4 sm:$0xff]  }
 0x2d4   : > { %7009 = vmatprep.subr.bf16.mxu0 %v10401_v63  ;;  %7697 = vmatprep.subr.bf16.mxu1 %v10404_v0  ;;  %v10491_v63 = vld [vmem:[%s14139_s1 + $0x1864] ss:$16 sps:$4 sm:$0xff]   ;;  %v10494_v0 = vld [vmem:[%s14139_s1 + $0x186c] ss:$16 sps:$4 sm:$0xff]  }
 0x2d7   : > { %7010 = vmatpush1.bf16.msra.mxu0 %v10399_v1  ;;  %7698 = vmatpush1.bf16.msra.mxu1 %v10402_v2  ;;  %v10489_v1 = vld [vmem:[%s14139_s1 + $0x1860] ss:$16 sps:$4 sm:$0xff]   ;;  %v10492_v2 = vld [vmem:[%s14139_s1 + $0x1868] ss:$16 sps:$4 sm:$0xff]  }
 0x2d8   : > { %7011 = vmatprep.subr.bf16.mxu0 %v10407_v3  ;;  %7699 = vmatprep.subr.bf16.mxu1 %v10410_v4  ;;  %v10497_v3 = vld [vmem:[%s14139_s1 + $0x1884] ss:$16 sps:$4 sm:$0xff]   ;;  %v10500_v4 = vld [vmem:[%s14139_s1 + $0x188c] ss:$16 sps:$4 sm:$0xff]  }
 0x2db   : > { %7012 = vmatpush1.bf16.msra.mxu0 %v10405_v5  ;;  %7700 = vmatpush1.bf16.msra.mxu1 %v10408_v6  ;;  %v10495_v5 = vld [vmem:[%s14139_s1 + $0x1880] ss:$16 sps:$4 sm:$0xff]   ;;  %v10498_v6 = vld [vmem:[%s14139_s1 + $0x1888] ss:$16 sps:$4 sm:$0xff]  }
 0x2dc   : > { %7013 = vmatprep.subr.bf16.mxu0 %v10413_v7  ;;  %7701 = vmatprep.subr.bf16.mxu1 %v10416_v8  ;;  %v10503_v7 = vld [vmem:[%s14139_s1 + $0x18a4] ss:$16 sps:$4 sm:$0xff]   ;;  %v10506_v8 = vld [vmem:[%s14139_s1 + $0x18ac] ss:$16 sps:$4 sm:$0xff]  }
 0x2df   : > { %7014 = vmatpush1.bf16.msra.mxu0 %v10411_v9  ;;  %7702 = vmatpush1.bf16.msra.mxu1 %v10414_v10  ;;  %v10501_v9 = vld [vmem:[%s14139_s1 + $0x18a0] ss:$16 sps:$4 sm:$0xff]   ;;  %v10504_v10 = vld [vmem:[%s14139_s1 + $0x18a8] ss:$16 sps:$4 sm:$0xff]  }
 0x2e0   : > { %7015 = vmatprep.subr.bf16.mxu0 %v10419_v11  ;;  %7703 = vmatprep.subr.bf16.mxu1 %v10422_v12  ;;  %v10509_v11 = vld [vmem:[%s14139_s1 + $0x18c4] ss:$16 sps:$4 sm:$0xff]   ;;  %v10512_v12 = vld [vmem:[%s14139_s1 + $0x18cc] ss:$16 sps:$4 sm:$0xff]  }
 0x2e3   : > { %7016 = vmatpush1.bf16.msra.mxu0 %v10417_v13  ;;  %7704 = vmatpush1.bf16.msra.mxu1 %v10420_v16  ;;  %v10507_v13 = vld [vmem:[%s14139_s1 + $0x18c0] ss:$16 sps:$4 sm:$0xff]   ;;  %v10510_v16 = vld [vmem:[%s14139_s1 + $0x18c8] ss:$16 sps:$4 sm:$0xff]  }
 0x2e4   : > { %7017 = vmatprep.subr.bf16.mxu0 %v10425_v17  ;;  %7705 = vmatprep.subr.bf16.mxu1 %v10428_v20  ;;  %v10515_v17 = vld [vmem:[%s14139_s1 + $0x18e4] ss:$16 sps:$4 sm:$0xff]   ;;  %v10518_v20 = vld [vmem:[%s14139_s1 + $0x18ec] ss:$16 sps:$4 sm:$0xff]  }
 0x2e7   : > { %7018 = vmatpush1.bf16.msra.mxu0 %v10423_v22  ;;  %7706 = vmatpush1.bf16.msra.mxu1 %v10426_v15  ;;  %v10513_v22 = vld [vmem:[%s14139_s1 + $0x18e0] ss:$16 sps:$4 sm:$0xff]   ;;  %v10516_v15 = vld [vmem:[%s14139_s1 + $0x18e8] ss:$16 sps:$4 sm:$0xff]  }
 0x2e8   : > { %7019 = vmatprep.subr.bf16.mxu0 %v10431_v23  ;;  %7707 = vmatprep.subr.bf16.mxu1 %v10434_v24  ;;  %v10521_v23 = vld [vmem:[%s14139_s1 + $0x1904] ss:$16 sps:$4 sm:$0xff]   ;;  %v10524_v24 = vld [vmem:[%s14139_s1 + $0x190c] ss:$16 sps:$4 sm:$0xff]  }
 0x2eb   : > { %7020 = vmatpush1.bf16.msra.mxu0 %v10429_v25  ;;  %7708 = vmatpush1.bf16.msra.mxu1 %v10432_v26  ;;  %v10519_v25 = vld [vmem:[%s14139_s1 + $0x1900] ss:$16 sps:$4 sm:$0xff]   ;;  %v10522_v26 = vld [vmem:[%s14139_s1 + $0x1908] ss:$16 sps:$4 sm:$0xff]  }
 0x2ec   : > { %7021 = vmatprep.subr.bf16.mxu0 %v10437_v27  ;;  %7709 = vmatprep.subr.bf16.mxu1 %v10440_v28  ;;  %v10527_v27 = vld [vmem:[%s14139_s1 + $0x1924] ss:$16 sps:$4 sm:$0xff]   ;;  %v10530_v28 = vld [vmem:[%s14139_s1 + $0x192c] ss:$16 sps:$4 sm:$0xff]  }
 0x2ef   : > { %7022 = vmatpush1.bf16.msra.mxu0 %v10435_v29  ;;  %7710 = vmatpush1.bf16.msra.mxu1 %v10438_v30  ;;  %v10525_v29 = vld [vmem:[%s14139_s1 + $0x1920] ss:$16 sps:$4 sm:$0xff]   ;;  %v10528_v30 = vld [vmem:[%s14139_s1 + $0x1928] ss:$16 sps:$4 sm:$0xff]  }
 0x2f0   : > { %7023 = vmatprep.subr.bf16.mxu0 %v10443_v31  ;;  %7711 = vmatprep.subr.bf16.mxu1 %v10446_v32  ;;  %v10533_v31 = vld [vmem:[%s14139_s1 + $0x1944] ss:$16 sps:$4 sm:$0xff]   ;;  %v10536_v32 = vld [vmem:[%s14139_s1 + $0x194c] ss:$16 sps:$4 sm:$0xff]  }
 0x2f3   : > { %7024 = vmatpush1.bf16.msra.mxu0 %v10441_v33  ;;  %7712 = vmatpush1.bf16.msra.mxu1 %v10444_v34  ;;  %v10531_v33 = vld [vmem:[%s14139_s1 + $0x1940] ss:$16 sps:$4 sm:$0xff]   ;;  %v10534_v34 = vld [vmem:[%s14139_s1 + $0x1948] ss:$16 sps:$4 sm:$0xff]  }
 0x2f4   : > { %7025 = vmatprep.subr.bf16.mxu0 %v10449_v35  ;;  %7713 = vmatprep.subr.bf16.mxu1 %v10452_v36  ;;  %v10539_v35 = vld [vmem:[%s14139_s1 + $0x1964] ss:$16 sps:$4 sm:$0xff]   ;;  %v10542_v36 = vld [vmem:[%s14139_s1 + $0x196c] ss:$16 sps:$4 sm:$0xff]  }
 0x2f7   : > { %7026 = vmatpush1.bf16.msra.mxu0 %v10447_v37  ;;  %7714 = vmatpush1.bf16.msra.mxu1 %v10450_v38  ;;  %v10537_v37 = vld [vmem:[%s14139_s1 + $0x1960] ss:$16 sps:$4 sm:$0xff]   ;;  %v10540_v38 = vld [vmem:[%s14139_s1 + $0x1968] ss:$16 sps:$4 sm:$0xff]  }
 0x2f8   : > { %7027 = vmatprep.subr.bf16.mxu0 %v10455_v39  ;;  %7715 = vmatprep.subr.bf16.mxu1 %v10458_v40  ;;  %v10545_v39 = vld [vmem:[%s14139_s1 + $0x1984] ss:$16 sps:$4 sm:$0xff]   ;;  %v10548_v40 = vld [vmem:[%s14139_s1 + $0x198c] ss:$16 sps:$4 sm:$0xff]  }
 0x2fb   : > { %7028 = vmatpush1.bf16.msra.mxu0 %v10453_v41  ;;  %7716 = vmatpush1.bf16.msra.mxu1 %v10456_v42  ;;  %v10543_v41 = vld [vmem:[%s14139_s1 + $0x1980] ss:$16 sps:$4 sm:$0xff]   ;;  %v10546_v42 = vld [vmem:[%s14139_s1 + $0x1988] ss:$16 sps:$4 sm:$0xff]  }
 0x2fc   : > { %7029 = vmatprep.subr.bf16.mxu0 %v10461_v43  ;;  %7717 = vmatprep.subr.bf16.mxu1 %v10464_v44  ;;  %v10551_v43 = vld [vmem:[%s14139_s1 + $0x19a4] ss:$16 sps:$4 sm:$0xff]   ;;  %v10554_v44 = vld [vmem:[%s14139_s1 + $0x19ac] ss:$16 sps:$4 sm:$0xff]  }
 0x2ff   : > { %7030 = vmatpush1.bf16.msra.mxu0 %v10459_v21  ;;  %7718 = vmatpush1.bf16.msra.mxu1 %v10462_v46  ;;  %v10549_v21 = vld [vmem:[%s14139_s1 + $0x19a0] ss:$16 sps:$4 sm:$0xff]   ;;  %v10552_v46 = vld [vmem:[%s14139_s1 + $0x19a8] ss:$16 sps:$4 sm:$0xff]  }
 0x300   : > { %7031 = vmatprep.subr.bf16.mxu0 %v10467_v47  ;;  %7719 = vmatprep.subr.bf16.mxu1 %v10470_v18  ;;  %v10557_v47 = vld [vmem:[%s14139_s1 + $0x19c4] ss:$16 sps:$4 sm:$0xff]   ;;  %v10560_v18 = vld [vmem:[%s14139_s1 + $0x19cc] ss:$16 sps:$4 sm:$0xff]  }
 0x303   : > { %7032 = vmatpush1.bf16.msra.mxu0 %v10465_v19  ;;  %7720 = vmatpush1.bf16.msra.mxu1 %v10468_v50  ;;  %v10555_v19 = vld [vmem:[%s14139_s1 + $0x19c0] ss:$16 sps:$4 sm:$0xff]   ;;  %v10558_v50 = vld [vmem:[%s14139_s1 + $0x19c8] ss:$16 sps:$4 sm:$0xff]  }
 0x304   : > { %7044 = vmatprep.subr.bf16.mxu0 %v10473_v51  ;;  %7732 = vmatprep.subr.bf16.mxu1 %v10476_v14  ;;  %v10563_v51 = vld [vmem:[%s14139_s1 + $0x19e4] ss:$16 sps:$4 sm:$0xff]   ;;  %v10566_v14 = vld [vmem:[%s14139_s1 + $0x19ec] ss:$16 sps:$4 sm:$0xff]  }
 0x306   : > { %7034 = vmatmul.mubr.bf16.vlgmr.msra.gmra.mrb[0].mxu0 %v8144_v45  ;;  %7722 = vmatmul.mubr.bf16.vlgmr.msra.gmra.mrb[0].mxu1 %v8144_v45  ;;  %v10561_v45 = vld [vmem:[%s14139_s1 + $0x19e0] ss:$16 sps:$4 sm:$0xff]  }
 0x307   : > { %7045 = vmatpush1.bf16.msra.mxu0 %v10471_v54  ;;  %7733 = vmatpush1.bf16.msra.mxu1 %v10474_v55  ;;  %v10564_v54 = vld [vmem:[%s14139_s1 + $0x19e8] ss:$16 sps:$4 sm:$0xff]   ;;  %v10569_v55 = vld [vmem:[%s14139_s1 + $0x1a04] ss:$16 sps:$4 sm:$0xff]  }
 0x308   : > { %7046 = vmatprep.subr.bf16.mxu0 %v10479_v48  ;;  %7734 = vmatprep.subr.bf16.mxu1 %v10482_v49  ;;  %v10572_v48 = vld [vmem:[%s14139_s1 + $0x1a0c] ss:$16 sps:$4 sm:$0xff]   ;;  %v8146_v49 = vcombine.low %v13325_v52, %v13328_v53  ;;  %v10575_v52 = vld [vmem:[%s14139_s1 + $0x1a24] ss:$16 sps:$4 sm:$0xff]  }
 0x309   : > { %7076 = vmatprep.mubr.bf16.mxu0 %v8147_v56  ;;  %7764 = vmatprep.mubr.bf16.mxu1 %v8147_v56  ;;  %v13527_v56 = vld [vmem:[%s11032_s5 + $0x68] sm:$0xff] }
 0x30a   : > { %v10578_v53 = vld [vmem:[%s14139_s1 + $0x1a2c] ss:$16 sps:$4 sm:$0xff]  }
 0x30b   : > { %7047 = vmatpush1.bf16.msra.mxu0 %v10477_v57  ;;  %7735 = vmatpush1.bf16.msra.mxu1 %v10480_v58  ;;  %v13530_v57 = vld [vmem:[%s11032_s5 + $0xe8] sm:$0xff]  ;;  %v10567_v58 = vld [vmem:[%s14139_s1 + $0x1a00] ss:$16 sps:$4 sm:$0xff]  }
 0x30c   : > { %7048 = vmatprep.subr.bf16.mxu0 %v10485_v59  ;;  %7736 = vmatprep.subr.bf16.mxu1 %v10488_v60  ;;  %v10570_v59 = vld [vmem:[%s14139_s1 + $0x1a08] ss:$16 sps:$4 sm:$0xff]   ;;  %v8149_v60 = vcombine.high %v13527_v56, %v13530_v57 }
 0x30f   : > { %7049 = vmatpush1.bf16.msra.mxu0 %v10483_v61  ;;  %7737 = vmatpush1.bf16.msra.mxu1 %v10486_v62  ;;  %v10573_v61 = vld [vmem:[%s14139_s1 + $0x1a20] ss:$16 sps:$4 sm:$0xff]   ;;  %v10576_v62 = vld [vmem:[%s14139_s1 + $0x1a28] ss:$16 sps:$4 sm:$0xff]  }
 0x310   : > { %7050 = vmatprep.subr.bf16.mxu0 %v10491_v63  ;;  %7738 = vmatprep.subr.bf16.mxu1 %v10494_v0  ;;  %v10581_v63 = vld [vmem:[%s14139_s1 + $0x1a44] ss:$16 sps:$4 sm:$0xff]   ;;  %v10584_v0 = vld [vmem:[%s14139_s1 + $0x1a4c] ss:$16 sps:$4 sm:$0xff]  }
 0x313   : > { %7051 = vmatpush1.bf16.msra.mxu0 %v10489_v1  ;;  %7739 = vmatpush1.bf16.msra.mxu1 %v10492_v2  ;;  %v10579_v1 = vld [vmem:[%s14139_s1 + $0x1a40] ss:$16 sps:$4 sm:$0xff]   ;;  %v10582_v2 = vld [vmem:[%s14139_s1 + $0x1a48] ss:$16 sps:$4 sm:$0xff]  }
 0x314   : > { %7052 = vmatprep.subr.bf16.mxu0 %v10497_v3  ;;  %7740 = vmatprep.subr.bf16.mxu1 %v10500_v4  ;;  %v10587_v3 = vld [vmem:[%s14139_s1 + $0x1a64] ss:$16 sps:$4 sm:$0xff]   ;;  %v10590_v4 = vld [vmem:[%s14139_s1 + $0x1a6c] ss:$16 sps:$4 sm:$0xff]  }
 0x317   : > { %7053 = vmatpush1.bf16.msra.mxu0 %v10495_v5  ;;  %7741 = vmatpush1.bf16.msra.mxu1 %v10498_v6  ;;  %v10585_v5 = vld [vmem:[%s14139_s1 + $0x1a60] ss:$16 sps:$4 sm:$0xff]   ;;  %v10588_v6 = vld [vmem:[%s14139_s1 + $0x1a68] ss:$16 sps:$4 sm:$0xff]  }
 0x318   : > { %7054 = vmatprep.subr.bf16.mxu0 %v10503_v7  ;;  %7742 = vmatprep.subr.bf16.mxu1 %v10506_v8  ;;  %v10593_v7 = vld [vmem:[%s14139_s1 + $0x1a84] ss:$16 sps:$4 sm:$0xff]   ;;  %v10596_v8 = vld [vmem:[%s14139_s1 + $0x1a8c] ss:$16 sps:$4 sm:$0xff]  }
 0x31b   : > { %7055 = vmatpush1.bf16.msra.mxu0 %v10501_v9  ;;  %7743 = vmatpush1.bf16.msra.mxu1 %v10504_v10  ;;  %v10591_v9 = vld [vmem:[%s14139_s1 + $0x1a80] ss:$16 sps:$4 sm:$0xff]   ;;  %v10594_v10 = vld [vmem:[%s14139_s1 + $0x1a88] ss:$16 sps:$4 sm:$0xff]  }
 0x31c   : > { %7056 = vmatprep.subr.bf16.mxu0 %v10509_v11  ;;  %7744 = vmatprep.subr.bf16.mxu1 %v10512_v12  ;;  %v10599_v11 = vld [vmem:[%s14139_s1 + $0x1aa4] ss:$16 sps:$4 sm:$0xff]   ;;  %v10602_v12 = vld [vmem:[%s14139_s1 + $0x1aac] ss:$16 sps:$4 sm:$0xff]  }
 0x31f   : > { %7057 = vmatpush1.bf16.msra.mxu0 %v10507_v13  ;;  %7745 = vmatpush1.bf16.msra.mxu1 %v10510_v16  ;;  %v10597_v13 = vld [vmem:[%s14139_s1 + $0x1aa0] ss:$16 sps:$4 sm:$0xff]   ;;  %v10600_v16 = vld [vmem:[%s14139_s1 + $0x1aa8] ss:$16 sps:$4 sm:$0xff]  }
 0x320   : > { %7058 = vmatprep.subr.bf16.mxu0 %v10515_v17  ;;  %7746 = vmatprep.subr.bf16.mxu1 %v10518_v20  ;;  %v10605_v17 = vld [vmem:[%s14139_s1 + $0x1ac4] ss:$16 sps:$4 sm:$0xff]   ;;  %v10608_v20 = vld [vmem:[%s14139_s1 + $0x1acc] ss:$16 sps:$4 sm:$0xff]  }
 0x323   : > { %7059 = vmatpush1.bf16.msra.mxu0 %v10513_v22  ;;  %7747 = vmatpush1.bf16.msra.mxu1 %v10516_v15  ;;  %v10603_v22 = vld [vmem:[%s14139_s1 + $0x1ac0] ss:$16 sps:$4 sm:$0xff]   ;;  %v10606_v15 = vld [vmem:[%s14139_s1 + $0x1ac8] ss:$16 sps:$4 sm:$0xff]  }
 0x324   : > { %7060 = vmatprep.subr.bf16.mxu0 %v10521_v23  ;;  %7748 = vmatprep.subr.bf16.mxu1 %v10524_v24  ;;  %v10611_v23 = vld [vmem:[%s14139_s1 + $0x1ae4] ss:$16 sps:$4 sm:$0xff]   ;;  %v10614_v24 = vld [vmem:[%s14139_s1 + $0x1aec] ss:$16 sps:$4 sm:$0xff]  }
 0x327   : > { %7061 = vmatpush1.bf16.msra.mxu0 %v10519_v25  ;;  %7749 = vmatpush1.bf16.msra.mxu1 %v10522_v26  ;;  %v10609_v25 = vld [vmem:[%s14139_s1 + $0x1ae0] ss:$16 sps:$4 sm:$0xff]   ;;  %v10612_v26 = vld [vmem:[%s14139_s1 + $0x1ae8] ss:$16 sps:$4 sm:$0xff]  }
 0x328   : > { %7062 = vmatprep.subr.bf16.mxu0 %v10527_v27  ;;  %7750 = vmatprep.subr.bf16.mxu1 %v10530_v28  ;;  %v10617_v27 = vld [vmem:[%s14139_s1 + $0x1b04] ss:$16 sps:$4 sm:$0xff]   ;;  %v10620_v28 = vld [vmem:[%s14139_s1 + $0x1b0c] ss:$16 sps:$4 sm:$0xff]  }
 0x32b   : > { %7063 = vmatpush1.bf16.msra.mxu0 %v10525_v29  ;;  %7751 = vmatpush1.bf16.msra.mxu1 %v10528_v30  ;;  %v10615_v29 = vld [vmem:[%s14139_s1 + $0x1b00] ss:$16 sps:$4 sm:$0xff]   ;;  %v10618_v30 = vld [vmem:[%s14139_s1 + $0x1b08] ss:$16 sps:$4 sm:$0xff]  }
 0x32c   : > { %7064 = vmatprep.subr.bf16.mxu0 %v10533_v31  ;;  %7752 = vmatprep.subr.bf16.mxu1 %v10536_v32  ;;  %v10623_v31 = vld [vmem:[%s14139_s1 + $0x1b24] ss:$16 sps:$4 sm:$0xff]   ;;  %v10626_v32 = vld [vmem:[%s14139_s1 + $0x1b2c] ss:$16 sps:$4 sm:$0xff]  }
 0x32f   : > { %7065 = vmatpush1.bf16.msra.mxu0 %v10531_v33  ;;  %7753 = vmatpush1.bf16.msra.mxu1 %v10534_v34  ;;  %v10621_v33 = vld [vmem:[%s14139_s1 + $0x1b20] ss:$16 sps:$4 sm:$0xff]   ;;  %v10624_v34 = vld [vmem:[%s14139_s1 + $0x1b28] ss:$16 sps:$4 sm:$0xff]  }
 0x330   : > { %7066 = vmatprep.subr.bf16.mxu0 %v10539_v35  ;;  %7754 = vmatprep.subr.bf16.mxu1 %v10542_v36  ;;  %v10629_v35 = vld [vmem:[%s14139_s1 + $0x1b44] ss:$16 sps:$4 sm:$0xff]   ;;  %v10632_v36 = vld [vmem:[%s14139_s1 + $0x1b4c] ss:$16 sps:$4 sm:$0xff]  }
 0x333   : > { %7067 = vmatpush1.bf16.msra.mxu0 %v10537_v37  ;;  %7755 = vmatpush1.bf16.msra.mxu1 %v10540_v38  ;;  %v10627_v37 = vld [vmem:[%s14139_s1 + $0x1b40] ss:$16 sps:$4 sm:$0xff]   ;;  %v10630_v38 = vld [vmem:[%s14139_s1 + $0x1b48] ss:$16 sps:$4 sm:$0xff]  }
 0x334   : > { %7068 = vmatprep.subr.bf16.mxu0 %v10545_v39  ;;  %7756 = vmatprep.subr.bf16.mxu1 %v10548_v40  ;;  %v10635_v39 = vld [vmem:[%s14139_s1 + $0x1b64] ss:$16 sps:$4 sm:$0xff]   ;;  %v10638_v40 = vld [vmem:[%s14139_s1 + $0x1b6c] ss:$16 sps:$4 sm:$0xff]  }
 0x337   : > { %7069 = vmatpush1.bf16.msra.mxu0 %v10543_v41  ;;  %7757 = vmatpush1.bf16.msra.mxu1 %v10546_v42  ;;  %v10633_v41 = vld [vmem:[%s14139_s1 + $0x1b60] ss:$16 sps:$4 sm:$0xff]   ;;  %v10636_v42 = vld [vmem:[%s14139_s1 + $0x1b68] ss:$16 sps:$4 sm:$0xff]  }
 0x338   : > { %7070 = vmatprep.subr.bf16.mxu0 %v10551_v43  ;;  %7758 = vmatprep.subr.bf16.mxu1 %v10554_v44  ;;  %v10641_v43 = vld [vmem:[%s14139_s1 + $0x1b84] ss:$16 sps:$4 sm:$0xff]   ;;  %v10644_v44 = vld [vmem:[%s14139_s1 + $0x1b8c] ss:$16 sps:$4 sm:$0xff]  }
 0x33b   : > { %7071 = vmatpush1.bf16.msra.mxu0 %v10549_v21  ;;  %7759 = vmatpush1.bf16.msra.mxu1 %v10552_v46  ;;  %v10639_v21 = vld [vmem:[%s14139_s1 + $0x1b80] ss:$16 sps:$4 sm:$0xff]   ;;  %v10642_v46 = vld [vmem:[%s14139_s1 + $0x1b88] ss:$16 sps:$4 sm:$0xff]  }
 0x33c   : > { %7072 = vmatprep.subr.bf16.mxu0 %v10557_v47  ;;  %7760 = vmatprep.subr.bf16.mxu1 %v10560_v18  ;;  %v10647_v47 = vld [vmem:[%s14139_s1 + $0x1ba4] ss:$16 sps:$4 sm:$0xff]   ;;  %v10650_v18 = vld [vmem:[%s14139_s1 + $0x1bac] ss:$16 sps:$4 sm:$0xff]  }
 0x33f   : > { %7073 = vmatpush1.bf16.msra.mxu0 %v10555_v19  ;;  %7761 = vmatpush1.bf16.msra.mxu1 %v10558_v50  ;;  %v10645_v19 = vld [vmem:[%s14139_s1 + $0x1ba0] ss:$16 sps:$4 sm:$0xff]   ;;  %v10648_v50 = vld [vmem:[%s14139_s1 + $0x1ba8] ss:$16 sps:$4 sm:$0xff]  }
 0x340   : > { %7074 = vmatprep.subr.bf16.mxu0 %v10563_v51  ;;  %7762 = vmatprep.subr.bf16.mxu1 %v10566_v14  ;;  %v10653_v51 = vld [vmem:[%s14139_s1 + $0x1bc4] ss:$16 sps:$4 sm:$0xff]   ;;  %v10656_v14 = vld [vmem:[%s14139_s1 + $0x1bcc] ss:$16 sps:$4 sm:$0xff]  }
 0x343   : > { %7075 = vmatpush1.bf16.msra.mxu0 %v10561_v45  ;;  %7763 = vmatpush1.bf16.msra.mxu1 %v10564_v54  ;;  %v10651_v45 = vld [vmem:[%s14139_s1 + $0x1bc0] ss:$16 sps:$4 sm:$0xff]   ;;  %v10654_v54 = vld [vmem:[%s14139_s1 + $0x1bc8] ss:$16 sps:$4 sm:$0xff]  }
 0x344   : > { %7087 = vmatprep.subr.bf16.mxu0 %v10569_v55  ;;  %7775 = vmatprep.subr.bf16.mxu1 %v10572_v48  ;;  %v10659_v55 = vld [vmem:[%s14139_s1 + $0x1be4] ss:$16 sps:$4 sm:$0xff]   ;;  %v10662_v48 = vld [vmem:[%s14139_s1 + $0x1bec] ss:$16 sps:$4 sm:$0xff]  }
 0x346   : > { %7077 = vmatmul.mubr.bf16.vlgmr.msra.gmra.mrb[0].mxu0 %v8146_v49  ;;  %7765 = vmatmul.mubr.bf16.vlgmr.msra.gmra.mrb[0].mxu1 %v8146_v49  ;;  %v10657_v49 = vld [vmem:[%s14139_s1 + $0x1be0] ss:$16 sps:$4 sm:$0xff]  }
 0x347   : > { %7088 = vmatpush1.bf16.msra.mxu0 %v10567_v58  ;;  %7776 = vmatpush1.bf16.msra.mxu1 %v10570_v59  ;;  %v10660_v58 = vld [vmem:[%s14139_s1 + $0x1be8] ss:$16 sps:$4 sm:$0xff]   ;;  %v10665_v59 = vld [vmem:[%s14139_s1 + $0x1c04] ss:$16 sps:$4 sm:$0xff]  }
 0x348   : > { %7089 = vmatprep.subr.bf16.mxu0 %v10575_v52  ;;  %7777 = vmatprep.subr.bf16.mxu1 %v10578_v53  ;;  %v10668_v52 = vld [vmem:[%s14139_s1 + $0x1c0c] ss:$16 sps:$4 sm:$0xff]   ;;  %v8148_v53 = vcombine.low %v13527_v56, %v13530_v57  ;;  %v10671_v56 = vld [vmem:[%s14139_s1 + $0x1c24] ss:$16 sps:$4 sm:$0xff]  }
 0x349   : > { %7119 = vmatprep.mubr.bf16.mxu0 %v8149_v60  ;;  %7807 = vmatprep.mubr.bf16.mxu1 %v8149_v60  ;;  %v13729_v60 = vld [vmem:[%s11032_s5 + $0x70] sm:$0xff]  ;;  %v10674_v57 = vld [vmem:[%s14139_s1 + $0x1c2c] ss:$16 sps:$4 sm:$0xff]  }
 0x34b   : > { %7090 = vmatpush1.bf16.msra.mxu0 %v10573_v61  ;;  %7778 = vmatpush1.bf16.msra.mxu1 %v10576_v62  ;;  %v13732_v61 = vld [vmem:[%s11032_s5 + $0xf0] sm:$0xff] }
 0x34c   : > { %7091 = vmatprep.subr.bf16.mxu0 %v10581_v63  ;;  %7779 = vmatprep.subr.bf16.mxu1 %v10584_v0  ;;  %v10663_v62 = vld [vmem:[%s14139_s1 + $0x1c00] ss:$16 sps:$4 sm:$0xff]   ;;  %v10666_v63 = vld [vmem:[%s14139_s1 + $0x1c08] ss:$16 sps:$4 sm:$0xff]   ;;  %v8151_v0 = vcombine.high %v13729_v60, %v13732_v61 }
 0x34f   : > { %7092 = vmatpush1.bf16.msra.mxu0 %v10579_v1  ;;  %7780 = vmatpush1.bf16.msra.mxu1 %v10582_v2  ;;  %v10669_v1 = vld [vmem:[%s14139_s1 + $0x1c20] ss:$16 sps:$4 sm:$0xff]   ;;  %v10672_v2 = vld [vmem:[%s14139_s1 + $0x1c28] ss:$16 sps:$4 sm:$0xff]  }
 0x350   : > { %7093 = vmatprep.subr.bf16.mxu0 %v10587_v3  ;;  %7781 = vmatprep.subr.bf16.mxu1 %v10590_v4  ;;  %v10677_v3 = vld [vmem:[%s14139_s1 + $0x1c44] ss:$16 sps:$4 sm:$0xff]   ;;  %v10680_v4 = vld [vmem:[%s14139_s1 + $0x1c4c] ss:$16 sps:$4 sm:$0xff]  }
 0x353   : > { %7094 = vmatpush1.bf16.msra.mxu0 %v10585_v5  ;;  %7782 = vmatpush1.bf16.msra.mxu1 %v10588_v6  ;;  %v10675_v5 = vld [vmem:[%s14139_s1 + $0x1c40] ss:$16 sps:$4 sm:$0xff]   ;;  %v10678_v6 = vld [vmem:[%s14139_s1 + $0x1c48] ss:$16 sps:$4 sm:$0xff]  }
 0x354   : > { %7095 = vmatprep.subr.bf16.mxu0 %v10593_v7  ;;  %7783 = vmatprep.subr.bf16.mxu1 %v10596_v8  ;;  %v10683_v7 = vld [vmem:[%s14139_s1 + $0x1c64] ss:$16 sps:$4 sm:$0xff]   ;;  %v10686_v8 = vld [vmem:[%s14139_s1 + $0x1c6c] ss:$16 sps:$4 sm:$0xff]  }
 0x357   : > { %7096 = vmatpush1.bf16.msra.mxu0 %v10591_v9  ;;  %7784 = vmatpush1.bf16.msra.mxu1 %v10594_v10  ;;  %v10681_v9 = vld [vmem:[%s14139_s1 + $0x1c60] ss:$16 sps:$4 sm:$0xff]   ;;  %v10684_v10 = vld [vmem:[%s14139_s1 + $0x1c68] ss:$16 sps:$4 sm:$0xff]  }
 0x358   : > { %7097 = vmatprep.subr.bf16.mxu0 %v10599_v11  ;;  %7785 = vmatprep.subr.bf16.mxu1 %v10602_v12  ;;  %v10689_v11 = vld [vmem:[%s14139_s1 + $0x1c84] ss:$16 sps:$4 sm:$0xff]   ;;  %v10692_v12 = vld [vmem:[%s14139_s1 + $0x1c8c] ss:$16 sps:$4 sm:$0xff]  }
 0x35b   : > { %7098 = vmatpush1.bf16.msra.mxu0 %v10597_v13  ;;  %7786 = vmatpush1.bf16.msra.mxu1 %v10600_v16  ;;  %v10687_v13 = vld [vmem:[%s14139_s1 + $0x1c80] ss:$16 sps:$4 sm:$0xff]   ;;  %v10690_v16 = vld [vmem:[%s14139_s1 + $0x1c88] ss:$16 sps:$4 sm:$0xff]  }
 0x35c   : > { %7099 = vmatprep.subr.bf16.mxu0 %v10605_v17  ;;  %7787 = vmatprep.subr.bf16.mxu1 %v10608_v20  ;;  %v10695_v17 = vld [vmem:[%s14139_s1 + $0x1ca4] ss:$16 sps:$4 sm:$0xff]   ;;  %v10698_v20 = vld [vmem:[%s14139_s1 + $0x1cac] ss:$16 sps:$4 sm:$0xff]  }
 0x35f   : > { %7100 = vmatpush1.bf16.msra.mxu0 %v10603_v22  ;;  %7788 = vmatpush1.bf16.msra.mxu1 %v10606_v15  ;;  %v10693_v22 = vld [vmem:[%s14139_s1 + $0x1ca0] ss:$16 sps:$4 sm:$0xff]   ;;  %v10696_v15 = vld [vmem:[%s14139_s1 + $0x1ca8] ss:$16 sps:$4 sm:$0xff]  }
 0x360   : > { %7101 = vmatprep.subr.bf16.mxu0 %v10611_v23  ;;  %7789 = vmatprep.subr.bf16.mxu1 %v10614_v24  ;;  %v10701_v23 = vld [vmem:[%s14139_s1 + $0x1cc4] ss:$16 sps:$4 sm:$0xff]   ;;  %v10704_v24 = vld [vmem:[%s14139_s1 + $0x1ccc] ss:$16 sps:$4 sm:$0xff]  }
 0x363   : > { %7102 = vmatpush1.bf16.msra.mxu0 %v10609_v25  ;;  %7790 = vmatpush1.bf16.msra.mxu1 %v10612_v26  ;;  %v10699_v25 = vld [vmem:[%s14139_s1 + $0x1cc0] ss:$16 sps:$4 sm:$0xff]   ;;  %v10702_v26 = vld [vmem:[%s14139_s1 + $0x1cc8] ss:$16 sps:$4 sm:$0xff]  }
 0x364   : > { %7103 = vmatprep.subr.bf16.mxu0 %v10617_v27  ;;  %7791 = vmatprep.subr.bf16.mxu1 %v10620_v28  ;;  %v10707_v27 = vld [vmem:[%s14139_s1 + $0x1ce4] ss:$16 sps:$4 sm:$0xff]   ;;  %v10710_v28 = vld [vmem:[%s14139_s1 + $0x1cec] ss:$16 sps:$4 sm:$0xff]  }
 0x367   : > { %7104 = vmatpush1.bf16.msra.mxu0 %v10615_v29  ;;  %7792 = vmatpush1.bf16.msra.mxu1 %v10618_v30  ;;  %v10705_v29 = vld [vmem:[%s14139_s1 + $0x1ce0] ss:$16 sps:$4 sm:$0xff]   ;;  %v10708_v30 = vld [vmem:[%s14139_s1 + $0x1ce8] ss:$16 sps:$4 sm:$0xff]  }
 0x368   : > { %7105 = vmatprep.subr.bf16.mxu0 %v10623_v31  ;;  %7793 = vmatprep.subr.bf16.mxu1 %v10626_v32  ;;  %v10713_v31 = vld [vmem:[%s14139_s1 + $0x1d04] ss:$16 sps:$4 sm:$0xff]   ;;  %v10716_v32 = vld [vmem:[%s14139_s1 + $0x1d0c] ss:$16 sps:$4 sm:$0xff]  }
 0x36b   : > { %7106 = vmatpush1.bf16.msra.mxu0 %v10621_v33  ;;  %7794 = vmatpush1.bf16.msra.mxu1 %v10624_v34  ;;  %v10711_v33 = vld [vmem:[%s14139_s1 + $0x1d00] ss:$16 sps:$4 sm:$0xff]   ;;  %v10714_v34 = vld [vmem:[%s14139_s1 + $0x1d08] ss:$16 sps:$4 sm:$0xff]  }
 0x36c   : > { %7107 = vmatprep.subr.bf16.mxu0 %v10629_v35  ;;  %7795 = vmatprep.subr.bf16.mxu1 %v10632_v36  ;;  %v10719_v35 = vld [vmem:[%s14139_s1 + $0x1d24] ss:$16 sps:$4 sm:$0xff]   ;;  %v10722_v36 = vld [vmem:[%s14139_s1 + $0x1d2c] ss:$16 sps:$4 sm:$0xff]  }
 0x36f   : > { %7108 = vmatpush1.bf16.msra.mxu0 %v10627_v37  ;;  %7796 = vmatpush1.bf16.msra.mxu1 %v10630_v38  ;;  %v10717_v37 = vld [vmem:[%s14139_s1 + $0x1d20] ss:$16 sps:$4 sm:$0xff]   ;;  %v10720_v38 = vld [vmem:[%s14139_s1 + $0x1d28] ss:$16 sps:$4 sm:$0xff]  }
 0x370   : > { %7109 = vmatprep.subr.bf16.mxu0 %v10635_v39  ;;  %7797 = vmatprep.subr.bf16.mxu1 %v10638_v40  ;;  %v10725_v39 = vld [vmem:[%s14139_s1 + $0x1d44] ss:$16 sps:$4 sm:$0xff]   ;;  %v10728_v40 = vld [vmem:[%s14139_s1 + $0x1d4c] ss:$16 sps:$4 sm:$0xff]  }
 0x373   : > { %7110 = vmatpush1.bf16.msra.mxu0 %v10633_v41  ;;  %7798 = vmatpush1.bf16.msra.mxu1 %v10636_v42  ;;  %v10723_v41 = vld [vmem:[%s14139_s1 + $0x1d40] ss:$16 sps:$4 sm:$0xff]   ;;  %v10726_v42 = vld [vmem:[%s14139_s1 + $0x1d48] ss:$16 sps:$4 sm:$0xff]  }
 0x374   : > { %7111 = vmatprep.subr.bf16.mxu0 %v10641_v43  ;;  %7799 = vmatprep.subr.bf16.mxu1 %v10644_v44  ;;  %v10731_v43 = vld [vmem:[%s14139_s1 + $0x1d64] ss:$16 sps:$4 sm:$0xff]   ;;  %v10734_v44 = vld [vmem:[%s14139_s1 + $0x1d6c] ss:$16 sps:$4 sm:$0xff]  }
 0x377   : > { %7112 = vmatpush1.bf16.msra.mxu0 %v10639_v21  ;;  %7800 = vmatpush1.bf16.msra.mxu1 %v10642_v46  ;;  %v10729_v21 = vld [vmem:[%s14139_s1 + $0x1d60] ss:$16 sps:$4 sm:$0xff]   ;;  %v10732_v46 = vld [vmem:[%s14139_s1 + $0x1d68] ss:$16 sps:$4 sm:$0xff]  }
 0x378   : > { %7113 = vmatprep.subr.bf16.mxu0 %v10647_v47  ;;  %7801 = vmatprep.subr.bf16.mxu1 %v10650_v18  ;;  %v10737_v47 = vld [vmem:[%s14139_s1 + $0x1d84] ss:$16 sps:$4 sm:$0xff]   ;;  %v10740_v18 = vld [vmem:[%s14139_s1 + $0x1d8c] ss:$16 sps:$4 sm:$0xff]  }
 0x37b   : > { %7114 = vmatpush1.bf16.msra.mxu0 %v10645_v19  ;;  %7802 = vmatpush1.bf16.msra.mxu1 %v10648_v50  ;;  %v10735_v19 = vld [vmem:[%s14139_s1 + $0x1d80] ss:$16 sps:$4 sm:$0xff]   ;;  %v10738_v50 = vld [vmem:[%s14139_s1 + $0x1d88] ss:$16 sps:$4 sm:$0xff]  }
 0x37c   : > { %7115 = vmatprep.subr.bf16.mxu0 %v10653_v51  ;;  %7803 = vmatprep.subr.bf16.mxu1 %v10656_v14  ;;  %v10743_v51 = vld [vmem:[%s14139_s1 + $0x1da4] ss:$16 sps:$4 sm:$0xff]   ;;  %v10746_v14 = vld [vmem:[%s14139_s1 + $0x1dac] ss:$16 sps:$4 sm:$0xff]  }
 0x37f   : > { %7116 = vmatpush1.bf16.msra.mxu0 %v10651_v45  ;;  %7804 = vmatpush1.bf16.msra.mxu1 %v10654_v54  ;;  %v10741_v45 = vld [vmem:[%s14139_s1 + $0x1da0] ss:$16 sps:$4 sm:$0xff]   ;;  %v10744_v54 = vld [vmem:[%s14139_s1 + $0x1da8] ss:$16 sps:$4 sm:$0xff]  }
 0x380   : > { %7117 = vmatprep.subr.bf16.mxu0 %v10659_v55  ;;  %7805 = vmatprep.subr.bf16.mxu1 %v10662_v48  ;;  %v10749_v55 = vld [vmem:[%s14139_s1 + $0x1dc4] ss:$16 sps:$4 sm:$0xff]   ;;  %v10752_v48 = vld [vmem:[%s14139_s1 + $0x1dcc] ss:$16 sps:$4 sm:$0xff]  }
 0x383   : > { %7118 = vmatpush1.bf16.msra.mxu0 %v10657_v49  ;;  %7806 = vmatpush1.bf16.msra.mxu1 %v10660_v58  ;;  %v10747_v49 = vld [vmem:[%s14139_s1 + $0x1dc0] ss:$16 sps:$4 sm:$0xff]   ;;  %v10750_v58 = vld [vmem:[%s14139_s1 + $0x1dc8] ss:$16 sps:$4 sm:$0xff]  }
 0x384   : > { %7130 = vmatprep.subr.bf16.mxu0 %v10665_v59  ;;  %7818 = vmatprep.subr.bf16.mxu1 %v10668_v52  ;;  %v10755_v59 = vld [vmem:[%s14139_s1 + $0x1de4] ss:$16 sps:$4 sm:$0xff]   ;;  %v10758_v52 = vld [vmem:[%s14139_s1 + $0x1dec] ss:$16 sps:$4 sm:$0xff]  }
 0x386   : > { %7120 = vmatmul.mubr.bf16.vlgmr.msra.gmra.mrb[0].mxu0 %v8148_v53  ;;  %7808 = vmatmul.mubr.bf16.vlgmr.msra.gmra.mrb[0].mxu1 %v8148_v53  ;;  %v10753_v53 = vld [vmem:[%s14139_s1 + $0x1de0] ss:$16 sps:$4 sm:$0xff]  }
 0x387   : > { %7131 = vmatpush1.bf16.msra.mxu0 %v10663_v62  ;;  %7819 = vmatpush1.bf16.msra.mxu1 %v10666_v63  ;;  %v10756_v62 = vld [vmem:[%s14139_s1 + $0x1de8] ss:$16 sps:$4 sm:$0xff]   ;;  %v10761_v63 = vld [vmem:[%s14139_s1 + $0x1e04] ss:$16 sps:$4 sm:$0xff]  }
 0x388   : > { %7132 = vmatprep.subr.bf16.mxu0 %v10671_v56  ;;  %7820 = vmatprep.subr.bf16.mxu1 %v10674_v57  ;;  %v10764_v56 = vld [vmem:[%s14139_s1 + $0x1e0c] ss:$16 sps:$4 sm:$0xff]   ;;  %v8150_v57 = vcombine.low %v13729_v60, %v13732_v61  ;;  %v10767_v60 = vld [vmem:[%s14139_s1 + $0x1e24] ss:$16 sps:$4 sm:$0xff]  }
 0x389   : > { %7162 = vmatprep.mubr.bf16.mxu0 %v8151_v0  ;;  %7850 = vmatprep.mubr.bf16.mxu1 %v8151_v0  ;;  %v13931_v0 = vld [vmem:[%s11032_s5 + $0x78] sm:$0xff] }
 0x38a   : > { %v10770_v61 = vld [vmem:[%s14139_s1 + $0x1e2c] ss:$16 sps:$4 sm:$0xff]  }
 0x38b   : > { %7133 = vmatpush1.bf16.msra.mxu0 %v10669_v1  ;;  %7821 = vmatpush1.bf16.msra.mxu1 %v10672_v2  ;;  %v13934_v1 = vld [vmem:[%s11032_s5 + $0xf8] sm:$0xff]  ;;  %v10759_v2 = vld [vmem:[%s14139_s1 + $0x1e00] ss:$16 sps:$4 sm:$0xff]  }
 0x38c   : > { %7134 = vmatprep.subr.bf16.mxu0 %v10677_v3  ;;  %7822 = vmatprep.subr.bf16.mxu1 %v10680_v4  ;;  %v10762_v3 = vld [vmem:[%s14139_s1 + $0x1e08] ss:$16 sps:$4 sm:$0xff]   ;;  %v8153_v4 = vcombine.high %v13931_v0, %v13934_v1 }
 0x38f   : > { %7135 = vmatpush1.bf16.msra.mxu0 %v10675_v5  ;;  %7823 = vmatpush1.bf16.msra.mxu1 %v10678_v6  ;;  %v10765_v5 = vld [vmem:[%s14139_s1 + $0x1e20] ss:$16 sps:$4 sm:$0xff]   ;;  %v10768_v6 = vld [vmem:[%s14139_s1 + $0x1e28] ss:$16 sps:$4 sm:$0xff]  }
 0x390   : > { %7136 = vmatprep.subr.bf16.mxu0 %v10683_v7  ;;  %7824 = vmatprep.subr.bf16.mxu1 %v10686_v8  ;;  %v10773_v7 = vld [vmem:[%s14139_s1 + $0x1e44] ss:$16 sps:$4 sm:$0xff]   ;;  %v10776_v8 = vld [vmem:[%s14139_s1 + $0x1e4c] ss:$16 sps:$4 sm:$0xff]  }
 0x393   : > { %7137 = vmatpush1.bf16.msra.mxu0 %v10681_v9  ;;  %7825 = vmatpush1.bf16.msra.mxu1 %v10684_v10  ;;  %v10771_v9 = vld [vmem:[%s14139_s1 + $0x1e40] ss:$16 sps:$4 sm:$0xff]   ;;  %v10774_v10 = vld [vmem:[%s14139_s1 + $0x1e48] ss:$16 sps:$4 sm:$0xff]  }
 0x394   : > { %7138 = vmatprep.subr.bf16.mxu0 %v10689_v11  ;;  %7826 = vmatprep.subr.bf16.mxu1 %v10692_v12  ;;  %v10779_v11 = vld [vmem:[%s14139_s1 + $0x1e64] ss:$16 sps:$4 sm:$0xff]   ;;  %v10782_v12 = vld [vmem:[%s14139_s1 + $0x1e6c] ss:$16 sps:$4 sm:$0xff]  }
 0x397   : > { %7139 = vmatpush1.bf16.msra.mxu0 %v10687_v13  ;;  %7827 = vmatpush1.bf16.msra.mxu1 %v10690_v16  ;;  %v10777_v13 = vld [vmem:[%s14139_s1 + $0x1e60] ss:$16 sps:$4 sm:$0xff]   ;;  %v10780_v16 = vld [vmem:[%s14139_s1 + $0x1e68] ss:$16 sps:$4 sm:$0xff]  }
 0x398   : > { %7140 = vmatprep.subr.bf16.mxu0 %v10695_v17  ;;  %7828 = vmatprep.subr.bf16.mxu1 %v10698_v20  ;;  %v10785_v17 = vld [vmem:[%s14139_s1 + $0x1e84] ss:$16 sps:$4 sm:$0xff]   ;;  %v10788_v20 = vld [vmem:[%s14139_s1 + $0x1e8c] ss:$16 sps:$4 sm:$0xff]  }
 0x39b   : > { %7141 = vmatpush1.bf16.msra.mxu0 %v10693_v22  ;;  %7829 = vmatpush1.bf16.msra.mxu1 %v10696_v15  ;;  %v10783_v22 = vld [vmem:[%s14139_s1 + $0x1e80] ss:$16 sps:$4 sm:$0xff]   ;;  %v10786_v15 = vld [vmem:[%s14139_s1 + $0x1e88] ss:$16 sps:$4 sm:$0xff]  }
 0x39c   : > { %7142 = vmatprep.subr.bf16.mxu0 %v10701_v23  ;;  %7830 = vmatprep.subr.bf16.mxu1 %v10704_v24  ;;  %v10791_v23 = vld [vmem:[%s14139_s1 + $0x1ea4] ss:$16 sps:$4 sm:$0xff]   ;;  %v10794_v24 = vld [vmem:[%s14139_s1 + $0x1eac] ss:$16 sps:$4 sm:$0xff]  }
 0x39f   : > { %7143 = vmatpush1.bf16.msra.mxu0 %v10699_v25  ;;  %7831 = vmatpush1.bf16.msra.mxu1 %v10702_v26  ;;  %v10789_v25 = vld [vmem:[%s14139_s1 + $0x1ea0] ss:$16 sps:$4 sm:$0xff]   ;;  %v10792_v26 = vld [vmem:[%s14139_s1 + $0x1ea8] ss:$16 sps:$4 sm:$0xff]  }
 0x3a0   : > { %7144 = vmatprep.subr.bf16.mxu0 %v10707_v27  ;;  %7832 = vmatprep.subr.bf16.mxu1 %v10710_v28  ;;  %v10797_v27 = vld [vmem:[%s14139_s1 + $0x1ec4] ss:$16 sps:$4 sm:$0xff]   ;;  %v10800_v28 = vld [vmem:[%s14139_s1 + $0x1ecc] ss:$16 sps:$4 sm:$0xff]  }
 0x3a3   : > { %7145 = vmatpush1.bf16.msra.mxu0 %v10705_v29  ;;  %7833 = vmatpush1.bf16.msra.mxu1 %v10708_v30  ;;  %v10795_v29 = vld [vmem:[%s14139_s1 + $0x1ec0] ss:$16 sps:$4 sm:$0xff]   ;;  %v10798_v30 = vld [vmem:[%s14139_s1 + $0x1ec8] ss:$16 sps:$4 sm:$0xff]  }
 0x3a4   : > { %7146 = vmatprep.subr.bf16.mxu0 %v10713_v31  ;;  %7834 = vmatprep.subr.bf16.mxu1 %v10716_v32  ;;  %v10803_v31 = vld [vmem:[%s14139_s1 + $0x1ee4] ss:$16 sps:$4 sm:$0xff]   ;;  %v10806_v32 = vld [vmem:[%s14139_s1 + $0x1eec] ss:$16 sps:$4 sm:$0xff]  }
 0x3a7   : > { %7147 = vmatpush1.bf16.msra.mxu0 %v10711_v33  ;;  %7835 = vmatpush1.bf16.msra.mxu1 %v10714_v34  ;;  %v10801_v33 = vld [vmem:[%s14139_s1 + $0x1ee0] ss:$16 sps:$4 sm:$0xff]   ;;  %v10804_v34 = vld [vmem:[%s14139_s1 + $0x1ee8] ss:$16 sps:$4 sm:$0xff]  }
 0x3a8   : > { %7148 = vmatprep.subr.bf16.mxu0 %v10719_v35  ;;  %7836 = vmatprep.subr.bf16.mxu1 %v10722_v36  ;;  %v10809_v35 = vld [vmem:[%s14139_s1 + $0x1f04] ss:$16 sps:$4 sm:$0xff]   ;;  %v10812_v36 = vld [vmem:[%s14139_s1 + $0x1f0c] ss:$16 sps:$4 sm:$0xff]  }
 0x3ab   : > { %7149 = vmatpush1.bf16.msra.mxu0 %v10717_v37  ;;  %7837 = vmatpush1.bf16.msra.mxu1 %v10720_v38  ;;  %v10807_v37 = vld [vmem:[%s14139_s1 + $0x1f00] ss:$16 sps:$4 sm:$0xff]   ;;  %v10810_v38 = vld [vmem:[%s14139_s1 + $0x1f08] ss:$16 sps:$4 sm:$0xff]  }
 0x3ac   : > { %7150 = vmatprep.subr.bf16.mxu0 %v10725_v39  ;;  %7838 = vmatprep.subr.bf16.mxu1 %v10728_v40  ;;  %v10815_v39 = vld [vmem:[%s14139_s1 + $0x1f24] ss:$16 sps:$4 sm:$0xff]   ;;  %v10818_v40 = vld [vmem:[%s14139_s1 + $0x1f2c] ss:$16 sps:$4 sm:$0xff]  }
 0x3af   : > { %7151 = vmatpush1.bf16.msra.mxu0 %v10723_v41  ;;  %7839 = vmatpush1.bf16.msra.mxu1 %v10726_v42  ;;  %v10813_v41 = vld [vmem:[%s14139_s1 + $0x1f20] ss:$16 sps:$4 sm:$0xff]   ;;  %v10816_v42 = vld [vmem:[%s14139_s1 + $0x1f28] ss:$16 sps:$4 sm:$0xff]  }
 0x3b0   : > { %7152 = vmatprep.subr.bf16.mxu0 %v10731_v43  ;;  %7840 = vmatprep.subr.bf16.mxu1 %v10734_v44  ;;  %v10821_v43 = vld [vmem:[%s14139_s1 + $0x1f44] ss:$16 sps:$4 sm:$0xff]   ;;  %v10824_v44 = vld [vmem:[%s14139_s1 + $0x1f4c] ss:$16 sps:$4 sm:$0xff]  }
 0x3b3   : > { %7153 = vmatpush1.bf16.msra.mxu0 %v10729_v21  ;;  %7841 = vmatpush1.bf16.msra.mxu1 %v10732_v46  ;;  %v10819_v21 = vld [vmem:[%s14139_s1 + $0x1f40] ss:$16 sps:$4 sm:$0xff]   ;;  %v10822_v46 = vld [vmem:[%s14139_s1 + $0x1f48] ss:$16 sps:$4 sm:$0xff]  }
 0x3b4   : > { %7154 = vmatprep.subr.bf16.mxu0 %v10737_v47  ;;  %7842 = vmatprep.subr.bf16.mxu1 %v10740_v18  ;;  %v10827_v47 = vld [vmem:[%s14139_s1 + $0x1f64] ss:$16 sps:$4 sm:$0xff]   ;;  %v10830_v18 = vld [vmem:[%s14139_s1 + $0x1f6c] ss:$16 sps:$4 sm:$0xff]  }
 0x3b7   : > { %7155 = vmatpush1.bf16.msra.mxu0 %v10735_v19  ;;  %7843 = vmatpush1.bf16.msra.mxu1 %v10738_v50  ;;  %v10825_v19 = vld [vmem:[%s14139_s1 + $0x1f60] ss:$16 sps:$4 sm:$0xff]   ;;  %v10828_v50 = vld [vmem:[%s14139_s1 + $0x1f68] ss:$16 sps:$4 sm:$0xff]  }
 0x3b8   : > { %7156 = vmatprep.subr.bf16.mxu0 %v10743_v51  ;;  %7844 = vmatprep.subr.bf16.mxu1 %v10746_v14  ;;  %v10833_v51 = vld [vmem:[%s14139_s1 + $0x1f84] ss:$16 sps:$4 sm:$0xff]   ;;  %v10836_v14 = vld [vmem:[%s14139_s1 + $0x1f8c] ss:$16 sps:$4 sm:$0xff]  }
 0x3bb   : > { %7157 = vmatpush1.bf16.msra.mxu0 %v10741_v45  ;;  %7845 = vmatpush1.bf16.msra.mxu1 %v10744_v54  ;;  %v10831_v45 = vld [vmem:[%s14139_s1 + $0x1f80] ss:$16 sps:$4 sm:$0xff]   ;;  %v10834_v54 = vld [vmem:[%s14139_s1 + $0x1f88] ss:$16 sps:$4 sm:$0xff]  }
 0x3bc   : > { %7158 = vmatprep.subr.bf16.mxu0 %v10749_v55  ;;  %7846 = vmatprep.subr.bf16.mxu1 %v10752_v48  ;;  %v10839_v55 = vld [vmem:[%s14139_s1 + $0x1fa4] ss:$16 sps:$4 sm:$0xff]   ;;  %v10842_v48 = vld [vmem:[%s14139_s1 + $0x1fac] ss:$16 sps:$4 sm:$0xff]  }
 0x3bf   : > { %7159 = vmatpush1.bf16.msra.mxu0 %v10747_v49  ;;  %7847 = vmatpush1.bf16.msra.mxu1 %v10750_v58  ;;  %v10837_v49 = vld [vmem:[%s14139_s1 + $0x1fa0] ss:$16 sps:$4 sm:$0xff]   ;;  %v10840_v58 = vld [vmem:[%s14139_s1 + $0x1fa8] ss:$16 sps:$4 sm:$0xff]  }
 0x3c0   : > { %7160 = vmatprep.subr.bf16.mxu0 %v10755_v59  ;;  %7848 = vmatprep.subr.bf16.mxu1 %v10758_v52  ;;  %v10845_v59 = vld [vmem:[%s14139_s1 + $0x1fc4] ss:$16 sps:$4 sm:$0xff]   ;;  %v10848_v52 = vld [vmem:[%s14139_s1 + $0x1fcc] ss:$16 sps:$4 sm:$0xff]  }
 0x3c3   : > { %7161 = vmatpush1.bf16.msra.mxu0 %v10753_v53  ;;  %7849 = vmatpush1.bf16.msra.mxu1 %v10756_v62  ;;  %v10843_v53 = vld [vmem:[%s14139_s1 + $0x1fc0] ss:$16 sps:$4 sm:$0xff]   ;;  %v10846_v62 = vld [vmem:[%s14139_s1 + $0x1fc8] ss:$16 sps:$4 sm:$0xff]  }
 0x3c4   : > { %7173 = vmatprep.subr.bf16.mxu0 %v10761_v63  ;;  %7861 = vmatprep.subr.bf16.mxu1 %v10764_v56  ;;  %v10851_v63 = vld [vmem:[%s14139_s1 + $0x1fe4] ss:$16 sps:$4 sm:$0xff]   ;;  %v10854_v56 = vld [vmem:[%s14139_s1 + $0x1fec] ss:$16 sps:$4 sm:$0xff]  }
 0x3c6   : > { %7163 = vmatmul.mubr.bf16.vlgmr.msra.gmra.mrb[0].mxu0 %v8150_v57  ;;  %7851 = vmatmul.mubr.bf16.vlgmr.msra.gmra.mrb[0].mxu1 %v8150_v57  ;;  %v10849_v57 = vld [vmem:[%s14139_s1 + $0x1fe0] ss:$16 sps:$4 sm:$0xff]  }
 0x3c7   : > { %7174 = vmatpush1.bf16.msra.mxu0 %v10759_v2  ;;  %7862 = vmatpush1.bf16.msra.mxu1 %v10762_v3  ;;  %v10852_v2 = vld [vmem:[%s14139_s1 + $0x1fe8] ss:$16 sps:$4 sm:$0xff]   ;;  %v8152_v3 = vcombine.low %v13931_v0, %v13934_v1 }
 0x3c8   : > { %7175 = vmatprep.subr.bf16.mxu0 %v10767_v60  ;;  %7863 = vmatprep.subr.bf16.mxu1 %v10770_v61 }
 0x3c9   : > { %7205 = vmatprep.mubr.bf16.mxu0 %v8153_v4  ;;  %7893 = vmatprep.mubr.bf16.mxu1 %v8153_v4 }
 0x3cb   : > { %7176 = vmatpush1.bf16.msra.mxu0 %v10765_v5  ;;  %7864 = vmatpush1.bf16.msra.mxu1 %v10768_v6 }
 0x3cc   : > { %7177 = vmatprep.subr.bf16.mxu0 %v10773_v7  ;;  %7865 = vmatprep.subr.bf16.mxu1 %v10776_v8 }
 0x3cf   : > { %7178 = vmatpush1.bf16.msra.mxu0 %v10771_v9  ;;  %7866 = vmatpush1.bf16.msra.mxu1 %v10774_v10 }
 0x3d0   : > { %7179 = vmatprep.subr.bf16.mxu0 %v10779_v11  ;;  %7867 = vmatprep.subr.bf16.mxu1 %v10782_v12 }
 0x3d3   : > { %7180 = vmatpush1.bf16.msra.mxu0 %v10777_v13  ;;  %7868 = vmatpush1.bf16.msra.mxu1 %v10780_v16 }
 0x3d4   : > { %7181 = vmatprep.subr.bf16.mxu0 %v10785_v17  ;;  %7869 = vmatprep.subr.bf16.mxu1 %v10788_v20 }
 0x3d7   : > { %7182 = vmatpush1.bf16.msra.mxu0 %v10783_v22  ;;  %7870 = vmatpush1.bf16.msra.mxu1 %v10786_v15 }
 0x3d8   : > { %7183 = vmatprep.subr.bf16.mxu0 %v10791_v23  ;;  %7871 = vmatprep.subr.bf16.mxu1 %v10794_v24 }
 0x3db   : > { %7184 = vmatpush1.bf16.msra.mxu0 %v10789_v25  ;;  %7872 = vmatpush1.bf16.msra.mxu1 %v10792_v26 }
 0x3dc   : > { %7185 = vmatprep.subr.bf16.mxu0 %v10797_v27  ;;  %7873 = vmatprep.subr.bf16.mxu1 %v10800_v28 }
 0x3df   : > { %7186 = vmatpush1.bf16.msra.mxu0 %v10795_v29  ;;  %7874 = vmatpush1.bf16.msra.mxu1 %v10798_v30 }
 0x3e0   : > { %7187 = vmatprep.subr.bf16.mxu0 %v10803_v31  ;;  %7875 = vmatprep.subr.bf16.mxu1 %v10806_v32 }
 0x3e3   : > { %7188 = vmatpush1.bf16.msra.mxu0 %v10801_v33  ;;  %7876 = vmatpush1.bf16.msra.mxu1 %v10804_v34 }
 0x3e4   : > { %7189 = vmatprep.subr.bf16.mxu0 %v10809_v35  ;;  %7877 = vmatprep.subr.bf16.mxu1 %v10812_v36 }
 0x3e7   : > { %7190 = vmatpush1.bf16.msra.mxu0 %v10807_v37  ;;  %7878 = vmatpush1.bf16.msra.mxu1 %v10810_v38 }
 0x3e8   : > { %7191 = vmatprep.subr.bf16.mxu0 %v10815_v39  ;;  %7879 = vmatprep.subr.bf16.mxu1 %v10818_v40 }
 0x3eb   : > { %7192 = vmatpush1.bf16.msra.mxu0 %v10813_v41  ;;  %7880 = vmatpush1.bf16.msra.mxu1 %v10816_v42 }
 0x3ec   : > { %7193 = vmatprep.subr.bf16.mxu0 %v10821_v43  ;;  %7881 = vmatprep.subr.bf16.mxu1 %v10824_v44 }
 0x3ef   : > { %7194 = vmatpush1.bf16.msra.mxu0 %v10819_v21  ;;  %7882 = vmatpush1.bf16.msra.mxu1 %v10822_v46 }
 0x3f0   : > { %7195 = vmatprep.subr.bf16.mxu0 %v10827_v47  ;;  %7883 = vmatprep.subr.bf16.mxu1 %v10830_v18 }
 0x3f3   : > { %7196 = vmatpush1.bf16.msra.mxu0 %v10825_v19  ;;  %7884 = vmatpush1.bf16.msra.mxu1 %v10828_v50 }
 0x3f4   : > { %7197 = vmatprep.subr.bf16.mxu0 %v10833_v51  ;;  %7885 = vmatprep.subr.bf16.mxu1 %v10836_v14 }
 0x3f7   : > { %7198 = vmatpush1.bf16.msra.mxu0 %v10831_v45  ;;  %7886 = vmatpush1.bf16.msra.mxu1 %v10834_v54 }
 0x3f8   : > { %7199 = vmatprep.subr.bf16.mxu0 %v10839_v55  ;;  %7887 = vmatprep.subr.bf16.mxu1 %v10842_v48 }
 0x3fb   : > { %7200 = vmatpush1.bf16.msra.mxu0 %v10837_v49  ;;  %7888 = vmatpush1.bf16.msra.mxu1 %v10840_v58 }
 0x3fc   : > { %7201 = vmatprep.subr.bf16.mxu0 %v10845_v59  ;;  %7889 = vmatprep.subr.bf16.mxu1 %v10848_v52 }
 0x3ff   : > { %7202 = vmatpush1.bf16.msra.mxu0 %v10843_v53  ;;  %7890 = vmatpush1.bf16.msra.mxu1 %v10846_v62 }
 0x400   : > { %7203 = vmatprep.subr.bf16.mxu0 %v10851_v63  ;;  %7891 = vmatprep.subr.bf16.mxu1 %v10854_v56 }
 0x403   : > { %7204 = vmatpush1.bf16.msra.mxu0 %v10849_v57  ;;  %7892 = vmatpush1.bf16.msra.mxu1 %v10852_v2 }
 0x406   : > { %7206 = vmatmul.mubr.bf16.vlgmr.msra.gmra.mrb[0].mxu0 %v8152_v3  ;;  %7894 = vmatmul.mubr.bf16.vlgmr.msra.gmra.mrb[0].mxu1 %v8152_v3 }
 0x4d9   : > { %v7207_v60 = vpop.f32.mrb[0].mxu0  ;;  %v7895_v61 = vpop.f32.mrb[0].mxu1 }
 0x4da   : > { %v7209_v4 = vpop.f32.mrb[1].mxu0  ;;  %v7897_v5 = vpop.f32.mrb[1].mxu1 }
 0x4db   : > { %v9187_v6 = vpack.c.bf16 %v7209_v4, %v7207_v60  ;;  %v9188_v7 = vpack.c.bf16 %v7897_v5, %v7895_v61  ;;  %v7211_v8 = vpop.f32.mrb[2].mxu0  ;;  %v7899_v9 = vpop.f32.mrb[2].mxu1 }
 0x4dc   : > { %v7932_v10 = vadd.f32 %v7211_v8, %v7207_v60  ;;  %v7946_v11 = vadd.f32 %v7899_v9, %v7895_v61  ;;  %v7213_v0 = vpop.f32.mrb[3].mxu0  ;;  %v7901_v1 = vpop.f32.mrb[3].mxu1 }
 0x4dd   : > { %7928 = vst [vmem:[%s185_s9] sm:$0xff] %v9187_v6  ;;  %7929 = vst [vmem:[%s185_s9 + $0x8] sm:$0xff] %v9188_v7  ;;  %v9189_v12 = vpack.c.bf16 %v7213_v0, %v7211_v8  ;;  %v7939_v13 = vadd.f32 %v7213_v0, %v7209_v4  ;;  %v9190_v16 = vpack.c.bf16 %v7901_v1, %v7899_v9 }
 0x4de   : > { %v7953_v17 = vadd.f32 %v7901_v1, %v7897_v5  ;;  %v7933_v20 = vrot.slane %v7932_v10, 4  ;;  %v7947_v22 = vrot.slane %v7946_v11, 4 }
 0x4df   : > { %7930 = vst [vmem:[%s185_s9 + $0x10] sm:$0xff] %v9189_v12  ;;  %v7940_v15 = vrot.slane %v7939_v13, 4  ;;  %7931 = vst [vmem:[%s185_s9 + $0x18] sm:$0xff] %v9190_v16 }
 0x4e0   : > { %v7954_v23 = vrot.slane %v7953_v17, 4  ;;  %v7934_v24 = vadd.f32 %v7933_v20, %v7932_v10  ;;  %v7948_v25 = vadd.f32 %v7947_v22, %v7946_v11 }
 0x4e1   : > { %v7941_v26 = vadd.f32 %v7940_v15, %v7939_v13 }
 0x4e2   : > { %v7955_v27 = vadd.f32 %v7954_v23, %v7953_v17  ;;  %v7935_v28 = vrot.slane %v7934_v24, 2  ;;  %v7949_v29 = vrot.slane %v7948_v25, 2 }
 0x4e3   : > { %v7942_v30 = vrot.slane %v7941_v26, 2 }
 0x4e4   : > { %v7956_v31 = vrot.slane %v7955_v27, 2  ;;  %v7936_v32 = vadd.f32 %v7935_v28, %v7934_v24  ;;  %v7950_v33 = vadd.f32 %v7949_v29, %v7948_v25 }
 0x4e5   : > { %v7943_v34 = vadd.f32 %v7942_v30, %v7941_v26 }
 0x4e6   : > { %v7957_v35 = vadd.f32 %v7956_v31, %v7955_v27  ;;  %v7937_v36 = vrot.slane %v7936_v32, 1  ;;  %v7951_v37 = vrot.slane %v7950_v33, 1 }
 0x4e7   : > { %v7944_v38 = vrot.slane %v7943_v34, 1 }
 0x4e8   : > { %v7958_v39 = vrot.slane %v7957_v35, 1  ;;  %v7938_v40 = vadd.f32 %v7937_v36, %v7936_v32  ;;  %v7952_v41 = vadd.f32 %v7951_v37, %v7950_v33 }
 0x4e9   : > { %v7945_v42 = vadd.f32 %v7944_v38, %v7943_v34 }
 0x4ea   : > { %v7959_v43 = vadd.f32 %v7958_v39, %v7957_v35  ;;  %v7961_v44 = vmul.f32 0.0625, %v7938_v40  ;;  %v7963_v21 = vmul.f32 0.0625, %v7952_v41 }
 0x4eb   : > { %v7962_v46 = vmul.f32 0.0625, %v7945_v42 }
 0x4ec   : > { %v7964_v47 = vmul.f32 0.0625, %v7959_v43  ;;  %v7965_v18 = vsub.f32 %v7207_v60, %v7961_v44  ;;  %v7969_v19 = vsub.f32 %v7211_v8, %v7961_v44  ;;  %v7967_v50 = vsub.f32 %v7895_v61, %v7963_v21 }
 0x4ed   : > { %v7971_v51 = vsub.f32 %v7899_v9, %v7963_v21  ;;  %v7966_v14 = vsub.f32 %v7209_v4, %v7962_v46  ;;  %v7970_v45 = vsub.f32 %v7213_v0, %v7962_v46 }
 0x4ee   : > { %v7968_v54 = vsub.f32 %v7897_v5, %v7964_v47  ;;  %v7972_v55 = vsub.f32 %v7901_v1, %v7964_v47  ;;  %v7973_v48 = vmul.f32 %v7965_v18, %v7965_v18  ;;  %v7977_v49 = vmul.f32 %v7969_v19, %v7969_v19 }
 0x4ef   : > { %v7975_v58 = vmul.f32 %v7967_v50, %v7967_v50  ;;  %v7979_v59 = vmul.f32 %v7971_v51, %v7971_v51  ;;  %v7974_v52 = vmul.f32 %v7966_v14, %v7966_v14  ;;  %v7978_v53 = vmul.f32 %v7970_v45, %v7970_v45 }
 0x4f0   : > { %v7976_v62 = vmul.f32 %v7968_v54, %v7968_v54  ;;  %v7980_v63 = vmul.f32 %v7972_v55, %v7972_v55  ;;  %v7981_v56 = vadd.f32 %v7977_v49, %v7973_v48 }
 0x4f1   : > { %v7995_v57 = vadd.f32 %v7979_v59, %v7975_v58  ;;  %v7988_v2 = vadd.f32 %v7978_v53, %v7974_v52 }
 0x4f2   : > { %v8002_v3 = vadd.f32 %v7980_v63, %v7976_v62  ;;  %v7982_v60 = vrot.slane %v7981_v56, 4 }
 0x4f3   : > { %v7996_v61 = vrot.slane %v7995_v57, 4  ;;  %v7989_v4 = vrot.slane %v7988_v2, 4 }
 0x4f4   : > { %v8003_v6 = vrot.slane %v8002_v3, 4  ;;  %v7983_v5 = vadd.f32 %v7982_v60, %v7981_v56 }
 0x4f5   : > { %v7997_v7 = vadd.f32 %v7996_v61, %v7995_v57  ;;  %v7990_v8 = vadd.f32 %v7989_v4, %v7988_v2 }
 0x4f6   : > { %v8004_v9 = vadd.f32 %v8003_v6, %v8002_v3  ;;  %v7984_v10 = vrot.slane %v7983_v5, 2 }
 0x4f7   : > { %v7998_v11 = vrot.slane %v7997_v7, 2  ;;  %v7991_v0 = vrot.slane %v7990_v8, 2 }
 0x4f8   : > { %v8005_v1 = vrot.slane %v8004_v9, 2  ;;  %v7985_v12 = vadd.f32 %v7984_v10, %v7983_v5 }
 0x4f9   : > { %v7999_v13 = vadd.f32 %v7998_v11, %v7997_v7  ;;  %v7992_v16 = vadd.f32 %v7991_v0, %v7990_v8 }
 0x4fa   : > { %v8006_v17 = vadd.f32 %v8005_v1, %v8004_v9  ;;  %v7986_v20 = vrot.slane %v7985_v12, 1 }
 0x4fb   : > { %v8000_v22 = vrot.slane %v7999_v13, 1  ;;  %v7993_v15 = vrot.slane %v7992_v16, 1 }
 0x4fc   : > { %v8007_v23 = vrot.slane %v8006_v17, 1  ;;  %v7987_v24 = vadd.f32 %v7986_v20, %v7985_v12 }
 0x4fd   : > { %v8001_v25 = vadd.f32 %v8000_v22, %v7999_v13  ;;  %v7994_v26 = vadd.f32 %v7993_v15, %v7992_v16 }
 0x4fe   : > { %v8008_v27 = vadd.f32 %v8007_v23, %v8006_v17  ;;  %v8010_v28 = vsel %vm8009_vm0, %v7961_v44, %v7987_v24 }
 0x4ff   : > { %v8012_v29 = vsel %vm8009_vm0, %v7963_v21, %v8001_v25  ;;  %8014 = vst [vmem:[%s191_s11] sm:$0x3] %v8010_v28  ;;  %v8011_v30 = vsel %vm8009_vm0, %v7962_v46, %v7994_v26 }
 0x500   : > { %8016 = vst [vmem:[%s191_s11 + $0x10] sm:$0x3] %v8012_v29  ;;  %v8013_v31 = vsel %vm8009_vm0, %v7964_v47, %v8008_v27  ;;  %8015 = vst [vmem:[%s191_s11 + $0x8] sm:$0x3] %v8011_v30 }
 0x501   : > { %8017 = vst [vmem:[%s191_s11 + $0x18] sm:$0x3] %v8013_v31 }
 0x502 PF: > { %s14_s12 = sadd.s32 1, %s10861_s12  }
 0x503   : > { %p11_p5 = scmp.ge.s32.totalorder %s14_s12, 4  }
 0x505   :  { %13 = sbr.rel (!%p11_p5) target bundleno = 1 (0x1), region = 70 }

// kernel: discriminator_forward.15
= control target key start
LH: loop header
LB: loop body
LE: loop exit
PB: predicated region body
PF: predicated region fallthrough
CT: control target
= control target key end

     0   :  { %v57_v0 = vlaneseq  ;;  %v2290_v6 = vmov 1983009808   ;;  %vm2153_vm0 = vcmask 1041408   ;;  %vm2283_vm1 = vcmask 1024   ;;  %s3530_s0 = inlined_call_operand.vmem [shape: bf16[2,8192], index: 0, kind: input, shape index: {}]   ;;  %s3531_s1 = inlined_call_operand.vmem [shape: f32[1,8192], index: 1, kind: input, shape index: {}]   ;;  %s3532_s2 = inlined_call_operand.vmem [shape: f32[1,8192], index: 2, kind: input, shape index: {}]   ;;  %s3533_s3 = inlined_call_operand.vmem [shape: f32[1,8192], index: 3, kind: input, shape index: {}]   ;;  %s3534_s4 = inlined_call_operand.vmem [shape: f32[2,1], index: 4, kind: output, shape index: {}]  }
   0x1   :  { %v2319_v1 = vld [vmem:[%s3530_s0] sm:$0xff]  ;;  %v2331_v4 = vld [vmem:[%s3530_s0 + $0x28] sm:$0xff]  ;;  %v316_v7 = vunpack.c.l.s4 %v2290_v6  ;;  %v2337_v8 = vld [vmem:[%s3530_s0 + $0x30] sm:$0xff] }
   0x2   :  { %v2321_v2 = vshrl.u32 %v57_v0, 7  ;;  %v2326_v3 = vld [vmem:[%s3530_s0 + $0x20] sm:$0xff]  ;;  %v2342_v9 = vld [vmem:[%s3530_s0 + $0x38] sm:$0xff]  ;;  %v35_v20 = vunpack.c.l.bf16 %v2331_v4  ;;  %v36_v23 = vunpack.c.h.bf16 %v2331_v4  ;;  %v37_v24 = vunpack.c.l.bf16 %v2337_v8  ;;  %v46_v32 = vld [vmem:[%s3531_s1 + $0x28] sm:$0xff] }
   0x3   :  { %v33_v11 = vunpack.c.l.bf16 %v2326_v3  ;;  %v2355_v14 = vld [vmem:[%s3531_s1] sm:$0xff]  ;;  %v34_v19 = vunpack.c.h.bf16 %v2326_v3  ;;  %v38_v25 = vunpack.c.h.bf16 %v2337_v8  ;;  %v39_v26 = vunpack.c.l.bf16 %v2342_v9  ;;  %v47_v41 = vld [vmem:[%s3531_s1 + $0x30] sm:$0xff]  ;;  %v48_v54 = vld [vmem:[%s3531_s1 + $0x38] sm:$0xff] }
   0x4   :  { %v2347_v12 = vsub.s32 0, %v2321_v2  ;;  %v2350_v13 = vsub.s32 1, %v2321_v2  ;;  %v2358_v15 = vsub.s32 2, %v2321_v2  ;;  %v2361_v16 = vsub.s32 3, %v2321_v2  ;;  %v45_v27 = vld [vmem:[%s3531_s1 + $0x20] sm:$0xff] }
   0x5   :  { %v2364_v17 = vsub.s32 4, %v2321_v2  ;;  %v2367_v18 = vsub.s32 5, %v2321_v2  ;;  %v2372_v21 = vsub.s32 6, %v2321_v2  ;;  %v2375_v22 = vsub.s32 7, %v2321_v2 }
   0x6   :  { %3579 = vst [vmem:[#allocation2_spill] sm:$0xff] %v2350_v13  ;;  %3580 = vst [vmem:[#allocation3_spill] sm:$0xff] %v2358_v15  ;;  %v40_v28 = vunpack.c.h.bf16 %v2342_v9  ;;  %v64_v30 = vrot.slane %v2355_v14, %v2350_v13  ;;  %v317_v31 = vunpack.c.0.s8 %v316_v7  ;;  %v188_v39 = vrot.slane %v45_v27, %v2347_v12 }
   0x7   :  { %3581 = vst [vmem:[#allocation4_spill] sm:$0xff] %v2361_v16  ;;  %3582 = vst [vmem:[#allocation5_spill] sm:$0xff] %v2364_v17  ;;  %v192_v40 = vrot.slane %v45_v27, %v2350_v13  ;;  %v196_v42 = vrot.slane %v45_v27, %v2358_v15  ;;  %v200_v43 = vrot.slane %v45_v27, %v2361_v16 }
   0x8   :  { %3583 = vst [vmem:[#allocation6_spill] sm:$0xff] %v2367_v18  ;;  %3584 = vst [vmem:[#allocation7_spill] sm:$0xff] %v2372_v21  ;;  %v204_v44 = vrot.slane %v45_v27, %v2364_v17  ;;  %v208_v45 = vrot.slane %v45_v27, %v2367_v18  ;;  %v212_v46 = vrot.slane %v45_v27, %v2372_v21 }
   0x9   :  { %3585 = vst [vmem:[#allocation8_spill] sm:$0xff] %v2375_v22  ;;  %v216_v47 = vrot.slane %v45_v27, %v2375_v22  ;;  %v220_v48 = vrot.slane %v46_v32, %v2347_v12  ;;  %v224_v49 = vrot.slane %v46_v32, %v2350_v13  ;;  %v228_v50 = vrot.slane %v46_v32, %v2358_v15 }
   0xa   :  { %v232_v51 = vrot.slane %v46_v32, %v2361_v16  ;;  %v236_v52 = vrot.slane %v46_v32, %v2364_v17  ;;  %v240_v53 = vrot.slane %v46_v32, %v2367_v18  ;;  %v244_v55 = vrot.slane %v46_v32, %v2372_v21 }
   0xb   :  { %v248_v56 = vrot.slane %v46_v32, %v2375_v22  ;;  %v252_v57 = vrot.slane %v47_v41, %v2347_v12  ;;  %v256_v58 = vrot.slane %v47_v41, %v2350_v13  ;;  %v260_v59 = vrot.slane %v47_v41, %v2358_v15 }
   0xc   :  { %v264_v60 = vrot.slane %v47_v41, %v2361_v16  ;;  %v268_v61 = vrot.slane %v47_v41, %v2364_v17  ;;  %v272_v62 = vrot.slane %v47_v41, %v2367_v18  ;;  %v276_v63 = vrot.slane %v47_v41, %v2372_v21 }
   0xd   :  { %v280_v0 = vrot.slane %v47_v41, %v2375_v22  ;;  %v2435_v6 = vsub.s32 %v317_v31, %v2321_v2  ;;  %v449_v7 = vcombine.low %v188_v39, %v192_v40  ;;  %v284_v27 = vrot.slane %v48_v54, %v2347_v12 }
   0xe   :  { %v288_v32 = vrot.slane %v48_v54, %v2350_v13  ;;  %v292_v10 = vrot.slane %v48_v54, %v2358_v15  ;;  %v450_v5 = vcombine.low %v196_v42, %v200_v43  ;;  %v296_v37 = vrot.slane %v48_v54, %v2361_v16 }
   0xf   :  { %v457_v38 = vrot.slane %v449_v7, %v2435_v6  ;;  %v466_v35 = vcombine.low %v204_v44, %v208_v45  ;;  %v467_v36 = vcombine.low %v212_v46, %v216_v47  ;;  %v300_v33 = vrot.slane %v48_v54, %v2364_v17 }
  0x10   :  { %v464_v41 = vrot.slane %v450_v5, %v2435_v6  ;;  %v483_v2 = vcombine.low %v220_v48, %v224_v49  ;;  %v484_v31 = vcombine.low %v228_v50, %v232_v51  ;;  %v304_v39 = vrot.slane %v48_v54, %v2367_v18 }
  0x11   :  { %v308_v40 = vrot.slane %v48_v54, %v2372_v21  ;;  %v312_v34 = vrot.slane %v48_v54, %v2375_v22  ;;  %v500_v29 = vcombine.low %v236_v52, %v240_v53  ;;  %v474_v43 = vrot.slane %v466_v35, %v2435_v6 }
  0x12   :  { %v465_v42 = vcombine.low %v457_v38, %v464_v41  ;;  %v481_v7 = vrot.slane %v467_v36, %v2435_v6  ;;  %v501_v44 = vcombine.low %v244_v55, %v248_v56  ;;  %v491_v45 = vrot.slane %v483_v2, %v2435_v6  ;;  %v42_v36 = vld [vmem:[%s3531_s1 + $0x8] sm:$0xff] }
  0x13   :  { %v498_v46 = vrot.slane %v484_v31, %v2435_v6  ;;  %v517_v5 = vcombine.low %v252_v57, %v256_v58  ;;  %v518_v47 = vcombine.low %v260_v59, %v264_v60  ;;  %v508_v48 = vrot.slane %v500_v29, %v2435_v6 }
  0x14   :  { %v515_v49 = vrot.slane %v501_v44, %v2435_v6  ;;  %v534_v50 = vcombine.low %v268_v61, %v272_v62  ;;  %v535_v51 = vcombine.low %v276_v63, %v280_v0  ;;  %v551_v35 = vcombine.low %v284_v27, %v288_v32  ;;  %v2488_v44 = vld [vmem:[%s3531_s1 + $0x18] sm:$0xff] }
  0x15   :  { %v525_v52 = vrot.slane %v517_v5, %v2435_v6  ;;  %v532_v38 = vrot.slane %v518_v47, %v2435_v6  ;;  %v552_v53 = vcombine.low %v292_v10, %v296_v37  ;;  %v482_v54 = vcombine.low %v474_v43, %v481_v7 }
  0x16   :  { %v542_v55 = vrot.slane %v534_v50, %v2435_v6  ;;  %v549_v56 = vrot.slane %v535_v51, %v2435_v6  ;;  %v568_v29 = vcombine.low %v300_v33, %v304_v39  ;;  %v499_v57 = vcombine.low %v491_v45, %v498_v46  ;;  %v43_v33 = vld [vmem:[%s3531_s1 + $0x10] sm:$0xff] }
  0x17   :  { %v559_v58 = vrot.slane %v551_v35, %v2435_v6  ;;  %v566_v59 = vrot.slane %v552_v53, %v2435_v6  ;;  %v569_v60 = vcombine.low %v308_v40, %v312_v34  ;;  %v516_v61 = vcombine.low %v508_v48, %v515_v49 }
  0x18   :  { %v533_v62 = vcombine.low %v525_v52, %v532_v38  ;;  %v550_v63 = vcombine.low %v542_v55, %v549_v56  ;;  %v576_v10 = vrot.slane %v568_v29, %v2435_v6  ;;  %v92_v37 = vrot.slane %v42_v36, %v2347_v12 }
  0x19   :  { %v96_v0 = vrot.slane %v42_v36, %v2350_v13  ;;  %v567_v27 = vcombine.low %v559_v58, %v566_v59  ;;  %v583_v32 = vrot.slane %v569_v60, %v2435_v6  ;;  %v100_v41 = vrot.slane %v42_v36, %v2358_v15 }
  0x1a   :  { %v104_v34 = vrot.slane %v42_v36, %v2361_v16  ;;  %v108_v2 = vrot.slane %v42_v36, %v2364_v17  ;;  %v112_v31 = vrot.slane %v42_v36, %v2367_v18  ;;  %v2475_v40 = vmul.f32 %v465_v42, %v33_v11 }
  0x1b   :  { %v584_v39 = vcombine.low %v576_v10, %v583_v32  ;;  %v2479_v43 = vmul.f32 %v482_v54, %v34_v19  ;;  %v2483_v7 = vmul.f32 %v499_v57, %v35_v20  ;;  %v2492_v45 = vmul.f32 %v516_v61, %v36_v23 }
  0x1c   :  { %v2496_v11 = vmul.f32 %v533_v62, %v37_v24  ;;  %v2500_v3 = vmul.f32 %v550_v63, %v38_v25  ;;  %v2504_v19 = vmul.f32 %v567_v27, %v39_v26  ;;  %v116_v20 = vrot.slane %v42_v36, %v2372_v21 }
  0x1d   :  { %v120_v42 = vrot.slane %v42_v36, %v2375_v22  ;;  %v124_v4 = vrot.slane %v43_v33, %v2347_v12  ;;  %v2511_v23 = vmul.f32 %v584_v39, %v40_v28  ;;  %v128_v24 = vrot.slane %v43_v33, %v2350_v13  ;;  %v2578_v39 = vld [vmem:[%s3530_s0 + $0x18] sm:$0xff] }
  0x1e   :  { %v132_v8 = vrot.slane %v43_v33, %v2358_v15  ;;  %v136_v25 = vrot.slane %v43_v33, %v2361_v16  ;;  %v140_v46 = vrot.slane %v43_v33, %v2364_v17  ;;  %v144_v26 = vrot.slane %v43_v33, %v2367_v18  ;;  %3595 = vst [vmem:[#allocation11_spill] sm:$0xff] %v2578_v39 }
  0x1f   :  { %v148_v5 = vrot.slane %v43_v33, %v2372_v21  ;;  %v152_v47 = vrot.slane %v43_v33, %v2375_v22  ;;  %v156_v48 = vrot.slane %v2488_v44, %v2347_v12  ;;  %v160_v9 = vrot.slane %v2488_v44, %v2350_v13 }
  0x20   :  { %v164_v28 = vrot.slane %v2488_v44, %v2358_v15  ;;  %v168_v49 = vrot.slane %v2488_v44, %v2361_v16  ;;  %v3586_v50 = vrot.slane %v2355_v14, %v2347_v12  ;;  %v3587_v52 = vrot.slane %v2355_v14, %v2361_v16 }
  0x21   :  { %v3588_v38 = vrot.slane %v2355_v14, %v2358_v15  ;;  %v3589_v53 = vrot.slane %v2355_v14, %v2367_v18  ;;  %v3590_v36 = vrot.slane %v2355_v14, %v2364_v17  ;;  %v3591_v55 = vrot.slane %v2355_v14, %v2375_v22 }
  0x22   :  { %v313_v51 = vcombine.low %v3586_v50, %v64_v30  ;;  %v3592_v30 = vrot.slane %v2355_v14, %v2372_v21  ;;  %v347_v29 = vcombine.low %v92_v37, %v96_v0  ;;  %v348_v57 = vcombine.low %v100_v41, %v104_v34  ;;  %v2564_v0 = vld [vmem:[%s3530_s0 + $0x8] sm:$0xff] }
  0x23   :  { %v314_v35 = vcombine.low %v3588_v38, %v3587_v52  ;;  %v330_v54 = vcombine.low %v3590_v36, %v3589_v53  ;;  %v364_v58 = vcombine.low %v108_v2, %v112_v31  ;;  %v365_v59 = vcombine.low %v116_v20, %v120_v42  ;;  %3593 = vst [vmem:[#allocation9_spill] sm:$0xff] %v2564_v0  ;;  %v2573_v31 = vld [vmem:[%s3530_s0 + $0x10] sm:$0xff] }
  0x24   :  { %v331_v56 = vcombine.low %v3592_v30, %v3591_v55  ;;  %v381_v60 = vcombine.low %v124_v4, %v128_v24  ;;  %v172_v61 = vrot.slane %v2488_v44, %v2364_v17  ;;  %v382_v62 = vcombine.low %v132_v8, %v136_v25  ;;  %3594 = vst [vmem:[#allocation10_spill] sm:$0xff] %v2573_v31 }
  0x25   :  { %v398_v63 = vcombine.low %v140_v46, %v144_v26  ;;  %v399_v10 = vcombine.low %v148_v5, %v152_v47  ;;  %v176_v27 = vrot.slane %v2488_v44, %v2367_v18  ;;  %v180_v32 = vrot.slane %v2488_v44, %v2372_v21 }
  0x26   :  { %v184_v14 = vrot.slane %v2488_v44, %v2375_v22  ;;  %v321_v37 = vrot.slane %v313_v51, %v2435_v6  ;;  %v328_v33 = vrot.slane %v314_v35, %v2435_v6  ;;  %v338_v41 = vrot.slane %v330_v54, %v2435_v6 }
  0x27   :  { %v345_v34 = vrot.slane %v331_v56, %v2435_v6  ;;  %v355_v2 = vrot.slane %v347_v29, %v2435_v6  ;;  %v362_v44 = vrot.slane %v348_v57, %v2435_v6  ;;  %v372_v20 = vrot.slane %v364_v58, %v2435_v6  ;;  %v2623_v56 = vld [vmem:[%s3532_s2 + $0x8] sm:$0xff]  ;;  %v621_v58 = vld [vmem:[%s3532_s2 + $0x20] sm:$0xff] }
  0x28   :  { %v379_v42 = vrot.slane %v365_v59, %v2435_v6  ;;  %v389_v4 = vrot.slane %v381_v60, %v2435_v6  ;;  %v396_v24 = vrot.slane %v382_v62, %v2435_v6  ;;  %v406_v8 = vrot.slane %v398_v63, %v2435_v6 }
  0x29   :  { %v413_v25 = vrot.slane %v399_v10, %v2435_v6  ;;  %v2587_v46 = vcombine.low %v156_v48, %v160_v9  ;;  %v2591_v47 = vcombine.low %v164_v28, %v168_v49  ;;  %v2593_v50 = vcombine.low %v172_v61, %v176_v27  ;;  %v2602_v48 = vld [vmem:[%s3532_s2] sm:$0xff]  ;;  %v622_v27 = vld [vmem:[%s3532_s2 + $0x28] sm:$0xff] }
  0x2a   :  { %v2604_v9 = vcombine.low %v321_v37, %v328_v33  ;;  %v2606_v53 = vcombine.low %v338_v41, %v345_v34  ;;  %v2608_v28 = vcombine.low %v355_v2, %v362_v44  ;;  %v2610_v49 = vcombine.low %v372_v20, %v379_v42  ;;  %v623_v20 = vld [vmem:[%s3532_s2 + $0x30] sm:$0xff]  ;;  %v624_v2 = vld [vmem:[%s3532_s2 + $0x38] sm:$0xff] }
  0x2b   :  { %v2612_v36 = vcombine.low %v389_v4, %v396_v24  ;;  %v2614_v54 = vcombine.low %v406_v8, %v413_v25  ;;  %v2618_v30 = vcombine.low %v180_v32, %v184_v14  ;;  %v764_v44 = vrot.slane %v621_v58, %v2347_v12 }
  0x2c   :  { %3596 = vst [vmem:[#allocation12_spill] sm:$0xff] %v2604_v9  ;;  %3597 = vst [vmem:[#allocation13_spill] sm:$0xff] %v2606_v53  ;;  %v768_v42 = vrot.slane %v621_v58, %v2350_v13  ;;  %v772_v4 = vrot.slane %v621_v58, %v2358_v15  ;;  %v776_v24 = vrot.slane %v621_v58, %v2361_v16 }
  0x2d   :  { %3598 = vst [vmem:[#allocation14_spill] sm:$0xff] %v2608_v28  ;;  %3599 = vst [vmem:[#allocation15_spill] sm:$0xff] %v2610_v49  ;;  %v780_v8 = vrot.slane %v621_v58, %v2364_v17  ;;  %v784_v25 = vrot.slane %v621_v58, %v2367_v18  ;;  %v788_v35 = vrot.slane %v621_v58, %v2372_v21 }
  0x2e   :  { %3600 = vst [vmem:[#allocation16_spill] sm:$0xff] %v2612_v36  ;;  %3601 = vst [vmem:[#allocation17_spill] sm:$0xff] %v2614_v54  ;;  %v792_v38 = vrot.slane %v621_v58, %v2375_v22  ;;  %v796_v52 = vrot.slane %v622_v27, %v2347_v12  ;;  %v800_v51 = vrot.slane %v622_v27, %v2350_v13 }
  0x2f   :  { %v804_v5 = vrot.slane %v622_v27, %v2358_v15  ;;  %v808_v26 = vrot.slane %v622_v27, %v2361_v16  ;;  %v812_v57 = vrot.slane %v622_v27, %v2364_v17  ;;  %v816_v55 = vrot.slane %v622_v27, %v2367_v18 }
  0x30   :  { %v820_v29 = vrot.slane %v622_v27, %v2372_v21  ;;  %v824_v58 = vrot.slane %v622_v27, %v2375_v22  ;;  %v828_v41 = vrot.slane %v623_v20, %v2347_v12  ;;  %v832_v34 = vrot.slane %v623_v20, %v2350_v13 }
  0x31   :  { %v836_v37 = vrot.slane %v623_v20, %v2358_v15  ;;  %v840_v33 = vrot.slane %v623_v20, %v2361_v16  ;;  %v844_v32 = vrot.slane %v623_v20, %v2364_v17  ;;  %v848_v14 = vrot.slane %v623_v20, %v2367_v18 }
  0x32   :  { %v852_v63 = vrot.slane %v623_v20, %v2372_v21  ;;  %v856_v10 = vrot.slane %v623_v20, %v2375_v22  ;;  %v1025_v61 = vcombine.low %v764_v44, %v768_v42  ;;  %v860_v62 = vrot.slane %v624_v2, %v2347_v12 }
  0x33   :  { %v864_v27 = vrot.slane %v624_v2, %v2350_v13  ;;  %v868_v59 = vrot.slane %v624_v2, %v2358_v15  ;;  %v1026_v60 = vcombine.low %v772_v4, %v776_v24  ;;  %v872_v39 = vrot.slane %v624_v2, %v2361_v16 }
  0x34   :  { %v1033_v54 = vrot.slane %v1025_v61, %v2435_v6  ;;  %v1042_v36 = vcombine.low %v780_v8, %v784_v25  ;;  %v1043_v31 = vcombine.low %v788_v35, %v792_v38  ;;  %v876_v49 = vrot.slane %v624_v2, %v2364_v17 }
  0x35   :  { %v1040_v28 = vrot.slane %v1026_v60, %v2435_v6  ;;  %v1059_v0 = vcombine.low %v796_v52, %v800_v51  ;;  %v1060_v20 = vcombine.low %v804_v5, %v808_v26  ;;  %v880_v44 = vrot.slane %v624_v2, %v2367_v18 }
  0x36   :  { %v884_v42 = vrot.slane %v624_v2, %v2372_v21  ;;  %v888_v53 = vrot.slane %v624_v2, %v2375_v22  ;;  %v1076_v9 = vcombine.low %v812_v57, %v816_v55  ;;  %v1050_v24 = vrot.slane %v1042_v36, %v2435_v6 }
  0x37   :  { %v1041_v4 = vcombine.low %v1033_v54, %v1040_v28  ;;  %v1057_v61 = vrot.slane %v1043_v31, %v2435_v6  ;;  %v1077_v8 = vcombine.low %v820_v29, %v824_v58  ;;  %v1067_v38 = vrot.slane %v1059_v0, %v2435_v6 }
  0x38   :  { %v1074_v35 = vrot.slane %v1060_v20, %v2435_v6  ;;  %v1093_v60 = vcombine.low %v828_v41, %v832_v34  ;;  %v1094_v51 = vcombine.low %v836_v37, %v840_v33  ;;  %v1084_v26 = vrot.slane %v1076_v9, %v2435_v6  ;;  %v619_v9 = vld [vmem:[%s3532_s2 + $0x10] sm:$0xff] }
  0x39   :  { %v1091_v5 = vrot.slane %v1077_v8, %v2435_v6  ;;  %v1110_v52 = vcombine.low %v844_v32, %v848_v14  ;;  %v1111_v25 = vcombine.low %v852_v63, %v856_v10  ;;  %v1127_v36 = vcombine.low %v860_v62, %v864_v27 }
  0x3a   :  { %v1101_v55 = vrot.slane %v1093_v60, %v2435_v6  ;;  %v1108_v28 = vrot.slane %v1094_v51, %v2435_v6  ;;  %v1128_v54 = vcombine.low %v868_v59, %v872_v39  ;;  %v1058_v31 = vcombine.low %v1050_v24, %v1057_v61 }
  0x3b   :  { %v1118_v29 = vrot.slane %v1110_v52, %v2435_v6  ;;  %v1125_v0 = vrot.slane %v1111_v25, %v2435_v6  ;;  %v1144_v57 = vcombine.low %v876_v49, %v880_v44  ;;  %v1075_v37 = vcombine.low %v1067_v38, %v1074_v35 }
  0x3c   :  { %v1135_v32 = vrot.slane %v1127_v36, %v2435_v6  ;;  %v1142_v63 = vrot.slane %v1128_v54, %v2435_v6  ;;  %v1145_v10 = vcombine.low %v884_v42, %v888_v53  ;;  %v1092_v14 = vcombine.low %v1084_v26, %v1091_v5 }
  0x3d   :  { %v1109_v33 = vcombine.low %v1101_v55, %v1108_v28  ;;  %v1126_v62 = vcombine.low %v1118_v29, %v1125_v0  ;;  %v1152_v39 = vrot.slane %v1144_v57, %v2435_v6  ;;  %v688_v59 = vrot.slane %v2623_v56, %v2367_v18 }
  0x3e   :  { %v692_v49 = vrot.slane %v2623_v56, %v2372_v21  ;;  %v1143_v41 = vcombine.low %v1135_v32, %v1142_v63  ;;  %v1159_v34 = vrot.slane %v1145_v10, %v2435_v6  ;;  %v696_v2 = vrot.slane %v2623_v56, %v2375_v22 }
  0x3f   :  { %v700_v58 = vrot.slane %v619_v9, %v2347_v12  ;;  %v3602_v53 = vrot.slane %v2602_v48, %v2350_v13  ;;  %v3603_v27 = vrot.slane %v2602_v48, %v2347_v12  ;;  %v3604_v44 = vrot.slane %v2602_v48, %v2361_v16 }
  0x40   :  { %v3605_v42 = vrot.slane %v2602_v48, %v2358_v15  ;;  %v1160_v61 = vcombine.low %v1152_v39, %v1159_v34  ;;  %v2738_v8 = vadd.f32 %v1041_v4, %v2475_v40  ;;  %v2741_v38 = vadd.f32 %v1058_v31, %v2479_v43 }
  0x41   :  { %v889_v20 = vcombine.low %v3603_v27, %v3602_v53  ;;  %v2744_v35 = vadd.f32 %v1075_v37, %v2483_v7  ;;  %v2747_v60 = vadd.f32 %v1092_v14, %v2492_v45  ;;  %v2750_v51 = vadd.f32 %v1109_v33, %v2496_v11 }
  0x42   :  { %v890_v24 = vcombine.low %v3605_v42, %v3604_v44  ;;  %3606 = vst [vmem:[#allocation18_spill] sm:$0xff] %v2741_v38  ;;  %v2753_v26 = vadd.f32 %v1126_v62, %v2500_v3  ;;  %v2756_v5 = vadd.f32 %v1143_v41, %v2504_v19  ;;  %v704_v40 = vrot.slane %v619_v9, %v2350_v13  ;;  %v3630_v42 = vld [vmem:[#allocation9_spill] sm:$0xff] }
  0x43   :  { %3607 = vst [vmem:[#allocation19_spill] sm:$0xff] %v2744_v35  ;;  %3608 = vst [vmem:[#allocation20_spill] sm:$0xff] %v2747_v60  ;;  %v708_v43 = vrot.slane %v619_v9, %v2358_v15  ;;  %v712_v4 = vrot.slane %v619_v9, %v2361_v16  ;;  %v2762_v7 = vadd.f32 %v1160_v61, %v2511_v23  ;;  %v3632_v61 = vld [vmem:[#allocation14_spill] sm:$0xff] }
  0x44   :  { %3609 = vst [vmem:[#allocation21_spill] sm:$0xff] %v2750_v51  ;;  %3610 = vst [vmem:[#allocation22_spill] sm:$0xff] %v2753_v26  ;;  %v3613_v45 = vrot.slane %v2602_v48, %v2367_v18  ;;  %v3614_v11 = vrot.slane %v2602_v48, %v2364_v17  ;;  %v3615_v19 = vrot.slane %v2602_v48, %v2375_v22 }
  0x45   :  { %3611 = vst [vmem:[#allocation23_spill] sm:$0xff] %v2756_v5  ;;  %3612 = vst [vmem:[#allocation24_spill] sm:$0xff] %v2762_v7  ;;  %v3616_v52 = vrot.slane %v2602_v48, %v2372_v21  ;;  %v3617_v55 = vrot.slane %v2623_v56, %v2350_v13  ;;  %v3618_v23 = vrot.slane %v2623_v56, %v2347_v12 }
  0x46   :  { %v906_v3 = vcombine.low %v3614_v11, %v3613_v45  ;;  %v3619_v36 = vrot.slane %v2623_v56, %v2361_v16  ;;  %v3620_v54 = vrot.slane %v2623_v56, %v2358_v15  ;;  %v3621_v29 = vrot.slane %v2591_v47, %v2435_v6 }
  0x47   :  { %v907_v25 = vcombine.low %v3616_v52, %v3615_v19  ;;  %v923_v28 = vcombine.low %v3618_v23, %v3617_v55  ;;  %v3622_v48 = vrot.slane %v2587_v46, %v2435_v6  ;;  %v447_v57 = vrot.slane %v2618_v30, %v2435_v6  ;;  %v3636_v23 = vld [vmem:[#allocation10_spill] sm:$0xff] }
  0x48   :  { %v924_v31 = vcombine.low %v3620_v54, %v3619_v36  ;;  %v716_v37 = vrot.slane %v619_v9, %v2364_v17  ;;  %v720_v32 = vrot.slane %v619_v9, %v2367_v18  ;;  %v897_v63 = vrot.slane %v889_v20, %v2435_v6  ;;  %v3638_v36 = vld [vmem:[#allocation16_spill] sm:$0xff] }
  0x49   :  { %v431_v0 = vcombine.low %v3622_v48, %v3621_v29  ;;  %v904_v10 = vrot.slane %v890_v24, %v2435_v6  ;;  %v3623_v14 = vrot.slane %v2623_v56, %v2364_v17  ;;  %v941_v47 = vcombine.low %v692_v49, %v696_v2  ;;  %v3627_v49 = vld [vmem:[#allocation12_spill] sm:$0xff]  ;;  %v3640_v29 = vld [vmem:[#allocation17_spill] sm:$0xff] }
  0x4a   :  { %v724_v62 = vrot.slane %v619_v9, %v2372_v21  ;;  %v728_v46 = vrot.slane %v619_v9, %v2375_v22  ;;  %v957_v39 = vcombine.low %v700_v58, %v704_v40  ;;  %v958_v41 = vcombine.low %v708_v43, %v712_v4  ;;  %v3629_v58 = vld [vmem:[#allocation13_spill] sm:$0xff]  ;;  %v3634_v4 = vld [vmem:[#allocation15_spill] sm:$0xff] }
  0x4b   :  { %v940_v33 = vcombine.low %v3623_v14, %v688_v59  ;;  %v914_v30 = vrot.slane %v906_v3, %v2435_v6  ;;  %v921_v34 = vrot.slane %v907_v25, %v2435_v6  ;;  %v931_v53 = vrot.slane %v923_v28, %v2435_v6 }
  0x4c   :  { %v938_v27 = vrot.slane %v924_v31, %v2435_v6  ;;  %v3624_v20 = vrot.slane %v2593_v50, %v2435_v6  ;;  %v3626_v59 = vunpack.c.l.bf16 %v2319_v1  ;;  %v3628_v9 = vunpack.c.h.bf16 %v2319_v1  ;;  %v2829_v50 = vld [vmem:[%s3532_s2 + $0x18] sm:$0xff] }
  0x4d   :  { %v3631_v24 = vunpack.c.l.bf16 %v3630_v42  ;;  %v3633_v43 = vunpack.c.h.bf16 %v3630_v42  ;;  %3635 = vst [vmem:[#allocation12_spill] sm:$0xff] %v2829_v50  ;;  %v905_v11 = vcombine.low %v897_v63, %v904_v10  ;;  %v948_v3 = vrot.slane %v940_v33, %v2435_v6  ;;  %v3642_v10 = vld [vmem:[#allocation11_spill] sm:$0xff] }
  0x4e   :  { %v2812_v56 = vcombine.low %v3624_v20, %v447_v57  ;;  %v601_v2 = vmul.f32 %v3627_v49, %v3626_v59  ;;  %v602_v44 = vmul.f32 %v3629_v58, %v3628_v9  ;;  %v955_v1 = vrot.slane %v941_v47, %v2435_v6  ;;  %v2876_v9 = vld [vmem:[%s3533_s3] sm:$0xff] }
  0x4f   :  { %v603_v40 = vmul.f32 %v3632_v61, %v3631_v24  ;;  %v604_v45 = vmul.f32 %v3634_v4, %v3633_v43  ;;  %v965_v19 = vrot.slane %v957_v39, %v2435_v6  ;;  %v972_v52 = vrot.slane %v958_v41, %v2435_v6 }
  0x50   :  { %3625 = vst [vmem:[#allocation25_spill] sm:$0xff] %v2812_v56  ;;  %v974_v25 = vcombine.low %v716_v37, %v720_v32  ;;  %v975_v55 = vcombine.low %v724_v62, %v728_v46  ;;  %v3637_v28 = vunpack.c.l.bf16 %v3636_v23  ;;  %v3639_v31 = vunpack.c.h.bf16 %v3636_v23 }
  0x51   :  { %v922_v57 = vcombine.low %v914_v30, %v921_v34  ;;  %v939_v63 = vcombine.low %v931_v53, %v938_v27  ;;  %v3643_v14 = vunpack.c.l.bf16 %v3642_v10  ;;  %v732_v47 = vrot.slane %v2829_v50, %v2347_v12 }
  0x52   :  { %v605_v54 = vmul.f32 %v3638_v36, %v3637_v28  ;;  %v2841_v48 = vmul.f32 %v3640_v29, %v3639_v31  ;;  %v736_v37 = vrot.slane %v2829_v50, %v2350_v13  ;;  %v740_v32 = vrot.slane %v2829_v50, %v2358_v15  ;;  %v2975_v29 = vld [vmem:[%s3533_s3 + $0x28] sm:$0xff]  ;;  %v1231_v36 = vld [vmem:[%s3533_s3 + $0x30] sm:$0xff] }
  0x53   :  { %v2845_v33 = vmul.f32 %v431_v0, %v3643_v14  ;;  %v744_v62 = vrot.slane %v2829_v50, %v2361_v16  ;;  %v956_v0 = vcombine.low %v948_v3, %v955_v1  ;;  %v973_v41 = vcombine.low %v965_v19, %v972_v52  ;;  %v2943_v14 = vld [vmem:[%s3533_s3 + $0x10] sm:$0xff] }
  0x54   :  { %3641 = vst [vmem:[#allocation13_spill] sm:$0xff] %v2841_v48  ;;  %v982_v30 = vrot.slane %v974_v25, %v2435_v6  ;;  %v989_v34 = vrot.slane %v975_v55, %v2435_v6  ;;  %v2861_v53 = vadd.f32 %v905_v11, %v601_v2  ;;  %v2863_v27 = vadd.f32 %v922_v57, %v602_v44 }
  0x55   :  { %3644 = vst [vmem:[#allocation9_spill] sm:$0xff] %v2845_v33  ;;  %v2865_v20 = vadd.f32 %v939_v63, %v603_v40  ;;  %v2868_v59 = vmul.f32 0.2, %v2738_v8  ;;  %v2871_v49 = vmul.f32 0.2, %v2741_v38  ;;  %v2889_v24 = vcombine.low %v732_v47, %v736_v37  ;;  %3664 = vst [vmem:[#allocation40_spill] sm:$0xff] %v2943_v14 }
  0x56   :  { %3645 = vst [vmem:[#allocation14_spill] sm:$0xff] %v2861_v53  ;;  %3646 = vst [vmem:[#allocation15_spill] sm:$0xff] %v2863_v27  ;;  %v2881_v2 = vmul.f32 0.2, %v2744_v35  ;;  %v2884_v44 = vmul.f32 0.2, %v2747_v60  ;;  %v2900_v4 = vcombine.low %v982_v30, %v989_v34  ;;  %v2902_v11 = vcombine.low %v740_v32, %v744_v62 }
  0x57   :  { %3647 = vst [vmem:[#allocation10_spill] sm:$0xff] %v2865_v20  ;;  %3648 = vst [vmem:[#allocation16_spill] sm:$0xff] %v2868_v59  ;;  %v2887_v42 = vmul.f32 0.2, %v2750_v51  ;;  %v2892_v61 = vmul.f32 0.2, %v2753_v26  ;;  %v2904_v3 = vadd.f32 %v956_v0, %v604_v45  ;;  %v2906_v1 = vadd.f32 %v973_v41, %v605_v54 }
  0x58   :  { %3649 = vst [vmem:[#allocation17_spill] sm:$0xff] %v2871_v49  ;;  %3650 = vst [vmem:[#allocation26_spill] sm:$0xff] %v2881_v2  ;;  %v2895_v40 = vmul.f32 0.2, %v2756_v5  ;;  %v2898_v43 = vmul.f32 0.2, %v2762_v7  ;;  %v1248_v47 = vrot.slane %v2876_v9, %v2350_v13  ;;  %v1252_v37 = vrot.slane %v2876_v9, %v2358_v15 }
  0x59   :  { %3651 = vst [vmem:[#allocation27_spill] sm:$0xff] %v2884_v44  ;;  %3652 = vst [vmem:[#allocation28_spill] sm:$0xff] %v2887_v42  ;;  %v2909_v19 = vmul.f32 0.2, %v2861_v53  ;;  %v2912_v52 = vmul.f32 0.2, %v2863_v27  ;;  %v1256_v32 = vrot.slane %v2876_v9, %v2361_v16  ;;  %v1260_v62 = vrot.slane %v2876_v9, %v2364_v17 }
  0x5a   :  { %3653 = vst [vmem:[#allocation29_spill] sm:$0xff] %v2889_v24  ;;  %3654 = vst [vmem:[#allocation30_spill] sm:$0xff] %v2892_v61  ;;  %v2915_v25 = vmul.f32 0.2, %v2865_v20  ;;  %v2930_v54 = vld [vmem:[%s3533_s3 + $0x8] sm:$0xff]  ;;  %v1229_v0 = vld [vmem:[%s3533_s3 + $0x20] sm:$0xff]  ;;  %v1264_v41 = vrot.slane %v2876_v9, %v2367_v18  ;;  %v1268_v30 = vrot.slane %v2876_v9, %v2372_v21  ;;  %v1272_v34 = vrot.slane %v2876_v9, %v2375_v22 }
  0x5b   :  { %3655 = vst [vmem:[#allocation31_spill] sm:$0xff] %v2895_v40  ;;  %3656 = vst [vmem:[#allocation32_spill] sm:$0xff] %v2898_v43  ;;  %v1276_v58 = vrot.slane %v2930_v54, %v2347_v12  ;;  %v1280_v46 = vrot.slane %v2930_v54, %v2350_v13  ;;  %v1284_v39 = vrot.slane %v2930_v54, %v2358_v15 }
  0x5c   :  { %3657 = vst [vmem:[#allocation33_spill] sm:$0xff] %v2900_v4  ;;  %3658 = vst [vmem:[#allocation34_spill] sm:$0xff] %v2902_v11  ;;  %v1288_v63 = vrot.slane %v2930_v54, %v2361_v16  ;;  %v1292_v57 = vrot.slane %v2930_v54, %v2364_v17  ;;  %v1296_v31 = vrot.slane %v2930_v54, %v2367_v18 }
  0x5d   :  { %3659 = vst [vmem:[#allocation35_spill] sm:$0xff] %v2904_v3  ;;  %3660 = vst [vmem:[#allocation36_spill] sm:$0xff] %v2906_v1  ;;  %v1372_v10 = vrot.slane %v1229_v0, %v2347_v12  ;;  %v1376_v28 = vrot.slane %v1229_v0, %v2350_v13  ;;  %v1380_v33 = vrot.slane %v1229_v0, %v2358_v15 }
  0x5e   :  { %3661 = vst [vmem:[#allocation37_spill] sm:$0xff] %v2909_v19  ;;  %3662 = vst [vmem:[#allocation38_spill] sm:$0xff] %v2912_v52  ;;  %v1384_v45 = vrot.slane %v1229_v0, %v2361_v16  ;;  %v1388_v23 = vrot.slane %v1229_v0, %v2364_v17  ;;  %v1392_v1 = vrot.slane %v1229_v0, %v2367_v18 }
  0x5f   :  { %3663 = vst [vmem:[#allocation39_spill] sm:$0xff] %v2915_v25  ;;  %v1396_v55 = vrot.slane %v1229_v0, %v2372_v21  ;;  %v1400_v56 = vrot.slane %v1229_v0, %v2375_v22  ;;  %v1404_v20 = vrot.slane %v2975_v29, %v2347_v12  ;;  %v3007_v25 = vld [vmem:[%s3533_s3 + $0x38] sm:$0xff]  ;;  %v1408_v4 = vrot.slane %v2975_v29, %v2350_v13 }
  0x60   :  { %v1412_v48 = vrot.slane %v2975_v29, %v2358_v15  ;;  %v1416_v11 = vrot.slane %v2975_v29, %v2361_v16  ;;  %v1420_v0 = vrot.slane %v2975_v29, %v2364_v17  ;;  %v1424_v14 = vrot.slane %v2975_v29, %v2367_v18 }
  0x61   :  { %v1428_v27 = vrot.slane %v2975_v29, %v2372_v21  ;;  %v1432_v52 = vrot.slane %v2975_v29, %v2375_v22  ;;  %v1436_v53 = vrot.slane %v1231_v36, %v2347_v12  ;;  %v1440_v19 = vrot.slane %v1231_v36, %v2350_v13 }
  0x62   :  { %v1444_v24 = vrot.slane %v1231_v36, %v2358_v15  ;;  %v1448_v50 = vrot.slane %v1231_v36, %v2361_v16  ;;  %v1452_v43 = vrot.slane %v1231_v36, %v2364_v17  ;;  %v1456_v7 = vrot.slane %v1231_v36, %v2367_v18 }
  0x63   :  { %v1460_v3 = vrot.slane %v1231_v36, %v2372_v21  ;;  %v1464_v40 = vrot.slane %v1231_v36, %v2375_v22  ;;  %v1468_v5 = vrot.slane %v3007_v25, %v2347_v12  ;;  %v1472_v29 = vrot.slane %v3007_v25, %v2350_v13 }
  0x64   :  { %v1476_v61 = vrot.slane %v3007_v25, %v2358_v15  ;;  %v1480_v26 = vrot.slane %v3007_v25, %v2361_v16  ;;  %v1484_v42 = vrot.slane %v3007_v25, %v2364_v17  ;;  %v1488_v51 = vrot.slane %v3007_v25, %v2367_v18 }
  0x65   :  { %v1492_v36 = vrot.slane %v3007_v25, %v2372_v21  ;;  %v3665_v44 = vrot.slane %v2876_v9, %v2347_v12  ;;  %v1633_v13 = vcombine.low %v1372_v10, %v1376_v28  ;;  %v1496_v15 = vrot.slane %v3007_v25, %v2375_v22 }
  0x66   :  { %v3052_v2 = vcombine.low %v1252_v37, %v1256_v32  ;;  %v3054_v16 = vcombine.low %v1260_v62, %v1264_v41  ;;  %v1634_v17 = vcombine.low %v1380_v33, %v1384_v45  ;;  %v3056_v35 = vcombine.low %v1268_v30, %v1272_v34  ;;  %v3670_v62 = vld [vmem:[#allocation18_spill] sm:$0xff]  ;;  %v3671_v41 = vld [vmem:[#allocation17_spill] sm:$0xff] }
  0x67   :  { %v3048_v60 = vcombine.low %v3665_v44, %v1248_v47  ;;  %v1641_v18 = vrot.slane %v1633_v13, %v2435_v6  ;;  %v1650_v49 = vcombine.low %v1388_v23, %v1392_v1  ;;  %v1651_v38 = vcombine.low %v1396_v55, %v1400_v56 }
  0x68   :  { %v3059_v59 = vcombine.low %v1276_v58, %v1280_v46  ;;  %v1648_v9 = vrot.slane %v1634_v17, %v2435_v6  ;;  %v1667_v44 = vcombine.low %v1404_v20, %v1408_v4  ;;  %v1668_v10 = vcombine.low %v1412_v48, %v1416_v11 }
  0x69   :  { %v1505_v25 = vrot.slane %v3048_v60, %v2435_v6  ;;  %v3064_v28 = vcombine.low %v1284_v39, %v1288_v63  ;;  %v3066_v47 = vcombine.low %v1292_v57, %v1296_v31  ;;  %v1684_v33 = vcombine.low %v1420_v0, %v1424_v14  ;;  %v3668_v14 = vld [vmem:[#allocation16_spill] sm:$0xff]  ;;  %v3674_v0 = vld [vmem:[#allocation26_spill] sm:$0xff] }
  0x6a   :  { %v1649_v45 = vcombine.low %v1641_v18, %v1648_v9  ;;  %v1658_v37 = vrot.slane %v1650_v49, %v2435_v6  ;;  %v1665_v13 = vrot.slane %v1651_v38, %v2435_v6  ;;  %v1685_v56 = vcombine.low %v1428_v27, %v1432_v52 }
  0x6b   :  { %v1675_v46 = vrot.slane %v1667_v44, %v2435_v6  ;;  %v1682_v17 = vrot.slane %v1668_v10, %v2435_v6  ;;  %v1701_v20 = vcombine.low %v1436_v53, %v1440_v19  ;;  %v1702_v48 = vcombine.low %v1444_v24, %v1448_v50  ;;  %v3679_v10 = vld [vmem:[#allocation21_spill] sm:$0xff] }
  0x6c   :  { %v1692_v58 = vrot.slane %v1684_v33, %v2435_v6  ;;  %v1699_v60 = vrot.slane %v1685_v56, %v2435_v6  ;;  %v1718_v39 = vcombine.low %v1452_v43, %v1456_v7  ;;  %v1719_v4 = vcombine.low %v1460_v3, %v1464_v40 }
  0x6d   :  { %v1709_v11 = vrot.slane %v1701_v20, %v2435_v6  ;;  %v1716_v18 = vrot.slane %v1702_v48, %v2435_v6  ;;  %v1735_v49 = vcombine.low %v1468_v5, %v1472_v29  ;;  %v1736_v1 = vcombine.low %v1476_v61, %v1480_v26 }
  0x6e   :  { %v1666_v38 = vcombine.low %v1658_v37, %v1665_v13  ;;  %v1726_v27 = vrot.slane %v1718_v39, %v2435_v6  ;;  %v1733_v52 = vrot.slane %v1719_v4, %v2435_v6  ;;  %v1752_v55 = vcombine.low %v1484_v42, %v1488_v51  ;;  %v3683_v37 = vld [vmem:[#allocation30_spill] sm:$0xff] }
  0x6f   :  { %v1683_v53 = vcombine.low %v1675_v46, %v1682_v17  ;;  %v1743_v50 = vrot.slane %v1735_v49, %v2435_v6  ;;  %v1750_v24 = vrot.slane %v1736_v1, %v2435_v6  ;;  %v1753_v19 = vcombine.low %v1492_v36, %v1496_v15  ;;  %v3677_v36 = vld [vmem:[#allocation27_spill] sm:$0xff] }
  0x70   :  { %v1700_v7 = vcombine.low %v1692_v58, %v1699_v60  ;;  %v1717_v40 = vcombine.low %v1709_v11, %v1716_v18  ;;  %v1734_v43 = vcombine.low %v1726_v27, %v1733_v52  ;;  %v1760_v3 = vrot.slane %v1752_v55, %v2435_v6  ;;  %v3685_v46 = vld [vmem:[#allocation23_spill] sm:$0xff]  ;;  %v3689_v11 = vld [vmem:[#allocation24_spill] sm:$0xff]  ;;  %v3693_v52 = vld [vmem:[#allocation29_spill] sm:$0xff] }
  0x71   :  { %v1512_v26 = vrot.slane %v3052_v2, %v2435_v6  ;;  %v3666_v5 = vrot.slane %v2930_v54, %v2375_v22  ;;  %v3667_v51 = vrot.slane %v2930_v54, %v2372_v21  ;;  %v1751_v61 = vcombine.low %v1743_v50, %v1750_v24  ;;  %v3686_v17 = vld [vmem:[#allocation31_spill] sm:$0xff]  ;;  %v3690_v18 = vld [vmem:[#allocation32_spill] sm:$0xff]  ;;  %v3695_v50 = vld [vmem:[#allocation14_spill] sm:$0xff] }
  0x72   :  { %v1767_v23 = vrot.slane %v1753_v19, %v2435_v6  ;;  %v1522_v15 = vrot.slane %v3054_v16, %v2435_v6  ;;  %v1529_v31 = vrot.slane %v3056_v35, %v2435_v6  ;;  %v1539_v57 = vrot.slane %v3059_v59, %v2435_v6  ;;  %v3673_v16 = vld [vmem:[#allocation19_spill] sm:$0xff]  ;;  %v3676_v59 = vld [vmem:[#allocation20_spill] sm:$0xff]  ;;  %v3696_v19 = vld [vmem:[#allocation38_spill] sm:$0xff] }
  0x73   :  { %v1549_v42 = vcombine.low %v3667_v51, %v3666_v5  ;;  %v1546_v2 = vrot.slane %v3064_v28, %v2435_v6  ;;  %v3669_v54 = vmax.f32 %v2738_v8, %v3668_v14  ;;  %v3672_v30 = vmax.f32 %v3670_v62, %v3671_v41  ;;  %v3680_v28 = vld [vmem:[#allocation28_spill] sm:$0xff]  ;;  %v3688_v58 = vld [vmem:[#allocation35_spill] sm:$0xff]  ;;  %v3699_v5 = vld [vmem:[#allocation2_spill] sm:$0xff] }
  0x74   :  { %v1768_v63 = vcombine.low %v1760_v3, %v1767_v23  ;;  %v3675_v35 = vmax.f32 %v3673_v16, %v3674_v0  ;;  %v3678_v9 = vmax.f32 %v3676_v59, %v3677_v36  ;;  %v3681_v8 = vmax.f32 %v3679_v10, %v3680_v28  ;;  %v3698_v3 = vld [vmem:[#allocation40_spill] sm:$0xff]  ;;  %v3704_v14 = vld [vmem:[#allocation3_spill] sm:$0xff]  ;;  %v3706_v41 = vld [vmem:[#allocation34_spill] sm:$0xff] }
  0x75   :  { %v3101_v32 = vmul.f32 %v1649_v45, %v3669_v54  ;;  %v3106_v34 = vmul.f32 %v1666_v38, %v3672_v30  ;;  %v3682_v45 = vld [vmem:[#allocation22_spill] sm:$0xff]  ;;  %v3687_v20 = vmax.f32 %v3685_v46, %v3686_v17  ;;  %v1196_v60 = vmul.f32 0.2, %v3688_v58  ;;  %v3692_v38 = vld [vmem:[#allocation12_spill] sm:$0xff]  ;;  %v3707_v16 = vld [vmem:[#allocation13_spill] sm:$0xff] }
  0x76   :  { %v3111_v29 = vmul.f32 %v1683_v53, %v3675_v35  ;;  %v3116_v44 = vmul.f32 %v1700_v7, %v3678_v9  ;;  %v3121_v33 = vmul.f32 %v1717_v40, %v3681_v8  ;;  %v3684_v13 = vmax.f32 %v3682_v45, %v3683_v37  ;;  %v3694_v53 = vld [vmem:[#allocation37_spill] sm:$0xff]  ;;  %v3697_v7 = vld [vmem:[#allocation15_spill] sm:$0xff]  ;;  %v3702_v23 = vld [vmem:[#allocation4_spill] sm:$0xff] }
  0x77   :  { %v3131_v48 = vmul.f32 %v1751_v61, %v3687_v20  ;;  %v1556_v39 = vrot.slane %v3066_v47, %v2435_v6  ;;  %v1563_v4 = vrot.slane %v1549_v42, %v2435_v6  ;;  %v3691_v49 = vmax.f32 %v3689_v11, %v3690_v18  ;;  %v3711_v59 = vld [vmem:[#allocation6_spill] sm:$0xff]  ;;  %v3713_v9 = vld [vmem:[#allocation5_spill] sm:$0xff]  ;;  %v3715_v8 = vld [vmem:[#allocation36_spill] sm:$0xff] }
  0x78   :  { %v3126_v56 = vmul.f32 %v1734_v43, %v3684_v13  ;;  %v760_v27 = vrot.slane %v3692_v38, %v2375_v22  ;;  %v999_v55 = vrot.slane %v3693_v52, %v2435_v6  ;;  %v1209_v24 = vmax.f32 %v3695_v50, %v3694_v53  ;;  %v3191_v20 = vld [vmem:[%s3533_s3 + $0x18] sm:$0xff] }
  0x79   :  { %v3140_v1 = vmul.f32 %v1768_v63, %v3691_v49  ;;  %v1210_v40 = vmax.f32 %v3697_v7, %v3696_v19  ;;  %v1513_v47 = vcombine.low %v1505_v25, %v1512_v26  ;;  %v1530_v43 = vcombine.low %v1522_v15, %v1529_v31  ;;  %v3708_v25 = vld [vmem:[#allocation33_spill] sm:$0xff]  ;;  %v3709_v15 = vld [vmem:[#allocation39_spill] sm:$0xff]  ;;  %v3710_v31 = vld [vmem:[#allocation10_spill] sm:$0xff] }
  0x7a   :  { %v3700_v51 = vrot.slane %v3698_v3, %v3699_v5  ;;  %v3701_v42 = vrot.slane %v3698_v3, %v2347_v12  ;;  %v3703_v63 = vrot.slane %v3698_v3, %v3702_v23  ;;  %v3705_v54 = vrot.slane %v3698_v3, %v3704_v14 }
  0x7b   :  { %v1006_v30 = vrot.slane %v3706_v41, %v2435_v6  ;;  %v3166_v26 = vadd.f32 %v3708_v25, %v3707_v16  ;;  %v1211_v0 = vmax.f32 %v3710_v31, %v3709_v15  ;;  %v1547_v35 = vcombine.low %v1539_v57, %v1546_v2 }
  0x7c   :  { %v1565_v61 = vcombine.low %v3701_v42, %v3700_v51  ;;  %v1566_v62 = vcombine.low %v3705_v54, %v3703_v63  ;;  %v3712_v36 = vrot.slane %v3692_v38, %v3711_v59  ;;  %v3714_v10 = vrot.slane %v3692_v38, %v3713_v9 }
  0x7d   :  { %v1197_v45 = vmul.f32 0.2, %v3715_v8  ;;  %v1212_v37 = vmax.f32 %v3688_v58, %v1196_v60  ;;  %v1564_v13 = vcombine.low %v1556_v39, %v1563_v4  ;;  %v1324_v46 = vrot.slane %v3698_v3, %v3713_v9 }
  0x7e   :  { %v3176_v28 = vcombine.low %v3714_v10, %v3712_v36  ;;  %v1328_v17 = vrot.slane %v3698_v3, %v3711_v59  ;;  %v1332_v57 = vrot.slane %v3698_v3, %v2372_v21  ;;  %v1336_v2 = vrot.slane %v3698_v3, %v2375_v22 }
  0x7f   :  { %v1573_v58 = vrot.slane %v1565_v61, %v2435_v6  ;;  %v1580_v60 = vrot.slane %v1566_v62, %v2435_v6  ;;  %v1785_v39 = vmul.f32 %v1513_v47, %v1209_v24  ;;  %v1786_v4 = vmul.f32 %v1530_v43, %v1210_v40 }
  0x80   :  { %v3195_v11 = vcombine.low %v999_v55, %v1006_v30  ;;  %v3716_v18 = vrot.slane %v3692_v38, %v2372_v21  ;;  %v3203_v52 = vmul.f32 0.2, %v3166_v26  ;;  %v1787_v53 = vmul.f32 %v1547_v35, %v1211_v0 }
  0x81   :  { %v1213_v50 = vmax.f32 %v3715_v8, %v1197_v45  ;;  %v1788_v19 = vmul.f32 %v1564_v13, %v1212_v37  ;;  %v1817_v7 = vcombine.high %v1785_v39, %v1785_v39  ;;  %v1834_v3 = vcombine.high %v1786_v4, %v1786_v4 }
  0x82   :  { %v3200_v49 = vcombine.low %v3716_v18, %v760_v27  ;;  %v3208_v40 = vcombine.low %v1324_v46, %v1328_v17  ;;  %v3210_v55 = vcombine.low %v1332_v57, %v1336_v2  ;;  %v1851_v47 = vcombine.high %v1787_v53, %v1787_v53 }
  0x83   :  { %v1581_v43 = vcombine.low %v1573_v58, %v1580_v60  ;;  %v1824_v51 = vrot.slane %v1785_v39, %v2435_v6  ;;  %v3218_v42 = vrot.slane %v1786_v4, %v2435_v6  ;;  %v3221_v61 = vrot.slane %v1787_v53, %v2435_v6 }
  0x84   :  { %v1868_v63 = vcombine.high %v1788_v19, %v1788_v19  ;;  %v1953_v54 = vcombine.high %v3101_v32, %v3101_v32  ;;  %v1831_v41 = vrot.slane %v1817_v7, %v2435_v6  ;;  %v3229_v30 = vrot.slane %v1834_v3, %v2435_v6 }
  0x85   :  { %v3232_v16 = vrot.slane %v1788_v19, %v2435_v6  ;;  %v3239_v31 = vrot.slane %v1851_v47, %v2435_v6  ;;  %v3243_v0 = vrot.slane %v3101_v32, %v2435_v6  ;;  %v3245_v35 = vmul.f32 %v1581_v43, %v1213_v50 }
  0x86   :  { %v1832_v36 = vcombine.high %v1824_v51, %v1824_v51  ;;  %v1970_v10 = vcombine.high %v3106_v34, %v3106_v34  ;;  %v3251_v8 = vrot.slane %v3106_v34, %v2435_v6  ;;  %v1849_v45 = vcombine.high %v3218_v42, %v3218_v42 }
  0x87   :  { %3717 = vst [vmem:[#allocation16_spill] sm:$0xff] %v3243_v0  ;;  %v1866_v37 = vcombine.high %v3221_v61, %v3221_v61  ;;  %v3258_v13 = vrot.slane %v1868_v63, %v2435_v6  ;;  %v1967_v32 = vrot.slane %v1953_v54, %v2435_v6  ;;  %v1833_v46 = vcombine.high %v1831_v41, %v1831_v41 }
  0x88   :  { %v1850_v17 = vcombine.high %v3229_v30, %v3229_v30  ;;  %v1987_v34 = vcombine.high %v3111_v29, %v3111_v29  ;;  %v1968_v58 = vcombine.high %v3243_v0, %v3243_v0  ;;  %v1994_v60 = vrot.slane %v3111_v29, %v2435_v6 }
  0x89   :  { %v2004_v39 = vcombine.high %v3116_v44, %v3116_v44  ;;  %v1984_v4 = vrot.slane %v1970_v10, %v2435_v6  ;;  %v1985_v18 = vcombine.high %v3251_v8, %v3251_v8  ;;  %v2021_v53 = vcombine.high %v3121_v33, %v3121_v33 }
  0x8a   :  { %v1969_v50 = vcombine.high %v1967_v32, %v1967_v32  ;;  %v2038_v19 = vcombine.high %v3126_v56, %v3126_v56  ;;  %v2055_v7 = vcombine.high %v3131_v48, %v3131_v48  ;;  %v2154_v29 = vsel %vm2153_vm0, %v1824_v51, 0.0 }
  0x8b   :  { %v2001_v3 = vrot.slane %v1987_v34, %v2435_v6  ;;  %v2072_v47 = vcombine.high %v3140_v1, %v3140_v1  ;;  %v2155_v43 = vsel %vm2153_vm0, %v1832_v36, 0.0  ;;  %v2157_v63 = vsel %vm2153_vm0, %v1831_v41, 0.0 }
  0x8c   :  { %v2002_v54 = vcombine.high %v1994_v60, %v1994_v60  ;;  %v2011_v10 = vrot.slane %v3116_v44, %v2435_v6  ;;  %v2018_v57 = vrot.slane %v2004_v39, %v2435_v6  ;;  %v2156_v27 = vadd.f32 %v2155_v43, %v2154_v29 }
  0x8d   :  { %v2028_v62 = vrot.slane %v3121_v33, %v2435_v6  ;;  %v2035_v51 = vrot.slane %v2021_v53, %v2435_v6  ;;  %v2045_v34 = vrot.slane %v3126_v56, %v2435_v6  ;;  %v2159_v24 = vsel %vm2153_vm0, %v1833_v46, 0.0 }
  0x8e   :  { %v2052_v36 = vrot.slane %v2038_v19, %v2435_v6  ;;  %v2062_v41 = vrot.slane %v3131_v48, %v2435_v6  ;;  %v2069_v44 = vrot.slane %v2055_v7, %v2435_v6  ;;  %v2158_v38 = vadd.f32 %v2157_v63, %v2156_v27 }
  0x8f   :  { %v1986_v39 = vcombine.high %v1984_v4, %v1984_v4  ;;  %v2079_v29 = vrot.slane %v3140_v1, %v2435_v6  ;;  %v2086_v33 = vrot.slane %v2072_v47, %v2435_v6  ;;  %v2161_v53 = vsel %vm2153_vm0, %v3218_v42, 0.0 }
  0x90   :  { %v2003_v56 = vcombine.high %v2001_v3, %v2001_v3  ;;  %v2019_v43 = vcombine.high %v2011_v10, %v2011_v10  ;;  %v2020_v46 = vcombine.high %v2018_v57, %v2018_v57  ;;  %v2160_v25 = vadd.f32 %v2159_v24, %v2158_v38 }
  0x91   :  { %v2036_v19 = vcombine.high %v2028_v62, %v2028_v62  ;;  %v2037_v15 = vcombine.high %v2035_v51, %v2035_v51  ;;  %v2053_v2 = vcombine.high %v2045_v34, %v2045_v34  ;;  %v2163_v48 = vsel %vm2153_vm0, %v1849_v45, 0.0 }
  0x92   :  { %v2054_v7 = vcombine.high %v2052_v36, %v2052_v36  ;;  %v2070_v27 = vcombine.high %v2062_v41, %v2062_v41  ;;  %v2071_v63 = vcombine.high %v2069_v44, %v2069_v44  ;;  %v2162_v0 = vadd.f32 %v2161_v53, %v2160_v25 }
  0x93   :  { %v2087_v22 = vcombine.high %v2079_v29, %v2079_v29  ;;  %v2088_v1 = vcombine.high %v2086_v33, %v2086_v33  ;;  %v2165_v47 = vsel %vm2153_vm0, %v3229_v30, 0.0  ;;  %v2167_v42 = vsel %vm2153_vm0, %v1850_v17, 0.0 }
  0x94   :  { %v2164_v21 = vadd.f32 %v2163_v48, %v2162_v0  ;;  %v2169_v24 = vsel %vm2153_vm0, %v3221_v61, 0.0  ;;  %v2171_v38 = vsel %vm2153_vm0, %v1866_v37, 0.0  ;;  %v2173_v45 = vsel %vm2153_vm0, %v3239_v31, 0.0 }
  0x95   :  { %v3318_v59 = vsel %vm2153_vm0, %v1968_v58, 0.0  ;;  %v3321_v25 = vsel %vm2153_vm0, %v1967_v32, 0.0  ;;  %v3324_v53 = vsel %vm2153_vm0, %v1969_v50, 0.0  ;;  %v3328_v30 = vsel %vm2153_vm0, %v3251_v8, 0.0 }
  0x96   :  { %v2166_v0 = vadd.f32 %v2165_v47, %v2164_v21  ;;  %v3331_v61 = vsel %vm2153_vm0, %v1985_v18, 0.0  ;;  %v3334_v37 = vsel %vm2153_vm0, %v1984_v4, 0.0  ;;  %v3337_v17 = vsel %vm2153_vm0, %v1986_v39, 0.0 }
  0x97   :  { %v3340_v32 = vsel %vm2153_vm0, %v1994_v60, 0.0  ;;  %v3343_v58 = vsel %vm2153_vm0, %v2002_v54, 0.0  ;;  %v3346_v50 = vsel %vm2153_vm0, %v2001_v3, 0.0  ;;  %v3349_v21 = vsel %vm2153_vm0, %v2003_v56, 0.0 }
  0x98   :  { %v2168_v8 = vadd.f32 %v2167_v42, %v2166_v0  ;;  %v3352_v18 = vsel %vm2153_vm0, %v2011_v10, 0.0  ;;  %v3355_v4 = vsel %vm2153_vm0, %v2019_v43, 0.0  ;;  %v3358_v39 = vsel %vm2153_vm0, %v2018_v57, 0.0  ;;  %v3721_v42 = vld [vmem:[#allocation9_spill] sm:$0xff] }
  0x99   :  { %v3361_v60 = vsel %vm2153_vm0, %v2020_v46, 0.0  ;;  %v3364_v54 = vsel %vm2153_vm0, %v2028_v62, 0.0  ;;  %v3367_v3 = vsel %vm2153_vm0, %v2036_v19, 0.0  ;;  %v3370_v56 = vsel %vm2153_vm0, %v2035_v51, 0.0 }
  0x9a   :  { %v2170_v10 = vadd.f32 %v2169_v24, %v2168_v8  ;;  %v3373_v48 = vsel %vm2153_vm0, %v2037_v15, 0.0  ;;  %v3376_v43 = vsel %vm2153_vm0, %v2045_v34, 0.0  ;;  %v3379_v57 = vsel %vm2153_vm0, %v2053_v2, 0.0 }
  0x9b   :  { %v3382_v46 = vsel %vm2153_vm0, %v2052_v36, 0.0  ;;  %v3385_v62 = vsel %vm2153_vm0, %v2054_v7, 0.0  ;;  %v3388_v19 = vsel %vm2153_vm0, %v2062_v41, 0.0  ;;  %v3391_v51 = vsel %vm2153_vm0, %v2070_v27, 0.0 }
  0x9c   :  { %v2172_v15 = vadd.f32 %v2171_v38, %v2170_v10  ;;  %v3394_v47 = vsel %vm2153_vm0, %v2069_v44, 0.0  ;;  %v3397_v34 = vsel %vm2153_vm0, %v2071_v63, 0.0  ;;  %v3400_v2 = vsel %vm2153_vm0, %v2079_v29, 0.0 }
  0x9d   :  { %v3718_v36 = vcombine.high %v3239_v31, %v3239_v31  ;;  %v3407_v41 = vsel %vm2153_vm0, %v2087_v22, 0.0  ;;  %v3410_v27 = vsel %vm2153_vm0, %v2086_v33, 0.0  ;;  %v3413_v44 = vsel %vm2153_vm0, %v2088_v1, 0.0 }
  0x9e   :  { %3719 = vst [vmem:[#allocation18_spill] sm:$0xff] %v3410_v27  ;;  %3720 = vst [vmem:[#allocation17_spill] sm:$0xff] %v3413_v44  ;;  %v1016_v63 = vrot.slane %v3176_v28, %v2435_v6  ;;  %v1023_v29 = vrot.slane %v3200_v49, %v2435_v6  ;;  %v1183_v31 = vadd.f32 %v3195_v11, %v3721_v42  ;;  %v2177_v33 = vsel %vm2153_vm0, %v3232_v16, 0.0 }
  0x9f   :  { %v2175_v7 = vsel %vm2153_vm0, %v3718_v36, 0.0  ;;  %v2174_v24 = vadd.f32 %v2173_v45, %v2172_v15  ;;  %v1214_v22 = vmax.f32 %v3166_v26, %v3203_v52  ;;  %v3722_v1 = vrot.slane %v3210_v55, %v2435_v6  ;;  %v3731_v36 = vld [vmem:[#allocation25_spill] sm:$0xff] }
  0xa0   :  { %v3723_v38 = vrot.slane %v3208_v40, %v2435_v6  ;;  %v3724_v49 = vrot.slane %v3191_v20, %v3699_v5  ;;  %v3725_v11 = vrot.slane %v3191_v20, %v2347_v12  ;;  %v3726_v26 = vrot.slane %v3191_v20, %v3702_v23  ;;  %v3729_v23 = vld [vmem:[#allocation11_spill] sm:$0xff] }
  0xa1   :  { %v3727_v52 = vrot.slane %v3191_v20, %v3704_v14  ;;  %v2176_v8 = vadd.f32 %v2175_v7, %v2174_v24  ;;  %v1884_v55 = vcombine.high %v3258_v13, %v3258_v13  ;;  %v1885_v40 = vcombine.high %v3245_v35, %v3245_v35 }
  0xa2   :  { %v1598_v28 = vcombine.low %v3723_v38, %v3722_v1  ;;  %v1599_v45 = vcombine.low %v3725_v11, %v3724_v49  ;;  %v1892_v5 = vrot.slane %v3245_v35, %v2435_v6  ;;  %v3728_v12 = vcombine.high %v3232_v16, %v3232_v16  ;;  %v3732_v38 = vld [vmem:[#allocation6_spill] sm:$0xff]  ;;  %v3733_v11 = vld [vmem:[#allocation7_spill] sm:$0xff] }
  0xa3   :  { %v1600_v0 = vcombine.low %v3727_v52, %v3726_v26  ;;  %v3730_v15 = vunpack.c.h.bf16 %v3729_v23  ;;  %v1024_v42 = vcombine.low %v1016_v63, %v1023_v29  ;;  %v1199_v7 = vmul.f32 0.2, %v1183_v31  ;;  %v3734_v26 = vld [vmem:[#allocation8_spill] sm:$0xff] }
  0xa4   :  { %v2179_v10 = vsel %vm2153_vm0, %v3728_v12, 0.0  ;;  %v2178_v24 = vadd.f32 %v2177_v33, %v2176_v8  ;;  %v1356_v1 = vrot.slane %v3191_v20, %v3713_v9  ;;  %v1360_v49 = vrot.slane %v3191_v20, %v3732_v38 }
  0xa5   :  { %v608_v14 = vmul.f32 %v3731_v36, %v3730_v15  ;;  %v1364_v35 = vrot.slane %v3191_v20, %v3733_v11  ;;  %v2181_v16 = vsel %vm2153_vm0, %v3258_v13, 0.0  ;;  %v1368_v52 = vrot.slane %v3191_v20, %v3734_v26 }
  0xa6   :  { %v1607_v12 = vrot.slane %v1599_v45, %v2435_v6  ;;  %v1614_v63 = vrot.slane %v1600_v0, %v2435_v6  ;;  %v2180_v29 = vadd.f32 %v2179_v10, %v2178_v24  ;;  %v1790_v33 = vmul.f32 %v1598_v28, %v1214_v22 }
  0xa7   :  { %v1899_v9 = vrot.slane %v1885_v40, %v2435_v6  ;;  %v1900_v8 = vcombine.high %v1892_v5, %v1892_v5  ;;  %v2183_v23 = vsel %vm2153_vm0, %v1884_v55, 0.0  ;;  %v1184_v36 = vadd.f32 %v1024_v42, %v608_v14 }
  0xa8   :  { %v2182_v15 = vadd.f32 %v2181_v16, %v2180_v29  ;;  %v1215_v38 = vmax.f32 %v1183_v31, %v1199_v7  ;;  %v2185_v11 = vsel %vm2153_vm0, %v1892_v5, 0.0  ;;  %v1615_v13 = vcombine.low %v1607_v12, %v1614_v63 }
  0xa9   :  { %v1616_v44 = vcombine.low %v1356_v1, %v1360_v49  ;;  %v1617_v27 = vcombine.low %v1364_v35, %v1368_v52  ;;  %v1901_v26 = vcombine.high %v1899_v9, %v1899_v9  ;;  %v1902_v45 = vcombine.high %v1790_v33, %v1790_v33 }
  0xaa   :  { %v2184_v20 = vadd.f32 %v2183_v23, %v2182_v15  ;;  %v1909_v0 = vrot.slane %v1790_v33, %v2435_v6  ;;  %v2187_v22 = vsel %vm2153_vm0, %v1900_v8, 0.0  ;;  %v2189_v40 = vsel %vm2153_vm0, %v1899_v9, 0.0 }
  0xab   :  { %v1200_v10 = vmul.f32 0.2, %v1184_v36  ;;  %v1624_v55 = vrot.slane %v1616_v44, %v2435_v6  ;;  %v1631_v31 = vrot.slane %v1617_v27, %v2435_v6  ;;  %v1791_v5 = vmul.f32 %v1615_v13, %v1215_v38 }
  0xac   :  { %v2186_v28 = vadd.f32 %v2185_v11, %v2184_v20  ;;  %v1916_v42 = vrot.slane %v1902_v45, %v2435_v6  ;;  %v1917_v7 = vcombine.high %v1909_v0, %v1909_v0  ;;  %v2191_v24 = vsel %vm2153_vm0, %v1901_v26, 0.0 }
  0xad   :  { %v2193_v49 = vsel %vm2153_vm0, %v1909_v0, 0.0  ;;  %v1216_v35 = vmax.f32 %v1184_v36, %v1200_v10  ;;  %v1632_v16 = vcombine.low %v1624_v55, %v1631_v31  ;;  %v1919_v63 = vcombine.high %v1791_v5, %v1791_v5 }
  0xae   :  { %v2188_v14 = vadd.f32 %v2187_v22, %v2186_v28  ;;  %v1918_v12 = vcombine.high %v1916_v42, %v1916_v42  ;;  %v1926_v29 = vrot.slane %v1791_v5, %v2435_v6  ;;  %v2195_v44 = vsel %vm2153_vm0, %v1917_v7, 0.0 }
  0xaf   :  { %v2197_v33 = vsel %vm2153_vm0, %v1916_v42, 0.0  ;;  %v1792_v8 = vmul.f32 %v1632_v16, %v1216_v35  ;;  %v1933_v23 = vrot.slane %v1919_v63, %v2435_v6 }
  0xb0   :  { %v2190_v1 = vadd.f32 %v2189_v40, %v2188_v14  ;;  %v1934_v15 = vcombine.high %v1926_v29, %v1926_v29  ;;  %v2199_v38 = vsel %vm2153_vm0, %v1918_v12, 0.0  ;;  %v2201_v36 = vsel %vm2153_vm0, %v1926_v29, 0.0  ;;  %v3735_v12 = vld [vmem:[#allocation16_spill] sm:$0xff] }
  0xb1   :  { %v1935_v20 = vcombine.high %v1933_v23, %v1933_v23  ;;  %v1936_v26 = vcombine.high %v1792_v8, %v1792_v8  ;;  %v1943_v45 = vrot.slane %v1792_v8, %v2435_v6  ;;  %v2205_v28 = vsel %vm2153_vm0, %v1933_v23, 0.0 }
  0xb2   :  { %v2192_v52 = vadd.f32 %v2191_v24, %v2190_v1  ;;  %v2203_v0 = vsel %vm2153_vm0, %v1934_v15, 0.0 }
  0xb3   :  { %v1950_v10 = vrot.slane %v1936_v26, %v2435_v6  ;;  %v1951_v55 = vcombine.high %v1943_v45, %v1943_v45  ;;  %v2207_v31 = vsel %vm2153_vm0, %v1935_v20, 0.0  ;;  %v2209_v5 = vsel %vm2153_vm0, %v1943_v45, 0.0  ;;  %v3737_v20 = vld [vmem:[#allocation17_spill] sm:$0xff] }
  0xb4   :  { %v2194_v27 = vadd.f32 %v2193_v49, %v2192_v52  ;;  %v2217_v6 = vsel %vm2153_vm0, %v3735_v12, 0.0 }
  0xb5   :  { %v1952_v7 = vcombine.high %v1950_v10, %v1950_v10  ;;  %v2211_v24 = vsel %vm2153_vm0, %v1951_v55, 0.0  ;;  %v2213_v49 = vsel %vm2153_vm0, %v1950_v10, 0.0 }
  0xb6   :  { %v2196_v9 = vadd.f32 %v2195_v44, %v2194_v27 }
  0xb7   :  { %v2215_v16 = vsel %vm2153_vm0, %v1952_v7, 0.0 }
  0xb8   :  { %v2198_v11 = vadd.f32 %v2197_v33, %v2196_v9 }
  0xba   :  { %v2200_v13 = vadd.f32 %v2199_v38, %v2198_v11 }
  0xbc   :  { %v2202_v22 = vadd.f32 %v2201_v36, %v2200_v13  ;;  %v3736_v13 = vld [vmem:[#allocation18_spill] sm:$0xff] }
  0xbe   :  { %v2204_v40 = vadd.f32 %v2203_v0, %v2202_v22 }
  0xc0   :  { %v2206_v14 = vadd.f32 %v2205_v28, %v2204_v40 }
  0xc2   :  { %v2208_v42 = vadd.f32 %v2207_v31, %v2206_v14 }
  0xc4   :  { %v2210_v1 = vadd.f32 %v2209_v5, %v2208_v42 }
  0xc6   :  { %v2212_v35 = vadd.f32 %v2211_v24, %v2210_v1 }
  0xc8   :  { %v2214_v52 = vadd.f32 %v2213_v49, %v2212_v35 }
  0xca   :  { %v2216_v63 = vadd.f32 %v2215_v16, %v2214_v52 }
  0xcc   :  { %v2218_v29 = vadd.f32 %v2217_v6, %v2216_v63 }
  0xce   :  { %v2220_v44 = vadd.f32 %v3318_v59, %v2218_v29 }
  0xd0   :  { %v2222_v27 = vadd.f32 %v3321_v25, %v2220_v44 }
  0xd2   :  { %v2224_v33 = vadd.f32 %v3324_v53, %v2222_v27 }
  0xd4   :  { %v2226_v9 = vadd.f32 %v3328_v30, %v2224_v33 }
  0xd6   :  { %v2228_v8 = vadd.f32 %v3331_v61, %v2226_v9 }
  0xd8   :  { %v2230_v23 = vadd.f32 %v3334_v37, %v2228_v8 }
  0xda   :  { %v2232_v15 = vadd.f32 %v3337_v17, %v2230_v23 }
  0xdc   :  { %v2234_v38 = vadd.f32 %v3340_v32, %v2232_v15 }
  0xde   :  { %v2236_v11 = vadd.f32 %v3343_v58, %v2234_v38 }
  0xe0   :  { %v2238_v36 = vadd.f32 %v3346_v50, %v2236_v11 }
  0xe2   :  { %v2240_v59 = vadd.f32 %v3349_v21, %v2238_v36 }
  0xe4   :  { %v2242_v25 = vadd.f32 %v3352_v18, %v2240_v59 }
  0xe6   :  { %v2244_v53 = vadd.f32 %v3355_v4, %v2242_v25 }
  0xe8   :  { %v2246_v30 = vadd.f32 %v3358_v39, %v2244_v53 }
  0xea   :  { %v2248_v61 = vadd.f32 %v3361_v60, %v2246_v30 }
  0xec   :  { %v2250_v37 = vadd.f32 %v3364_v54, %v2248_v61 }
  0xee   :  { %v2252_v17 = vadd.f32 %v3367_v3, %v2250_v37 }
  0xf0   :  { %v2254_v32 = vadd.f32 %v3370_v56, %v2252_v17 }
  0xf2   :  { %v2256_v58 = vadd.f32 %v3373_v48, %v2254_v32 }
  0xf4   :  { %v2258_v50 = vadd.f32 %v3376_v43, %v2256_v58 }
  0xf6   :  { %v2260_v21 = vadd.f32 %v3379_v57, %v2258_v50 }
  0xf8   :  { %v2262_v18 = vadd.f32 %v3382_v46, %v2260_v21 }
  0xfa   :  { %v2264_v4 = vadd.f32 %v3385_v62, %v2262_v18 }
  0xfc   :  { %v2266_v39 = vadd.f32 %v3388_v19, %v2264_v4 }
  0xfe   :  { %v2268_v60 = vadd.f32 %v3391_v51, %v2266_v39 }
 0x100   :  { %v2270_v54 = vadd.f32 %v3394_v47, %v2268_v60 }
 0x102   :  { %v2272_v3 = vadd.f32 %v3397_v34, %v2270_v54 }
 0x104   :  { %v2274_v56 = vadd.f32 %v3400_v2, %v2272_v3 }
 0x106   :  { %v2276_v48 = vadd.f32 %v3407_v41, %v2274_v56 }
 0x108   :  { %v2278_v43 = vadd.f32 %v3736_v13, %v2276_v48 }
 0x10a   :  { %v2280_v57 = vadd.f32 %v3737_v20, %v2278_v43 }
 0x10c   :  { %2281 = vadd.xlane.f32.xlu0 %v2280_v57 }
 0x199   :  { %v2282_v46 = vpop.xlane.xlu0 %2281 }
 0x19a   :  { %2284 = vst.msk [vmem:[%s3534_s4] sm:$0x3] %vm2283_vm1, %v2282_v46 }

</bundles_post_ra>
